<compile_context>
chip_gen: v7x
topology: tpu7x:2x2x1
jax: 0.10.0
libtpu: 0.0.40
codegen_flags: <defaults>
</compile_context>

<pallas_src>
import math

import jax
import jax.numpy as jnp
from jax.experimental import pallas as pl

D_MODEL = 32
N_HEADS = 4
D_FF = 64
N_LAYERS = 2
LN_EPS = 1e-5


def _round_up(x, m):
    return (x + m - 1) // m * m


# ----------------------------- host-side parameter packing --------------------------------

def pack_params(params):
    """Pack every parameter leaf into one lane-dense [rows, 128] f32 slab.

    Returns (slab, index): `index` mirrors the params pytree with static
    (row_offset, rows, cols) tuples at the leaves.  Every leaf starts on an
    8-row (sublane-tile) boundary so all in-kernel reads are tile-aligned.
    """
    leaves, treedef = jax.tree_util.tree_flatten(params)
    blocks, entries, off = [], [], 0
    for leaf in leaves:
        a = jnp.asarray(leaf, jnp.float32)
        if a.ndim == 1:
            a = a[None, :]
        assert a.ndim == 2 and a.shape[1] <= 128, a.shape
        r, c = a.shape
        rp = _round_up(r, 8)
        blocks.append(jnp.zeros((rp, 128), jnp.float32).at[:r, :c].set(a))
        entries.append((off, r, c))
        off += rp
    slab = jnp.concatenate(blocks, axis=0)
    index = jax.tree_util.tree_unflatten(treedef, entries)
    return slab, index


# ----------------------------- in-kernel slab readers --------------------------------------

def _read(slab_ref, entry):
    """Load a whole packed leaf: [rows, cols] (vectors come back as [1, cols])."""
    off, r, c = entry
    return slab_ref[off:off + r, :c]


def _proj_w(slab_ref, entry, j, d):
    """Column block j (q/k/v/o) of a packed [d, 4d] attention weight leaf."""
    off, r, _ = entry
    return slab_ref[off:off + r, j * d:(j + 1) * d]


def _proj_b(slab_ref, entry, j, d):
    off, _, _ = entry
    return slab_ref[off:off + 1, j * d:(j + 1) * d]


# ----------------------------- in-kernel building blocks -----------------------------------

def _layer_norm(x, g, b):
    """LayerNorm over the last axis. x: [N, D]; g/b: [1, D]."""
    mu = jnp.mean(x, axis=-1, keepdims=True)
    var = jnp.mean((x - mu) ** 2, axis=-1, keepdims=True)
    return (x - mu) * jax.lax.rsqrt(var + LN_EPS) * g + b


def _ffn(slab_ref, fp, x):
    """Two-layer ReLU MLP on [N, D] rows."""
    h = jnp.dot(x, _read(slab_ref, fp["w1"]), preferred_element_type=jnp.float32)
    h = jnp.maximum(h + _read(slab_ref, fp["b1"]), 0.0)
    return (jnp.dot(h, _read(slab_ref, fp["w2"]), preferred_element_type=jnp.float32)
            + _read(slab_ref, fp["b2"]))


def _mha(slab_ref, ap, q_in, k_in, v_in, batch, n_heads):
    """Multi-head attention on batch-folded 2-D rows.

    q_in: [B*Lq, D]; k_in/v_in: [B*Lk, D].
    Returns (out [B*Lq, D], head-averaged attention probs [B*Lq, Lk]).
    """
    nq, d = q_in.shape
    nk = k_in.shape[0]
    lq, lk, dh = nq // batch, nk // batch, d // n_heads

    # Separate lane-dense projections (one MXU push each, K = D = 32).
    q = jnp.dot(q_in, _proj_w(slab_ref, ap["w"], 0, d),
                preferred_element_type=jnp.float32) + _proj_b(slab_ref, ap["b"], 0, d)
    k = jnp.dot(k_in, _proj_w(slab_ref, ap["w"], 1, d),
                preferred_element_type=jnp.float32) + _proj_b(slab_ref, ap["b"], 1, d)
    v = jnp.dot(v_in, _proj_w(slab_ref, ap["w"], 2, d),
                preferred_element_type=jnp.float32) + _proj_b(slab_ref, ap["b"], 2, d)
    q = q * (1.0 / math.sqrt(dh))                       # scale folded into q once (hoisted)

    q3 = q.reshape(batch, lq, d)                        # leading-dim split only (tile aligned)
    k3 = k.reshape(batch, lk, d)
    v3 = v.reshape(batch, lk, d)
    wo = _proj_w(slab_ref, ap["w"], 3, d)               # [D, D], loaded once
    bo = _proj_b(slab_ref, ap["b"], 3, d)

    out = None      # accumulated output-projection contributions [B*Lq, D]
    w_sum = None    # accumulated attention probabilities [B, Lq, Lk] (head average)
    for h in range(n_heads):                            # heads are independent; LLO interleaves
        sl = slice(h * dh, (h + 1) * dh)
        s = jnp.einsum("bqd,bkd->bqk", q3[:, :, sl], k3[:, :, sl],
                       preferred_element_type=jnp.float32)
        s = s - jnp.max(s, axis=-1, keepdims=True)
        e = jnp.exp(s)
        prob = e / jnp.sum(e, axis=-1, keepdims=True)   # exact divide: probs are returned
        oh = jnp.einsum("bqk,bkd->bqd", prob, v3[:, :, sl],
                        preferred_element_type=jnp.float32)
        contrib = jnp.dot(oh.reshape(nq, dh), wo[sl, :], preferred_element_type=jnp.float32)
        out = contrib if out is None else out + contrib
        w_sum = prob if w_sum is None else w_sum + prob

    out = out + bo
    return out, (w_sum * (1.0 / n_heads)).reshape(nq, lk)


def _decoder_layer(slab_ref, lp, tgt, query_pos, memory, memory_kpos, batch, n_heads):
    """DETR-style post-norm decoder layer on batch-folded 2-D rows."""
    q = tgt + query_pos
    sa_out, sa_w = _mha(slab_ref, lp["sa"], q, q, tgt, batch, n_heads)
    tgt = _layer_norm(tgt + sa_out, _read(slab_ref, lp["ln1_g"]), _read(slab_ref, lp["ln1_b"]))
    ca_out, ca_w = _mha(slab_ref, lp["ca"], tgt + query_pos, memory_kpos, memory, batch, n_heads)
    tgt = _layer_norm(tgt + ca_out, _read(slab_ref, lp["ln2_g"]), _read(slab_ref, lp["ln2_b"]))
    tgt = _layer_norm(tgt + _ffn(slab_ref, lp["ffn"], tgt),
                      _read(slab_ref, lp["ln3_g"]), _read(slab_ref, lp["ln3_b"]))
    return tgt, ca_w, sa_w


# ----------------------------- fused forward (single pallas_call, no grid) -----------------

def twin_tower_decoder_fwd(slab, index, video_features, diagram_features, positional_query,
                           video_positional_encoding, diagram_positional_encoding,
                           n_layers=N_LAYERS, n_heads=N_HEADS):
    B, LV, D = video_features.shape
    LQ = diagram_features.shape[1]
    assert D % n_heads == 0
    BLQ = B * LQ

    # lane layout of the packed output slab (per layer, per query row)
    o_out, o_ca, o_sa, o_co = 0, D, D + LV, D + LV + LQ
    payload = 2 * D + LV + LQ
    out_lanes = _round_up(payload, 128)

    def kernel(vf_ref, df_ref, pq_ref, vpe_ref, dpe_ref, slab_ref, out_ref):
        out_ref[...] = jnp.zeros(out_ref.shape, jnp.float32)   # deterministic pad lanes

        vf = vf_ref[...]                         # [B*LV, D]  (cross-attn values)
        mem_kpos = vf + vpe_ref[...]             # hoisted: shared by every cross-attention
        dpe = dpe_ref[...]                       # [B*LQ, D]
        norm_g = _read(slab_ref, index["norm_g"])
        norm_b = _read(slab_ref, index["norm_b"])
        cnorm_g = _read(slab_ref, index["content_norm_g"])
        cnorm_b = _read(slab_ref, index["content_norm_b"])

        output = pq_ref[...]                     # positional tower state [B*LQ, D]
        content = df_ref[...]                    # content tower state    [B*LQ, D]

        for l in range(n_layers):                # per-layer, non-shared weights
            output, ca_w, sa_w = _decoder_layer(
                slab_ref, index["layers"][l], output, dpe, vf, mem_kpos, B, n_heads)
            out_ref[l, :, o_out:o_out + D] = _layer_norm(output, norm_g, norm_b)
            out_ref[l, :, o_ca:o_ca + LV] = ca_w
            out_ref[l, :, o_sa:o_sa + LQ] = sa_w
            # content tower: the updated positional output feeds its query positional term
            content, _, _ = _decoder_layer(
                slab_ref, index["content_layers"][l], content, output + dpe, vf, mem_kpos,
                B, n_heads)
            out_ref[l, :, o_co:o_co + D] = _layer_norm(content, cnorm_g, cnorm_b)

    out_slab = pl.pallas_call(
        kernel,
        out_shape=jax.ShapeDtypeStruct((n_layers, BLQ, out_lanes), jnp.float32),
    )(video_features.reshape(B * LV, D),
      diagram_features.reshape(BLQ, D),
      positional_query.reshape(BLQ, D),
      video_positional_encoding.reshape(B * LV, D),
      diagram_positional_encoding.reshape(BLQ, D),
      slab)

    return dict(
        output=out_slab[:, :, o_out:o_out + D].reshape(n_layers, B, LQ, D),
        ca_weight=out_slab[:, :, o_ca:o_ca + LV].reshape(n_layers, B, LQ, LV),
        sa_weight=out_slab[:, :, o_sa:o_sa + LQ].reshape(n_layers, B, LQ, LQ),
        content_output=out_slab[:, :, o_co:o_co + D].reshape(n_layers, B, LQ, D))


# ----------------------------- parameter init ---------------------------------------------

def _init_attn(key, d):
    s = 0.02
    # q | k | v | o projection weights packed side-by-side into one [d, 4d] (= [32, 128]) leaf
    return dict(w=s * jax.random.normal(key, (d, 4 * d), jnp.float32),
                b=jnp.zeros((1, 4 * d), jnp.float32))


def _init_layer(key, d, dff):
    ks = jax.random.split(key, 4)
    s = 0.02
    return dict(
        sa=_init_attn(ks[0], d),
        ca=_init_attn(ks[1], d),
        ffn=dict(w1=s * jax.random.normal(ks[2], (d, dff), jnp.float32),
                 b1=jnp.zeros((1, dff), jnp.float32),
                 w2=s * jax.random.normal(ks[3], (dff, d), jnp.float32),
                 b2=jnp.zeros((1, d), jnp.float32)),
        ln1_g=jnp.ones((1, d), jnp.float32), ln1_b=jnp.zeros((1, d), jnp.float32),
        ln2_g=jnp.ones((1, d), jnp.float32), ln2_b=jnp.zeros((1, d), jnp.float32),
        ln3_g=jnp.ones((1, d), jnp.float32), ln3_b=jnp.zeros((1, d), jnp.float32))


def init_params(key, d=D_MODEL, dff=D_FF, n_layers=N_LAYERS):
    ks = jax.random.split(key, 2 * n_layers)
    return dict(
        layers=[_init_layer(ks[i], d, dff) for i in range(n_layers)],
        content_layers=[_init_layer(ks[n_layers + i], d, dff) for i in range(n_layers)],
        norm_g=jnp.ones((1, d), jnp.float32), norm_b=jnp.zeros((1, d), jnp.float32),
        content_norm_g=jnp.ones((1, d), jnp.float32),
        content_norm_b=jnp.zeros((1, d), jnp.float32))


# ----------------------------- main --------------------------------------------------------

if __name__ == "__main__":
    B, LQ, LV, D = 2, 8, 16, D_MODEL
    root = jax.random.PRNGKey(0)
    kp, k1, k2, k3, k4, k5 = jax.random.split(root, 6)

    params = init_params(kp)
    slab, index = pack_params(params)   # one lane-dense weight slab + static offsets

    video_features = jax.random.normal(k1, (B, LV, D), jnp.float32)
    diagram_features = jax.random.normal(k2, (B, LQ, D), jnp.float32)
    positional_query = jax.random.normal(k3, (B, LQ, D), jnp.float32)
    video_positional_encoding = jax.random.normal(k4, (B, LV, D), jnp.float32)
    diagram_positional_encoding = jax.random.normal(k5, (B, LQ, D), jnp.float32)

    fwd = jax.jit(lambda w, vf, df, pq, vpe, dpe: twin_tower_decoder_fwd(
        w, index, vf, df, pq, vpe, dpe, n_layers=N_LAYERS, n_heads=N_HEADS))
    out = fwd(slab, video_features, diagram_features, positional_query,
              video_positional_encoding, diagram_positional_encoding)
    out = jax.block_until_ready(out)

    assert out["output"].shape == (N_LAYERS, B, LQ, D)
    assert out["ca_weight"].shape == (N_LAYERS, B, LQ, LV)
    assert out["sa_weight"].shape == (N_LAYERS, B, LQ, LQ)
    assert out["content_output"].shape == (N_LAYERS, B, LQ, D)
    assert all(bool(jnp.all(jnp.isfinite(v))) for v in out.values())
    # exact softmax divide in-kernel -> returned attention weights are row-normalized
    assert bool(jnp.allclose(jnp.sum(out["ca_weight"], -1), 1.0, atol=1e-4))
    assert bool(jnp.allclose(jnp.sum(out["sa_weight"], -1), 1.0, atol=1e-4))
    print("KERNEL_OK")
</pallas_src>

<mosaic_0001>
module attributes {stable_mosaic.version = 11 : i64} {
  func.func @kernel(%arg0: memref<32x32xf32, #tpu.memory_space<vmem>>, %arg1: memref<16x32xf32, #tpu.memory_space<vmem>>, %arg2: memref<16x32xf32, #tpu.memory_space<vmem>>, %arg3: memref<32x32xf32, #tpu.memory_space<vmem>>, %arg4: memref<16x32xf32, #tpu.memory_space<vmem>>, %arg5: memref<992x128xf32, #tpu.memory_space<vmem>>, %arg6: memref<2x16x128xf32, #tpu.memory_space<vmem>>) attributes {dimension_semantics = [], scalar_prefetch = 0 : i64, scratch_operands = 0 : i64, tpu.core_type = #tpu.core_type<tc>} {
    %cst = arith.constant 0.000000e+00 : f32
    %0 = vector.broadcast %cst : f32 to vector<2x16x128xf32>
    %c0 = arith.constant 0 : index
    %c0_0 = arith.constant 0 : index
    %c0_1 = arith.constant 0 : index
    %1 = vector.load %arg6[%c0, %c0_0, %c0_1] : memref<2x16x128xf32, #tpu.memory_space<vmem>>, vector<2x16x128xf32>
    tpu.vector_store %arg6[%c0, %c0_0, %c0_1], %0 {strides = array<i32>} : memref<2x16x128xf32, #tpu.memory_space<vmem>>, vector<2x16x128xf32>,
    %c0_2 = arith.constant 0 : index
    %c0_3 = arith.constant 0 : index
    %2 = vector.load %arg0[%c0_2, %c0_3] : memref<32x32xf32, #tpu.memory_space<vmem>>, vector<32x32xf32>
    %c0_4 = arith.constant 0 : index
    %c0_5 = arith.constant 0 : index
    %3 = vector.load %arg3[%c0_4, %c0_5] : memref<32x32xf32, #tpu.memory_space<vmem>>, vector<32x32xf32>
    %4 = arith.addf %2, %3 : vector<32x32xf32>
    %c0_6 = arith.constant 0 : index
    %c0_7 = arith.constant 0 : index
    %5 = vector.load %arg4[%c0_6, %c0_7] : memref<16x32xf32, #tpu.memory_space<vmem>>, vector<16x32xf32>
    %c984 = arith.constant 984 : index
    %c0_8 = arith.constant 0 : index
    %6 = vector.load %arg5[%c984, %c0_8] : memref<992x128xf32, #tpu.memory_space<vmem>>, vector<1x32xf32>
    %c976 = arith.constant 976 : index
    %c0_9 = arith.constant 0 : index
    %7 = vector.load %arg5[%c976, %c0_9] : memref<992x128xf32, #tpu.memory_space<vmem>>, vector<1x32xf32>
    %c488 = arith.constant 488 : index
    %c0_10 = arith.constant 0 : index
    %8 = vector.load %arg5[%c488, %c0_10] : memref<992x128xf32, #tpu.memory_space<vmem>>, vector<1x32xf32>
    %c480 = arith.constant 480 : index
    %c0_11 = arith.constant 0 : index
    %9 = vector.load %arg5[%c480, %c0_11] : memref<992x128xf32, #tpu.memory_space<vmem>>, vector<1x32xf32>
    %c0_12 = arith.constant 0 : index
    %c0_13 = arith.constant 0 : index
    %10 = vector.load %arg2[%c0_12, %c0_13] : memref<16x32xf32, #tpu.memory_space<vmem>>, vector<16x32xf32>
    %c0_14 = arith.constant 0 : index
    %c0_15 = arith.constant 0 : index
    %11 = vector.load %arg1[%c0_14, %c0_15] : memref<16x32xf32, #tpu.memory_space<vmem>>, vector<16x32xf32>
    %12 = arith.addf %10, %5 : vector<16x32xf32>
    %c704 = arith.constant 704 : index
    %c0_16 = arith.constant 0 : index
    %13 = vector.load %arg5[%c704, %c0_16] : memref<992x128xf32, #tpu.memory_space<vmem>>, vector<32x32xf32>
    %cst_17 = arith.constant dense<0.000000e+00> : vector<16x32xf32>
    %14 = tpu.matmul %12, %13, %cst_17 {dimension_numbers = #tpu.dot_dimension_numbers<[1], [0], [0], [1], [0, 0, 1, 1], [], []>} : vector<16x32xf32>, vector<32x32xf32>, vector<16x32xf32> -> vector<16x32xf32>
    %c696 = arith.constant 696 : index
    %c0_18 = arith.constant 0 : index
    %15 = vector.load %arg5[%c696, %c0_18] : memref<992x128xf32, #tpu.memory_space<vmem>>, vector<1x32xf32>
    %16 = vector.broadcast %15 : vector<1x32xf32> to vector<16x32xf32>
    %17 = arith.addf %14, %16 : vector<16x32xf32>
    %c704_19 = arith.constant 704 : index
    %c32 = arith.constant 32 : index
    %18 = vector.load %arg5[%c704_19, %c32] : memref<992x128xf32, #tpu.memory_space<vmem>>, vector<32x32xf32>
    %cst_20 = arith.constant dense<0.000000e+00> : vector<16x32xf32>
    %19 = tpu.matmul %12, %18, %cst_20 {dimension_numbers = #tpu.dot_dimension_numbers<[1], [0], [0], [1], [0, 0, 1, 1], [], []>} : vector<16x32xf32>, vector<32x32xf32>, vector<16x32xf32> -> vector<16x32xf32>
    %c696_21 = arith.constant 696 : index
    %c32_22 = arith.constant 32 : index
    %20 = vector.load %arg5[%c696_21, %c32_22] : memref<992x128xf32, #tpu.memory_space<vmem>>, vector<1x32xf32>
    %21 = vector.broadcast %20 : vector<1x32xf32> to vector<16x32xf32>
    %22 = arith.addf %19, %21 : vector<16x32xf32>
    %c704_23 = arith.constant 704 : index
    %c64 = arith.constant 64 : index
    %23 = vector.load %arg5[%c704_23, %c64] : memref<992x128xf32, #tpu.memory_space<vmem>>, vector<32x32xf32>
    %cst_24 = arith.constant dense<0.000000e+00> : vector<16x32xf32>
    %24 = tpu.matmul %10, %23, %cst_24 {dimension_numbers = #tpu.dot_dimension_numbers<[1], [0], [0], [1], [0, 0, 1, 1], [], []>} : vector<16x32xf32>, vector<32x32xf32>, vector<16x32xf32> -> vector<16x32xf32>
    %c696_25 = arith.constant 696 : index
    %c64_26 = arith.constant 64 : index
    %25 = vector.load %arg5[%c696_25, %c64_26] : memref<992x128xf32, #tpu.memory_space<vmem>>, vector<1x32xf32>
    %26 = vector.broadcast %25 : vector<1x32xf32> to vector<16x32xf32>
    %27 = arith.addf %24, %26 : vector<16x32xf32>
    %cst_27 = arith.constant 0.353553385 : f32
    %28 = vector.broadcast %cst_27 : f32 to vector<16x32xf32>
    %29 = arith.mulf %17, %28 : vector<16x32xf32>
    %30 = vector.shape_cast %29 : vector<16x32xf32> to vector<2x8x32xf32>
    %31 = vector.shape_cast %22 : vector<16x32xf32> to vector<2x8x32xf32>
    %32 = vector.shape_cast %27 : vector<16x32xf32> to vector<2x8x32xf32>
    %c704_28 = arith.constant 704 : index
    %c96 = arith.constant 96 : index
    %33 = vector.load %arg5[%c704_28, %c96] : memref<992x128xf32, #tpu.memory_space<vmem>>, vector<32x32xf32>
    %c696_29 = arith.constant 696 : index
    %c96_30 = arith.constant 96 : index
    %34 = vector.load %arg5[%c696_29, %c96_30] : memref<992x128xf32, #tpu.memory_space<vmem>>, vector<1x32xf32>
    %35 = vector.extract_strided_slice %30 {offsets = [0, 0, 0], sizes = [2, 8, 8], strides = [1, 1, 1]} : vector<2x8x32xf32> to vector<2x8x8xf32>
    %36 = vector.extract_strided_slice %31 {offsets = [0, 0, 0], sizes = [2, 8, 8], strides = [1, 1, 1]} : vector<2x8x32xf32> to vector<2x8x8xf32>
    "tpu.trace_start"() <{level = 10 : i32, message = "bqd,bkd->bqk"}> : () -> ()
    %cst_31 = arith.constant dense<0.000000e+00> : vector<2x8x8xf32>
    %37 = tpu.matmul %35, %36, %cst_31 {dimension_numbers = #tpu.dot_dimension_numbers<[2], [2], [1], [1], [0, 0, 0, 1, 1, 1], [0], [0]>} : vector<2x8x8xf32>, vector<2x8x8xf32>, vector<2x8x8xf32> -> vector<2x8x8xf32>
    "tpu.trace_stop"() : () -> ()
    %cst_32 = arith.constant dense<0xFF800000> : vector<2x8xf32>
    %38 = vector.multi_reduction <maximumf>, %37, %cst_32 [2] : vector<2x8x8xf32> to vector<2x8xf32>
    %39 = vector.shape_cast %38 : vector<2x8xf32> to vector<2x8x1xf32>
    %40 = vector.broadcast %39 : vector<2x8x1xf32> to vector<2x8x8xf32>
    %41 = arith.subf %37, %40 : vector<2x8x8xf32>
    %42 = math.exp %41 : vector<2x8x8xf32>
    %cst_33 = arith.constant dense<0.000000e+00> : vector<2x8xf32>
    %43 = vector.multi_reduction <add>, %42, %cst_33 [2] : vector<2x8x8xf32> to vector<2x8xf32>
    %44 = vector.shape_cast %43 : vector<2x8xf32> to vector<2x8x1xf32>
    %45 = vector.broadcast %44 : vector<2x8x1xf32> to vector<2x8x8xf32>
    %46 = arith.divf %42, %45 : vector<2x8x8xf32>
    %47 = vector.extract_strided_slice %32 {offsets = [0, 0, 0], sizes = [2, 8, 8], strides = [1, 1, 1]} : vector<2x8x32xf32> to vector<2x8x8xf32>
    "tpu.trace_start"() <{level = 10 : i32, message = "bqk,bkd->bqd"}> : () -> ()
    %cst_34 = arith.constant dense<0.000000e+00> : vector<2x8x8xf32>
    %48 = tpu.matmul %46, %47, %cst_34 {dimension_numbers = #tpu.dot_dimension_numbers<[2], [1], [1], [2], [0, 0, 0, 1, 1, 2], [0], [0]>} : vector<2x8x8xf32>, vector<2x8x8xf32>, vector<2x8x8xf32> -> vector<2x8x8xf32>
    "tpu.trace_stop"() : () -> ()
    %49 = vector.shape_cast %48 : vector<2x8x8xf32> to vector<16x8xf32>
    %50 = vector.extract_strided_slice %33 {offsets = [0, 0], sizes = [8, 32], strides = [1, 1]} : vector<32x32xf32> to vector<8x32xf32>
    %cst_35 = arith.constant dense<0.000000e+00> : vector<16x32xf32>
    %51 = tpu.matmul %49, %50, %cst_35 {dimension_numbers = #tpu.dot_dimension_numbers<[1], [0], [0], [1], [0, 0, 1, 1], [], []>} : vector<16x8xf32>, vector<8x32xf32>, vector<16x32xf32> -> vector<16x32xf32>
    %52 = vector.extract_strided_slice %30 {offsets = [0, 0, 8], sizes = [2, 8, 8], strides = [1, 1, 1]} : vector<2x8x32xf32> to vector<2x8x8xf32>
    %53 = vector.extract_strided_slice %31 {offsets = [0, 0, 8], sizes = [2, 8, 8], strides = [1, 1, 1]} : vector<2x8x32xf32> to vector<2x8x8xf32>
    "tpu.trace_start"() <{level = 10 : i32, message = "bqd,bkd->bqk"}> : () -> ()
    %cst_36 = arith.constant dense<0.000000e+00> : vector<2x8x8xf32>
    %54 = tpu.matmul %52, %53, %cst_36 {dimension_numbers = #tpu.dot_dimension_numbers<[2], [2], [1], [1], [0, 0, 0, 1, 1, 1], [0], [0]>} : vector<2x8x8xf32>, vector<2x8x8xf32>, vector<2x8x8xf32> -> vector<2x8x8xf32>
    "tpu.trace_stop"() : () -> ()
    %cst_37 = arith.constant dense<0xFF800000> : vector<2x8xf32>
    %55 = vector.multi_reduction <maximumf>, %54, %cst_37 [2] : vector<2x8x8xf32> to vector<2x8xf32>
    %56 = vector.shape_cast %55 : vector<2x8xf32> to vector<2x8x1xf32>
    %57 = vector.broadcast %56 : vector<2x8x1xf32> to vector<2x8x8xf32>
    %58 = arith.subf %54, %57 : vector<2x8x8xf32>
    %59 = math.exp %58 : vector<2x8x8xf32>
    %cst_38 = arith.constant dense<0.000000e+00> : vector<2x8xf32>
    %60 = vector.multi_reduction <add>, %59, %cst_38 [2] : vector<2x8x8xf32> to vector<2x8xf32>
    %61 = vector.shape_cast %60 : vector<2x8xf32> to vector<2x8x1xf32>
    %62 = vector.broadcast %61 : vector<2x8x1xf32> to vector<2x8x8xf32>
    %63 = arith.divf %59, %62 : vector<2x8x8xf32>
    %64 = vector.extract_strided_slice %32 {offsets = [0, 0, 8], sizes = [2, 8, 8], strides = [1, 1, 1]} : vector<2x8x32xf32> to vector<2x8x8xf32>
    "tpu.trace_start"() <{level = 10 : i32, message = "bqk,bkd->bqd"}> : () -> ()
    %cst_39 = arith.constant dense<0.000000e+00> : vector<2x8x8xf32>
    %65 = tpu.matmul %63, %64, %cst_39 {dimension_numbers = #tpu.dot_dimension_numbers<[2], [1], [1], [2], [0, 0, 0, 1, 1, 2], [0], [0]>} : vector<2x8x8xf32>, vector<2x8x8xf32>, vector<2x8x8xf32> -> vector<2x8x8xf32>
    "tpu.trace_stop"() : () -> ()
    %66 = vector.shape_cast %65 : vector<2x8x8xf32> to vector<16x8xf32>
    %67 = vector.extract_strided_slice %33 {offsets = [8, 0], sizes = [8, 32], strides = [1, 1]} : vector<32x32xf32> to vector<8x32xf32>
    %cst_40 = arith.constant dense<0.000000e+00> : vector<16x32xf32>
    %68 = tpu.matmul %66, %67, %cst_40 {dimension_numbers = #tpu.dot_dimension_numbers<[1], [0], [0], [1], [0, 0, 1, 1], [], []>} : vector<16x8xf32>, vector<8x32xf32>, vector<16x32xf32> -> vector<16x32xf32>
    %69 = arith.addf %51, %68 : vector<16x32xf32>
    %70 = arith.addf %46, %63 : vector<2x8x8xf32>
    %71 = vector.extract_strided_slice %30 {offsets = [0, 0, 16], sizes = [2, 8, 8], strides = [1, 1, 1]} : vector<2x8x32xf32> to vector<2x8x8xf32>
    %72 = vector.extract_strided_slice %31 {offsets = [0, 0, 16], sizes = [2, 8, 8], strides = [1, 1, 1]} : vector<2x8x32xf32> to vector<2x8x8xf32>
    "tpu.trace_start"() <{level = 10 : i32, message = "bqd,bkd->bqk"}> : () -> ()
    %cst_41 = arith.constant dense<0.000000e+00> : vector<2x8x8xf32>
    %73 = tpu.matmul %71, %72, %cst_41 {dimension_numbers = #tpu.dot_dimension_numbers<[2], [2], [1], [1], [0, 0, 0, 1, 1, 1], [0], [0]>} : vector<2x8x8xf32>, vector<2x8x8xf32>, vector<2x8x8xf32> -> vector<2x8x8xf32>
    "tpu.trace_stop"() : () -> ()
    %cst_42 = arith.constant dense<0xFF800000> : vector<2x8xf32>
    %74 = vector.multi_reduction <maximumf>, %73, %cst_42 [2] : vector<2x8x8xf32> to vector<2x8xf32>
    %75 = vector.shape_cast %74 : vector<2x8xf32> to vector<2x8x1xf32>
    %76 = vector.broadcast %75 : vector<2x8x1xf32> to vector<2x8x8xf32>
    %77 = arith.subf %73, %76 : vector<2x8x8xf32>
    %78 = math.exp %77 : vector<2x8x8xf32>
    %cst_43 = arith.constant dense<0.000000e+00> : vector<2x8xf32>
    %79 = vector.multi_reduction <add>, %78, %cst_43 [2] : vector<2x8x8xf32> to vector<2x8xf32>
    %80 = vector.shape_cast %79 : vector<2x8xf32> to vector<2x8x1xf32>
    %81 = vector.broadcast %80 : vector<2x8x1xf32> to vector<2x8x8xf32>
    %82 = arith.divf %78, %81 : vector<2x8x8xf32>
    %83 = vector.extract_strided_slice %32 {offsets = [0, 0, 16], sizes = [2, 8, 8], strides = [1, 1, 1]} : vector<2x8x32xf32> to vector<2x8x8xf32>
    "tpu.trace_start"() <{level = 10 : i32, message = "bqk,bkd->bqd"}> : () -> ()
    %cst_44 = arith.constant dense<0.000000e+00> : vector<2x8x8xf32>
    %84 = tpu.matmul %82, %83, %cst_44 {dimension_numbers = #tpu.dot_dimension_numbers<[2], [1], [1], [2], [0, 0, 0, 1, 1, 2], [0], [0]>} : vector<2x8x8xf32>, vector<2x8x8xf32>, vector<2x8x8xf32> -> vector<2x8x8xf32>
    "tpu.trace_stop"() : () -> ()
    %85 = vector.shape_cast %84 : vector<2x8x8xf32> to vector<16x8xf32>
    %86 = vector.extract_strided_slice %33 {offsets = [16, 0], sizes = [8, 32], strides = [1, 1]} : vector<32x32xf32> to vector<8x32xf32>
    %cst_45 = arith.constant dense<0.000000e+00> : vector<16x32xf32>
    %87 = tpu.matmul %85, %86, %cst_45 {dimension_numbers = #tpu.dot_dimension_numbers<[1], [0], [0], [1], [0, 0, 1, 1], [], []>} : vector<16x8xf32>, vector<8x32xf32>, vector<16x32xf32> -> vector<16x32xf32>
    %88 = arith.addf %69, %87 : vector<16x32xf32>
    %89 = arith.addf %70, %82 : vector<2x8x8xf32>
    %90 = vector.extract_strided_slice %30 {offsets = [0, 0, 24], sizes = [2, 8, 8], strides = [1, 1, 1]} : vector<2x8x32xf32> to vector<2x8x8xf32>
    %91 = vector.extract_strided_slice %31 {offsets = [0, 0, 24], sizes = [2, 8, 8], strides = [1, 1, 1]} : vector<2x8x32xf32> to vector<2x8x8xf32>
    "tpu.trace_start"() <{level = 10 : i32, message = "bqd,bkd->bqk"}> : () -> ()
    %cst_46 = arith.constant dense<0.000000e+00> : vector<2x8x8xf32>
    %92 = tpu.matmul %90, %91, %cst_46 {dimension_numbers = #tpu.dot_dimension_numbers<[2], [2], [1], [1], [0, 0, 0, 1, 1, 1], [0], [0]>} : vector<2x8x8xf32>, vector<2x8x8xf32>, vector<2x8x8xf32> -> vector<2x8x8xf32>
    "tpu.trace_stop"() : () -> ()
    %cst_47 = arith.constant dense<0xFF800000> : vector<2x8xf32>
    %93 = vector.multi_reduction <maximumf>, %92, %cst_47 [2] : vector<2x8x8xf32> to vector<2x8xf32>
    %94 = vector.shape_cast %93 : vector<2x8xf32> to vector<2x8x1xf32>
    %95 = vector.broadcast %94 : vector<2x8x1xf32> to vector<2x8x8xf32>
    %96 = arith.subf %92, %95 : vector<2x8x8xf32>
    %97 = math.exp %96 : vector<2x8x8xf32>
    %cst_48 = arith.constant dense<0.000000e+00> : vector<2x8xf32>
    %98 = vector.multi_reduction <add>, %97, %cst_48 [2] : vector<2x8x8xf32> to vector<2x8xf32>
    %99 = vector.shape_cast %98 : vector<2x8xf32> to vector<2x8x1xf32>
    %100 = vector.broadcast %99 : vector<2x8x1xf32> to vector<2x8x8xf32>
    %101 = arith.divf %97, %100 : vector<2x8x8xf32>
    %102 = vector.extract_strided_slice %32 {offsets = [0, 0, 24], sizes = [2, 8, 8], strides = [1, 1, 1]} : vector<2x8x32xf32> to vector<2x8x8xf32>
    "tpu.trace_start"() <{level = 10 : i32, message = "bqk,bkd->bqd"}> : () -> ()
    %cst_49 = arith.constant dense<0.000000e+00> : vector<2x8x8xf32>
    %103 = tpu.matmul %101, %102, %cst_49 {dimension_numbers = #tpu.dot_dimension_numbers<[2], [1], [1], [2], [0, 0, 0, 1, 1, 2], [0], [0]>} : vector<2x8x8xf32>, vector<2x8x8xf32>, vector<2x8x8xf32> -> vector<2x8x8xf32>
    "tpu.trace_stop"() : () -> ()
    %104 = vector.shape_cast %103 : vector<2x8x8xf32> to vector<16x8xf32>
    %105 = vector.extract_strided_slice %33 {offsets = [24, 0], sizes = [8, 32], strides = [1, 1]} : vector<32x32xf32> to vector<8x32xf32>
    %cst_50 = arith.constant dense<0.000000e+00> : vector<16x32xf32>
    %106 = tpu.matmul %104, %105, %cst_50 {dimension_numbers = #tpu.dot_dimension_numbers<[1], [0], [0], [1], [0, 0, 1, 1], [], []>} : vector<16x8xf32>, vector<8x32xf32>, vector<16x32xf32> -> vector<16x32xf32>
    %107 = arith.addf %88, %106 : vector<16x32xf32>
    %108 = arith.addf %89, %101 : vector<2x8x8xf32>
    %109 = vector.broadcast %34 : vector<1x32xf32> to vector<16x32xf32>
    %110 = arith.addf %107, %109 : vector<16x32xf32>
    %cst_51 = arith.constant 2.500000e-01 : f32
    %111 = vector.broadcast %cst_51 : f32 to vector<2x8x8xf32>
    %112 = arith.mulf %108, %111 : vector<2x8x8xf32>
    %113 = vector.shape_cast %112 : vector<2x8x8xf32> to vector<16x8xf32>
    %114 = arith.addf %10, %110 : vector<16x32xf32>
    %c656 = arith.constant 656 : index
    %c0_52 = arith.constant 0 : index
    %115 = vector.load %arg5[%c656, %c0_52] : memref<992x128xf32, #tpu.memory_space<vmem>>, vector<1x32xf32>
    %c648 = arith.constant 648 : index
    %c0_53 = arith.constant 0 : index
    %116 = vector.load %arg5[%c648, %c0_53] : memref<992x128xf32, #tpu.memory_space<vmem>>, vector<1x32xf32>
    %cst_54 = arith.constant dense<0.000000e+00> : vector<16xf32>
    %117 = vector.multi_reduction <add>, %114, %cst_54 [1] : vector<16x32xf32> to vector<16xf32>
    %118 = vector.shape_cast %117 : vector<16xf32> to vector<16x1xf32>
    %cst_55 = arith.constant 3.200000e+01 : f32
    %119 = vector.broadcast %cst_55 : f32 to vector<16x1xf32>
    %120 = arith.divf %118, %119 : vector<16x1xf32>
    %121 = vector.broadcast %120 : vector<16x1xf32> to vector<16x32xf32>
    %122 = arith.subf %114, %121 : vector<16x32xf32>
    %123 = arith.mulf %122, %122 : vector<16x32xf32>
    %cst_56 = arith.constant dense<0.000000e+00> : vector<16xf32>
    %124 = vector.multi_reduction <add>, %123, %cst_56 [1] : vector<16x32xf32> to vector<16xf32>
    %125 = vector.shape_cast %124 : vector<16xf32> to vector<16x1xf32>
    %cst_57 = arith.constant 3.200000e+01 : f32
    %126 = vector.broadcast %cst_57 : f32 to vector<16x1xf32>
    %127 = arith.divf %125, %126 : vector<16x1xf32>
    %128 = vector.broadcast %120 : vector<16x1xf32> to vector<16x32xf32>
    %129 = arith.subf %114, %128 : vector<16x32xf32>
    %cst_58 = arith.constant 9.99999974E-6 : f32
    %130 = vector.broadcast %cst_58 : f32 to vector<16x1xf32>
    %131 = arith.addf %127, %130 : vector<16x1xf32>
    %132 = math.rsqrt %131 : vector<16x1xf32>
    %133 = vector.broadcast %132 : vector<16x1xf32> to vector<16x32xf32>
    %134 = arith.mulf %129, %133 : vector<16x32xf32>
    %135 = vector.broadcast %115 : vector<1x32xf32> to vector<16x32xf32>
    %136 = arith.mulf %134, %135 : vector<16x32xf32>
    %137 = vector.broadcast %116 : vector<1x32xf32> to vector<16x32xf32>
    %138 = arith.addf %136, %137 : vector<16x32xf32>
    %139 = arith.addf %138, %5 : vector<16x32xf32>
    %c504 = arith.constant 504 : index
    %c0_59 = arith.constant 0 : index
    %140 = vector.load %arg5[%c504, %c0_59] : memref<992x128xf32, #tpu.memory_space<vmem>>, vector<32x32xf32>
    %cst_60 = arith.constant dense<0.000000e+00> : vector<16x32xf32>
    %141 = tpu.matmul %139, %140, %cst_60 {dimension_numbers = #tpu.dot_dimension_numbers<[1], [0], [0], [1], [0, 0, 1, 1], [], []>} : vector<16x32xf32>, vector<32x32xf32>, vector<16x32xf32> -> vector<16x32xf32>
    %c496 = arith.constant 496 : index
    %c0_61 = arith.constant 0 : index
    %142 = vector.load %arg5[%c496, %c0_61] : memref<992x128xf32, #tpu.memory_space<vmem>>, vector<1x32xf32>
    %143 = vector.broadcast %142 : vector<1x32xf32> to vector<16x32xf32>
    %144 = arith.addf %141, %143 : vector<16x32xf32>
    %c504_62 = arith.constant 504 : index
    %c32_63 = arith.constant 32 : index
    %145 = vector.load %arg5[%c504_62, %c32_63] : memref<992x128xf32, #tpu.memory_space<vmem>>, vector<32x32xf32>
    %cst_64 = arith.constant dense<0.000000e+00> : vector<32x32xf32>
    %146 = tpu.matmul %4, %145, %cst_64 {dimension_numbers = #tpu.dot_dimension_numbers<[1], [0], [0], [1], [0, 0, 1, 1], [], []>} : vector<32x32xf32>, vector<32x32xf32>, vector<32x32xf32> -> vector<32x32xf32>
    %c496_65 = arith.constant 496 : index
    %c32_66 = arith.constant 32 : index
    %147 = vector.load %arg5[%c496_65, %c32_66] : memref<992x128xf32, #tpu.memory_space<vmem>>, vector<1x32xf32>
    %148 = vector.broadcast %147 : vector<1x32xf32> to vector<32x32xf32>
    %149 = arith.addf %146, %148 : vector<32x32xf32>
    %c504_67 = arith.constant 504 : index
    %c64_68 = arith.constant 64 : index
    %150 = vector.load %arg5[%c504_67, %c64_68] : memref<992x128xf32, #tpu.memory_space<vmem>>, vector<32x32xf32>
    %cst_69 = arith.constant dense<0.000000e+00> : vector<32x32xf32>
    %151 = tpu.matmul %2, %150, %cst_69 {dimension_numbers = #tpu.dot_dimension_numbers<[1], [0], [0], [1], [0, 0, 1, 1], [], []>} : vector<32x32xf32>, vector<32x32xf32>, vector<32x32xf32> -> vector<32x32xf32>
    %c496_70 = arith.constant 496 : index
    %c64_71 = arith.constant 64 : index
    %152 = vector.load %arg5[%c496_70, %c64_71] : memref<992x128xf32, #tpu.memory_space<vmem>>, vector<1x32xf32>
    %153 = vector.broadcast %152 : vector<1x32xf32> to vector<32x32xf32>
    %154 = arith.addf %151, %153 : vector<32x32xf32>
    %cst_72 = arith.constant 0.353553385 : f32
    %155 = vector.broadcast %cst_72 : f32 to vector<16x32xf32>
    %156 = arith.mulf %144, %155 : vector<16x32xf32>
    %157 = vector.shape_cast %156 : vector<16x32xf32> to vector<2x8x32xf32>
    %158 = vector.shape_cast %149 : vector<32x32xf32> to vector<2x16x32xf32>
    %159 = vector.shape_cast %154 : vector<32x32xf32> to vector<2x16x32xf32>
    %c504_73 = arith.constant 504 : index
    %c96_74 = arith.constant 96 : index
    %160 = vector.load %arg5[%c504_73, %c96_74] : memref<992x128xf32, #tpu.memory_space<vmem>>, vector<32x32xf32>
    %c496_75 = arith.constant 496 : index
    %c96_76 = arith.constant 96 : index
    %161 = vector.load %arg5[%c496_75, %c96_76] : memref<992x128xf32, #tpu.memory_space<vmem>>, vector<1x32xf32>
    %162 = vector.extract_strided_slice %157 {offsets = [0, 0, 0], sizes = [2, 8, 8], strides = [1, 1, 1]} : vector<2x8x32xf32> to vector<2x8x8xf32>
    %163 = vector.extract_strided_slice %158 {offsets = [0, 0, 0], sizes = [2, 16, 8], strides = [1, 1, 1]} : vector<2x16x32xf32> to vector<2x16x8xf32>
    "tpu.trace_start"() <{level = 10 : i32, message = "bqd,bkd->bqk"}> : () -> ()
    %cst_77 = arith.constant dense<0.000000e+00> : vector<2x8x16xf32>
    %164 = tpu.matmul %162, %163, %cst_77 {dimension_numbers = #tpu.dot_dimension_numbers<[2], [2], [1], [1], [0, 0, 0, 1, 1, 1], [0], [0]>} : vector<2x8x8xf32>, vector<2x16x8xf32>, vector<2x8x16xf32> -> vector<2x8x16xf32>
    "tpu.trace_stop"() : () -> ()
    %cst_78 = arith.constant dense<0xFF800000> : vector<2x8xf32>
    %165 = vector.multi_reduction <maximumf>, %164, %cst_78 [2] : vector<2x8x16xf32> to vector<2x8xf32>
    %166 = vector.shape_cast %165 : vector<2x8xf32> to vector<2x8x1xf32>
    %167 = vector.broadcast %166 : vector<2x8x1xf32> to vector<2x8x16xf32>
    %168 = arith.subf %164, %167 : vector<2x8x16xf32>
    %169 = math.exp %168 : vector<2x8x16xf32>
    %cst_79 = arith.constant dense<0.000000e+00> : vector<2x8xf32>
    %170 = vector.multi_reduction <add>, %169, %cst_79 [2] : vector<2x8x16xf32> to vector<2x8xf32>
    %171 = vector.shape_cast %170 : vector<2x8xf32> to vector<2x8x1xf32>
    %172 = vector.broadcast %171 : vector<2x8x1xf32> to vector<2x8x16xf32>
    %173 = arith.divf %169, %172 : vector<2x8x16xf32>
    %174 = vector.extract_strided_slice %159 {offsets = [0, 0, 0], sizes = [2, 16, 8], strides = [1, 1, 1]} : vector<2x16x32xf32> to vector<2x16x8xf32>
    "tpu.trace_start"() <{level = 10 : i32, message = "bqk,bkd->bqd"}> : () -> ()
    %cst_80 = arith.constant dense<0.000000e+00> : vector<2x8x8xf32>
    %175 = tpu.matmul %173, %174, %cst_80 {dimension_numbers = #tpu.dot_dimension_numbers<[2], [1], [1], [2], [0, 0, 0, 1, 1, 2], [0], [0]>} : vector<2x8x16xf32>, vector<2x16x8xf32>, vector<2x8x8xf32> -> vector<2x8x8xf32>
    "tpu.trace_stop"() : () -> ()
    %176 = vector.shape_cast %175 : vector<2x8x8xf32> to vector<16x8xf32>
    %177 = vector.extract_strided_slice %160 {offsets = [0, 0], sizes = [8, 32], strides = [1, 1]} : vector<32x32xf32> to vector<8x32xf32>
    %cst_81 = arith.constant dense<0.000000e+00> : vector<16x32xf32>
    %178 = tpu.matmul %176, %177, %cst_81 {dimension_numbers = #tpu.dot_dimension_numbers<[1], [0], [0], [1], [0, 0, 1, 1], [], []>} : vector<16x8xf32>, vector<8x32xf32>, vector<16x32xf32> -> vector<16x32xf32>
    %179 = vector.extract_strided_slice %157 {offsets = [0, 0, 8], sizes = [2, 8, 8], strides = [1, 1, 1]} : vector<2x8x32xf32> to vector<2x8x8xf32>
    %180 = vector.extract_strided_slice %158 {offsets = [0, 0, 8], sizes = [2, 16, 8], strides = [1, 1, 1]} : vector<2x16x32xf32> to vector<2x16x8xf32>
    "tpu.trace_start"() <{level = 10 : i32, message = "bqd,bkd->bqk"}> : () -> ()
    %cst_82 = arith.constant dense<0.000000e+00> : vector<2x8x16xf32>
    %181 = tpu.matmul %179, %180, %cst_82 {dimension_numbers = #tpu.dot_dimension_numbers<[2], [2], [1], [1], [0, 0, 0, 1, 1, 1], [0], [0]>} : vector<2x8x8xf32>, vector<2x16x8xf32>, vector<2x8x16xf32> -> vector<2x8x16xf32>
    "tpu.trace_stop"() : () -> ()
    %cst_83 = arith.constant dense<0xFF800000> : vector<2x8xf32>
    %182 = vector.multi_reduction <maximumf>, %181, %cst_83 [2] : vector<2x8x16xf32> to vector<2x8xf32>
    %183 = vector.shape_cast %182 : vector<2x8xf32> to vector<2x8x1xf32>
    %184 = vector.broadcast %183 : vector<2x8x1xf32> to vector<2x8x16xf32>
    %185 = arith.subf %181, %184 : vector<2x8x16xf32>
    %186 = math.exp %185 : vector<2x8x16xf32>
    %cst_84 = arith.constant dense<0.000000e+00> : vector<2x8xf32>
    %187 = vector.multi_reduction <add>, %186, %cst_84 [2] : vector<2x8x16xf32> to vector<2x8xf32>
    %188 = vector.shape_cast %187 : vector<2x8xf32> to vector<2x8x1xf32>
    %189 = vector.broadcast %188 : vector<2x8x1xf32> to vector<2x8x16xf32>
    %190 = arith.divf %186, %189 : vector<2x8x16xf32>
    %191 = vector.extract_strided_slice %159 {offsets = [0, 0, 8], sizes = [2, 16, 8], strides = [1, 1, 1]} : vector<2x16x32xf32> to vector<2x16x8xf32>
    "tpu.trace_start"() <{level = 10 : i32, message = "bqk,bkd->bqd"}> : () -> ()
    %cst_85 = arith.constant dense<0.000000e+00> : vector<2x8x8xf32>
    %192 = tpu.matmul %190, %191, %cst_85 {dimension_numbers = #tpu.dot_dimension_numbers<[2], [1], [1], [2], [0, 0, 0, 1, 1, 2], [0], [0]>} : vector<2x8x16xf32>, vector<2x16x8xf32>, vector<2x8x8xf32> -> vector<2x8x8xf32>
    "tpu.trace_stop"() : () -> ()
    %193 = vector.shape_cast %192 : vector<2x8x8xf32> to vector<16x8xf32>
    %194 = vector.extract_strided_slice %160 {offsets = [8, 0], sizes = [8, 32], strides = [1, 1]} : vector<32x32xf32> to vector<8x32xf32>
    %cst_86 = arith.constant dense<0.000000e+00> : vector<16x32xf32>
    %195 = tpu.matmul %193, %194, %cst_86 {dimension_numbers = #tpu.dot_dimension_numbers<[1], [0], [0], [1], [0, 0, 1, 1], [], []>} : vector<16x8xf32>, vector<8x32xf32>, vector<16x32xf32> -> vector<16x32xf32>
    %196 = arith.addf %178, %195 : vector<16x32xf32>
    %197 = arith.addf %173, %190 : vector<2x8x16xf32>
    %198 = vector.extract_strided_slice %157 {offsets = [0, 0, 16], sizes = [2, 8, 8], strides = [1, 1, 1]} : vector<2x8x32xf32> to vector<2x8x8xf32>
    %199 = vector.extract_strided_slice %158 {offsets = [0, 0, 16], sizes = [2, 16, 8], strides = [1, 1, 1]} : vector<2x16x32xf32> to vector<2x16x8xf32>
    "tpu.trace_start"() <{level = 10 : i32, message = "bqd,bkd->bqk"}> : () -> ()
    %cst_87 = arith.constant dense<0.000000e+00> : vector<2x8x16xf32>
    %200 = tpu.matmul %198, %199, %cst_87 {dimension_numbers = #tpu.dot_dimension_numbers<[2], [2], [1], [1], [0, 0, 0, 1, 1, 1], [0], [0]>} : vector<2x8x8xf32>, vector<2x16x8xf32>, vector<2x8x16xf32> -> vector<2x8x16xf32>
    "tpu.trace_stop"() : () -> ()
    %cst_88 = arith.constant dense<0xFF800000> : vector<2x8xf32>
    %201 = vector.multi_reduction <maximumf>, %200, %cst_88 [2] : vector<2x8x16xf32> to vector<2x8xf32>
    %202 = vector.shape_cast %201 : vector<2x8xf32> to vector<2x8x1xf32>
    %203 = vector.broadcast %202 : vector<2x8x1xf32> to vector<2x8x16xf32>
    %204 = arith.subf %200, %203 : vector<2x8x16xf32>
    %205 = math.exp %204 : vector<2x8x16xf32>
    %cst_89 = arith.constant dense<0.000000e+00> : vector<2x8xf32>
    %206 = vector.multi_reduction <add>, %205, %cst_89 [2] : vector<2x8x16xf32> to vector<2x8xf32>
    %207 = vector.shape_cast %206 : vector<2x8xf32> to vector<2x8x1xf32>
    %208 = vector.broadcast %207 : vector<2x8x1xf32> to vector<2x8x16xf32>
    %209 = arith.divf %205, %208 : vector<2x8x16xf32>
    %210 = vector.extract_strided_slice %159 {offsets = [0, 0, 16], sizes = [2, 16, 8], strides = [1, 1, 1]} : vector<2x16x32xf32> to vector<2x16x8xf32>
    "tpu.trace_start"() <{level = 10 : i32, message = "bqk,bkd->bqd"}> : () -> ()
    %cst_90 = arith.constant dense<0.000000e+00> : vector<2x8x8xf32>
    %211 = tpu.matmul %209, %210, %cst_90 {dimension_numbers = #tpu.dot_dimension_numbers<[2], [1], [1], [2], [0, 0, 0, 1, 1, 2], [0], [0]>} : vector<2x8x16xf32>, vector<2x16x8xf32>, vector<2x8x8xf32> -> vector<2x8x8xf32>
    "tpu.trace_stop"() : () -> ()
    %212 = vector.shape_cast %211 : vector<2x8x8xf32> to vector<16x8xf32>
    %213 = vector.extract_strided_slice %160 {offsets = [16, 0], sizes = [8, 32], strides = [1, 1]} : vector<32x32xf32> to vector<8x32xf32>
    %cst_91 = arith.constant dense<0.000000e+00> : vector<16x32xf32>
    %214 = tpu.matmul %212, %213, %cst_91 {dimension_numbers = #tpu.dot_dimension_numbers<[1], [0], [0], [1], [0, 0, 1, 1], [], []>} : vector<16x8xf32>, vector<8x32xf32>, vector<16x32xf32> -> vector<16x32xf32>
    %215 = arith.addf %196, %214 : vector<16x32xf32>
    %216 = arith.addf %197, %209 : vector<2x8x16xf32>
    %217 = vector.extract_strided_slice %157 {offsets = [0, 0, 24], sizes = [2, 8, 8], strides = [1, 1, 1]} : vector<2x8x32xf32> to vector<2x8x8xf32>
    %218 = vector.extract_strided_slice %158 {offsets = [0, 0, 24], sizes = [2, 16, 8], strides = [1, 1, 1]} : vector<2x16x32xf32> to vector<2x16x8xf32>
    "tpu.trace_start"() <{level = 10 : i32, message = "bqd,bkd->bqk"}> : () -> ()
    %cst_92 = arith.constant dense<0.000000e+00> : vector<2x8x16xf32>
    %219 = tpu.matmul %217, %218, %cst_92 {dimension_numbers = #tpu.dot_dimension_numbers<[2], [2], [1], [1], [0, 0, 0, 1, 1, 1], [0], [0]>} : vector<2x8x8xf32>, vector<2x16x8xf32>, vector<2x8x16xf32> -> vector<2x8x16xf32>
    "tpu.trace_stop"() : () -> ()
    %cst_93 = arith.constant dense<0xFF800000> : vector<2x8xf32>
    %220 = vector.multi_reduction <maximumf>, %219, %cst_93 [2] : vector<2x8x16xf32> to vector<2x8xf32>
    %221 = vector.shape_cast %220 : vector<2x8xf32> to vector<2x8x1xf32>
    %222 = vector.broadcast %221 : vector<2x8x1xf32> to vector<2x8x16xf32>
    %223 = arith.subf %219, %222 : vector<2x8x16xf32>
    %224 = math.exp %223 : vector<2x8x16xf32>
    %cst_94 = arith.constant dense<0.000000e+00> : vector<2x8xf32>
    %225 = vector.multi_reduction <add>, %224, %cst_94 [2] : vector<2x8x16xf32> to vector<2x8xf32>
    %226 = vector.shape_cast %225 : vector<2x8xf32> to vector<2x8x1xf32>
    %227 = vector.broadcast %226 : vector<2x8x1xf32> to vector<2x8x16xf32>
    %228 = arith.divf %224, %227 : vector<2x8x16xf32>
    %229 = vector.extract_strided_slice %159 {offsets = [0, 0, 24], sizes = [2, 16, 8], strides = [1, 1, 1]} : vector<2x16x32xf32> to vector<2x16x8xf32>
    "tpu.trace_start"() <{level = 10 : i32, message = "bqk,bkd->bqd"}> : () -> ()
    %cst_95 = arith.constant dense<0.000000e+00> : vector<2x8x8xf32>
    %230 = tpu.matmul %228, %229, %cst_95 {dimension_numbers = #tpu.dot_dimension_numbers<[2], [1], [1], [2], [0, 0, 0, 1, 1, 2], [0], [0]>} : vector<2x8x16xf32>, vector<2x16x8xf32>, vector<2x8x8xf32> -> vector<2x8x8xf32>
    "tpu.trace_stop"() : () -> ()
    %231 = vector.shape_cast %230 : vector<2x8x8xf32> to vector<16x8xf32>
    %232 = vector.extract_strided_slice %160 {offsets = [24, 0], sizes = [8, 32], strides = [1, 1]} : vector<32x32xf32> to vector<8x32xf32>
    %cst_96 = arith.constant dense<0.000000e+00> : vector<16x32xf32>
    %233 = tpu.matmul %231, %232, %cst_96 {dimension_numbers = #tpu.dot_dimension_numbers<[1], [0], [0], [1], [0, 0, 1, 1], [], []>} : vector<16x8xf32>, vector<8x32xf32>, vector<16x32xf32> -> vector<16x32xf32>
    %234 = arith.addf %215, %233 : vector<16x32xf32>
    %235 = arith.addf %216, %228 : vector<2x8x16xf32>
    %236 = vector.broadcast %161 : vector<1x32xf32> to vector<16x32xf32>
    %237 = arith.addf %234, %236 : vector<16x32xf32>
    %cst_97 = arith.constant 2.500000e-01 : f32
    %238 = vector.broadcast %cst_97 : f32 to vector<2x8x16xf32>
    %239 = arith.mulf %235, %238 : vector<2x8x16xf32>
    %240 = vector.shape_cast %239 : vector<2x8x16xf32> to vector<16x16xf32>
    %241 = arith.addf %138, %237 : vector<16x32xf32>
    %c672 = arith.constant 672 : index
    %c0_98 = arith.constant 0 : index
    %242 = vector.load %arg5[%c672, %c0_98] : memref<992x128xf32, #tpu.memory_space<vmem>>, vector<1x32xf32>
    %c664 = arith.constant 664 : index
    %c0_99 = arith.constant 0 : index
    %243 = vector.load %arg5[%c664, %c0_99] : memref<992x128xf32, #tpu.memory_space<vmem>>, vector<1x32xf32>
    %cst_100 = arith.constant dense<0.000000e+00> : vector<16xf32>
    %244 = vector.multi_reduction <add>, %241, %cst_100 [1] : vector<16x32xf32> to vector<16xf32>
    %245 = vector.shape_cast %244 : vector<16xf32> to vector<16x1xf32>
    %cst_101 = arith.constant 3.200000e+01 : f32
    %246 = vector.broadcast %cst_101 : f32 to vector<16x1xf32>
    %247 = arith.divf %245, %246 : vector<16x1xf32>
    %248 = vector.broadcast %247 : vector<16x1xf32> to vector<16x32xf32>
    %249 = arith.subf %241, %248 : vector<16x32xf32>
    %250 = arith.mulf %249, %249 : vector<16x32xf32>
    %cst_102 = arith.constant dense<0.000000e+00> : vector<16xf32>
    %251 = vector.multi_reduction <add>, %250, %cst_102 [1] : vector<16x32xf32> to vector<16xf32>
    %252 = vector.shape_cast %251 : vector<16xf32> to vector<16x1xf32>
    %cst_103 = arith.constant 3.200000e+01 : f32
    %253 = vector.broadcast %cst_103 : f32 to vector<16x1xf32>
    %254 = arith.divf %252, %253 : vector<16x1xf32>
    %255 = vector.broadcast %247 : vector<16x1xf32> to vector<16x32xf32>
    %256 = arith.subf %241, %255 : vector<16x32xf32>
    %cst_104 = arith.constant 9.99999974E-6 : f32
    %257 = vector.broadcast %cst_104 : f32 to vector<16x1xf32>
    %258 = arith.addf %254, %257 : vector<16x1xf32>
    %259 = math.rsqrt %258 : vector<16x1xf32>
    %260 = vector.broadcast %259 : vector<16x1xf32> to vector<16x32xf32>
    %261 = arith.mulf %256, %260 : vector<16x32xf32>
    %262 = vector.broadcast %242 : vector<1x32xf32> to vector<16x32xf32>
    %263 = arith.mulf %261, %262 : vector<16x32xf32>
    %264 = vector.broadcast %243 : vector<1x32xf32> to vector<16x32xf32>
    %265 = arith.addf %263, %264 : vector<16x32xf32>
    %c552 = arith.constant 552 : index
    %c0_105 = arith.constant 0 : index
    %266 = vector.load %arg5[%c552, %c0_105] : memref<992x128xf32, #tpu.memory_space<vmem>>, vector<32x64xf32>
    %cst_106 = arith.constant dense<0.000000e+00> : vector<16x64xf32>
    %267 = tpu.matmul %265, %266, %cst_106 {dimension_numbers = #tpu.dot_dimension_numbers<[1], [0], [0], [1], [0, 0, 1, 1], [], []>} : vector<16x32xf32>, vector<32x64xf32>, vector<16x64xf32> -> vector<16x64xf32>
    %c536 = arith.constant 536 : index
    %c0_107 = arith.constant 0 : index
    %268 = vector.load %arg5[%c536, %c0_107] : memref<992x128xf32, #tpu.memory_space<vmem>>, vector<1x64xf32>
    %269 = vector.broadcast %268 : vector<1x64xf32> to vector<16x64xf32>
    %270 = arith.addf %267, %269 : vector<16x64xf32>
    %cst_108 = arith.constant 0.000000e+00 : f32
    %271 = vector.broadcast %cst_108 : f32 to vector<16x64xf32>
    %272 = arith.maximumf %270, %271 : vector<16x64xf32>
    %c584 = arith.constant 584 : index
    %c0_109 = arith.constant 0 : index
    %273 = vector.load %arg5[%c584, %c0_109] : memref<992x128xf32, #tpu.memory_space<vmem>>, vector<64x32xf32>
    %cst_110 = arith.constant dense<0.000000e+00> : vector<16x32xf32>
    %274 = tpu.matmul %272, %273, %cst_110 {dimension_numbers = #tpu.dot_dimension_numbers<[1], [0], [0], [1], [0, 0, 1, 1], [], []>} : vector<16x64xf32>, vector<64x32xf32>, vector<16x32xf32> -> vector<16x32xf32>
    %c544 = arith.constant 544 : index
    %c0_111 = arith.constant 0 : index
    %275 = vector.load %arg5[%c544, %c0_111] : memref<992x128xf32, #tpu.memory_space<vmem>>, vector<1x32xf32>
    %276 = vector.broadcast %275 : vector<1x32xf32> to vector<16x32xf32>
    %277 = arith.addf %274, %276 : vector<16x32xf32>
    %278 = arith.addf %265, %277 : vector<16x32xf32>
    %c688 = arith.constant 688 : index
    %c0_112 = arith.constant 0 : index
    %279 = vector.load %arg5[%c688, %c0_112] : memref<992x128xf32, #tpu.memory_space<vmem>>, vector<1x32xf32>
    %c680 = arith.constant 680 : index
    %c0_113 = arith.constant 0 : index
    %280 = vector.load %arg5[%c680, %c0_113] : memref<992x128xf32, #tpu.memory_space<vmem>>, vector<1x32xf32>
    %cst_114 = arith.constant dense<0.000000e+00> : vector<16xf32>
    %281 = vector.multi_reduction <add>, %278, %cst_114 [1] : vector<16x32xf32> to vector<16xf32>
    %282 = vector.shape_cast %281 : vector<16xf32> to vector<16x1xf32>
    %cst_115 = arith.constant 3.200000e+01 : f32
    %283 = vector.broadcast %cst_115 : f32 to vector<16x1xf32>
    %284 = arith.divf %282, %283 : vector<16x1xf32>
    %285 = vector.broadcast %284 : vector<16x1xf32> to vector<16x32xf32>
    %286 = arith.subf %278, %285 : vector<16x32xf32>
    %287 = arith.mulf %286, %286 : vector<16x32xf32>
    %cst_116 = arith.constant dense<0.000000e+00> : vector<16xf32>
    %288 = vector.multi_reduction <add>, %287, %cst_116 [1] : vector<16x32xf32> to vector<16xf32>
    %289 = vector.shape_cast %288 : vector<16xf32> to vector<16x1xf32>
    %cst_117 = arith.constant 3.200000e+01 : f32
    %290 = vector.broadcast %cst_117 : f32 to vector<16x1xf32>
    %291 = arith.divf %289, %290 : vector<16x1xf32>
    %292 = vector.broadcast %284 : vector<16x1xf32> to vector<16x32xf32>
    %293 = arith.subf %278, %292 : vector<16x32xf32>
    %cst_118 = arith.constant 9.99999974E-6 : f32
    %294 = vector.broadcast %cst_118 : f32 to vector<16x1xf32>
    %295 = arith.addf %291, %294 : vector<16x1xf32>
    %296 = math.rsqrt %295 : vector<16x1xf32>
    %297 = vector.broadcast %296 : vector<16x1xf32> to vector<16x32xf32>
    %298 = arith.mulf %293, %297 : vector<16x32xf32>
    %299 = vector.broadcast %279 : vector<1x32xf32> to vector<16x32xf32>
    %300 = arith.mulf %298, %299 : vector<16x32xf32>
    %301 = vector.broadcast %280 : vector<1x32xf32> to vector<16x32xf32>
    %302 = arith.addf %300, %301 : vector<16x32xf32>
    %cst_119 = arith.constant dense<0.000000e+00> : vector<16xf32>
    %303 = vector.multi_reduction <add>, %302, %cst_119 [1] : vector<16x32xf32> to vector<16xf32>
    %304 = vector.shape_cast %303 : vector<16xf32> to vector<16x1xf32>
    %cst_120 = arith.constant 3.200000e+01 : f32
    %305 = vector.broadcast %cst_120 : f32 to vector<16x1xf32>
    %306 = arith.divf %304, %305 : vector<16x1xf32>
    %307 = vector.broadcast %306 : vector<16x1xf32> to vector<16x32xf32>
    %308 = arith.subf %302, %307 : vector<16x32xf32>
    %309 = arith.mulf %308, %308 : vector<16x32xf32>
    %cst_121 = arith.constant dense<0.000000e+00> : vector<16xf32>
    %310 = vector.multi_reduction <add>, %309, %cst_121 [1] : vector<16x32xf32> to vector<16xf32>
    %311 = vector.shape_cast %310 : vector<16xf32> to vector<16x1xf32>
    %cst_122 = arith.constant 3.200000e+01 : f32
    %312 = vector.broadcast %cst_122 : f32 to vector<16x1xf32>
    %313 = arith.divf %311, %312 : vector<16x1xf32>
    %314 = vector.broadcast %306 : vector<16x1xf32> to vector<16x32xf32>
    %315 = arith.subf %302, %314 : vector<16x32xf32>
    %cst_123 = arith.constant 9.99999974E-6 : f32
    %316 = vector.broadcast %cst_123 : f32 to vector<16x1xf32>
    %317 = arith.addf %313, %316 : vector<16x1xf32>
    %318 = math.rsqrt %317 : vector<16x1xf32>
    %319 = vector.broadcast %318 : vector<16x1xf32> to vector<16x32xf32>
    %320 = arith.mulf %315, %319 : vector<16x32xf32>
    %321 = vector.broadcast %6 : vector<1x32xf32> to vector<16x32xf32>
    %322 = arith.mulf %320, %321 : vector<16x32xf32>
    %323 = vector.broadcast %7 : vector<1x32xf32> to vector<16x32xf32>
    %324 = arith.addf %322, %323 : vector<16x32xf32>
    %c0_124 = arith.constant 0 : index
    %c0_125 = arith.constant 0 : index
    %c0_126 = arith.constant 0 : index
    %325 = vector.load %arg6[%c0_124, %c0_125, %c0_126] : memref<2x16x128xf32, #tpu.memory_space<vmem>>, vector<1x16x32xf32>
    %326 = vector.shape_cast %325 : vector<1x16x32xf32> to vector<16x32xf32>
    %327 = vector.shape_cast %324 : vector<16x32xf32> to vector<1x16x32xf32>
    tpu.vector_store %arg6[%c0_124, %c0_125, %c0_126], %327 {strides = array<i32>} : memref<2x16x128xf32, #tpu.memory_space<vmem>>, vector<1x16x32xf32>,
    %c0_127 = arith.constant 0 : index
    %c0_128 = arith.constant 0 : index
    %c32_129 = arith.constant 32 : index
    %328 = vector.load %arg6[%c0_127, %c0_128, %c32_129] : memref<2x16x128xf32, #tpu.memory_space<vmem>>, vector<1x16x16xf32>
    %329 = vector.shape_cast %328 : vector<1x16x16xf32> to vector<16x16xf32>
    %330 = vector.shape_cast %240 : vector<16x16xf32> to vector<1x16x16xf32>
    tpu.vector_store %arg6[%c0_127, %c0_128, %c32_129], %330 {strides = array<i32>} : memref<2x16x128xf32, #tpu.memory_space<vmem>>, vector<1x16x16xf32>,
    %c0_130 = arith.constant 0 : index
    %c0_131 = arith.constant 0 : index
    %c48 = arith.constant 48 : index
    %331 = vector.load %arg6[%c0_130, %c0_131, %c48] : memref<2x16x128xf32, #tpu.memory_space<vmem>>, vector<1x16x8xf32>
    %332 = vector.shape_cast %331 : vector<1x16x8xf32> to vector<16x8xf32>
    %333 = vector.shape_cast %113 : vector<16x8xf32> to vector<1x16x8xf32>
    tpu.vector_store %arg6[%c0_130, %c0_131, %c48], %333 {strides = array<i32>} : memref<2x16x128xf32, #tpu.memory_space<vmem>>, vector<1x16x8xf32>,
    %334 = arith.addf %302, %5 : vector<16x32xf32>
    %335 = arith.addf %11, %334 : vector<16x32xf32>
    %c208 = arith.constant 208 : index
    %c0_132 = arith.constant 0 : index
    %336 = vector.load %arg5[%c208, %c0_132] : memref<992x128xf32, #tpu.memory_space<vmem>>, vector<32x32xf32>
    %cst_133 = arith.constant dense<0.000000e+00> : vector<16x32xf32>
    %337 = tpu.matmul %335, %336, %cst_133 {dimension_numbers = #tpu.dot_dimension_numbers<[1], [0], [0], [1], [0, 0, 1, 1], [], []>} : vector<16x32xf32>, vector<32x32xf32>, vector<16x32xf32> -> vector<16x32xf32>
    %c200 = arith.constant 200 : index
    %c0_134 = arith.constant 0 : index
    %338 = vector.load %arg5[%c200, %c0_134] : memref<992x128xf32, #tpu.memory_space<vmem>>, vector<1x32xf32>
    %339 = vector.broadcast %338 : vector<1x32xf32> to vector<16x32xf32>
    %340 = arith.addf %337, %339 : vector<16x32xf32>
    %c208_135 = arith.constant 208 : index
    %c32_136 = arith.constant 32 : index
    %341 = vector.load %arg5[%c208_135, %c32_136] : memref<992x128xf32, #tpu.memory_space<vmem>>, vector<32x32xf32>
    %cst_137 = arith.constant dense<0.000000e+00> : vector<16x32xf32>
    %342 = tpu.matmul %335, %341, %cst_137 {dimension_numbers = #tpu.dot_dimension_numbers<[1], [0], [0], [1], [0, 0, 1, 1], [], []>} : vector<16x32xf32>, vector<32x32xf32>, vector<16x32xf32> -> vector<16x32xf32>
    %c200_138 = arith.constant 200 : index
    %c32_139 = arith.constant 32 : index
    %343 = vector.load %arg5[%c200_138, %c32_139] : memref<992x128xf32, #tpu.memory_space<vmem>>, vector<1x32xf32>
    %344 = vector.broadcast %343 : vector<1x32xf32> to vector<16x32xf32>
    %345 = arith.addf %342, %344 : vector<16x32xf32>
    %c208_140 = arith.constant 208 : index
    %c64_141 = arith.constant 64 : index
    %346 = vector.load %arg5[%c208_140, %c64_141] : memref<992x128xf32, #tpu.memory_space<vmem>>, vector<32x32xf32>
    %cst_142 = arith.constant dense<0.000000e+00> : vector<16x32xf32>
    %347 = tpu.matmul %11, %346, %cst_142 {dimension_numbers = #tpu.dot_dimension_numbers<[1], [0], [0], [1], [0, 0, 1, 1], [], []>} : vector<16x32xf32>, vector<32x32xf32>, vector<16x32xf32> -> vector<16x32xf32>
    %c200_143 = arith.constant 200 : index
    %c64_144 = arith.constant 64 : index
    %348 = vector.load %arg5[%c200_143, %c64_144] : memref<992x128xf32, #tpu.memory_space<vmem>>, vector<1x32xf32>
    %349 = vector.broadcast %348 : vector<1x32xf32> to vector<16x32xf32>
    %350 = arith.addf %347, %349 : vector<16x32xf32>
    %cst_145 = arith.constant 0.353553385 : f32
    %351 = vector.broadcast %cst_145 : f32 to vector<16x32xf32>
    %352 = arith.mulf %340, %351 : vector<16x32xf32>
    %353 = vector.shape_cast %352 : vector<16x32xf32> to vector<2x8x32xf32>
    %354 = vector.shape_cast %345 : vector<16x32xf32> to vector<2x8x32xf32>
    %355 = vector.shape_cast %350 : vector<16x32xf32> to vector<2x8x32xf32>
    %c208_146 = arith.constant 208 : index
    %c96_147 = arith.constant 96 : index
    %356 = vector.load %arg5[%c208_146, %c96_147] : memref<992x128xf32, #tpu.memory_space<vmem>>, vector<32x32xf32>
    %c200_148 = arith.constant 200 : index
    %c96_149 = arith.constant 96 : index
    %357 = vector.load %arg5[%c200_148, %c96_149] : memref<992x128xf32, #tpu.memory_space<vmem>>, vector<1x32xf32>
    %358 = vector.extract_strided_slice %353 {offsets = [0, 0, 0], sizes = [2, 8, 8], strides = [1, 1, 1]} : vector<2x8x32xf32> to vector<2x8x8xf32>
    %359 = vector.extract_strided_slice %354 {offsets = [0, 0, 0], sizes = [2, 8, 8], strides = [1, 1, 1]} : vector<2x8x32xf32> to vector<2x8x8xf32>
    "tpu.trace_start"() <{level = 10 : i32, message = "bqd,bkd->bqk"}> : () -> ()
    %cst_150 = arith.constant dense<0.000000e+00> : vector<2x8x8xf32>
    %360 = tpu.matmul %358, %359, %cst_150 {dimension_numbers = #tpu.dot_dimension_numbers<[2], [2], [1], [1], [0, 0, 0, 1, 1, 1], [0], [0]>} : vector<2x8x8xf32>, vector<2x8x8xf32>, vector<2x8x8xf32> -> vector<2x8x8xf32>
    "tpu.trace_stop"() : () -> ()
    %cst_151 = arith.constant dense<0xFF800000> : vector<2x8xf32>
    %361 = vector.multi_reduction <maximumf>, %360, %cst_151 [2] : vector<2x8x8xf32> to vector<2x8xf32>
    %362 = vector.shape_cast %361 : vector<2x8xf32> to vector<2x8x1xf32>
    %363 = vector.broadcast %362 : vector<2x8x1xf32> to vector<2x8x8xf32>
    %364 = arith.subf %360, %363 : vector<2x8x8xf32>
    %365 = math.exp %364 : vector<2x8x8xf32>
    %cst_152 = arith.constant dense<0.000000e+00> : vector<2x8xf32>
    %366 = vector.multi_reduction <add>, %365, %cst_152 [2] : vector<2x8x8xf32> to vector<2x8xf32>
    %367 = vector.shape_cast %366 : vector<2x8xf32> to vector<2x8x1xf32>
    %368 = vector.broadcast %367 : vector<2x8x1xf32> to vector<2x8x8xf32>
    %369 = arith.divf %365, %368 : vector<2x8x8xf32>
    %370 = vector.extract_strided_slice %355 {offsets = [0, 0, 0], sizes = [2, 8, 8], strides = [1, 1, 1]} : vector<2x8x32xf32> to vector<2x8x8xf32>
    "tpu.trace_start"() <{level = 10 : i32, message = "bqk,bkd->bqd"}> : () -> ()
    %cst_153 = arith.constant dense<0.000000e+00> : vector<2x8x8xf32>
    %371 = tpu.matmul %369, %370, %cst_153 {dimension_numbers = #tpu.dot_dimension_numbers<[2], [1], [1], [2], [0, 0, 0, 1, 1, 2], [0], [0]>} : vector<2x8x8xf32>, vector<2x8x8xf32>, vector<2x8x8xf32> -> vector<2x8x8xf32>
    "tpu.trace_stop"() : () -> ()
    %372 = vector.shape_cast %371 : vector<2x8x8xf32> to vector<16x8xf32>
    %373 = vector.extract_strided_slice %356 {offsets = [0, 0], sizes = [8, 32], strides = [1, 1]} : vector<32x32xf32> to vector<8x32xf32>
    %cst_154 = arith.constant dense<0.000000e+00> : vector<16x32xf32>
    %374 = tpu.matmul %372, %373, %cst_154 {dimension_numbers = #tpu.dot_dimension_numbers<[1], [0], [0], [1], [0, 0, 1, 1], [], []>} : vector<16x8xf32>, vector<8x32xf32>, vector<16x32xf32> -> vector<16x32xf32>
    %375 = vector.extract_strided_slice %353 {offsets = [0, 0, 8], sizes = [2, 8, 8], strides = [1, 1, 1]} : vector<2x8x32xf32> to vector<2x8x8xf32>
    %376 = vector.extract_strided_slice %354 {offsets = [0, 0, 8], sizes = [2, 8, 8], strides = [1, 1, 1]} : vector<2x8x32xf32> to vector<2x8x8xf32>
    "tpu.trace_start"() <{level = 10 : i32, message = "bqd,bkd->bqk"}> : () -> ()
    %cst_155 = arith.constant dense<0.000000e+00> : vector<2x8x8xf32>
    %377 = tpu.matmul %375, %376, %cst_155 {dimension_numbers = #tpu.dot_dimension_numbers<[2], [2], [1], [1], [0, 0, 0, 1, 1, 1], [0], [0]>} : vector<2x8x8xf32>, vector<2x8x8xf32>, vector<2x8x8xf32> -> vector<2x8x8xf32>
    "tpu.trace_stop"() : () -> ()
    %cst_156 = arith.constant dense<0xFF800000> : vector<2x8xf32>
    %378 = vector.multi_reduction <maximumf>, %377, %cst_156 [2] : vector<2x8x8xf32> to vector<2x8xf32>
    %379 = vector.shape_cast %378 : vector<2x8xf32> to vector<2x8x1xf32>
    %380 = vector.broadcast %379 : vector<2x8x1xf32> to vector<2x8x8xf32>
    %381 = arith.subf %377, %380 : vector<2x8x8xf32>
    %382 = math.exp %381 : vector<2x8x8xf32>
    %cst_157 = arith.constant dense<0.000000e+00> : vector<2x8xf32>
    %383 = vector.multi_reduction <add>, %382, %cst_157 [2] : vector<2x8x8xf32> to vector<2x8xf32>
    %384 = vector.shape_cast %383 : vector<2x8xf32> to vector<2x8x1xf32>
    %385 = vector.broadcast %384 : vector<2x8x1xf32> to vector<2x8x8xf32>
    %386 = arith.divf %382, %385 : vector<2x8x8xf32>
    %387 = vector.extract_strided_slice %355 {offsets = [0, 0, 8], sizes = [2, 8, 8], strides = [1, 1, 1]} : vector<2x8x32xf32> to vector<2x8x8xf32>
    "tpu.trace_start"() <{level = 10 : i32, message = "bqk,bkd->bqd"}> : () -> ()
    %cst_158 = arith.constant dense<0.000000e+00> : vector<2x8x8xf32>
    %388 = tpu.matmul %386, %387, %cst_158 {dimension_numbers = #tpu.dot_dimension_numbers<[2], [1], [1], [2], [0, 0, 0, 1, 1, 2], [0], [0]>} : vector<2x8x8xf32>, vector<2x8x8xf32>, vector<2x8x8xf32> -> vector<2x8x8xf32>
    "tpu.trace_stop"() : () -> ()
    %389 = vector.shape_cast %388 : vector<2x8x8xf32> to vector<16x8xf32>
    %390 = vector.extract_strided_slice %356 {offsets = [8, 0], sizes = [8, 32], strides = [1, 1]} : vector<32x32xf32> to vector<8x32xf32>
    %cst_159 = arith.constant dense<0.000000e+00> : vector<16x32xf32>
    %391 = tpu.matmul %389, %390, %cst_159 {dimension_numbers = #tpu.dot_dimension_numbers<[1], [0], [0], [1], [0, 0, 1, 1], [], []>} : vector<16x8xf32>, vector<8x32xf32>, vector<16x32xf32> -> vector<16x32xf32>
    %392 = arith.addf %374, %391 : vector<16x32xf32>
    %393 = vector.extract_strided_slice %353 {offsets = [0, 0, 16], sizes = [2, 8, 8], strides = [1, 1, 1]} : vector<2x8x32xf32> to vector<2x8x8xf32>
    %394 = vector.extract_strided_slice %354 {offsets = [0, 0, 16], sizes = [2, 8, 8], strides = [1, 1, 1]} : vector<2x8x32xf32> to vector<2x8x8xf32>
    "tpu.trace_start"() <{level = 10 : i32, message = "bqd,bkd->bqk"}> : () -> ()
    %cst_160 = arith.constant dense<0.000000e+00> : vector<2x8x8xf32>
    %395 = tpu.matmul %393, %394, %cst_160 {dimension_numbers = #tpu.dot_dimension_numbers<[2], [2], [1], [1], [0, 0, 0, 1, 1, 1], [0], [0]>} : vector<2x8x8xf32>, vector<2x8x8xf32>, vector<2x8x8xf32> -> vector<2x8x8xf32>
    "tpu.trace_stop"() : () -> ()
    %cst_161 = arith.constant dense<0xFF800000> : vector<2x8xf32>
    %396 = vector.multi_reduction <maximumf>, %395, %cst_161 [2] : vector<2x8x8xf32> to vector<2x8xf32>
    %397 = vector.shape_cast %396 : vector<2x8xf32> to vector<2x8x1xf32>
    %398 = vector.broadcast %397 : vector<2x8x1xf32> to vector<2x8x8xf32>
    %399 = arith.subf %395, %398 : vector<2x8x8xf32>
    %400 = math.exp %399 : vector<2x8x8xf32>
    %cst_162 = arith.constant dense<0.000000e+00> : vector<2x8xf32>
    %401 = vector.multi_reduction <add>, %400, %cst_162 [2] : vector<2x8x8xf32> to vector<2x8xf32>
    %402 = vector.shape_cast %401 : vector<2x8xf32> to vector<2x8x1xf32>
    %403 = vector.broadcast %402 : vector<2x8x1xf32> to vector<2x8x8xf32>
    %404 = arith.divf %400, %403 : vector<2x8x8xf32>
    %405 = vector.extract_strided_slice %355 {offsets = [0, 0, 16], sizes = [2, 8, 8], strides = [1, 1, 1]} : vector<2x8x32xf32> to vector<2x8x8xf32>
    "tpu.trace_start"() <{level = 10 : i32, message = "bqk,bkd->bqd"}> : () -> ()
    %cst_163 = arith.constant dense<0.000000e+00> : vector<2x8x8xf32>
    %406 = tpu.matmul %404, %405, %cst_163 {dimension_numbers = #tpu.dot_dimension_numbers<[2], [1], [1], [2], [0, 0, 0, 1, 1, 2], [0], [0]>} : vector<2x8x8xf32>, vector<2x8x8xf32>, vector<2x8x8xf32> -> vector<2x8x8xf32>
    "tpu.trace_stop"() : () -> ()
    %407 = vector.shape_cast %406 : vector<2x8x8xf32> to vector<16x8xf32>
    %408 = vector.extract_strided_slice %356 {offsets = [16, 0], sizes = [8, 32], strides = [1, 1]} : vector<32x32xf32> to vector<8x32xf32>
    %cst_164 = arith.constant dense<0.000000e+00> : vector<16x32xf32>
    %409 = tpu.matmul %407, %408, %cst_164 {dimension_numbers = #tpu.dot_dimension_numbers<[1], [0], [0], [1], [0, 0, 1, 1], [], []>} : vector<16x8xf32>, vector<8x32xf32>, vector<16x32xf32> -> vector<16x32xf32>
    %410 = arith.addf %392, %409 : vector<16x32xf32>
    %411 = vector.extract_strided_slice %353 {offsets = [0, 0, 24], sizes = [2, 8, 8], strides = [1, 1, 1]} : vector<2x8x32xf32> to vector<2x8x8xf32>
    %412 = vector.extract_strided_slice %354 {offsets = [0, 0, 24], sizes = [2, 8, 8], strides = [1, 1, 1]} : vector<2x8x32xf32> to vector<2x8x8xf32>
    "tpu.trace_start"() <{level = 10 : i32, message = "bqd,bkd->bqk"}> : () -> ()
    %cst_165 = arith.constant dense<0.000000e+00> : vector<2x8x8xf32>
    %413 = tpu.matmul %411, %412, %cst_165 {dimension_numbers = #tpu.dot_dimension_numbers<[2], [2], [1], [1], [0, 0, 0, 1, 1, 1], [0], [0]>} : vector<2x8x8xf32>, vector<2x8x8xf32>, vector<2x8x8xf32> -> vector<2x8x8xf32>
    "tpu.trace_stop"() : () -> ()
    %cst_166 = arith.constant dense<0xFF800000> : vector<2x8xf32>
    %414 = vector.multi_reduction <maximumf>, %413, %cst_166 [2] : vector<2x8x8xf32> to vector<2x8xf32>
    %415 = vector.shape_cast %414 : vector<2x8xf32> to vector<2x8x1xf32>
    %416 = vector.broadcast %415 : vector<2x8x1xf32> to vector<2x8x8xf32>
    %417 = arith.subf %413, %416 : vector<2x8x8xf32>
    %418 = math.exp %417 : vector<2x8x8xf32>
    %cst_167 = arith.constant dense<0.000000e+00> : vector<2x8xf32>
    %419 = vector.multi_reduction <add>, %418, %cst_167 [2] : vector<2x8x8xf32> to vector<2x8xf32>
    %420 = vector.shape_cast %419 : vector<2x8xf32> to vector<2x8x1xf32>
    %421 = vector.broadcast %420 : vector<2x8x1xf32> to vector<2x8x8xf32>
    %422 = arith.divf %418, %421 : vector<2x8x8xf32>
    %423 = vector.extract_strided_slice %355 {offsets = [0, 0, 24], sizes = [2, 8, 8], strides = [1, 1, 1]} : vector<2x8x32xf32> to vector<2x8x8xf32>
    "tpu.trace_start"() <{level = 10 : i32, message = "bqk,bkd->bqd"}> : () -> ()
    %cst_168 = arith.constant dense<0.000000e+00> : vector<2x8x8xf32>
    %424 = tpu.matmul %422, %423, %cst_168 {dimension_numbers = #tpu.dot_dimension_numbers<[2], [1], [1], [2], [0, 0, 0, 1, 1, 2], [0], [0]>} : vector<2x8x8xf32>, vector<2x8x8xf32>, vector<2x8x8xf32> -> vector<2x8x8xf32>
    "tpu.trace_stop"() : () -> ()
    %425 = vector.shape_cast %424 : vector<2x8x8xf32> to vector<16x8xf32>
    %426 = vector.extract_strided_slice %356 {offsets = [24, 0], sizes = [8, 32], strides = [1, 1]} : vector<32x32xf32> to vector<8x32xf32>
    %cst_169 = arith.constant dense<0.000000e+00> : vector<16x32xf32>
    %427 = tpu.matmul %425, %426, %cst_169 {dimension_numbers = #tpu.dot_dimension_numbers<[1], [0], [0], [1], [0, 0, 1, 1], [], []>} : vector<16x8xf32>, vector<8x32xf32>, vector<16x32xf32> -> vector<16x32xf32>
    %428 = arith.addf %410, %427 : vector<16x32xf32>
    %429 = vector.broadcast %357 : vector<1x32xf32> to vector<16x32xf32>
    %430 = arith.addf %428, %429 : vector<16x32xf32>
    %431 = arith.addf %11, %430 : vector<16x32xf32>
    %c160 = arith.constant 160 : index
    %c0_170 = arith.constant 0 : index
    %432 = vector.load %arg5[%c160, %c0_170] : memref<992x128xf32, #tpu.memory_space<vmem>>, vector<1x32xf32>
    %c152 = arith.constant 152 : index
    %c0_171 = arith.constant 0 : index
    %433 = vector.load %arg5[%c152, %c0_171] : memref<992x128xf32, #tpu.memory_space<vmem>>, vector<1x32xf32>
    %cst_172 = arith.constant dense<0.000000e+00> : vector<16xf32>
    %434 = vector.multi_reduction <add>, %431, %cst_172 [1] : vector<16x32xf32> to vector<16xf32>
    %435 = vector.shape_cast %434 : vector<16xf32> to vector<16x1xf32>
    %cst_173 = arith.constant 3.200000e+01 : f32
    %436 = vector.broadcast %cst_173 : f32 to vector<16x1xf32>
    %437 = arith.divf %435, %436 : vector<16x1xf32>
    %438 = vector.broadcast %437 : vector<16x1xf32> to vector<16x32xf32>
    %439 = arith.subf %431, %438 : vector<16x32xf32>
    %440 = arith.mulf %439, %439 : vector<16x32xf32>
    %cst_174 = arith.constant dense<0.000000e+00> : vector<16xf32>
    %441 = vector.multi_reduction <add>, %440, %cst_174 [1] : vector<16x32xf32> to vector<16xf32>
    %442 = vector.shape_cast %441 : vector<16xf32> to vector<16x1xf32>
    %cst_175 = arith.constant 3.200000e+01 : f32
    %443 = vector.broadcast %cst_175 : f32 to vector<16x1xf32>
    %444 = arith.divf %442, %443 : vector<16x1xf32>
    %445 = vector.broadcast %437 : vector<16x1xf32> to vector<16x32xf32>
    %446 = arith.subf %431, %445 : vector<16x32xf32>
    %cst_176 = arith.constant 9.99999974E-6 : f32
    %447 = vector.broadcast %cst_176 : f32 to vector<16x1xf32>
    %448 = arith.addf %444, %447 : vector<16x1xf32>
    %449 = math.rsqrt %448 : vector<16x1xf32>
    %450 = vector.broadcast %449 : vector<16x1xf32> to vector<16x32xf32>
    %451 = arith.mulf %446, %450 : vector<16x32xf32>
    %452 = vector.broadcast %432 : vector<1x32xf32> to vector<16x32xf32>
    %453 = arith.mulf %451, %452 : vector<16x32xf32>
    %454 = vector.broadcast %433 : vector<1x32xf32> to vector<16x32xf32>
    %455 = arith.addf %453, %454 : vector<16x32xf32>
    %456 = arith.addf %455, %334 : vector<16x32xf32>
    %c8 = arith.constant 8 : index
    %c0_177 = arith.constant 0 : index
    %457 = vector.load %arg5[%c8, %c0_177] : memref<992x128xf32, #tpu.memory_space<vmem>>, vector<32x32xf32>
    %cst_178 = arith.constant dense<0.000000e+00> : vector<16x32xf32>
    %458 = tpu.matmul %456, %457, %cst_178 {dimension_numbers = #tpu.dot_dimension_numbers<[1], [0], [0], [1], [0, 0, 1, 1], [], []>} : vector<16x32xf32>, vector<32x32xf32>, vector<16x32xf32> -> vector<16x32xf32>
    %c0_179 = arith.constant 0 : index
    %c0_180 = arith.constant 0 : index
    %459 = vector.load %arg5[%c0_179, %c0_180] : memref<992x128xf32, #tpu.memory_space<vmem>>, vector<1x32xf32>
    %460 = vector.broadcast %459 : vector<1x32xf32> to vector<16x32xf32>
    %461 = arith.addf %458, %460 : vector<16x32xf32>
    %c8_181 = arith.constant 8 : index
    %c32_182 = arith.constant 32 : index
    %462 = vector.load %arg5[%c8_181, %c32_182] : memref<992x128xf32, #tpu.memory_space<vmem>>, vector<32x32xf32>
    %cst_183 = arith.constant dense<0.000000e+00> : vector<32x32xf32>
    %463 = tpu.matmul %4, %462, %cst_183 {dimension_numbers = #tpu.dot_dimension_numbers<[1], [0], [0], [1], [0, 0, 1, 1], [], []>} : vector<32x32xf32>, vector<32x32xf32>, vector<32x32xf32> -> vector<32x32xf32>
    %c0_184 = arith.constant 0 : index
    %c32_185 = arith.constant 32 : index
    %464 = vector.load %arg5[%c0_184, %c32_185] : memref<992x128xf32, #tpu.memory_space<vmem>>, vector<1x32xf32>
    %465 = vector.broadcast %464 : vector<1x32xf32> to vector<32x32xf32>
    %466 = arith.addf %463, %465 : vector<32x32xf32>
    %c8_186 = arith.constant 8 : index
    %c64_187 = arith.constant 64 : index
    %467 = vector.load %arg5[%c8_186, %c64_187] : memref<992x128xf32, #tpu.memory_space<vmem>>, vector<32x32xf32>
    %cst_188 = arith.constant dense<0.000000e+00> : vector<32x32xf32>
    %468 = tpu.matmul %2, %467, %cst_188 {dimension_numbers = #tpu.dot_dimension_numbers<[1], [0], [0], [1], [0, 0, 1, 1], [], []>} : vector<32x32xf32>, vector<32x32xf32>, vector<32x32xf32> -> vector<32x32xf32>
    %c0_189 = arith.constant 0 : index
    %c64_190 = arith.constant 64 : index
    %469 = vector.load %arg5[%c0_189, %c64_190] : memref<992x128xf32, #tpu.memory_space<vmem>>, vector<1x32xf32>
    %470 = vector.broadcast %469 : vector<1x32xf32> to vector<32x32xf32>
    %471 = arith.addf %468, %470 : vector<32x32xf32>
    %cst_191 = arith.constant 0.353553385 : f32
    %472 = vector.broadcast %cst_191 : f32 to vector<16x32xf32>
    %473 = arith.mulf %461, %472 : vector<16x32xf32>
    %474 = vector.shape_cast %473 : vector<16x32xf32> to vector<2x8x32xf32>
    %475 = vector.shape_cast %466 : vector<32x32xf32> to vector<2x16x32xf32>
    %476 = vector.shape_cast %471 : vector<32x32xf32> to vector<2x16x32xf32>
    %c8_192 = arith.constant 8 : index
    %c96_193 = arith.constant 96 : index
    %477 = vector.load %arg5[%c8_192, %c96_193] : memref<992x128xf32, #tpu.memory_space<vmem>>, vector<32x32xf32>
    %c0_194 = arith.constant 0 : index
    %c96_195 = arith.constant 96 : index
    %478 = vector.load %arg5[%c0_194, %c96_195] : memref<992x128xf32, #tpu.memory_space<vmem>>, vector<1x32xf32>
    %479 = vector.extract_strided_slice %474 {offsets = [0, 0, 0], sizes = [2, 8, 8], strides = [1, 1, 1]} : vector<2x8x32xf32> to vector<2x8x8xf32>
    %480 = vector.extract_strided_slice %475 {offsets = [0, 0, 0], sizes = [2, 16, 8], strides = [1, 1, 1]} : vector<2x16x32xf32> to vector<2x16x8xf32>
    "tpu.trace_start"() <{level = 10 : i32, message = "bqd,bkd->bqk"}> : () -> ()
    %cst_196 = arith.constant dense<0.000000e+00> : vector<2x8x16xf32>
    %481 = tpu.matmul %479, %480, %cst_196 {dimension_numbers = #tpu.dot_dimension_numbers<[2], [2], [1], [1], [0, 0, 0, 1, 1, 1], [0], [0]>} : vector<2x8x8xf32>, vector<2x16x8xf32>, vector<2x8x16xf32> -> vector<2x8x16xf32>
    "tpu.trace_stop"() : () -> ()
    %cst_197 = arith.constant dense<0xFF800000> : vector<2x8xf32>
    %482 = vector.multi_reduction <maximumf>, %481, %cst_197 [2] : vector<2x8x16xf32> to vector<2x8xf32>
    %483 = vector.shape_cast %482 : vector<2x8xf32> to vector<2x8x1xf32>
    %484 = vector.broadcast %483 : vector<2x8x1xf32> to vector<2x8x16xf32>
    %485 = arith.subf %481, %484 : vector<2x8x16xf32>
    %486 = math.exp %485 : vector<2x8x16xf32>
    %cst_198 = arith.constant dense<0.000000e+00> : vector<2x8xf32>
    %487 = vector.multi_reduction <add>, %486, %cst_198 [2] : vector<2x8x16xf32> to vector<2x8xf32>
    %488 = vector.shape_cast %487 : vector<2x8xf32> to vector<2x8x1xf32>
    %489 = vector.broadcast %488 : vector<2x8x1xf32> to vector<2x8x16xf32>
    %490 = arith.divf %486, %489 : vector<2x8x16xf32>
    %491 = vector.extract_strided_slice %476 {offsets = [0, 0, 0], sizes = [2, 16, 8], strides = [1, 1, 1]} : vector<2x16x32xf32> to vector<2x16x8xf32>
    "tpu.trace_start"() <{level = 10 : i32, message = "bqk,bkd->bqd"}> : () -> ()
    %cst_199 = arith.constant dense<0.000000e+00> : vector<2x8x8xf32>
    %492 = tpu.matmul %490, %491, %cst_199 {dimension_numbers = #tpu.dot_dimension_numbers<[2], [1], [1], [2], [0, 0, 0, 1, 1, 2], [0], [0]>} : vector<2x8x16xf32>, vector<2x16x8xf32>, vector<2x8x8xf32> -> vector<2x8x8xf32>
    "tpu.trace_stop"() : () -> ()
    %493 = vector.shape_cast %492 : vector<2x8x8xf32> to vector<16x8xf32>
    %494 = vector.extract_strided_slice %477 {offsets = [0, 0], sizes = [8, 32], strides = [1, 1]} : vector<32x32xf32> to vector<8x32xf32>
    %cst_200 = arith.constant dense<0.000000e+00> : vector<16x32xf32>
    %495 = tpu.matmul %493, %494, %cst_200 {dimension_numbers = #tpu.dot_dimension_numbers<[1], [0], [0], [1], [0, 0, 1, 1], [], []>} : vector<16x8xf32>, vector<8x32xf32>, vector<16x32xf32> -> vector<16x32xf32>
    %496 = vector.extract_strided_slice %474 {offsets = [0, 0, 8], sizes = [2, 8, 8], strides = [1, 1, 1]} : vector<2x8x32xf32> to vector<2x8x8xf32>
    %497 = vector.extract_strided_slice %475 {offsets = [0, 0, 8], sizes = [2, 16, 8], strides = [1, 1, 1]} : vector<2x16x32xf32> to vector<2x16x8xf32>
    "tpu.trace_start"() <{level = 10 : i32, message = "bqd,bkd->bqk"}> : () -> ()
    %cst_201 = arith.constant dense<0.000000e+00> : vector<2x8x16xf32>
    %498 = tpu.matmul %496, %497, %cst_201 {dimension_numbers = #tpu.dot_dimension_numbers<[2], [2], [1], [1], [0, 0, 0, 1, 1, 1], [0], [0]>} : vector<2x8x8xf32>, vector<2x16x8xf32>, vector<2x8x16xf32> -> vector<2x8x16xf32>
    "tpu.trace_stop"() : () -> ()
    %cst_202 = arith.constant dense<0xFF800000> : vector<2x8xf32>
    %499 = vector.multi_reduction <maximumf>, %498, %cst_202 [2] : vector<2x8x16xf32> to vector<2x8xf32>
    %500 = vector.shape_cast %499 : vector<2x8xf32> to vector<2x8x1xf32>
    %501 = vector.broadcast %500 : vector<2x8x1xf32> to vector<2x8x16xf32>
    %502 = arith.subf %498, %501 : vector<2x8x16xf32>
    %503 = math.exp %502 : vector<2x8x16xf32>
    %cst_203 = arith.constant dense<0.000000e+00> : vector<2x8xf32>
    %504 = vector.multi_reduction <add>, %503, %cst_203 [2] : vector<2x8x16xf32> to vector<2x8xf32>
    %505 = vector.shape_cast %504 : vector<2x8xf32> to vector<2x8x1xf32>
    %506 = vector.broadcast %505 : vector<2x8x1xf32> to vector<2x8x16xf32>
    %507 = arith.divf %503, %506 : vector<2x8x16xf32>
    %508 = vector.extract_strided_slice %476 {offsets = [0, 0, 8], sizes = [2, 16, 8], strides = [1, 1, 1]} : vector<2x16x32xf32> to vector<2x16x8xf32>
    "tpu.trace_start"() <{level = 10 : i32, message = "bqk,bkd->bqd"}> : () -> ()
    %cst_204 = arith.constant dense<0.000000e+00> : vector<2x8x8xf32>
    %509 = tpu.matmul %507, %508, %cst_204 {dimension_numbers = #tpu.dot_dimension_numbers<[2], [1], [1], [2], [0, 0, 0, 1, 1, 2], [0], [0]>} : vector<2x8x16xf32>, vector<2x16x8xf32>, vector<2x8x8xf32> -> vector<2x8x8xf32>
    "tpu.trace_stop"() : () -> ()
    %510 = vector.shape_cast %509 : vector<2x8x8xf32> to vector<16x8xf32>
    %511 = vector.extract_strided_slice %477 {offsets = [8, 0], sizes = [8, 32], strides = [1, 1]} : vector<32x32xf32> to vector<8x32xf32>
    %cst_205 = arith.constant dense<0.000000e+00> : vector<16x32xf32>
    %512 = tpu.matmul %510, %511, %cst_205 {dimension_numbers = #tpu.dot_dimension_numbers<[1], [0], [0], [1], [0, 0, 1, 1], [], []>} : vector<16x8xf32>, vector<8x32xf32>, vector<16x32xf32> -> vector<16x32xf32>
    %513 = arith.addf %495, %512 : vector<16x32xf32>
    %514 = vector.extract_strided_slice %474 {offsets = [0, 0, 16], sizes = [2, 8, 8], strides = [1, 1, 1]} : vector<2x8x32xf32> to vector<2x8x8xf32>
    %515 = vector.extract_strided_slice %475 {offsets = [0, 0, 16], sizes = [2, 16, 8], strides = [1, 1, 1]} : vector<2x16x32xf32> to vector<2x16x8xf32>
    "tpu.trace_start"() <{level = 10 : i32, message = "bqd,bkd->bqk"}> : () -> ()
    %cst_206 = arith.constant dense<0.000000e+00> : vector<2x8x16xf32>
    %516 = tpu.matmul %514, %515, %cst_206 {dimension_numbers = #tpu.dot_dimension_numbers<[2], [2], [1], [1], [0, 0, 0, 1, 1, 1], [0], [0]>} : vector<2x8x8xf32>, vector<2x16x8xf32>, vector<2x8x16xf32> -> vector<2x8x16xf32>
    "tpu.trace_stop"() : () -> ()
    %cst_207 = arith.constant dense<0xFF800000> : vector<2x8xf32>
    %517 = vector.multi_reduction <maximumf>, %516, %cst_207 [2] : vector<2x8x16xf32> to vector<2x8xf32>
    %518 = vector.shape_cast %517 : vector<2x8xf32> to vector<2x8x1xf32>
    %519 = vector.broadcast %518 : vector<2x8x1xf32> to vector<2x8x16xf32>
    %520 = arith.subf %516, %519 : vector<2x8x16xf32>
    %521 = math.exp %520 : vector<2x8x16xf32>
    %cst_208 = arith.constant dense<0.000000e+00> : vector<2x8xf32>
    %522 = vector.multi_reduction <add>, %521, %cst_208 [2] : vector<2x8x16xf32> to vector<2x8xf32>
    %523 = vector.shape_cast %522 : vector<2x8xf32> to vector<2x8x1xf32>
    %524 = vector.broadcast %523 : vector<2x8x1xf32> to vector<2x8x16xf32>
    %525 = arith.divf %521, %524 : vector<2x8x16xf32>
    %526 = vector.extract_strided_slice %476 {offsets = [0, 0, 16], sizes = [2, 16, 8], strides = [1, 1, 1]} : vector<2x16x32xf32> to vector<2x16x8xf32>
    "tpu.trace_start"() <{level = 10 : i32, message = "bqk,bkd->bqd"}> : () -> ()
    %cst_209 = arith.constant dense<0.000000e+00> : vector<2x8x8xf32>
    %527 = tpu.matmul %525, %526, %cst_209 {dimension_numbers = #tpu.dot_dimension_numbers<[2], [1], [1], [2], [0, 0, 0, 1, 1, 2], [0], [0]>} : vector<2x8x16xf32>, vector<2x16x8xf32>, vector<2x8x8xf32> -> vector<2x8x8xf32>
    "tpu.trace_stop"() : () -> ()
    %528 = vector.shape_cast %527 : vector<2x8x8xf32> to vector<16x8xf32>
    %529 = vector.extract_strided_slice %477 {offsets = [16, 0], sizes = [8, 32], strides = [1, 1]} : vector<32x32xf32> to vector<8x32xf32>
    %cst_210 = arith.constant dense<0.000000e+00> : vector<16x32xf32>
    %530 = tpu.matmul %528, %529, %cst_210 {dimension_numbers = #tpu.dot_dimension_numbers<[1], [0], [0], [1], [0, 0, 1, 1], [], []>} : vector<16x8xf32>, vector<8x32xf32>, vector<16x32xf32> -> vector<16x32xf32>
    %531 = arith.addf %513, %530 : vector<16x32xf32>
    %532 = vector.extract_strided_slice %474 {offsets = [0, 0, 24], sizes = [2, 8, 8], strides = [1, 1, 1]} : vector<2x8x32xf32> to vector<2x8x8xf32>
    %533 = vector.extract_strided_slice %475 {offsets = [0, 0, 24], sizes = [2, 16, 8], strides = [1, 1, 1]} : vector<2x16x32xf32> to vector<2x16x8xf32>
    "tpu.trace_start"() <{level = 10 : i32, message = "bqd,bkd->bqk"}> : () -> ()
    %cst_211 = arith.constant dense<0.000000e+00> : vector<2x8x16xf32>
    %534 = tpu.matmul %532, %533, %cst_211 {dimension_numbers = #tpu.dot_dimension_numbers<[2], [2], [1], [1], [0, 0, 0, 1, 1, 1], [0], [0]>} : vector<2x8x8xf32>, vector<2x16x8xf32>, vector<2x8x16xf32> -> vector<2x8x16xf32>
    "tpu.trace_stop"() : () -> ()
    %cst_212 = arith.constant dense<0xFF800000> : vector<2x8xf32>
    %535 = vector.multi_reduction <maximumf>, %534, %cst_212 [2] : vector<2x8x16xf32> to vector<2x8xf32>
    %536 = vector.shape_cast %535 : vector<2x8xf32> to vector<2x8x1xf32>
    %537 = vector.broadcast %536 : vector<2x8x1xf32> to vector<2x8x16xf32>
    %538 = arith.subf %534, %537 : vector<2x8x16xf32>
    %539 = math.exp %538 : vector<2x8x16xf32>
    %cst_213 = arith.constant dense<0.000000e+00> : vector<2x8xf32>
    %540 = vector.multi_reduction <add>, %539, %cst_213 [2] : vector<2x8x16xf32> to vector<2x8xf32>
    %541 = vector.shape_cast %540 : vector<2x8xf32> to vector<2x8x1xf32>
    %542 = vector.broadcast %541 : vector<2x8x1xf32> to vector<2x8x16xf32>
    %543 = arith.divf %539, %542 : vector<2x8x16xf32>
    %544 = vector.extract_strided_slice %476 {offsets = [0, 0, 24], sizes = [2, 16, 8], strides = [1, 1, 1]} : vector<2x16x32xf32> to vector<2x16x8xf32>
    "tpu.trace_start"() <{level = 10 : i32, message = "bqk,bkd->bqd"}> : () -> ()
    %cst_214 = arith.constant dense<0.000000e+00> : vector<2x8x8xf32>
    %545 = tpu.matmul %543, %544, %cst_214 {dimension_numbers = #tpu.dot_dimension_numbers<[2], [1], [1], [2], [0, 0, 0, 1, 1, 2], [0], [0]>} : vector<2x8x16xf32>, vector<2x16x8xf32>, vector<2x8x8xf32> -> vector<2x8x8xf32>
    "tpu.trace_stop"() : () -> ()
    %546 = vector.shape_cast %545 : vector<2x8x8xf32> to vector<16x8xf32>
    %547 = vector.extract_strided_slice %477 {offsets = [24, 0], sizes = [8, 32], strides = [1, 1]} : vector<32x32xf32> to vector<8x32xf32>
    %cst_215 = arith.constant dense<0.000000e+00> : vector<16x32xf32>
    %548 = tpu.matmul %546, %547, %cst_215 {dimension_numbers = #tpu.dot_dimension_numbers<[1], [0], [0], [1], [0, 0, 1, 1], [], []>} : vector<16x8xf32>, vector<8x32xf32>, vector<16x32xf32> -> vector<16x32xf32>
    %549 = arith.addf %531, %548 : vector<16x32xf32>
    %550 = vector.broadcast %478 : vector<1x32xf32> to vector<16x32xf32>
    %551 = arith.addf %549, %550 : vector<16x32xf32>
    %552 = arith.addf %455, %551 : vector<16x32xf32>
    %c176 = arith.constant 176 : index
    %c0_216 = arith.constant 0 : index
    %553 = vector.load %arg5[%c176, %c0_216] : memref<992x128xf32, #tpu.memory_space<vmem>>, vector<1x32xf32>
    %c168 = arith.constant 168 : index
    %c0_217 = arith.constant 0 : index
    %554 = vector.load %arg5[%c168, %c0_217] : memref<992x128xf32, #tpu.memory_space<vmem>>, vector<1x32xf32>
    %cst_218 = arith.constant dense<0.000000e+00> : vector<16xf32>
    %555 = vector.multi_reduction <add>, %552, %cst_218 [1] : vector<16x32xf32> to vector<16xf32>
    %556 = vector.shape_cast %555 : vector<16xf32> to vector<16x1xf32>
    %cst_219 = arith.constant 3.200000e+01 : f32
    %557 = vector.broadcast %cst_219 : f32 to vector<16x1xf32>
    %558 = arith.divf %556, %557 : vector<16x1xf32>
    %559 = vector.broadcast %558 : vector<16x1xf32> to vector<16x32xf32>
    %560 = arith.subf %552, %559 : vector<16x32xf32>
    %561 = arith.mulf %560, %560 : vector<16x32xf32>
    %cst_220 = arith.constant dense<0.000000e+00> : vector<16xf32>
    %562 = vector.multi_reduction <add>, %561, %cst_220 [1] : vector<16x32xf32> to vector<16xf32>
    %563 = vector.shape_cast %562 : vector<16xf32> to vector<16x1xf32>
    %cst_221 = arith.constant 3.200000e+01 : f32
    %564 = vector.broadcast %cst_221 : f32 to vector<16x1xf32>
    %565 = arith.divf %563, %564 : vector<16x1xf32>
    %566 = vector.broadcast %558 : vector<16x1xf32> to vector<16x32xf32>
    %567 = arith.subf %552, %566 : vector<16x32xf32>
    %cst_222 = arith.constant 9.99999974E-6 : f32
    %568 = vector.broadcast %cst_222 : f32 to vector<16x1xf32>
    %569 = arith.addf %565, %568 : vector<16x1xf32>
    %570 = math.rsqrt %569 : vector<16x1xf32>
    %571 = vector.broadcast %570 : vector<16x1xf32> to vector<16x32xf32>
    %572 = arith.mulf %567, %571 : vector<16x32xf32>
    %573 = vector.broadcast %553 : vector<1x32xf32> to vector<16x32xf32>
    %574 = arith.mulf %572, %573 : vector<16x32xf32>
    %575 = vector.broadcast %554 : vector<1x32xf32> to vector<16x32xf32>
    %576 = arith.addf %574, %575 : vector<16x32xf32>
    %c56 = arith.constant 56 : index
    %c0_223 = arith.constant 0 : index
    %577 = vector.load %arg5[%c56, %c0_223] : memref<992x128xf32, #tpu.memory_space<vmem>>, vector<32x64xf32>
    %cst_224 = arith.constant dense<0.000000e+00> : vector<16x64xf32>
    %578 = tpu.matmul %576, %577, %cst_224 {dimension_numbers = #tpu.dot_dimension_numbers<[1], [0], [0], [1], [0, 0, 1, 1], [], []>} : vector<16x32xf32>, vector<32x64xf32>, vector<16x64xf32> -> vector<16x64xf32>
    %c40 = arith.constant 40 : index
    %c0_225 = arith.constant 0 : index
    %579 = vector.load %arg5[%c40, %c0_225] : memref<992x128xf32, #tpu.memory_space<vmem>>, vector<1x64xf32>
    %580 = vector.broadcast %579 : vector<1x64xf32> to vector<16x64xf32>
    %581 = arith.addf %578, %580 : vector<16x64xf32>
    %cst_226 = arith.constant 0.000000e+00 : f32
    %582 = vector.broadcast %cst_226 : f32 to vector<16x64xf32>
    %583 = arith.maximumf %581, %582 : vector<16x64xf32>
    %c88 = arith.constant 88 : index
    %c0_227 = arith.constant 0 : index
    %584 = vector.load %arg5[%c88, %c0_227] : memref<992x128xf32, #tpu.memory_space<vmem>>, vector<64x32xf32>
    %cst_228 = arith.constant dense<0.000000e+00> : vector<16x32xf32>
    %585 = tpu.matmul %583, %584, %cst_228 {dimension_numbers = #tpu.dot_dimension_numbers<[1], [0], [0], [1], [0, 0, 1, 1], [], []>} : vector<16x64xf32>, vector<64x32xf32>, vector<16x32xf32> -> vector<16x32xf32>
    %c48_229 = arith.constant 48 : index
    %c0_230 = arith.constant 0 : index
    %586 = vector.load %arg5[%c48_229, %c0_230] : memref<992x128xf32, #tpu.memory_space<vmem>>, vector<1x32xf32>
    %587 = vector.broadcast %586 : vector<1x32xf32> to vector<16x32xf32>
    %588 = arith.addf %585, %587 : vector<16x32xf32>
    %589 = arith.addf %576, %588 : vector<16x32xf32>
    %c192 = arith.constant 192 : index
    %c0_231 = arith.constant 0 : index
    %590 = vector.load %arg5[%c192, %c0_231] : memref<992x128xf32, #tpu.memory_space<vmem>>, vector<1x32xf32>
    %c184 = arith.constant 184 : index
    %c0_232 = arith.constant 0 : index
    %591 = vector.load %arg5[%c184, %c0_232] : memref<992x128xf32, #tpu.memory_space<vmem>>, vector<1x32xf32>
    %cst_233 = arith.constant dense<0.000000e+00> : vector<16xf32>
    %592 = vector.multi_reduction <add>, %589, %cst_233 [1] : vector<16x32xf32> to vector<16xf32>
    %593 = vector.shape_cast %592 : vector<16xf32> to vector<16x1xf32>
    %cst_234 = arith.constant 3.200000e+01 : f32
    %594 = vector.broadcast %cst_234 : f32 to vector<16x1xf32>
    %595 = arith.divf %593, %594 : vector<16x1xf32>
    %596 = vector.broadcast %595 : vector<16x1xf32> to vector<16x32xf32>
    %597 = arith.subf %589, %596 : vector<16x32xf32>
    %598 = arith.mulf %597, %597 : vector<16x32xf32>
    %cst_235 = arith.constant dense<0.000000e+00> : vector<16xf32>
    %599 = vector.multi_reduction <add>, %598, %cst_235 [1] : vector<16x32xf32> to vector<16xf32>
    %600 = vector.shape_cast %599 : vector<16xf32> to vector<16x1xf32>
    %cst_236 = arith.constant 3.200000e+01 : f32
    %601 = vector.broadcast %cst_236 : f32 to vector<16x1xf32>
    %602 = arith.divf %600, %601 : vector<16x1xf32>
    %603 = vector.broadcast %595 : vector<16x1xf32> to vector<16x32xf32>
    %604 = arith.subf %589, %603 : vector<16x32xf32>
    %cst_237 = arith.constant 9.99999974E-6 : f32
    %605 = vector.broadcast %cst_237 : f32 to vector<16x1xf32>
    %606 = arith.addf %602, %605 : vector<16x1xf32>
    %607 = math.rsqrt %606 : vector<16x1xf32>
    %608 = vector.broadcast %607 : vector<16x1xf32> to vector<16x32xf32>
    %609 = arith.mulf %604, %608 : vector<16x32xf32>
    %610 = vector.broadcast %590 : vector<1x32xf32> to vector<16x32xf32>
    %611 = arith.mulf %609, %610 : vector<16x32xf32>
    %612 = vector.broadcast %591 : vector<1x32xf32> to vector<16x32xf32>
    %613 = arith.addf %611, %612 : vector<16x32xf32>
    %cst_238 = arith.constant dense<0.000000e+00> : vector<16xf32>
    %614 = vector.multi_reduction <add>, %613, %cst_238 [1] : vector<16x32xf32> to vector<16xf32>
    %615 = vector.shape_cast %614 : vector<16xf32> to vector<16x1xf32>
    %cst_239 = arith.constant 3.200000e+01 : f32
    %616 = vector.broadcast %cst_239 : f32 to vector<16x1xf32>
    %617 = arith.divf %615, %616 : vector<16x1xf32>
    %618 = vector.broadcast %617 : vector<16x1xf32> to vector<16x32xf32>
    %619 = arith.subf %613, %618 : vector<16x32xf32>
    %620 = arith.mulf %619, %619 : vector<16x32xf32>
    %cst_240 = arith.constant dense<0.000000e+00> : vector<16xf32>
    %621 = vector.multi_reduction <add>, %620, %cst_240 [1] : vector<16x32xf32> to vector<16xf32>
    %622 = vector.shape_cast %621 : vector<16xf32> to vector<16x1xf32>
    %cst_241 = arith.constant 3.200000e+01 : f32
    %623 = vector.broadcast %cst_241 : f32 to vector<16x1xf32>
    %624 = arith.divf %622, %623 : vector<16x1xf32>
    %625 = vector.broadcast %617 : vector<16x1xf32> to vector<16x32xf32>
    %626 = arith.subf %613, %625 : vector<16x32xf32>
    %cst_242 = arith.constant 9.99999974E-6 : f32
    %627 = vector.broadcast %cst_242 : f32 to vector<16x1xf32>
    %628 = arith.addf %624, %627 : vector<16x1xf32>
    %629 = math.rsqrt %628 : vector<16x1xf32>
    %630 = vector.broadcast %629 : vector<16x1xf32> to vector<16x32xf32>
    %631 = arith.mulf %626, %630 : vector<16x32xf32>
    %632 = vector.broadcast %8 : vector<1x32xf32> to vector<16x32xf32>
    %633 = arith.mulf %631, %632 : vector<16x32xf32>
    %634 = vector.broadcast %9 : vector<1x32xf32> to vector<16x32xf32>
    %635 = arith.addf %633, %634 : vector<16x32xf32>
    %c0_243 = arith.constant 0 : index
    %c0_244 = arith.constant 0 : index
    %c56_245 = arith.constant 56 : index
    %636 = vector.load %arg6[%c0_243, %c0_244, %c56_245] : memref<2x16x128xf32, #tpu.memory_space<vmem>>, vector<1x16x32xf32>
    %637 = vector.shape_cast %636 : vector<1x16x32xf32> to vector<16x32xf32>
    %638 = vector.shape_cast %635 : vector<16x32xf32> to vector<1x16x32xf32>
    tpu.vector_store %arg6[%c0_243, %c0_244, %c56_245], %638 {strides = array<i32>} : memref<2x16x128xf32, #tpu.memory_space<vmem>>, vector<1x16x32xf32>,
    %639 = arith.addf %302, %5 : vector<16x32xf32>
    %c944 = arith.constant 944 : index
    %c0_246 = arith.constant 0 : index
    %640 = vector.load %arg5[%c944, %c0_246] : memref<992x128xf32, #tpu.memory_space<vmem>>, vector<32x32xf32>
    %cst_247 = arith.constant dense<0.000000e+00> : vector<16x32xf32>
    %641 = tpu.matmul %639, %640, %cst_247 {dimension_numbers = #tpu.dot_dimension_numbers<[1], [0], [0], [1], [0, 0, 1, 1], [], []>} : vector<16x32xf32>, vector<32x32xf32>, vector<16x32xf32> -> vector<16x32xf32>
    %c936 = arith.constant 936 : index
    %c0_248 = arith.constant 0 : index
    %642 = vector.load %arg5[%c936, %c0_248] : memref<992x128xf32, #tpu.memory_space<vmem>>, vector<1x32xf32>
    %643 = vector.broadcast %642 : vector<1x32xf32> to vector<16x32xf32>
    %644 = arith.addf %641, %643 : vector<16x32xf32>
    %c944_249 = arith.constant 944 : index
    %c32_250 = arith.constant 32 : index
    %645 = vector.load %arg5[%c944_249, %c32_250] : memref<992x128xf32, #tpu.memory_space<vmem>>, vector<32x32xf32>
    %cst_251 = arith.constant dense<0.000000e+00> : vector<16x32xf32>
    %646 = tpu.matmul %639, %645, %cst_251 {dimension_numbers = #tpu.dot_dimension_numbers<[1], [0], [0], [1], [0, 0, 1, 1], [], []>} : vector<16x32xf32>, vector<32x32xf32>, vector<16x32xf32> -> vector<16x32xf32>
    %c936_252 = arith.constant 936 : index
    %c32_253 = arith.constant 32 : index
    %647 = vector.load %arg5[%c936_252, %c32_253] : memref<992x128xf32, #tpu.memory_space<vmem>>, vector<1x32xf32>
    %648 = vector.broadcast %647 : vector<1x32xf32> to vector<16x32xf32>
    %649 = arith.addf %646, %648 : vector<16x32xf32>
    %c944_254 = arith.constant 944 : index
    %c64_255 = arith.constant 64 : index
    %650 = vector.load %arg5[%c944_254, %c64_255] : memref<992x128xf32, #tpu.memory_space<vmem>>, vector<32x32xf32>
    %cst_256 = arith.constant dense<0.000000e+00> : vector<16x32xf32>
    %651 = tpu.matmul %302, %650, %cst_256 {dimension_numbers = #tpu.dot_dimension_numbers<[1], [0], [0], [1], [0, 0, 1, 1], [], []>} : vector<16x32xf32>, vector<32x32xf32>, vector<16x32xf32> -> vector<16x32xf32>
    %c936_257 = arith.constant 936 : index
    %c64_258 = arith.constant 64 : index
    %652 = vector.load %arg5[%c936_257, %c64_258] : memref<992x128xf32, #tpu.memory_space<vmem>>, vector<1x32xf32>
    %653 = vector.broadcast %652 : vector<1x32xf32> to vector<16x32xf32>
    %654 = arith.addf %651, %653 : vector<16x32xf32>
    %cst_259 = arith.constant 0.353553385 : f32
    %655 = vector.broadcast %cst_259 : f32 to vector<16x32xf32>
    %656 = arith.mulf %644, %655 : vector<16x32xf32>
    %657 = vector.shape_cast %656 : vector<16x32xf32> to vector<2x8x32xf32>
    %658 = vector.shape_cast %649 : vector<16x32xf32> to vector<2x8x32xf32>
    %659 = vector.shape_cast %654 : vector<16x32xf32> to vector<2x8x32xf32>
    %c944_260 = arith.constant 944 : index
    %c96_261 = arith.constant 96 : index
    %660 = vector.load %arg5[%c944_260, %c96_261] : memref<992x128xf32, #tpu.memory_space<vmem>>, vector<32x32xf32>
    %c936_262 = arith.constant 936 : index
    %c96_263 = arith.constant 96 : index
    %661 = vector.load %arg5[%c936_262, %c96_263] : memref<992x128xf32, #tpu.memory_space<vmem>>, vector<1x32xf32>
    %662 = vector.extract_strided_slice %657 {offsets = [0, 0, 0], sizes = [2, 8, 8], strides = [1, 1, 1]} : vector<2x8x32xf32> to vector<2x8x8xf32>
    %663 = vector.extract_strided_slice %658 {offsets = [0, 0, 0], sizes = [2, 8, 8], strides = [1, 1, 1]} : vector<2x8x32xf32> to vector<2x8x8xf32>
    "tpu.trace_start"() <{level = 10 : i32, message = "bqd,bkd->bqk"}> : () -> ()
    %cst_264 = arith.constant dense<0.000000e+00> : vector<2x8x8xf32>
    %664 = tpu.matmul %662, %663, %cst_264 {dimension_numbers = #tpu.dot_dimension_numbers<[2], [2], [1], [1], [0, 0, 0, 1, 1, 1], [0], [0]>} : vector<2x8x8xf32>, vector<2x8x8xf32>, vector<2x8x8xf32> -> vector<2x8x8xf32>
    "tpu.trace_stop"() : () -> ()
    %cst_265 = arith.constant dense<0xFF800000> : vector<2x8xf32>
    %665 = vector.multi_reduction <maximumf>, %664, %cst_265 [2] : vector<2x8x8xf32> to vector<2x8xf32>
    %666 = vector.shape_cast %665 : vector<2x8xf32> to vector<2x8x1xf32>
    %667 = vector.broadcast %666 : vector<2x8x1xf32> to vector<2x8x8xf32>
    %668 = arith.subf %664, %667 : vector<2x8x8xf32>
    %669 = math.exp %668 : vector<2x8x8xf32>
    %cst_266 = arith.constant dense<0.000000e+00> : vector<2x8xf32>
    %670 = vector.multi_reduction <add>, %669, %cst_266 [2] : vector<2x8x8xf32> to vector<2x8xf32>
    %671 = vector.shape_cast %670 : vector<2x8xf32> to vector<2x8x1xf32>
    %672 = vector.broadcast %671 : vector<2x8x1xf32> to vector<2x8x8xf32>
    %673 = arith.divf %669, %672 : vector<2x8x8xf32>
    %674 = vector.extract_strided_slice %659 {offsets = [0, 0, 0], sizes = [2, 8, 8], strides = [1, 1, 1]} : vector<2x8x32xf32> to vector<2x8x8xf32>
    "tpu.trace_start"() <{level = 10 : i32, message = "bqk,bkd->bqd"}> : () -> ()
    %cst_267 = arith.constant dense<0.000000e+00> : vector<2x8x8xf32>
    %675 = tpu.matmul %673, %674, %cst_267 {dimension_numbers = #tpu.dot_dimension_numbers<[2], [1], [1], [2], [0, 0, 0, 1, 1, 2], [0], [0]>} : vector<2x8x8xf32>, vector<2x8x8xf32>, vector<2x8x8xf32> -> vector<2x8x8xf32>
    "tpu.trace_stop"() : () -> ()
    %676 = vector.shape_cast %675 : vector<2x8x8xf32> to vector<16x8xf32>
    %677 = vector.extract_strided_slice %660 {offsets = [0, 0], sizes = [8, 32], strides = [1, 1]} : vector<32x32xf32> to vector<8x32xf32>
    %cst_268 = arith.constant dense<0.000000e+00> : vector<16x32xf32>
    %678 = tpu.matmul %676, %677, %cst_268 {dimension_numbers = #tpu.dot_dimension_numbers<[1], [0], [0], [1], [0, 0, 1, 1], [], []>} : vector<16x8xf32>, vector<8x32xf32>, vector<16x32xf32> -> vector<16x32xf32>
    %679 = vector.extract_strided_slice %657 {offsets = [0, 0, 8], sizes = [2, 8, 8], strides = [1, 1, 1]} : vector<2x8x32xf32> to vector<2x8x8xf32>
    %680 = vector.extract_strided_slice %658 {offsets = [0, 0, 8], sizes = [2, 8, 8], strides = [1, 1, 1]} : vector<2x8x32xf32> to vector<2x8x8xf32>
    "tpu.trace_start"() <{level = 10 : i32, message = "bqd,bkd->bqk"}> : () -> ()
    %cst_269 = arith.constant dense<0.000000e+00> : vector<2x8x8xf32>
    %681 = tpu.matmul %679, %680, %cst_269 {dimension_numbers = #tpu.dot_dimension_numbers<[2], [2], [1], [1], [0, 0, 0, 1, 1, 1], [0], [0]>} : vector<2x8x8xf32>, vector<2x8x8xf32>, vector<2x8x8xf32> -> vector<2x8x8xf32>
    "tpu.trace_stop"() : () -> ()
    %cst_270 = arith.constant dense<0xFF800000> : vector<2x8xf32>
    %682 = vector.multi_reduction <maximumf>, %681, %cst_270 [2] : vector<2x8x8xf32> to vector<2x8xf32>
    %683 = vector.shape_cast %682 : vector<2x8xf32> to vector<2x8x1xf32>
    %684 = vector.broadcast %683 : vector<2x8x1xf32> to vector<2x8x8xf32>
    %685 = arith.subf %681, %684 : vector<2x8x8xf32>
    %686 = math.exp %685 : vector<2x8x8xf32>
    %cst_271 = arith.constant dense<0.000000e+00> : vector<2x8xf32>
    %687 = vector.multi_reduction <add>, %686, %cst_271 [2] : vector<2x8x8xf32> to vector<2x8xf32>
    %688 = vector.shape_cast %687 : vector<2x8xf32> to vector<2x8x1xf32>
    %689 = vector.broadcast %688 : vector<2x8x1xf32> to vector<2x8x8xf32>
    %690 = arith.divf %686, %689 : vector<2x8x8xf32>
    %691 = vector.extract_strided_slice %659 {offsets = [0, 0, 8], sizes = [2, 8, 8], strides = [1, 1, 1]} : vector<2x8x32xf32> to vector<2x8x8xf32>
    "tpu.trace_start"() <{level = 10 : i32, message = "bqk,bkd->bqd"}> : () -> ()
    %cst_272 = arith.constant dense<0.000000e+00> : vector<2x8x8xf32>
    %692 = tpu.matmul %690, %691, %cst_272 {dimension_numbers = #tpu.dot_dimension_numbers<[2], [1], [1], [2], [0, 0, 0, 1, 1, 2], [0], [0]>} : vector<2x8x8xf32>, vector<2x8x8xf32>, vector<2x8x8xf32> -> vector<2x8x8xf32>
    "tpu.trace_stop"() : () -> ()
    %693 = vector.shape_cast %692 : vector<2x8x8xf32> to vector<16x8xf32>
    %694 = vector.extract_strided_slice %660 {offsets = [8, 0], sizes = [8, 32], strides = [1, 1]} : vector<32x32xf32> to vector<8x32xf32>
    %cst_273 = arith.constant dense<0.000000e+00> : vector<16x32xf32>
    %695 = tpu.matmul %693, %694, %cst_273 {dimension_numbers = #tpu.dot_dimension_numbers<[1], [0], [0], [1], [0, 0, 1, 1], [], []>} : vector<16x8xf32>, vector<8x32xf32>, vector<16x32xf32> -> vector<16x32xf32>
    %696 = arith.addf %678, %695 : vector<16x32xf32>
    %697 = arith.addf %673, %690 : vector<2x8x8xf32>
    %698 = vector.extract_strided_slice %657 {offsets = [0, 0, 16], sizes = [2, 8, 8], strides = [1, 1, 1]} : vector<2x8x32xf32> to vector<2x8x8xf32>
    %699 = vector.extract_strided_slice %658 {offsets = [0, 0, 16], sizes = [2, 8, 8], strides = [1, 1, 1]} : vector<2x8x32xf32> to vector<2x8x8xf32>
    "tpu.trace_start"() <{level = 10 : i32, message = "bqd,bkd->bqk"}> : () -> ()
    %cst_274 = arith.constant dense<0.000000e+00> : vector<2x8x8xf32>
    %700 = tpu.matmul %698, %699, %cst_274 {dimension_numbers = #tpu.dot_dimension_numbers<[2], [2], [1], [1], [0, 0, 0, 1, 1, 1], [0], [0]>} : vector<2x8x8xf32>, vector<2x8x8xf32>, vector<2x8x8xf32> -> vector<2x8x8xf32>
    "tpu.trace_stop"() : () -> ()
    %cst_275 = arith.constant dense<0xFF800000> : vector<2x8xf32>
    %701 = vector.multi_reduction <maximumf>, %700, %cst_275 [2] : vector<2x8x8xf32> to vector<2x8xf32>
    %702 = vector.shape_cast %701 : vector<2x8xf32> to vector<2x8x1xf32>
    %703 = vector.broadcast %702 : vector<2x8x1xf32> to vector<2x8x8xf32>
    %704 = arith.subf %700, %703 : vector<2x8x8xf32>
    %705 = math.exp %704 : vector<2x8x8xf32>
    %cst_276 = arith.constant dense<0.000000e+00> : vector<2x8xf32>
    %706 = vector.multi_reduction <add>, %705, %cst_276 [2] : vector<2x8x8xf32> to vector<2x8xf32>
    %707 = vector.shape_cast %706 : vector<2x8xf32> to vector<2x8x1xf32>
    %708 = vector.broadcast %707 : vector<2x8x1xf32> to vector<2x8x8xf32>
    %709 = arith.divf %705, %708 : vector<2x8x8xf32>
    %710 = vector.extract_strided_slice %659 {offsets = [0, 0, 16], sizes = [2, 8, 8], strides = [1, 1, 1]} : vector<2x8x32xf32> to vector<2x8x8xf32>
    "tpu.trace_start"() <{level = 10 : i32, message = "bqk,bkd->bqd"}> : () -> ()
    %cst_277 = arith.constant dense<0.000000e+00> : vector<2x8x8xf32>
    %711 = tpu.matmul %709, %710, %cst_277 {dimension_numbers = #tpu.dot_dimension_numbers<[2], [1], [1], [2], [0, 0, 0, 1, 1, 2], [0], [0]>} : vector<2x8x8xf32>, vector<2x8x8xf32>, vector<2x8x8xf32> -> vector<2x8x8xf32>
    "tpu.trace_stop"() : () -> ()
    %712 = vector.shape_cast %711 : vector<2x8x8xf32> to vector<16x8xf32>
    %713 = vector.extract_strided_slice %660 {offsets = [16, 0], sizes = [8, 32], strides = [1, 1]} : vector<32x32xf32> to vector<8x32xf32>
    %cst_278 = arith.constant dense<0.000000e+00> : vector<16x32xf32>
    %714 = tpu.matmul %712, %713, %cst_278 {dimension_numbers = #tpu.dot_dimension_numbers<[1], [0], [0], [1], [0, 0, 1, 1], [], []>} : vector<16x8xf32>, vector<8x32xf32>, vector<16x32xf32> -> vector<16x32xf32>
    %715 = arith.addf %696, %714 : vector<16x32xf32>
    %716 = arith.addf %697, %709 : vector<2x8x8xf32>
    %717 = vector.extract_strided_slice %657 {offsets = [0, 0, 24], sizes = [2, 8, 8], strides = [1, 1, 1]} : vector<2x8x32xf32> to vector<2x8x8xf32>
    %718 = vector.extract_strided_slice %658 {offsets = [0, 0, 24], sizes = [2, 8, 8], strides = [1, 1, 1]} : vector<2x8x32xf32> to vector<2x8x8xf32>
    "tpu.trace_start"() <{level = 10 : i32, message = "bqd,bkd->bqk"}> : () -> ()
    %cst_279 = arith.constant dense<0.000000e+00> : vector<2x8x8xf32>
    %719 = tpu.matmul %717, %718, %cst_279 {dimension_numbers = #tpu.dot_dimension_numbers<[2], [2], [1], [1], [0, 0, 0, 1, 1, 1], [0], [0]>} : vector<2x8x8xf32>, vector<2x8x8xf32>, vector<2x8x8xf32> -> vector<2x8x8xf32>
    "tpu.trace_stop"() : () -> ()
    %cst_280 = arith.constant dense<0xFF800000> : vector<2x8xf32>
    %720 = vector.multi_reduction <maximumf>, %719, %cst_280 [2] : vector<2x8x8xf32> to vector<2x8xf32>
    %721 = vector.shape_cast %720 : vector<2x8xf32> to vector<2x8x1xf32>
    %722 = vector.broadcast %721 : vector<2x8x1xf32> to vector<2x8x8xf32>
    %723 = arith.subf %719, %722 : vector<2x8x8xf32>
    %724 = math.exp %723 : vector<2x8x8xf32>
    %cst_281 = arith.constant dense<0.000000e+00> : vector<2x8xf32>
    %725 = vector.multi_reduction <add>, %724, %cst_281 [2] : vector<2x8x8xf32> to vector<2x8xf32>
    %726 = vector.shape_cast %725 : vector<2x8xf32> to vector<2x8x1xf32>
    %727 = vector.broadcast %726 : vector<2x8x1xf32> to vector<2x8x8xf32>
    %728 = arith.divf %724, %727 : vector<2x8x8xf32>
    %729 = vector.extract_strided_slice %659 {offsets = [0, 0, 24], sizes = [2, 8, 8], strides = [1, 1, 1]} : vector<2x8x32xf32> to vector<2x8x8xf32>
    "tpu.trace_start"() <{level = 10 : i32, message = "bqk,bkd->bqd"}> : () -> ()
    %cst_282 = arith.constant dense<0.000000e+00> : vector<2x8x8xf32>
    %730 = tpu.matmul %728, %729, %cst_282 {dimension_numbers = #tpu.dot_dimension_numbers<[2], [1], [1], [2], [0, 0, 0, 1, 1, 2], [0], [0]>} : vector<2x8x8xf32>, vector<2x8x8xf32>, vector<2x8x8xf32> -> vector<2x8x8xf32>
    "tpu.trace_stop"() : () -> ()
    %731 = vector.shape_cast %730 : vector<2x8x8xf32> to vector<16x8xf32>
    %732 = vector.extract_strided_slice %660 {offsets = [24, 0], sizes = [8, 32], strides = [1, 1]} : vector<32x32xf32> to vector<8x32xf32>
    %cst_283 = arith.constant dense<0.000000e+00> : vector<16x32xf32>
    %733 = tpu.matmul %731, %732, %cst_283 {dimension_numbers = #tpu.dot_dimension_numbers<[1], [0], [0], [1], [0, 0, 1, 1], [], []>} : vector<16x8xf32>, vector<8x32xf32>, vector<16x32xf32> -> vector<16x32xf32>
    %734 = arith.addf %715, %733 : vector<16x32xf32>
    %735 = arith.addf %716, %728 : vector<2x8x8xf32>
    %736 = vector.broadcast %661 : vector<1x32xf32> to vector<16x32xf32>
    %737 = arith.addf %734, %736 : vector<16x32xf32>
    %cst_284 = arith.constant 2.500000e-01 : f32
    %738 = vector.broadcast %cst_284 : f32 to vector<2x8x8xf32>
    %739 = arith.mulf %735, %738 : vector<2x8x8xf32>
    %740 = vector.shape_cast %739 : vector<2x8x8xf32> to vector<16x8xf32>
    %741 = arith.addf %302, %737 : vector<16x32xf32>
    %c896 = arith.constant 896 : index
    %c0_285 = arith.constant 0 : index
    %742 = vector.load %arg5[%c896, %c0_285] : memref<992x128xf32, #tpu.memory_space<vmem>>, vector<1x32xf32>
    %c888 = arith.constant 888 : index
    %c0_286 = arith.constant 0 : index
    %743 = vector.load %arg5[%c888, %c0_286] : memref<992x128xf32, #tpu.memory_space<vmem>>, vector<1x32xf32>
    %cst_287 = arith.constant dense<0.000000e+00> : vector<16xf32>
    %744 = vector.multi_reduction <add>, %741, %cst_287 [1] : vector<16x32xf32> to vector<16xf32>
    %745 = vector.shape_cast %744 : vector<16xf32> to vector<16x1xf32>
    %cst_288 = arith.constant 3.200000e+01 : f32
    %746 = vector.broadcast %cst_288 : f32 to vector<16x1xf32>
    %747 = arith.divf %745, %746 : vector<16x1xf32>
    %748 = vector.broadcast %747 : vector<16x1xf32> to vector<16x32xf32>
    %749 = arith.subf %741, %748 : vector<16x32xf32>
    %750 = arith.mulf %749, %749 : vector<16x32xf32>
    %cst_289 = arith.constant dense<0.000000e+00> : vector<16xf32>
    %751 = vector.multi_reduction <add>, %750, %cst_289 [1] : vector<16x32xf32> to vector<16xf32>
    %752 = vector.shape_cast %751 : vector<16xf32> to vector<16x1xf32>
    %cst_290 = arith.constant 3.200000e+01 : f32
    %753 = vector.broadcast %cst_290 : f32 to vector<16x1xf32>
    %754 = arith.divf %752, %753 : vector<16x1xf32>
    %755 = vector.broadcast %747 : vector<16x1xf32> to vector<16x32xf32>
    %756 = arith.subf %741, %755 : vector<16x32xf32>
    %cst_291 = arith.constant 9.99999974E-6 : f32
    %757 = vector.broadcast %cst_291 : f32 to vector<16x1xf32>
    %758 = arith.addf %754, %757 : vector<16x1xf32>
    %759 = math.rsqrt %758 : vector<16x1xf32>
    %760 = vector.broadcast %759 : vector<16x1xf32> to vector<16x32xf32>
    %761 = arith.mulf %756, %760 : vector<16x32xf32>
    %762 = vector.broadcast %742 : vector<1x32xf32> to vector<16x32xf32>
    %763 = arith.mulf %761, %762 : vector<16x32xf32>
    %764 = vector.broadcast %743 : vector<1x32xf32> to vector<16x32xf32>
    %765 = arith.addf %763, %764 : vector<16x32xf32>
    %766 = arith.addf %765, %5 : vector<16x32xf32>
    %c744 = arith.constant 744 : index
    %c0_292 = arith.constant 0 : index
    %767 = vector.load %arg5[%c744, %c0_292] : memref<992x128xf32, #tpu.memory_space<vmem>>, vector<32x32xf32>
    %cst_293 = arith.constant dense<0.000000e+00> : vector<16x32xf32>
    %768 = tpu.matmul %766, %767, %cst_293 {dimension_numbers = #tpu.dot_dimension_numbers<[1], [0], [0], [1], [0, 0, 1, 1], [], []>} : vector<16x32xf32>, vector<32x32xf32>, vector<16x32xf32> -> vector<16x32xf32>
    %c736 = arith.constant 736 : index
    %c0_294 = arith.constant 0 : index
    %769 = vector.load %arg5[%c736, %c0_294] : memref<992x128xf32, #tpu.memory_space<vmem>>, vector<1x32xf32>
    %770 = vector.broadcast %769 : vector<1x32xf32> to vector<16x32xf32>
    %771 = arith.addf %768, %770 : vector<16x32xf32>
    %c744_295 = arith.constant 744 : index
    %c32_296 = arith.constant 32 : index
    %772 = vector.load %arg5[%c744_295, %c32_296] : memref<992x128xf32, #tpu.memory_space<vmem>>, vector<32x32xf32>
    %cst_297 = arith.constant dense<0.000000e+00> : vector<32x32xf32>
    %773 = tpu.matmul %4, %772, %cst_297 {dimension_numbers = #tpu.dot_dimension_numbers<[1], [0], [0], [1], [0, 0, 1, 1], [], []>} : vector<32x32xf32>, vector<32x32xf32>, vector<32x32xf32> -> vector<32x32xf32>
    %c736_298 = arith.constant 736 : index
    %c32_299 = arith.constant 32 : index
    %774 = vector.load %arg5[%c736_298, %c32_299] : memref<992x128xf32, #tpu.memory_space<vmem>>, vector<1x32xf32>
    %775 = vector.broadcast %774 : vector<1x32xf32> to vector<32x32xf32>
    %776 = arith.addf %773, %775 : vector<32x32xf32>
    %c744_300 = arith.constant 744 : index
    %c64_301 = arith.constant 64 : index
    %777 = vector.load %arg5[%c744_300, %c64_301] : memref<992x128xf32, #tpu.memory_space<vmem>>, vector<32x32xf32>
    %cst_302 = arith.constant dense<0.000000e+00> : vector<32x32xf32>
    %778 = tpu.matmul %2, %777, %cst_302 {dimension_numbers = #tpu.dot_dimension_numbers<[1], [0], [0], [1], [0, 0, 1, 1], [], []>} : vector<32x32xf32>, vector<32x32xf32>, vector<32x32xf32> -> vector<32x32xf32>
    %c736_303 = arith.constant 736 : index
    %c64_304 = arith.constant 64 : index
    %779 = vector.load %arg5[%c736_303, %c64_304] : memref<992x128xf32, #tpu.memory_space<vmem>>, vector<1x32xf32>
    %780 = vector.broadcast %779 : vector<1x32xf32> to vector<32x32xf32>
    %781 = arith.addf %778, %780 : vector<32x32xf32>
    %cst_305 = arith.constant 0.353553385 : f32
    %782 = vector.broadcast %cst_305 : f32 to vector<16x32xf32>
    %783 = arith.mulf %771, %782 : vector<16x32xf32>
    %784 = vector.shape_cast %783 : vector<16x32xf32> to vector<2x8x32xf32>
    %785 = vector.shape_cast %776 : vector<32x32xf32> to vector<2x16x32xf32>
    %786 = vector.shape_cast %781 : vector<32x32xf32> to vector<2x16x32xf32>
    %c744_306 = arith.constant 744 : index
    %c96_307 = arith.constant 96 : index
    %787 = vector.load %arg5[%c744_306, %c96_307] : memref<992x128xf32, #tpu.memory_space<vmem>>, vector<32x32xf32>
    %c736_308 = arith.constant 736 : index
    %c96_309 = arith.constant 96 : index
    %788 = vector.load %arg5[%c736_308, %c96_309] : memref<992x128xf32, #tpu.memory_space<vmem>>, vector<1x32xf32>
    %789 = vector.extract_strided_slice %784 {offsets = [0, 0, 0], sizes = [2, 8, 8], strides = [1, 1, 1]} : vector<2x8x32xf32> to vector<2x8x8xf32>
    %790 = vector.extract_strided_slice %785 {offsets = [0, 0, 0], sizes = [2, 16, 8], strides = [1, 1, 1]} : vector<2x16x32xf32> to vector<2x16x8xf32>
    "tpu.trace_start"() <{level = 10 : i32, message = "bqd,bkd->bqk"}> : () -> ()
    %cst_310 = arith.constant dense<0.000000e+00> : vector<2x8x16xf32>
    %791 = tpu.matmul %789, %790, %cst_310 {dimension_numbers = #tpu.dot_dimension_numbers<[2], [2], [1], [1], [0, 0, 0, 1, 1, 1], [0], [0]>} : vector<2x8x8xf32>, vector<2x16x8xf32>, vector<2x8x16xf32> -> vector<2x8x16xf32>
    "tpu.trace_stop"() : () -> ()
    %cst_311 = arith.constant dense<0xFF800000> : vector<2x8xf32>
    %792 = vector.multi_reduction <maximumf>, %791, %cst_311 [2] : vector<2x8x16xf32> to vector<2x8xf32>
    %793 = vector.shape_cast %792 : vector<2x8xf32> to vector<2x8x1xf32>
    %794 = vector.broadcast %793 : vector<2x8x1xf32> to vector<2x8x16xf32>
    %795 = arith.subf %791, %794 : vector<2x8x16xf32>
    %796 = math.exp %795 : vector<2x8x16xf32>
    %cst_312 = arith.constant dense<0.000000e+00> : vector<2x8xf32>
    %797 = vector.multi_reduction <add>, %796, %cst_312 [2] : vector<2x8x16xf32> to vector<2x8xf32>
    %798 = vector.shape_cast %797 : vector<2x8xf32> to vector<2x8x1xf32>
    %799 = vector.broadcast %798 : vector<2x8x1xf32> to vector<2x8x16xf32>
    %800 = arith.divf %796, %799 : vector<2x8x16xf32>
    %801 = vector.extract_strided_slice %786 {offsets = [0, 0, 0], sizes = [2, 16, 8], strides = [1, 1, 1]} : vector<2x16x32xf32> to vector<2x16x8xf32>
    "tpu.trace_start"() <{level = 10 : i32, message = "bqk,bkd->bqd"}> : () -> ()
    %cst_313 = arith.constant dense<0.000000e+00> : vector<2x8x8xf32>
    %802 = tpu.matmul %800, %801, %cst_313 {dimension_numbers = #tpu.dot_dimension_numbers<[2], [1], [1], [2], [0, 0, 0, 1, 1, 2], [0], [0]>} : vector<2x8x16xf32>, vector<2x16x8xf32>, vector<2x8x8xf32> -> vector<2x8x8xf32>
    "tpu.trace_stop"() : () -> ()
    %803 = vector.shape_cast %802 : vector<2x8x8xf32> to vector<16x8xf32>
    %804 = vector.extract_strided_slice %787 {offsets = [0, 0], sizes = [8, 32], strides = [1, 1]} : vector<32x32xf32> to vector<8x32xf32>
    %cst_314 = arith.constant dense<0.000000e+00> : vector<16x32xf32>
    %805 = tpu.matmul %803, %804, %cst_314 {dimension_numbers = #tpu.dot_dimension_numbers<[1], [0], [0], [1], [0, 0, 1, 1], [], []>} : vector<16x8xf32>, vector<8x32xf32>, vector<16x32xf32> -> vector<16x32xf32>
    %806 = vector.extract_strided_slice %784 {offsets = [0, 0, 8], sizes = [2, 8, 8], strides = [1, 1, 1]} : vector<2x8x32xf32> to vector<2x8x8xf32>
    %807 = vector.extract_strided_slice %785 {offsets = [0, 0, 8], sizes = [2, 16, 8], strides = [1, 1, 1]} : vector<2x16x32xf32> to vector<2x16x8xf32>
    "tpu.trace_start"() <{level = 10 : i32, message = "bqd,bkd->bqk"}> : () -> ()
    %cst_315 = arith.constant dense<0.000000e+00> : vector<2x8x16xf32>
    %808 = tpu.matmul %806, %807, %cst_315 {dimension_numbers = #tpu.dot_dimension_numbers<[2], [2], [1], [1], [0, 0, 0, 1, 1, 1], [0], [0]>} : vector<2x8x8xf32>, vector<2x16x8xf32>, vector<2x8x16xf32> -> vector<2x8x16xf32>
    "tpu.trace_stop"() : () -> ()
    %cst_316 = arith.constant dense<0xFF800000> : vector<2x8xf32>
    %809 = vector.multi_reduction <maximumf>, %808, %cst_316 [2] : vector<2x8x16xf32> to vector<2x8xf32>
    %810 = vector.shape_cast %809 : vector<2x8xf32> to vector<2x8x1xf32>
    %811 = vector.broadcast %810 : vector<2x8x1xf32> to vector<2x8x16xf32>
    %812 = arith.subf %808, %811 : vector<2x8x16xf32>
    %813 = math.exp %812 : vector<2x8x16xf32>
    %cst_317 = arith.constant dense<0.000000e+00> : vector<2x8xf32>
    %814 = vector.multi_reduction <add>, %813, %cst_317 [2] : vector<2x8x16xf32> to vector<2x8xf32>
    %815 = vector.shape_cast %814 : vector<2x8xf32> to vector<2x8x1xf32>
    %816 = vector.broadcast %815 : vector<2x8x1xf32> to vector<2x8x16xf32>
    %817 = arith.divf %813, %816 : vector<2x8x16xf32>
    %818 = vector.extract_strided_slice %786 {offsets = [0, 0, 8], sizes = [2, 16, 8], strides = [1, 1, 1]} : vector<2x16x32xf32> to vector<2x16x8xf32>
    "tpu.trace_start"() <{level = 10 : i32, message = "bqk,bkd->bqd"}> : () -> ()
    %cst_318 = arith.constant dense<0.000000e+00> : vector<2x8x8xf32>
    %819 = tpu.matmul %817, %818, %cst_318 {dimension_numbers = #tpu.dot_dimension_numbers<[2], [1], [1], [2], [0, 0, 0, 1, 1, 2], [0], [0]>} : vector<2x8x16xf32>, vector<2x16x8xf32>, vector<2x8x8xf32> -> vector<2x8x8xf32>
    "tpu.trace_stop"() : () -> ()
    %820 = vector.shape_cast %819 : vector<2x8x8xf32> to vector<16x8xf32>
    %821 = vector.extract_strided_slice %787 {offsets = [8, 0], sizes = [8, 32], strides = [1, 1]} : vector<32x32xf32> to vector<8x32xf32>
    %cst_319 = arith.constant dense<0.000000e+00> : vector<16x32xf32>
    %822 = tpu.matmul %820, %821, %cst_319 {dimension_numbers = #tpu.dot_dimension_numbers<[1], [0], [0], [1], [0, 0, 1, 1], [], []>} : vector<16x8xf32>, vector<8x32xf32>, vector<16x32xf32> -> vector<16x32xf32>
    %823 = arith.addf %805, %822 : vector<16x32xf32>
    %824 = arith.addf %800, %817 : vector<2x8x16xf32>
    %825 = vector.extract_strided_slice %784 {offsets = [0, 0, 16], sizes = [2, 8, 8], strides = [1, 1, 1]} : vector<2x8x32xf32> to vector<2x8x8xf32>
    %826 = vector.extract_strided_slice %785 {offsets = [0, 0, 16], sizes = [2, 16, 8], strides = [1, 1, 1]} : vector<2x16x32xf32> to vector<2x16x8xf32>
    "tpu.trace_start"() <{level = 10 : i32, message = "bqd,bkd->bqk"}> : () -> ()
    %cst_320 = arith.constant dense<0.000000e+00> : vector<2x8x16xf32>
    %827 = tpu.matmul %825, %826, %cst_320 {dimension_numbers = #tpu.dot_dimension_numbers<[2], [2], [1], [1], [0, 0, 0, 1, 1, 1], [0], [0]>} : vector<2x8x8xf32>, vector<2x16x8xf32>, vector<2x8x16xf32> -> vector<2x8x16xf32>
    "tpu.trace_stop"() : () -> ()
    %cst_321 = arith.constant dense<0xFF800000> : vector<2x8xf32>
    %828 = vector.multi_reduction <maximumf>, %827, %cst_321 [2] : vector<2x8x16xf32> to vector<2x8xf32>
    %829 = vector.shape_cast %828 : vector<2x8xf32> to vector<2x8x1xf32>
    %830 = vector.broadcast %829 : vector<2x8x1xf32> to vector<2x8x16xf32>
    %831 = arith.subf %827, %830 : vector<2x8x16xf32>
    %832 = math.exp %831 : vector<2x8x16xf32>
    %cst_322 = arith.constant dense<0.000000e+00> : vector<2x8xf32>
    %833 = vector.multi_reduction <add>, %832, %cst_322 [2] : vector<2x8x16xf32> to vector<2x8xf32>
    %834 = vector.shape_cast %833 : vector<2x8xf32> to vector<2x8x1xf32>
    %835 = vector.broadcast %834 : vector<2x8x1xf32> to vector<2x8x16xf32>
    %836 = arith.divf %832, %835 : vector<2x8x16xf32>
    %837 = vector.extract_strided_slice %786 {offsets = [0, 0, 16], sizes = [2, 16, 8], strides = [1, 1, 1]} : vector<2x16x32xf32> to vector<2x16x8xf32>
    "tpu.trace_start"() <{level = 10 : i32, message = "bqk,bkd->bqd"}> : () -> ()
    %cst_323 = arith.constant dense<0.000000e+00> : vector<2x8x8xf32>
    %838 = tpu.matmul %836, %837, %cst_323 {dimension_numbers = #tpu.dot_dimension_numbers<[2], [1], [1], [2], [0, 0, 0, 1, 1, 2], [0], [0]>} : vector<2x8x16xf32>, vector<2x16x8xf32>, vector<2x8x8xf32> -> vector<2x8x8xf32>
    "tpu.trace_stop"() : () -> ()
    %839 = vector.shape_cast %838 : vector<2x8x8xf32> to vector<16x8xf32>
    %840 = vector.extract_strided_slice %787 {offsets = [16, 0], sizes = [8, 32], strides = [1, 1]} : vector<32x32xf32> to vector<8x32xf32>
    %cst_324 = arith.constant dense<0.000000e+00> : vector<16x32xf32>
    %841 = tpu.matmul %839, %840, %cst_324 {dimension_numbers = #tpu.dot_dimension_numbers<[1], [0], [0], [1], [0, 0, 1, 1], [], []>} : vector<16x8xf32>, vector<8x32xf32>, vector<16x32xf32> -> vector<16x32xf32>
    %842 = arith.addf %823, %841 : vector<16x32xf32>
    %843 = arith.addf %824, %836 : vector<2x8x16xf32>
    %844 = vector.extract_strided_slice %784 {offsets = [0, 0, 24], sizes = [2, 8, 8], strides = [1, 1, 1]} : vector<2x8x32xf32> to vector<2x8x8xf32>
    %845 = vector.extract_strided_slice %785 {offsets = [0, 0, 24], sizes = [2, 16, 8], strides = [1, 1, 1]} : vector<2x16x32xf32> to vector<2x16x8xf32>
    "tpu.trace_start"() <{level = 10 : i32, message = "bqd,bkd->bqk"}> : () -> ()
    %cst_325 = arith.constant dense<0.000000e+00> : vector<2x8x16xf32>
    %846 = tpu.matmul %844, %845, %cst_325 {dimension_numbers = #tpu.dot_dimension_numbers<[2], [2], [1], [1], [0, 0, 0, 1, 1, 1], [0], [0]>} : vector<2x8x8xf32>, vector<2x16x8xf32>, vector<2x8x16xf32> -> vector<2x8x16xf32>
    "tpu.trace_stop"() : () -> ()
    %cst_326 = arith.constant dense<0xFF800000> : vector<2x8xf32>
    %847 = vector.multi_reduction <maximumf>, %846, %cst_326 [2] : vector<2x8x16xf32> to vector<2x8xf32>
    %848 = vector.shape_cast %847 : vector<2x8xf32> to vector<2x8x1xf32>
    %849 = vector.broadcast %848 : vector<2x8x1xf32> to vector<2x8x16xf32>
    %850 = arith.subf %846, %849 : vector<2x8x16xf32>
    %851 = math.exp %850 : vector<2x8x16xf32>
    %cst_327 = arith.constant dense<0.000000e+00> : vector<2x8xf32>
    %852 = vector.multi_reduction <add>, %851, %cst_327 [2] : vector<2x8x16xf32> to vector<2x8xf32>
    %853 = vector.shape_cast %852 : vector<2x8xf32> to vector<2x8x1xf32>
    %854 = vector.broadcast %853 : vector<2x8x1xf32> to vector<2x8x16xf32>
    %855 = arith.divf %851, %854 : vector<2x8x16xf32>
    %856 = vector.extract_strided_slice %786 {offsets = [0, 0, 24], sizes = [2, 16, 8], strides = [1, 1, 1]} : vector<2x16x32xf32> to vector<2x16x8xf32>
    "tpu.trace_start"() <{level = 10 : i32, message = "bqk,bkd->bqd"}> : () -> ()
    %cst_328 = arith.constant dense<0.000000e+00> : vector<2x8x8xf32>
    %857 = tpu.matmul %855, %856, %cst_328 {dimension_numbers = #tpu.dot_dimension_numbers<[2], [1], [1], [2], [0, 0, 0, 1, 1, 2], [0], [0]>} : vector<2x8x16xf32>, vector<2x16x8xf32>, vector<2x8x8xf32> -> vector<2x8x8xf32>
    "tpu.trace_stop"() : () -> ()
    %858 = vector.shape_cast %857 : vector<2x8x8xf32> to vector<16x8xf32>
    %859 = vector.extract_strided_slice %787 {offsets = [24, 0], sizes = [8, 32], strides = [1, 1]} : vector<32x32xf32> to vector<8x32xf32>
    %cst_329 = arith.constant dense<0.000000e+00> : vector<16x32xf32>
    %860 = tpu.matmul %858, %859, %cst_329 {dimension_numbers = #tpu.dot_dimension_numbers<[1], [0], [0], [1], [0, 0, 1, 1], [], []>} : vector<16x8xf32>, vector<8x32xf32>, vector<16x32xf32> -> vector<16x32xf32>
    %861 = arith.addf %842, %860 : vector<16x32xf32>
    %862 = arith.addf %843, %855 : vector<2x8x16xf32>
    %863 = vector.broadcast %788 : vector<1x32xf32> to vector<16x32xf32>
    %864 = arith.addf %861, %863 : vector<16x32xf32>
    %cst_330 = arith.constant 2.500000e-01 : f32
    %865 = vector.broadcast %cst_330 : f32 to vector<2x8x16xf32>
    %866 = arith.mulf %862, %865 : vector<2x8x16xf32>
    %867 = vector.shape_cast %866 : vector<2x8x16xf32> to vector<16x16xf32>
    %868 = arith.addf %765, %864 : vector<16x32xf32>
    %c912 = arith.constant 912 : index
    %c0_331 = arith.constant 0 : index
    %869 = vector.load %arg5[%c912, %c0_331] : memref<992x128xf32, #tpu.memory_space<vmem>>, vector<1x32xf32>
    %c904 = arith.constant 904 : index
    %c0_332 = arith.constant 0 : index
    %870 = vector.load %arg5[%c904, %c0_332] : memref<992x128xf32, #tpu.memory_space<vmem>>, vector<1x32xf32>
    %cst_333 = arith.constant dense<0.000000e+00> : vector<16xf32>
    %871 = vector.multi_reduction <add>, %868, %cst_333 [1] : vector<16x32xf32> to vector<16xf32>
    %872 = vector.shape_cast %871 : vector<16xf32> to vector<16x1xf32>
    %cst_334 = arith.constant 3.200000e+01 : f32
    %873 = vector.broadcast %cst_334 : f32 to vector<16x1xf32>
    %874 = arith.divf %872, %873 : vector<16x1xf32>
    %875 = vector.broadcast %874 : vector<16x1xf32> to vector<16x32xf32>
    %876 = arith.subf %868, %875 : vector<16x32xf32>
    %877 = arith.mulf %876, %876 : vector<16x32xf32>
    %cst_335 = arith.constant dense<0.000000e+00> : vector<16xf32>
    %878 = vector.multi_reduction <add>, %877, %cst_335 [1] : vector<16x32xf32> to vector<16xf32>
    %879 = vector.shape_cast %878 : vector<16xf32> to vector<16x1xf32>
    %cst_336 = arith.constant 3.200000e+01 : f32
    %880 = vector.broadcast %cst_336 : f32 to vector<16x1xf32>
    %881 = arith.divf %879, %880 : vector<16x1xf32>
    %882 = vector.broadcast %874 : vector<16x1xf32> to vector<16x32xf32>
    %883 = arith.subf %868, %882 : vector<16x32xf32>
    %cst_337 = arith.constant 9.99999974E-6 : f32
    %884 = vector.broadcast %cst_337 : f32 to vector<16x1xf32>
    %885 = arith.addf %881, %884 : vector<16x1xf32>
    %886 = math.rsqrt %885 : vector<16x1xf32>
    %887 = vector.broadcast %886 : vector<16x1xf32> to vector<16x32xf32>
    %888 = arith.mulf %883, %887 : vector<16x32xf32>
    %889 = vector.broadcast %869 : vector<1x32xf32> to vector<16x32xf32>
    %890 = arith.mulf %888, %889 : vector<16x32xf32>
    %891 = vector.broadcast %870 : vector<1x32xf32> to vector<16x32xf32>
    %892 = arith.addf %890, %891 : vector<16x32xf32>
    %c792 = arith.constant 792 : index
    %c0_338 = arith.constant 0 : index
    %893 = vector.load %arg5[%c792, %c0_338] : memref<992x128xf32, #tpu.memory_space<vmem>>, vector<32x64xf32>
    %cst_339 = arith.constant dense<0.000000e+00> : vector<16x64xf32>
    %894 = tpu.matmul %892, %893, %cst_339 {dimension_numbers = #tpu.dot_dimension_numbers<[1], [0], [0], [1], [0, 0, 1, 1], [], []>} : vector<16x32xf32>, vector<32x64xf32>, vector<16x64xf32> -> vector<16x64xf32>
    %c776 = arith.constant 776 : index
    %c0_340 = arith.constant 0 : index
    %895 = vector.load %arg5[%c776, %c0_340] : memref<992x128xf32, #tpu.memory_space<vmem>>, vector<1x64xf32>
    %896 = vector.broadcast %895 : vector<1x64xf32> to vector<16x64xf32>
    %897 = arith.addf %894, %896 : vector<16x64xf32>
    %cst_341 = arith.constant 0.000000e+00 : f32
    %898 = vector.broadcast %cst_341 : f32 to vector<16x64xf32>
    %899 = arith.maximumf %897, %898 : vector<16x64xf32>
    %c824 = arith.constant 824 : index
    %c0_342 = arith.constant 0 : index
    %900 = vector.load %arg5[%c824, %c0_342] : memref<992x128xf32, #tpu.memory_space<vmem>>, vector<64x32xf32>
    %cst_343 = arith.constant dense<0.000000e+00> : vector<16x32xf32>
    %901 = tpu.matmul %899, %900, %cst_343 {dimension_numbers = #tpu.dot_dimension_numbers<[1], [0], [0], [1], [0, 0, 1, 1], [], []>} : vector<16x64xf32>, vector<64x32xf32>, vector<16x32xf32> -> vector<16x32xf32>
    %c784 = arith.constant 784 : index
    %c0_344 = arith.constant 0 : index
    %902 = vector.load %arg5[%c784, %c0_344] : memref<992x128xf32, #tpu.memory_space<vmem>>, vector<1x32xf32>
    %903 = vector.broadcast %902 : vector<1x32xf32> to vector<16x32xf32>
    %904 = arith.addf %901, %903 : vector<16x32xf32>
    %905 = arith.addf %892, %904 : vector<16x32xf32>
    %c928 = arith.constant 928 : index
    %c0_345 = arith.constant 0 : index
    %906 = vector.load %arg5[%c928, %c0_345] : memref<992x128xf32, #tpu.memory_space<vmem>>, vector<1x32xf32>
    %c920 = arith.constant 920 : index
    %c0_346 = arith.constant 0 : index
    %907 = vector.load %arg5[%c920, %c0_346] : memref<992x128xf32, #tpu.memory_space<vmem>>, vector<1x32xf32>
    %cst_347 = arith.constant dense<0.000000e+00> : vector<16xf32>
    %908 = vector.multi_reduction <add>, %905, %cst_347 [1] : vector<16x32xf32> to vector<16xf32>
    %909 = vector.shape_cast %908 : vector<16xf32> to vector<16x1xf32>
    %cst_348 = arith.constant 3.200000e+01 : f32
    %910 = vector.broadcast %cst_348 : f32 to vector<16x1xf32>
    %911 = arith.divf %909, %910 : vector<16x1xf32>
    %912 = vector.broadcast %911 : vector<16x1xf32> to vector<16x32xf32>
    %913 = arith.subf %905, %912 : vector<16x32xf32>
    %914 = arith.mulf %913, %913 : vector<16x32xf32>
    %cst_349 = arith.constant dense<0.000000e+00> : vector<16xf32>
    %915 = vector.multi_reduction <add>, %914, %cst_349 [1] : vector<16x32xf32> to vector<16xf32>
    %916 = vector.shape_cast %915 : vector<16xf32> to vector<16x1xf32>
    %cst_350 = arith.constant 3.200000e+01 : f32
    %917 = vector.broadcast %cst_350 : f32 to vector<16x1xf32>
    %918 = arith.divf %916, %917 : vector<16x1xf32>
    %919 = vector.broadcast %911 : vector<16x1xf32> to vector<16x32xf32>
    %920 = arith.subf %905, %919 : vector<16x32xf32>
    %cst_351 = arith.constant 9.99999974E-6 : f32
    %921 = vector.broadcast %cst_351 : f32 to vector<16x1xf32>
    %922 = arith.addf %918, %921 : vector<16x1xf32>
    %923 = math.rsqrt %922 : vector<16x1xf32>
    %924 = vector.broadcast %923 : vector<16x1xf32> to vector<16x32xf32>
    %925 = arith.mulf %920, %924 : vector<16x32xf32>
    %926 = vector.broadcast %906 : vector<1x32xf32> to vector<16x32xf32>
    %927 = arith.mulf %925, %926 : vector<16x32xf32>
    %928 = vector.broadcast %907 : vector<1x32xf32> to vector<16x32xf32>
    %929 = arith.addf %927, %928 : vector<16x32xf32>
    %cst_352 = arith.constant dense<0.000000e+00> : vector<16xf32>
    %930 = vector.multi_reduction <add>, %929, %cst_352 [1] : vector<16x32xf32> to vector<16xf32>
    %931 = vector.shape_cast %930 : vector<16xf32> to vector<16x1xf32>
    %cst_353 = arith.constant 3.200000e+01 : f32
    %932 = vector.broadcast %cst_353 : f32 to vector<16x1xf32>
    %933 = arith.divf %931, %932 : vector<16x1xf32>
    %934 = vector.broadcast %933 : vector<16x1xf32> to vector<16x32xf32>
    %935 = arith.subf %929, %934 : vector<16x32xf32>
    %936 = arith.mulf %935, %935 : vector<16x32xf32>
    %cst_354 = arith.constant dense<0.000000e+00> : vector<16xf32>
    %937 = vector.multi_reduction <add>, %936, %cst_354 [1] : vector<16x32xf32> to vector<16xf32>
    %938 = vector.shape_cast %937 : vector<16xf32> to vector<16x1xf32>
    %cst_355 = arith.constant 3.200000e+01 : f32
    %939 = vector.broadcast %cst_355 : f32 to vector<16x1xf32>
    %940 = arith.divf %938, %939 : vector<16x1xf32>
    %941 = vector.broadcast %933 : vector<16x1xf32> to vector<16x32xf32>
    %942 = arith.subf %929, %941 : vector<16x32xf32>
    %cst_356 = arith.constant 9.99999974E-6 : f32
    %943 = vector.broadcast %cst_356 : f32 to vector<16x1xf32>
    %944 = arith.addf %940, %943 : vector<16x1xf32>
    %945 = math.rsqrt %944 : vector<16x1xf32>
    %946 = vector.broadcast %945 : vector<16x1xf32> to vector<16x32xf32>
    %947 = arith.mulf %942, %946 : vector<16x32xf32>
    %948 = vector.broadcast %6 : vector<1x32xf32> to vector<16x32xf32>
    %949 = arith.mulf %947, %948 : vector<16x32xf32>
    %950 = vector.broadcast %7 : vector<1x32xf32> to vector<16x32xf32>
    %951 = arith.addf %949, %950 : vector<16x32xf32>
    %c1 = arith.constant 1 : index
    %c0_357 = arith.constant 0 : index
    %c0_358 = arith.constant 0 : index
    %952 = vector.load %arg6[%c1, %c0_357, %c0_358] : memref<2x16x128xf32, #tpu.memory_space<vmem>>, vector<1x16x32xf32>
    %953 = vector.shape_cast %952 : vector<1x16x32xf32> to vector<16x32xf32>
    %954 = vector.shape_cast %951 : vector<16x32xf32> to vector<1x16x32xf32>
    tpu.vector_store %arg6[%c1, %c0_357, %c0_358], %954 {strides = array<i32>} : memref<2x16x128xf32, #tpu.memory_space<vmem>>, vector<1x16x32xf32>,
    %c1_359 = arith.constant 1 : index
    %c0_360 = arith.constant 0 : index
    %c32_361 = arith.constant 32 : index
    %955 = vector.load %arg6[%c1_359, %c0_360, %c32_361] : memref<2x16x128xf32, #tpu.memory_space<vmem>>, vector<1x16x16xf32>
    %956 = vector.shape_cast %955 : vector<1x16x16xf32> to vector<16x16xf32>
    %957 = vector.shape_cast %867 : vector<16x16xf32> to vector<1x16x16xf32>
    tpu.vector_store %arg6[%c1_359, %c0_360, %c32_361], %957 {strides = array<i32>} : memref<2x16x128xf32, #tpu.memory_space<vmem>>, vector<1x16x16xf32>,
    %c1_362 = arith.constant 1 : index
    %c0_363 = arith.constant 0 : index
    %c48_364 = arith.constant 48 : index
    %958 = vector.load %arg6[%c1_362, %c0_363, %c48_364] : memref<2x16x128xf32, #tpu.memory_space<vmem>>, vector<1x16x8xf32>
    %959 = vector.shape_cast %958 : vector<1x16x8xf32> to vector<16x8xf32>
    %960 = vector.shape_cast %740 : vector<16x8xf32> to vector<1x16x8xf32>
    tpu.vector_store %arg6[%c1_362, %c0_363, %c48_364], %960 {strides = array<i32>} : memref<2x16x128xf32, #tpu.memory_space<vmem>>, vector<1x16x8xf32>,
    %961 = arith.addf %929, %5 : vector<16x32xf32>
    %962 = arith.addf %613, %961 : vector<16x32xf32>
    %c448 = arith.constant 448 : index
    %c0_365 = arith.constant 0 : index
    %963 = vector.load %arg5[%c448, %c0_365] : memref<992x128xf32, #tpu.memory_space<vmem>>, vector<32x32xf32>
    %cst_366 = arith.constant dense<0.000000e+00> : vector<16x32xf32>
    %964 = tpu.matmul %962, %963, %cst_366 {dimension_numbers = #tpu.dot_dimension_numbers<[1], [0], [0], [1], [0, 0, 1, 1], [], []>} : vector<16x32xf32>, vector<32x32xf32>, vector<16x32xf32> -> vector<16x32xf32>
    %c440 = arith.constant 440 : index
    %c0_367 = arith.constant 0 : index
    %965 = vector.load %arg5[%c440, %c0_367] : memref<992x128xf32, #tpu.memory_space<vmem>>, vector<1x32xf32>
    %966 = vector.broadcast %965 : vector<1x32xf32> to vector<16x32xf32>
    %967 = arith.addf %964, %966 : vector<16x32xf32>
    %c448_368 = arith.constant 448 : index
    %c32_369 = arith.constant 32 : index
    %968 = vector.load %arg5[%c448_368, %c32_369] : memref<992x128xf32, #tpu.memory_space<vmem>>, vector<32x32xf32>
    %cst_370 = arith.constant dense<0.000000e+00> : vector<16x32xf32>
    %969 = tpu.matmul %962, %968, %cst_370 {dimension_numbers = #tpu.dot_dimension_numbers<[1], [0], [0], [1], [0, 0, 1, 1], [], []>} : vector<16x32xf32>, vector<32x32xf32>, vector<16x32xf32> -> vector<16x32xf32>
    %c440_371 = arith.constant 440 : index
    %c32_372 = arith.constant 32 : index
    %970 = vector.load %arg5[%c440_371, %c32_372] : memref<992x128xf32, #tpu.memory_space<vmem>>, vector<1x32xf32>
    %971 = vector.broadcast %970 : vector<1x32xf32> to vector<16x32xf32>
    %972 = arith.addf %969, %971 : vector<16x32xf32>
    %c448_373 = arith.constant 448 : index
    %c64_374 = arith.constant 64 : index
    %973 = vector.load %arg5[%c448_373, %c64_374] : memref<992x128xf32, #tpu.memory_space<vmem>>, vector<32x32xf32>
    %cst_375 = arith.constant dense<0.000000e+00> : vector<16x32xf32>
    %974 = tpu.matmul %613, %973, %cst_375 {dimension_numbers = #tpu.dot_dimension_numbers<[1], [0], [0], [1], [0, 0, 1, 1], [], []>} : vector<16x32xf32>, vector<32x32xf32>, vector<16x32xf32> -> vector<16x32xf32>
    %c440_376 = arith.constant 440 : index
    %c64_377 = arith.constant 64 : index
    %975 = vector.load %arg5[%c440_376, %c64_377] : memref<992x128xf32, #tpu.memory_space<vmem>>, vector<1x32xf32>
    %976 = vector.broadcast %975 : vector<1x32xf32> to vector<16x32xf32>
    %977 = arith.addf %974, %976 : vector<16x32xf32>
    %cst_378 = arith.constant 0.353553385 : f32
    %978 = vector.broadcast %cst_378 : f32 to vector<16x32xf32>
    %979 = arith.mulf %967, %978 : vector<16x32xf32>
    %980 = vector.shape_cast %979 : vector<16x32xf32> to vector<2x8x32xf32>
    %981 = vector.shape_cast %972 : vector<16x32xf32> to vector<2x8x32xf32>
    %982 = vector.shape_cast %977 : vector<16x32xf32> to vector<2x8x32xf32>
    %c448_379 = arith.constant 448 : index
    %c96_380 = arith.constant 96 : index
    %983 = vector.load %arg5[%c448_379, %c96_380] : memref<992x128xf32, #tpu.memory_space<vmem>>, vector<32x32xf32>
    %c440_381 = arith.constant 440 : index
    %c96_382 = arith.constant 96 : index
    %984 = vector.load %arg5[%c440_381, %c96_382] : memref<992x128xf32, #tpu.memory_space<vmem>>, vector<1x32xf32>
    %985 = vector.extract_strided_slice %980 {offsets = [0, 0, 0], sizes = [2, 8, 8], strides = [1, 1, 1]} : vector<2x8x32xf32> to vector<2x8x8xf32>
    %986 = vector.extract_strided_slice %981 {offsets = [0, 0, 0], sizes = [2, 8, 8], strides = [1, 1, 1]} : vector<2x8x32xf32> to vector<2x8x8xf32>
    "tpu.trace_start"() <{level = 10 : i32, message = "bqd,bkd->bqk"}> : () -> ()
    %cst_383 = arith.constant dense<0.000000e+00> : vector<2x8x8xf32>
    %987 = tpu.matmul %985, %986, %cst_383 {dimension_numbers = #tpu.dot_dimension_numbers<[2], [2], [1], [1], [0, 0, 0, 1, 1, 1], [0], [0]>} : vector<2x8x8xf32>, vector<2x8x8xf32>, vector<2x8x8xf32> -> vector<2x8x8xf32>
    "tpu.trace_stop"() : () -> ()
    %cst_384 = arith.constant dense<0xFF800000> : vector<2x8xf32>
    %988 = vector.multi_reduction <maximumf>, %987, %cst_384 [2] : vector<2x8x8xf32> to vector<2x8xf32>
    %989 = vector.shape_cast %988 : vector<2x8xf32> to vector<2x8x1xf32>
    %990 = vector.broadcast %989 : vector<2x8x1xf32> to vector<2x8x8xf32>
    %991 = arith.subf %987, %990 : vector<2x8x8xf32>
    %992 = math.exp %991 : vector<2x8x8xf32>
    %cst_385 = arith.constant dense<0.000000e+00> : vector<2x8xf32>
    %993 = vector.multi_reduction <add>, %992, %cst_385 [2] : vector<2x8x8xf32> to vector<2x8xf32>
    %994 = vector.shape_cast %993 : vector<2x8xf32> to vector<2x8x1xf32>
    %995 = vector.broadcast %994 : vector<2x8x1xf32> to vector<2x8x8xf32>
    %996 = arith.divf %992, %995 : vector<2x8x8xf32>
    %997 = vector.extract_strided_slice %982 {offsets = [0, 0, 0], sizes = [2, 8, 8], strides = [1, 1, 1]} : vector<2x8x32xf32> to vector<2x8x8xf32>
    "tpu.trace_start"() <{level = 10 : i32, message = "bqk,bkd->bqd"}> : () -> ()
    %cst_386 = arith.constant dense<0.000000e+00> : vector<2x8x8xf32>
    %998 = tpu.matmul %996, %997, %cst_386 {dimension_numbers = #tpu.dot_dimension_numbers<[2], [1], [1], [2], [0, 0, 0, 1, 1, 2], [0], [0]>} : vector<2x8x8xf32>, vector<2x8x8xf32>, vector<2x8x8xf32> -> vector<2x8x8xf32>
    "tpu.trace_stop"() : () -> ()
    %999 = vector.shape_cast %998 : vector<2x8x8xf32> to vector<16x8xf32>
    %1000 = vector.extract_strided_slice %983 {offsets = [0, 0], sizes = [8, 32], strides = [1, 1]} : vector<32x32xf32> to vector<8x32xf32>
    %cst_387 = arith.constant dense<0.000000e+00> : vector<16x32xf32>
    %1001 = tpu.matmul %999, %1000, %cst_387 {dimension_numbers = #tpu.dot_dimension_numbers<[1], [0], [0], [1], [0, 0, 1, 1], [], []>} : vector<16x8xf32>, vector<8x32xf32>, vector<16x32xf32> -> vector<16x32xf32>
    %1002 = vector.extract_strided_slice %980 {offsets = [0, 0, 8], sizes = [2, 8, 8], strides = [1, 1, 1]} : vector<2x8x32xf32> to vector<2x8x8xf32>
    %1003 = vector.extract_strided_slice %981 {offsets = [0, 0, 8], sizes = [2, 8, 8], strides = [1, 1, 1]} : vector<2x8x32xf32> to vector<2x8x8xf32>
    "tpu.trace_start"() <{level = 10 : i32, message = "bqd,bkd->bqk"}> : () -> ()
    %cst_388 = arith.constant dense<0.000000e+00> : vector<2x8x8xf32>
    %1004 = tpu.matmul %1002, %1003, %cst_388 {dimension_numbers = #tpu.dot_dimension_numbers<[2], [2], [1], [1], [0, 0, 0, 1, 1, 1], [0], [0]>} : vector<2x8x8xf32>, vector<2x8x8xf32>, vector<2x8x8xf32> -> vector<2x8x8xf32>
    "tpu.trace_stop"() : () -> ()
    %cst_389 = arith.constant dense<0xFF800000> : vector<2x8xf32>
    %1005 = vector.multi_reduction <maximumf>, %1004, %cst_389 [2] : vector<2x8x8xf32> to vector<2x8xf32>
    %1006 = vector.shape_cast %1005 : vector<2x8xf32> to vector<2x8x1xf32>
    %1007 = vector.broadcast %1006 : vector<2x8x1xf32> to vector<2x8x8xf32>
    %1008 = arith.subf %1004, %1007 : vector<2x8x8xf32>
    %1009 = math.exp %1008 : vector<2x8x8xf32>
    %cst_390 = arith.constant dense<0.000000e+00> : vector<2x8xf32>
    %1010 = vector.multi_reduction <add>, %1009, %cst_390 [2] : vector<2x8x8xf32> to vector<2x8xf32>
    %1011 = vector.shape_cast %1010 : vector<2x8xf32> to vector<2x8x1xf32>
    %1012 = vector.broadcast %1011 : vector<2x8x1xf32> to vector<2x8x8xf32>
    %1013 = arith.divf %1009, %1012 : vector<2x8x8xf32>
    %1014 = vector.extract_strided_slice %982 {offsets = [0, 0, 8], sizes = [2, 8, 8], strides = [1, 1, 1]} : vector<2x8x32xf32> to vector<2x8x8xf32>
    "tpu.trace_start"() <{level = 10 : i32, message = "bqk,bkd->bqd"}> : () -> ()
    %cst_391 = arith.constant dense<0.000000e+00> : vector<2x8x8xf32>
    %1015 = tpu.matmul %1013, %1014, %cst_391 {dimension_numbers = #tpu.dot_dimension_numbers<[2], [1], [1], [2], [0, 0, 0, 1, 1, 2], [0], [0]>} : vector<2x8x8xf32>, vector<2x8x8xf32>, vector<2x8x8xf32> -> vector<2x8x8xf32>
    "tpu.trace_stop"() : () -> ()
    %1016 = vector.shape_cast %1015 : vector<2x8x8xf32> to vector<16x8xf32>
    %1017 = vector.extract_strided_slice %983 {offsets = [8, 0], sizes = [8, 32], strides = [1, 1]} : vector<32x32xf32> to vector<8x32xf32>
    %cst_392 = arith.constant dense<0.000000e+00> : vector<16x32xf32>
    %1018 = tpu.matmul %1016, %1017, %cst_392 {dimension_numbers = #tpu.dot_dimension_numbers<[1], [0], [0], [1], [0, 0, 1, 1], [], []>} : vector<16x8xf32>, vector<8x32xf32>, vector<16x32xf32> -> vector<16x32xf32>
    %1019 = arith.addf %1001, %1018 : vector<16x32xf32>
    %1020 = vector.extract_strided_slice %980 {offsets = [0, 0, 16], sizes = [2, 8, 8], strides = [1, 1, 1]} : vector<2x8x32xf32> to vector<2x8x8xf32>
    %1021 = vector.extract_strided_slice %981 {offsets = [0, 0, 16], sizes = [2, 8, 8], strides = [1, 1, 1]} : vector<2x8x32xf32> to vector<2x8x8xf32>
    "tpu.trace_start"() <{level = 10 : i32, message = "bqd,bkd->bqk"}> : () -> ()
    %cst_393 = arith.constant dense<0.000000e+00> : vector<2x8x8xf32>
    %1022 = tpu.matmul %1020, %1021, %cst_393 {dimension_numbers = #tpu.dot_dimension_numbers<[2], [2], [1], [1], [0, 0, 0, 1, 1, 1], [0], [0]>} : vector<2x8x8xf32>, vector<2x8x8xf32>, vector<2x8x8xf32> -> vector<2x8x8xf32>
    "tpu.trace_stop"() : () -> ()
    %cst_394 = arith.constant dense<0xFF800000> : vector<2x8xf32>
    %1023 = vector.multi_reduction <maximumf>, %1022, %cst_394 [2] : vector<2x8x8xf32> to vector<2x8xf32>
    %1024 = vector.shape_cast %1023 : vector<2x8xf32> to vector<2x8x1xf32>
    %1025 = vector.broadcast %1024 : vector<2x8x1xf32> to vector<2x8x8xf32>
    %1026 = arith.subf %1022, %1025 : vector<2x8x8xf32>
    %1027 = math.exp %1026 : vector<2x8x8xf32>
    %cst_395 = arith.constant dense<0.000000e+00> : vector<2x8xf32>
    %1028 = vector.multi_reduction <add>, %1027, %cst_395 [2] : vector<2x8x8xf32> to vector<2x8xf32>
    %1029 = vector.shape_cast %1028 : vector<2x8xf32> to vector<2x8x1xf32>
    %1030 = vector.broadcast %1029 : vector<2x8x1xf32> to vector<2x8x8xf32>
    %1031 = arith.divf %1027, %1030 : vector<2x8x8xf32>
    %1032 = vector.extract_strided_slice %982 {offsets = [0, 0, 16], sizes = [2, 8, 8], strides = [1, 1, 1]} : vector<2x8x32xf32> to vector<2x8x8xf32>
    "tpu.trace_start"() <{level = 10 : i32, message = "bqk,bkd->bqd"}> : () -> ()
    %cst_396 = arith.constant dense<0.000000e+00> : vector<2x8x8xf32>
    %1033 = tpu.matmul %1031, %1032, %cst_396 {dimension_numbers = #tpu.dot_dimension_numbers<[2], [1], [1], [2], [0, 0, 0, 1, 1, 2], [0], [0]>} : vector<2x8x8xf32>, vector<2x8x8xf32>, vector<2x8x8xf32> -> vector<2x8x8xf32>
    "tpu.trace_stop"() : () -> ()
    %1034 = vector.shape_cast %1033 : vector<2x8x8xf32> to vector<16x8xf32>
    %1035 = vector.extract_strided_slice %983 {offsets = [16, 0], sizes = [8, 32], strides = [1, 1]} : vector<32x32xf32> to vector<8x32xf32>
    %cst_397 = arith.constant dense<0.000000e+00> : vector<16x32xf32>
    %1036 = tpu.matmul %1034, %1035, %cst_397 {dimension_numbers = #tpu.dot_dimension_numbers<[1], [0], [0], [1], [0, 0, 1, 1], [], []>} : vector<16x8xf32>, vector<8x32xf32>, vector<16x32xf32> -> vector<16x32xf32>
    %1037 = arith.addf %1019, %1036 : vector<16x32xf32>
    %1038 = vector.extract_strided_slice %980 {offsets = [0, 0, 24], sizes = [2, 8, 8], strides = [1, 1, 1]} : vector<2x8x32xf32> to vector<2x8x8xf32>
    %1039 = vector.extract_strided_slice %981 {offsets = [0, 0, 24], sizes = [2, 8, 8], strides = [1, 1, 1]} : vector<2x8x32xf32> to vector<2x8x8xf32>
    "tpu.trace_start"() <{level = 10 : i32, message = "bqd,bkd->bqk"}> : () -> ()
    %cst_398 = arith.constant dense<0.000000e+00> : vector<2x8x8xf32>
    %1040 = tpu.matmul %1038, %1039, %cst_398 {dimension_numbers = #tpu.dot_dimension_numbers<[2], [2], [1], [1], [0, 0, 0, 1, 1, 1], [0], [0]>} : vector<2x8x8xf32>, vector<2x8x8xf32>, vector<2x8x8xf32> -> vector<2x8x8xf32>
    "tpu.trace_stop"() : () -> ()
    %cst_399 = arith.constant dense<0xFF800000> : vector<2x8xf32>
    %1041 = vector.multi_reduction <maximumf>, %1040, %cst_399 [2] : vector<2x8x8xf32> to vector<2x8xf32>
    %1042 = vector.shape_cast %1041 : vector<2x8xf32> to vector<2x8x1xf32>
    %1043 = vector.broadcast %1042 : vector<2x8x1xf32> to vector<2x8x8xf32>
    %1044 = arith.subf %1040, %1043 : vector<2x8x8xf32>
    %1045 = math.exp %1044 : vector<2x8x8xf32>
    %cst_400 = arith.constant dense<0.000000e+00> : vector<2x8xf32>
    %1046 = vector.multi_reduction <add>, %1045, %cst_400 [2] : vector<2x8x8xf32> to vector<2x8xf32>
    %1047 = vector.shape_cast %1046 : vector<2x8xf32> to vector<2x8x1xf32>
    %1048 = vector.broadcast %1047 : vector<2x8x1xf32> to vector<2x8x8xf32>
    %1049 = arith.divf %1045, %1048 : vector<2x8x8xf32>
    %1050 = vector.extract_strided_slice %982 {offsets = [0, 0, 24], sizes = [2, 8, 8], strides = [1, 1, 1]} : vector<2x8x32xf32> to vector<2x8x8xf32>
    "tpu.trace_start"() <{level = 10 : i32, message = "bqk,bkd->bqd"}> : () -> ()
    %cst_401 = arith.constant dense<0.000000e+00> : vector<2x8x8xf32>
    %1051 = tpu.matmul %1049, %1050, %cst_401 {dimension_numbers = #tpu.dot_dimension_numbers<[2], [1], [1], [2], [0, 0, 0, 1, 1, 2], [0], [0]>} : vector<2x8x8xf32>, vector<2x8x8xf32>, vector<2x8x8xf32> -> vector<2x8x8xf32>
    "tpu.trace_stop"() : () -> ()
    %1052 = vector.shape_cast %1051 : vector<2x8x8xf32> to vector<16x8xf32>
    %1053 = vector.extract_strided_slice %983 {offsets = [24, 0], sizes = [8, 32], strides = [1, 1]} : vector<32x32xf32> to vector<8x32xf32>
    %cst_402 = arith.constant dense<0.000000e+00> : vector<16x32xf32>
    %1054 = tpu.matmul %1052, %1053, %cst_402 {dimension_numbers = #tpu.dot_dimension_numbers<[1], [0], [0], [1], [0, 0, 1, 1], [], []>} : vector<16x8xf32>, vector<8x32xf32>, vector<16x32xf32> -> vector<16x32xf32>
    %1055 = arith.addf %1037, %1054 : vector<16x32xf32>
    %1056 = vector.broadcast %984 : vector<1x32xf32> to vector<16x32xf32>
    %1057 = arith.addf %1055, %1056 : vector<16x32xf32>
    %1058 = arith.addf %613, %1057 : vector<16x32xf32>
    %c400 = arith.constant 400 : index
    %c0_403 = arith.constant 0 : index
    %1059 = vector.load %arg5[%c400, %c0_403] : memref<992x128xf32, #tpu.memory_space<vmem>>, vector<1x32xf32>
    %c392 = arith.constant 392 : index
    %c0_404 = arith.constant 0 : index
    %1060 = vector.load %arg5[%c392, %c0_404] : memref<992x128xf32, #tpu.memory_space<vmem>>, vector<1x32xf32>
    %cst_405 = arith.constant dense<0.000000e+00> : vector<16xf32>
    %1061 = vector.multi_reduction <add>, %1058, %cst_405 [1] : vector<16x32xf32> to vector<16xf32>
    %1062 = vector.shape_cast %1061 : vector<16xf32> to vector<16x1xf32>
    %cst_406 = arith.constant 3.200000e+01 : f32
    %1063 = vector.broadcast %cst_406 : f32 to vector<16x1xf32>
    %1064 = arith.divf %1062, %1063 : vector<16x1xf32>
    %1065 = vector.broadcast %1064 : vector<16x1xf32> to vector<16x32xf32>
    %1066 = arith.subf %1058, %1065 : vector<16x32xf32>
    %1067 = arith.mulf %1066, %1066 : vector<16x32xf32>
    %cst_407 = arith.constant dense<0.000000e+00> : vector<16xf32>
    %1068 = vector.multi_reduction <add>, %1067, %cst_407 [1] : vector<16x32xf32> to vector<16xf32>
    %1069 = vector.shape_cast %1068 : vector<16xf32> to vector<16x1xf32>
    %cst_408 = arith.constant 3.200000e+01 : f32
    %1070 = vector.broadcast %cst_408 : f32 to vector<16x1xf32>
    %1071 = arith.divf %1069, %1070 : vector<16x1xf32>
    %1072 = vector.broadcast %1064 : vector<16x1xf32> to vector<16x32xf32>
    %1073 = arith.subf %1058, %1072 : vector<16x32xf32>
    %cst_409 = arith.constant 9.99999974E-6 : f32
    %1074 = vector.broadcast %cst_409 : f32 to vector<16x1xf32>
    %1075 = arith.addf %1071, %1074 : vector<16x1xf32>
    %1076 = math.rsqrt %1075 : vector<16x1xf32>
    %1077 = vector.broadcast %1076 : vector<16x1xf32> to vector<16x32xf32>
    %1078 = arith.mulf %1073, %1077 : vector<16x32xf32>
    %1079 = vector.broadcast %1059 : vector<1x32xf32> to vector<16x32xf32>
    %1080 = arith.mulf %1078, %1079 : vector<16x32xf32>
    %1081 = vector.broadcast %1060 : vector<1x32xf32> to vector<16x32xf32>
    %1082 = arith.addf %1080, %1081 : vector<16x32xf32>
    %1083 = arith.addf %1082, %961 : vector<16x32xf32>
    %c248 = arith.constant 248 : index
    %c0_410 = arith.constant 0 : index
    %1084 = vector.load %arg5[%c248, %c0_410] : memref<992x128xf32, #tpu.memory_space<vmem>>, vector<32x32xf32>
    %cst_411 = arith.constant dense<0.000000e+00> : vector<16x32xf32>
    %1085 = tpu.matmul %1083, %1084, %cst_411 {dimension_numbers = #tpu.dot_dimension_numbers<[1], [0], [0], [1], [0, 0, 1, 1], [], []>} : vector<16x32xf32>, vector<32x32xf32>, vector<16x32xf32> -> vector<16x32xf32>
    %c240 = arith.constant 240 : index
    %c0_412 = arith.constant 0 : index
    %1086 = vector.load %arg5[%c240, %c0_412] : memref<992x128xf32, #tpu.memory_space<vmem>>, vector<1x32xf32>
    %1087 = vector.broadcast %1086 : vector<1x32xf32> to vector<16x32xf32>
    %1088 = arith.addf %1085, %1087 : vector<16x32xf32>
    %c248_413 = arith.constant 248 : index
    %c32_414 = arith.constant 32 : index
    %1089 = vector.load %arg5[%c248_413, %c32_414] : memref<992x128xf32, #tpu.memory_space<vmem>>, vector<32x32xf32>
    %cst_415 = arith.constant dense<0.000000e+00> : vector<32x32xf32>
    %1090 = tpu.matmul %4, %1089, %cst_415 {dimension_numbers = #tpu.dot_dimension_numbers<[1], [0], [0], [1], [0, 0, 1, 1], [], []>} : vector<32x32xf32>, vector<32x32xf32>, vector<32x32xf32> -> vector<32x32xf32>
    %c240_416 = arith.constant 240 : index
    %c32_417 = arith.constant 32 : index
    %1091 = vector.load %arg5[%c240_416, %c32_417] : memref<992x128xf32, #tpu.memory_space<vmem>>, vector<1x32xf32>
    %1092 = vector.broadcast %1091 : vector<1x32xf32> to vector<32x32xf32>
    %1093 = arith.addf %1090, %1092 : vector<32x32xf32>
    %c248_418 = arith.constant 248 : index
    %c64_419 = arith.constant 64 : index
    %1094 = vector.load %arg5[%c248_418, %c64_419] : memref<992x128xf32, #tpu.memory_space<vmem>>, vector<32x32xf32>
    %cst_420 = arith.constant dense<0.000000e+00> : vector<32x32xf32>
    %1095 = tpu.matmul %2, %1094, %cst_420 {dimension_numbers = #tpu.dot_dimension_numbers<[1], [0], [0], [1], [0, 0, 1, 1], [], []>} : vector<32x32xf32>, vector<32x32xf32>, vector<32x32xf32> -> vector<32x32xf32>
    %c240_421 = arith.constant 240 : index
    %c64_422 = arith.constant 64 : index
    %1096 = vector.load %arg5[%c240_421, %c64_422] : memref<992x128xf32, #tpu.memory_space<vmem>>, vector<1x32xf32>
    %1097 = vector.broadcast %1096 : vector<1x32xf32> to vector<32x32xf32>
    %1098 = arith.addf %1095, %1097 : vector<32x32xf32>
    %cst_423 = arith.constant 0.353553385 : f32
    %1099 = vector.broadcast %cst_423 : f32 to vector<16x32xf32>
    %1100 = arith.mulf %1088, %1099 : vector<16x32xf32>
    %1101 = vector.shape_cast %1100 : vector<16x32xf32> to vector<2x8x32xf32>
    %1102 = vector.shape_cast %1093 : vector<32x32xf32> to vector<2x16x32xf32>
    %1103 = vector.shape_cast %1098 : vector<32x32xf32> to vector<2x16x32xf32>
    %c248_424 = arith.constant 248 : index
    %c96_425 = arith.constant 96 : index
    %1104 = vector.load %arg5[%c248_424, %c96_425] : memref<992x128xf32, #tpu.memory_space<vmem>>, vector<32x32xf32>
    %c240_426 = arith.constant 240 : index
    %c96_427 = arith.constant 96 : index
    %1105 = vector.load %arg5[%c240_426, %c96_427] : memref<992x128xf32, #tpu.memory_space<vmem>>, vector<1x32xf32>
    %1106 = vector.extract_strided_slice %1101 {offsets = [0, 0, 0], sizes = [2, 8, 8], strides = [1, 1, 1]} : vector<2x8x32xf32> to vector<2x8x8xf32>
    %1107 = vector.extract_strided_slice %1102 {offsets = [0, 0, 0], sizes = [2, 16, 8], strides = [1, 1, 1]} : vector<2x16x32xf32> to vector<2x16x8xf32>
    "tpu.trace_start"() <{level = 10 : i32, message = "bqd,bkd->bqk"}> : () -> ()
    %cst_428 = arith.constant dense<0.000000e+00> : vector<2x8x16xf32>
    %1108 = tpu.matmul %1106, %1107, %cst_428 {dimension_numbers = #tpu.dot_dimension_numbers<[2], [2], [1], [1], [0, 0, 0, 1, 1, 1], [0], [0]>} : vector<2x8x8xf32>, vector<2x16x8xf32>, vector<2x8x16xf32> -> vector<2x8x16xf32>
    "tpu.trace_stop"() : () -> ()
    %cst_429 = arith.constant dense<0xFF800000> : vector<2x8xf32>
    %1109 = vector.multi_reduction <maximumf>, %1108, %cst_429 [2] : vector<2x8x16xf32> to vector<2x8xf32>
    %1110 = vector.shape_cast %1109 : vector<2x8xf32> to vector<2x8x1xf32>
    %1111 = vector.broadcast %1110 : vector<2x8x1xf32> to vector<2x8x16xf32>
    %1112 = arith.subf %1108, %1111 : vector<2x8x16xf32>
    %1113 = math.exp %1112 : vector<2x8x16xf32>
    %cst_430 = arith.constant dense<0.000000e+00> : vector<2x8xf32>
    %1114 = vector.multi_reduction <add>, %1113, %cst_430 [2] : vector<2x8x16xf32> to vector<2x8xf32>
    %1115 = vector.shape_cast %1114 : vector<2x8xf32> to vector<2x8x1xf32>
    %1116 = vector.broadcast %1115 : vector<2x8x1xf32> to vector<2x8x16xf32>
    %1117 = arith.divf %1113, %1116 : vector<2x8x16xf32>
    %1118 = vector.extract_strided_slice %1103 {offsets = [0, 0, 0], sizes = [2, 16, 8], strides = [1, 1, 1]} : vector<2x16x32xf32> to vector<2x16x8xf32>
    "tpu.trace_start"() <{level = 10 : i32, message = "bqk,bkd->bqd"}> : () -> ()
    %cst_431 = arith.constant dense<0.000000e+00> : vector<2x8x8xf32>
    %1119 = tpu.matmul %1117, %1118, %cst_431 {dimension_numbers = #tpu.dot_dimension_numbers<[2], [1], [1], [2], [0, 0, 0, 1, 1, 2], [0], [0]>} : vector<2x8x16xf32>, vector<2x16x8xf32>, vector<2x8x8xf32> -> vector<2x8x8xf32>
    "tpu.trace_stop"() : () -> ()
    %1120 = vector.shape_cast %1119 : vector<2x8x8xf32> to vector<16x8xf32>
    %1121 = vector.extract_strided_slice %1104 {offsets = [0, 0], sizes = [8, 32], strides = [1, 1]} : vector<32x32xf32> to vector<8x32xf32>
    %cst_432 = arith.constant dense<0.000000e+00> : vector<16x32xf32>
    %1122 = tpu.matmul %1120, %1121, %cst_432 {dimension_numbers = #tpu.dot_dimension_numbers<[1], [0], [0], [1], [0, 0, 1, 1], [], []>} : vector<16x8xf32>, vector<8x32xf32>, vector<16x32xf32> -> vector<16x32xf32>
    %1123 = vector.extract_strided_slice %1101 {offsets = [0, 0, 8], sizes = [2, 8, 8], strides = [1, 1, 1]} : vector<2x8x32xf32> to vector<2x8x8xf32>
    %1124 = vector.extract_strided_slice %1102 {offsets = [0, 0, 8], sizes = [2, 16, 8], strides = [1, 1, 1]} : vector<2x16x32xf32> to vector<2x16x8xf32>
    "tpu.trace_start"() <{level = 10 : i32, message = "bqd,bkd->bqk"}> : () -> ()
    %cst_433 = arith.constant dense<0.000000e+00> : vector<2x8x16xf32>
    %1125 = tpu.matmul %1123, %1124, %cst_433 {dimension_numbers = #tpu.dot_dimension_numbers<[2], [2], [1], [1], [0, 0, 0, 1, 1, 1], [0], [0]>} : vector<2x8x8xf32>, vector<2x16x8xf32>, vector<2x8x16xf32> -> vector<2x8x16xf32>
    "tpu.trace_stop"() : () -> ()
    %cst_434 = arith.constant dense<0xFF800000> : vector<2x8xf32>
    %1126 = vector.multi_reduction <maximumf>, %1125, %cst_434 [2] : vector<2x8x16xf32> to vector<2x8xf32>
    %1127 = vector.shape_cast %1126 : vector<2x8xf32> to vector<2x8x1xf32>
    %1128 = vector.broadcast %1127 : vector<2x8x1xf32> to vector<2x8x16xf32>
    %1129 = arith.subf %1125, %1128 : vector<2x8x16xf32>
    %1130 = math.exp %1129 : vector<2x8x16xf32>
    %cst_435 = arith.constant dense<0.000000e+00> : vector<2x8xf32>
    %1131 = vector.multi_reduction <add>, %1130, %cst_435 [2] : vector<2x8x16xf32> to vector<2x8xf32>
    %1132 = vector.shape_cast %1131 : vector<2x8xf32> to vector<2x8x1xf32>
    %1133 = vector.broadcast %1132 : vector<2x8x1xf32> to vector<2x8x16xf32>
    %1134 = arith.divf %1130, %1133 : vector<2x8x16xf32>
    %1135 = vector.extract_strided_slice %1103 {offsets = [0, 0, 8], sizes = [2, 16, 8], strides = [1, 1, 1]} : vector<2x16x32xf32> to vector<2x16x8xf32>
    "tpu.trace_start"() <{level = 10 : i32, message = "bqk,bkd->bqd"}> : () -> ()
    %cst_436 = arith.constant dense<0.000000e+00> : vector<2x8x8xf32>
    %1136 = tpu.matmul %1134, %1135, %cst_436 {dimension_numbers = #tpu.dot_dimension_numbers<[2], [1], [1], [2], [0, 0, 0, 1, 1, 2], [0], [0]>} : vector<2x8x16xf32>, vector<2x16x8xf32>, vector<2x8x8xf32> -> vector<2x8x8xf32>
    "tpu.trace_stop"() : () -> ()
    %1137 = vector.shape_cast %1136 : vector<2x8x8xf32> to vector<16x8xf32>
    %1138 = vector.extract_strided_slice %1104 {offsets = [8, 0], sizes = [8, 32], strides = [1, 1]} : vector<32x32xf32> to vector<8x32xf32>
    %cst_437 = arith.constant dense<0.000000e+00> : vector<16x32xf32>
    %1139 = tpu.matmul %1137, %1138, %cst_437 {dimension_numbers = #tpu.dot_dimension_numbers<[1], [0], [0], [1], [0, 0, 1, 1], [], []>} : vector<16x8xf32>, vector<8x32xf32>, vector<16x32xf32> -> vector<16x32xf32>
    %1140 = arith.addf %1122, %1139 : vector<16x32xf32>
    %1141 = vector.extract_strided_slice %1101 {offsets = [0, 0, 16], sizes = [2, 8, 8], strides = [1, 1, 1]} : vector<2x8x32xf32> to vector<2x8x8xf32>
    %1142 = vector.extract_strided_slice %1102 {offsets = [0, 0, 16], sizes = [2, 16, 8], strides = [1, 1, 1]} : vector<2x16x32xf32> to vector<2x16x8xf32>
    "tpu.trace_start"() <{level = 10 : i32, message = "bqd,bkd->bqk"}> : () -> ()
    %cst_438 = arith.constant dense<0.000000e+00> : vector<2x8x16xf32>
    %1143 = tpu.matmul %1141, %1142, %cst_438 {dimension_numbers = #tpu.dot_dimension_numbers<[2], [2], [1], [1], [0, 0, 0, 1, 1, 1], [0], [0]>} : vector<2x8x8xf32>, vector<2x16x8xf32>, vector<2x8x16xf32> -> vector<2x8x16xf32>
    "tpu.trace_stop"() : () -> ()
    %cst_439 = arith.constant dense<0xFF800000> : vector<2x8xf32>
    %1144 = vector.multi_reduction <maximumf>, %1143, %cst_439 [2] : vector<2x8x16xf32> to vector<2x8xf32>
    %1145 = vector.shape_cast %1144 : vector<2x8xf32> to vector<2x8x1xf32>
    %1146 = vector.broadcast %1145 : vector<2x8x1xf32> to vector<2x8x16xf32>
    %1147 = arith.subf %1143, %1146 : vector<2x8x16xf32>
    %1148 = math.exp %1147 : vector<2x8x16xf32>
    %cst_440 = arith.constant dense<0.000000e+00> : vector<2x8xf32>
    %1149 = vector.multi_reduction <add>, %1148, %cst_440 [2] : vector<2x8x16xf32> to vector<2x8xf32>
    %1150 = vector.shape_cast %1149 : vector<2x8xf32> to vector<2x8x1xf32>
    %1151 = vector.broadcast %1150 : vector<2x8x1xf32> to vector<2x8x16xf32>
    %1152 = arith.divf %1148, %1151 : vector<2x8x16xf32>
    %1153 = vector.extract_strided_slice %1103 {offsets = [0, 0, 16], sizes = [2, 16, 8], strides = [1, 1, 1]} : vector<2x16x32xf32> to vector<2x16x8xf32>
    "tpu.trace_start"() <{level = 10 : i32, message = "bqk,bkd->bqd"}> : () -> ()
    %cst_441 = arith.constant dense<0.000000e+00> : vector<2x8x8xf32>
    %1154 = tpu.matmul %1152, %1153, %cst_441 {dimension_numbers = #tpu.dot_dimension_numbers<[2], [1], [1], [2], [0, 0, 0, 1, 1, 2], [0], [0]>} : vector<2x8x16xf32>, vector<2x16x8xf32>, vector<2x8x8xf32> -> vector<2x8x8xf32>
    "tpu.trace_stop"() : () -> ()
    %1155 = vector.shape_cast %1154 : vector<2x8x8xf32> to vector<16x8xf32>
    %1156 = vector.extract_strided_slice %1104 {offsets = [16, 0], sizes = [8, 32], strides = [1, 1]} : vector<32x32xf32> to vector<8x32xf32>
    %cst_442 = arith.constant dense<0.000000e+00> : vector<16x32xf32>
    %1157 = tpu.matmul %1155, %1156, %cst_442 {dimension_numbers = #tpu.dot_dimension_numbers<[1], [0], [0], [1], [0, 0, 1, 1], [], []>} : vector<16x8xf32>, vector<8x32xf32>, vector<16x32xf32> -> vector<16x32xf32>
    %1158 = arith.addf %1140, %1157 : vector<16x32xf32>
    %1159 = vector.extract_strided_slice %1101 {offsets = [0, 0, 24], sizes = [2, 8, 8], strides = [1, 1, 1]} : vector<2x8x32xf32> to vector<2x8x8xf32>
    %1160 = vector.extract_strided_slice %1102 {offsets = [0, 0, 24], sizes = [2, 16, 8], strides = [1, 1, 1]} : vector<2x16x32xf32> to vector<2x16x8xf32>
    "tpu.trace_start"() <{level = 10 : i32, message = "bqd,bkd->bqk"}> : () -> ()
    %cst_443 = arith.constant dense<0.000000e+00> : vector<2x8x16xf32>
    %1161 = tpu.matmul %1159, %1160, %cst_443 {dimension_numbers = #tpu.dot_dimension_numbers<[2], [2], [1], [1], [0, 0, 0, 1, 1, 1], [0], [0]>} : vector<2x8x8xf32>, vector<2x16x8xf32>, vector<2x8x16xf32> -> vector<2x8x16xf32>
    "tpu.trace_stop"() : () -> ()
    %cst_444 = arith.constant dense<0xFF800000> : vector<2x8xf32>
    %1162 = vector.multi_reduction <maximumf>, %1161, %cst_444 [2] : vector<2x8x16xf32> to vector<2x8xf32>
    %1163 = vector.shape_cast %1162 : vector<2x8xf32> to vector<2x8x1xf32>
    %1164 = vector.broadcast %1163 : vector<2x8x1xf32> to vector<2x8x16xf32>
    %1165 = arith.subf %1161, %1164 : vector<2x8x16xf32>
    %1166 = math.exp %1165 : vector<2x8x16xf32>
    %cst_445 = arith.constant dense<0.000000e+00> : vector<2x8xf32>
    %1167 = vector.multi_reduction <add>, %1166, %cst_445 [2] : vector<2x8x16xf32> to vector<2x8xf32>
    %1168 = vector.shape_cast %1167 : vector<2x8xf32> to vector<2x8x1xf32>
    %1169 = vector.broadcast %1168 : vector<2x8x1xf32> to vector<2x8x16xf32>
    %1170 = arith.divf %1166, %1169 : vector<2x8x16xf32>
    %1171 = vector.extract_strided_slice %1103 {offsets = [0, 0, 24], sizes = [2, 16, 8], strides = [1, 1, 1]} : vector<2x16x32xf32> to vector<2x16x8xf32>
    "tpu.trace_start"() <{level = 10 : i32, message = "bqk,bkd->bqd"}> : () -> ()
    %cst_446 = arith.constant dense<0.000000e+00> : vector<2x8x8xf32>
    %1172 = tpu.matmul %1170, %1171, %cst_446 {dimension_numbers = #tpu.dot_dimension_numbers<[2], [1], [1], [2], [0, 0, 0, 1, 1, 2], [0], [0]>} : vector<2x8x16xf32>, vector<2x16x8xf32>, vector<2x8x8xf32> -> vector<2x8x8xf32>
    "tpu.trace_stop"() : () -> ()
    %1173 = vector.shape_cast %1172 : vector<2x8x8xf32> to vector<16x8xf32>
    %1174 = vector.extract_strided_slice %1104 {offsets = [24, 0], sizes = [8, 32], strides = [1, 1]} : vector<32x32xf32> to vector<8x32xf32>
    %cst_447 = arith.constant dense<0.000000e+00> : vector<16x32xf32>
    %1175 = tpu.matmul %1173, %1174, %cst_447 {dimension_numbers = #tpu.dot_dimension_numbers<[1], [0], [0], [1], [0, 0, 1, 1], [], []>} : vector<16x8xf32>, vector<8x32xf32>, vector<16x32xf32> -> vector<16x32xf32>
    %1176 = arith.addf %1158, %1175 : vector<16x32xf32>
    %1177 = vector.broadcast %1105 : vector<1x32xf32> to vector<16x32xf32>
    %1178 = arith.addf %1176, %1177 : vector<16x32xf32>
    %1179 = arith.addf %1082, %1178 : vector<16x32xf32>
    %c416 = arith.constant 416 : index
    %c0_448 = arith.constant 0 : index
    %1180 = vector.load %arg5[%c416, %c0_448] : memref<992x128xf32, #tpu.memory_space<vmem>>, vector<1x32xf32>
    %c408 = arith.constant 408 : index
    %c0_449 = arith.constant 0 : index
    %1181 = vector.load %arg5[%c408, %c0_449] : memref<992x128xf32, #tpu.memory_space<vmem>>, vector<1x32xf32>
    %cst_450 = arith.constant dense<0.000000e+00> : vector<16xf32>
    %1182 = vector.multi_reduction <add>, %1179, %cst_450 [1] : vector<16x32xf32> to vector<16xf32>
    %1183 = vector.shape_cast %1182 : vector<16xf32> to vector<16x1xf32>
    %cst_451 = arith.constant 3.200000e+01 : f32
    %1184 = vector.broadcast %cst_451 : f32 to vector<16x1xf32>
    %1185 = arith.divf %1183, %1184 : vector<16x1xf32>
    %1186 = vector.broadcast %1185 : vector<16x1xf32> to vector<16x32xf32>
    %1187 = arith.subf %1179, %1186 : vector<16x32xf32>
    %1188 = arith.mulf %1187, %1187 : vector<16x32xf32>
    %cst_452 = arith.constant dense<0.000000e+00> : vector<16xf32>
    %1189 = vector.multi_reduction <add>, %1188, %cst_452 [1] : vector<16x32xf32> to vector<16xf32>
    %1190 = vector.shape_cast %1189 : vector<16xf32> to vector<16x1xf32>
    %cst_453 = arith.constant 3.200000e+01 : f32
    %1191 = vector.broadcast %cst_453 : f32 to vector<16x1xf32>
    %1192 = arith.divf %1190, %1191 : vector<16x1xf32>
    %1193 = vector.broadcast %1185 : vector<16x1xf32> to vector<16x32xf32>
    %1194 = arith.subf %1179, %1193 : vector<16x32xf32>
    %cst_454 = arith.constant 9.99999974E-6 : f32
    %1195 = vector.broadcast %cst_454 : f32 to vector<16x1xf32>
    %1196 = arith.addf %1192, %1195 : vector<16x1xf32>
    %1197 = math.rsqrt %1196 : vector<16x1xf32>
    %1198 = vector.broadcast %1197 : vector<16x1xf32> to vector<16x32xf32>
    %1199 = arith.mulf %1194, %1198 : vector<16x32xf32>
    %1200 = vector.broadcast %1180 : vector<1x32xf32> to vector<16x32xf32>
    %1201 = arith.mulf %1199, %1200 : vector<16x32xf32>
    %1202 = vector.broadcast %1181 : vector<1x32xf32> to vector<16x32xf32>
    %1203 = arith.addf %1201, %1202 : vector<16x32xf32>
    %c296 = arith.constant 296 : index
    %c0_455 = arith.constant 0 : index
    %1204 = vector.load %arg5[%c296, %c0_455] : memref<992x128xf32, #tpu.memory_space<vmem>>, vector<32x64xf32>
    %cst_456 = arith.constant dense<0.000000e+00> : vector<16x64xf32>
    %1205 = tpu.matmul %1203, %1204, %cst_456 {dimension_numbers = #tpu.dot_dimension_numbers<[1], [0], [0], [1], [0, 0, 1, 1], [], []>} : vector<16x32xf32>, vector<32x64xf32>, vector<16x64xf32> -> vector<16x64xf32>
    %c280 = arith.constant 280 : index
    %c0_457 = arith.constant 0 : index
    %1206 = vector.load %arg5[%c280, %c0_457] : memref<992x128xf32, #tpu.memory_space<vmem>>, vector<1x64xf32>
    %1207 = vector.broadcast %1206 : vector<1x64xf32> to vector<16x64xf32>
    %1208 = arith.addf %1205, %1207 : vector<16x64xf32>
    %cst_458 = arith.constant 0.000000e+00 : f32
    %1209 = vector.broadcast %cst_458 : f32 to vector<16x64xf32>
    %1210 = arith.maximumf %1208, %1209 : vector<16x64xf32>
    %c328 = arith.constant 328 : index
    %c0_459 = arith.constant 0 : index
    %1211 = vector.load %arg5[%c328, %c0_459] : memref<992x128xf32, #tpu.memory_space<vmem>>, vector<64x32xf32>
    %cst_460 = arith.constant dense<0.000000e+00> : vector<16x32xf32>
    %1212 = tpu.matmul %1210, %1211, %cst_460 {dimension_numbers = #tpu.dot_dimension_numbers<[1], [0], [0], [1], [0, 0, 1, 1], [], []>} : vector<16x64xf32>, vector<64x32xf32>, vector<16x32xf32> -> vector<16x32xf32>
    %c288 = arith.constant 288 : index
    %c0_461 = arith.constant 0 : index
    %1213 = vector.load %arg5[%c288, %c0_461] : memref<992x128xf32, #tpu.memory_space<vmem>>, vector<1x32xf32>
    %1214 = vector.broadcast %1213 : vector<1x32xf32> to vector<16x32xf32>
    %1215 = arith.addf %1212, %1214 : vector<16x32xf32>
    %1216 = arith.addf %1203, %1215 : vector<16x32xf32>
    %c432 = arith.constant 432 : index
    %c0_462 = arith.constant 0 : index
    %1217 = vector.load %arg5[%c432, %c0_462] : memref<992x128xf32, #tpu.memory_space<vmem>>, vector<1x32xf32>
    %c424 = arith.constant 424 : index
    %c0_463 = arith.constant 0 : index
    %1218 = vector.load %arg5[%c424, %c0_463] : memref<992x128xf32, #tpu.memory_space<vmem>>, vector<1x32xf32>
    %cst_464 = arith.constant dense<0.000000e+00> : vector<16xf32>
    %1219 = vector.multi_reduction <add>, %1216, %cst_464 [1] : vector<16x32xf32> to vector<16xf32>
    %1220 = vector.shape_cast %1219 : vector<16xf32> to vector<16x1xf32>
    %cst_465 = arith.constant 3.200000e+01 : f32
    %1221 = vector.broadcast %cst_465 : f32 to vector<16x1xf32>
    %1222 = arith.divf %1220, %1221 : vector<16x1xf32>
    %1223 = vector.broadcast %1222 : vector<16x1xf32> to vector<16x32xf32>
    %1224 = arith.subf %1216, %1223 : vector<16x32xf32>
    %1225 = arith.mulf %1224, %1224 : vector<16x32xf32>
    %cst_466 = arith.constant dense<0.000000e+00> : vector<16xf32>
    %1226 = vector.multi_reduction <add>, %1225, %cst_466 [1] : vector<16x32xf32> to vector<16xf32>
    %1227 = vector.shape_cast %1226 : vector<16xf32> to vector<16x1xf32>
    %cst_467 = arith.constant 3.200000e+01 : f32
    %1228 = vector.broadcast %cst_467 : f32 to vector<16x1xf32>
    %1229 = arith.divf %1227, %1228 : vector<16x1xf32>
    %1230 = vector.broadcast %1222 : vector<16x1xf32> to vector<16x32xf32>
    %1231 = arith.subf %1216, %1230 : vector<16x32xf32>
    %cst_468 = arith.constant 9.99999974E-6 : f32
    %1232 = vector.broadcast %cst_468 : f32 to vector<16x1xf32>
    %1233 = arith.addf %1229, %1232 : vector<16x1xf32>
    %1234 = math.rsqrt %1233 : vector<16x1xf32>
    %1235 = vector.broadcast %1234 : vector<16x1xf32> to vector<16x32xf32>
    %1236 = arith.mulf %1231, %1235 : vector<16x32xf32>
    %1237 = vector.broadcast %1217 : vector<1x32xf32> to vector<16x32xf32>
    %1238 = arith.mulf %1236, %1237 : vector<16x32xf32>
    %1239 = vector.broadcast %1218 : vector<1x32xf32> to vector<16x32xf32>
    %1240 = arith.addf %1238, %1239 : vector<16x32xf32>
    %cst_469 = arith.constant dense<0.000000e+00> : vector<16xf32>
    %1241 = vector.multi_reduction <add>, %1240, %cst_469 [1] : vector<16x32xf32> to vector<16xf32>
    %1242 = vector.shape_cast %1241 : vector<16xf32> to vector<16x1xf32>
    %cst_470 = arith.constant 3.200000e+01 : f32
    %1243 = vector.broadcast %cst_470 : f32 to vector<16x1xf32>
    %1244 = arith.divf %1242, %1243 : vector<16x1xf32>
    %1245 = vector.broadcast %1244 : vector<16x1xf32> to vector<16x32xf32>
    %1246 = arith.subf %1240, %1245 : vector<16x32xf32>
    %1247 = arith.mulf %1246, %1246 : vector<16x32xf32>
    %cst_471 = arith.constant dense<0.000000e+00> : vector<16xf32>
    %1248 = vector.multi_reduction <add>, %1247, %cst_471 [1] : vector<16x32xf32> to vector<16xf32>
    %1249 = vector.shape_cast %1248 : vector<16xf32> to vector<16x1xf32>
    %cst_472 = arith.constant 3.200000e+01 : f32
    %1250 = vector.broadcast %cst_472 : f32 to vector<16x1xf32>
    %1251 = arith.divf %1249, %1250 : vector<16x1xf32>
    %1252 = vector.broadcast %1244 : vector<16x1xf32> to vector<16x32xf32>
    %1253 = arith.subf %1240, %1252 : vector<16x32xf32>
    %cst_473 = arith.constant 9.99999974E-6 : f32
    %1254 = vector.broadcast %cst_473 : f32 to vector<16x1xf32>
    %1255 = arith.addf %1251, %1254 : vector<16x1xf32>
    %1256 = math.rsqrt %1255 : vector<16x1xf32>
    %1257 = vector.broadcast %1256 : vector<16x1xf32> to vector<16x32xf32>
    %1258 = arith.mulf %1253, %1257 : vector<16x32xf32>
    %1259 = vector.broadcast %8 : vector<1x32xf32> to vector<16x32xf32>
    %1260 = arith.mulf %1258, %1259 : vector<16x32xf32>
    %1261 = vector.broadcast %9 : vector<1x32xf32> to vector<16x32xf32>
    %1262 = arith.addf %1260, %1261 : vector<16x32xf32>
    %c1_474 = arith.constant 1 : index
    %c0_475 = arith.constant 0 : index
    %c56_476 = arith.constant 56 : index
    %1263 = vector.load %arg6[%c1_474, %c0_475, %c56_476] : memref<2x16x128xf32, #tpu.memory_space<vmem>>, vector<1x16x32xf32>
    %1264 = vector.shape_cast %1263 : vector<1x16x32xf32> to vector<16x32xf32>
    %1265 = vector.shape_cast %1262 : vector<16x32xf32> to vector<1x16x32xf32>
    tpu.vector_store %arg6[%c1_474, %c0_475, %c56_476], %1265 {strides = array<i32>} : memref<2x16x128xf32, #tpu.memory_space<vmem>>, vector<1x16x32xf32>,
    return
  }
}

</mosaic_0001>

<bundles_post_ra>
// kernel: _lambda_.1
= control target key start
LH: loop header
LB: loop body
LE: loop exit
PB: predicated region body
PF: predicated region fallthrough
CT: control target
= control target key end

     0   :  { %11 = vsyncpa [#allocation3], 0  ;;  %s23629_s0 = inlined_call_operand.vmem [shape: f32[32,32], index: 0, kind: input, shape index: {}]   ;;  %s23630_s1 = inlined_call_operand.hbm [shape: f32[16,32], index: 1, kind: input, shape index: {}]   ;;  %s23631_s2 = inlined_call_operand.hbm [shape: f32[16,32], index: 2, kind: input, shape index: {}]   ;;  %s23632_s3 = inlined_call_operand.hbm [shape: f32[32,32], index: 3, kind: input, shape index: {}]   ;;  %s23633_s4 = inlined_call_operand.hbm [shape: f32[16,32], index: 4, kind: input, shape index: {}]   ;;  %s23634_s5 = inlined_call_operand.hbm [shape: f32[992,128], index: 5, kind: input, shape index: {}]   ;;  %s23635_s6 = inlined_call_operand.vmem [shape: f32[2,16,128], index: 6, kind: output, shape index: {}]  }
   0x1   :  { %12 = vsyncpa [#allocation5], 0 }
   0x2   :  { %13 = vsyncpa [#allocation8], 0  ;;  %s21265_s21 = smov [#allocation4]   ;;  %s21266_s23 = smov [#allocation7]  }
   0x3   :  { %s33_s22 = sshll.u32 %s21265_s21, 4  ;;  %s57_s24 = sshll.u32 %s21266_s23, 4  ;;  %s34_s22 = int_to_ptr.vmem [resolvable:$true] %s33_s22  ;;  %s21318_s24 = int_to_ptr.vmem [resolvable:$true] %s57_s24 }
   0x4   :  { %s21149_s27 = scalar_lea.hbm %s23631_s2, 256 }
   0x5   :  { %p21150_p0 = scmp.ne.s32.totalorder %s23631_s2, %s21149_s27  ;;  %p21153_p1 = scmp.lt.u32.totalorder %s21149_s27, %s23631_s2 }
   0x7   :  { %p21155_p2 = pnand %p21153_p1, %p21150_p0 }
   0x9   :  { %21158 = shalt.err (!%p21155_p2)
}
   0xa   :  { %s21159_s8 = scalar_lea.vmem %s34_s22, 256  ;;  %p21164_p4 = scmp.lt.s32.totalorder %s34_s22, %s34_s22 }
   0xb   :  { %p21160_p3 = scmp.ne.s32.totalorder %s34_s22, %s21159_s8  ;;  %p21165_p5 = scmp.lt.s32.totalorder %s21159_s8, %s21159_s8 }
   0xd   :  { %p21166_p6 = por %p21165_p5, %p21164_p4 }
   0xf   :  { %p21167_p7 = pnand %p21166_p6, %p21160_p3 }
  0x11   :  { %21170 = shalt.err (!%p21167_p7)
}
  0x12   :  { %s21267_s9 = smov 128   ;;  %s21268_s10 = smov 8  }
  0x13   :  { %39 = dma.hbm_to_vmem [thread:$0]  %s23631_s2, 256, %s34_s22, [#allocation5], %s21267_s9, %s21267_s9, %s21268_s10  }
  0x14   :  { %s21171_s15 = scalar_lea.hbm %s23633_s4, 256 }
  0x15   :  { %p21172_p8 = scmp.ne.s32.totalorder %s23633_s4, %s21171_s15  ;;  %p21175_p9 = scmp.lt.u32.totalorder %s21171_s15, %s23633_s4 }
  0x17   :  { %p21177_p10 = pnand %p21175_p9, %p21172_p8 }
  0x19   :  { %21180 = shalt.err (!%p21177_p10)
}
  0x1a   :  { %s21181_s20 = scalar_lea.vmem %s21318_s24, 256  ;;  %p21186_p12 = scmp.lt.s32.totalorder %s21318_s24, %s21318_s24 }
  0x1b   :  { %p21182_p11 = scmp.ne.s32.totalorder %s21318_s24, %s21181_s20  ;;  %p21187_p13 = scmp.lt.s32.totalorder %s21181_s20, %s21181_s20 }
  0x1d   :  { %p21188_p0 = por %p21187_p13, %p21186_p12 }
  0x1f   :  { %p21189_p1 = pnand %p21188_p0, %p21182_p11 }
  0x21   :  { %21192 = shalt.err (!%p21189_p1)
}
  0x22   :  { %63 = dma.hbm_to_vmem [thread:$0]  %s23633_s4, 256, %s21318_s24, [#allocation8], %s21267_s9, %s21267_s9, %s21268_s10  }
  0x23   :  { %s21269_s22 = smov [#allocation2]   ;;  %s21270_s25 = smov [#allocation6]  }
  0x24   :  { %s21_s23 = sshll.u32 %s21269_s22, 4  ;;  %s45_s26 = sshll.u32 %s21270_s25, 4  ;;  %s22_s23 = int_to_ptr.vmem [resolvable:$true] %s21_s23  ;;  %s21355_s26 = int_to_ptr.vmem [resolvable:$true] %s45_s26 }
  0x25   :  { %s21193_s29 = scalar_lea.hbm %s23630_s1, 256 }
  0x26   :  { %p21194_p2 = scmp.ne.s32.totalorder %s23630_s1, %s21193_s29  ;;  %p21197_p3 = scmp.lt.u32.totalorder %s21193_s29, %s23630_s1 }
  0x28   :  { %p21199_p4 = pnand %p21197_p3, %p21194_p2 }
  0x2a   :  { %21202 = shalt.err (!%p21199_p4)
}
  0x2b   :  { %s21203_s4 = scalar_lea.vmem %s22_s23, 256  ;;  %p21208_p6 = scmp.lt.s32.totalorder %s22_s23, %s22_s23 }
  0x2c   :  { %p21204_p5 = scmp.ne.s32.totalorder %s22_s23, %s21203_s4  ;;  %p21209_p7 = scmp.lt.s32.totalorder %s21203_s4, %s21203_s4 }
  0x2e   :  { %p21210_p8 = por %p21209_p7, %p21208_p6 }
  0x30   :  { %p21211_p9 = pnand %p21210_p8, %p21204_p5 }
  0x32   :  { %21214 = shalt.err (!%p21211_p9)
}
  0x33   :  { %27 = dma.hbm_to_vmem [thread:$0]  %s23630_s1, 256, %s22_s23, [#allocation3], %s21267_s9, %s21267_s9, %s21268_s10  }
  0x34   :  { %s21215_s15 = scalar_lea.hbm %s23632_s3, 512 }
  0x35   :  { %p21216_p10 = scmp.ne.s32.totalorder %s23632_s3, %s21215_s15  ;;  %p21219_p11 = scmp.lt.u32.totalorder %s21215_s15, %s23632_s3 }
  0x37   :  { %p21221_p12 = pnand %p21219_p11, %p21216_p10 }
  0x39   :  { %21224 = shalt.err (!%p21221_p12)
}
  0x3a   :  { %s21225_s20 = scalar_lea.vmem %s21355_s26, 512  ;;  %p21230_p0 = scmp.lt.s32.totalorder %s21355_s26, %s21355_s26 }
  0x3b   :  { %p21226_p13 = scmp.ne.s32.totalorder %s21355_s26, %s21225_s20  ;;  %p21231_p1 = scmp.lt.s32.totalorder %s21225_s20, %s21225_s20 }
  0x3d   :  { %p21232_p2 = por %p21231_p1, %p21230_p0 }
  0x3f   :  { %p21233_p3 = pnand %p21232_p2, %p21226_p13 }
  0x41   :  { %21236 = shalt.err (!%p21233_p3)
}
  0x42   :  { %51 = dma.hbm_to_vmem [thread:$0]  %s23632_s3, 512, %s21355_s26, [#allocation5], %s21267_s9, %s21267_s9, %s21268_s10  }
  0x43   :  { %s21271_s21 = smov [#allocation9]   ;;  %s21237_s27 = scalar_lea.hbm %s23634_s5, 15872 }
  0x44   :  { %s69_s22 = sshll.u32 %s21271_s21, 4  ;;  %p21238_p4 = scmp.ne.s32.totalorder %s23634_s5, %s21237_s27  ;;  %s70_s22 = int_to_ptr.vmem [resolvable:$true] %s69_s22 }
  0x45   :  { %p21241_p5 = scmp.lt.u32.totalorder %s21237_s27, %s23634_s5 }
  0x47   :  { %p21243_p6 = pnand %p21241_p5, %p21238_p4 }
  0x49   :  { %21246 = shalt.err (!%p21243_p6)
}
  0x4a   :  { %s21247_s8 = scalar_lea.vmem %s70_s22, 15872  ;;  %p21252_p8 = scmp.lt.s32.totalorder %s70_s22, %s70_s22 }
  0x4b   :  { %p21248_p7 = scmp.ne.s32.totalorder %s70_s22, %s21247_s8  ;;  %p21253_p9 = scmp.lt.s32.totalorder %s21247_s8, %s21247_s8 }
  0x4d   :  { %p21254_p10 = por %p21253_p9, %p21252_p8 }
  0x4f   :  { %p21255_p11 = pnand %p21254_p10, %p21248_p7 }
  0x51   :  { %21258 = shalt.err (!%p21255_p11)
}
  0x52   :  { %75 = dma.hbm_to_vmem [thread:$0]  %s23634_s5, 15872, %s70_s22, [#allocation8], %s21267_s9, %s21267_s9, %s21268_s10  }
  0x53   :  { %21259 = dma.done.wait [#allocation3], 256  }
  0x54   :  { %21260 = vsyncadd [#allocation3], 4294967040 }
  0x55   :  { %21261 = dma.done.wait [#allocation5], 768  }
  0x56   :  { %21262 = vsyncadd [#allocation5], 4294966528 }
  0x57   :  { %21263 = dma.done.wait [#allocation8], 16128  }
  0x58   :  { %21264 = vsyncadd [#allocation8], 4294951168  ;;  %v21407_v0 = vld [vmem:[#allocation9 + $0x2c0] sm:$0xff]  ;;  %v21409_v1 = vld [vmem:[#allocation9 + $0x2c8] sm:$0xff]  ;;  %vm128_vm0 = vcmask 261120   ;;  %s21272_s5 = smov 96  }
  0x59   :  { %v21411_v2 = vld [vmem:[#allocation9 + $0x2d0] sm:$0xff]  ;;  %v20405_v3 = vpack.i.bf16 %v21409_v1, %v21407_v0  ;;  %v21415_v4 = vld [vmem:[#allocation9 + $0x2d8] sm:$0xff]  ;;  %v19827_v5 = vpack.c.bf16 %v21409_v1, %v21407_v0  ;;  %v21421_v7 = vld [vmem:[#allocation4] sm:$0xff]  ;;  %v21273_v23 = vmov 0.0   ;;  %vm21274_vm1 = vmmov 0   ;;  %s21275_s15 = smov 64  }
  0x5a   :  { %v21419_v6 = vld [vmem:[#allocation7] sm:$0xff]  ;;  %v19831_v8 = vpack.c.bf16 %v21415_v4, %v21411_v2  ;;  %v21427_v10 = vld [vmem:[#allocation9 + $0x2b8] ss:$0 sm:$0xff]  ;;  %18521 = vmatprep.mubr.msk.f32.mxu0 %vm128_vm0, %v21421_v7  ;;  %v20410_v11 = vpack.i.bf16 %v21415_v4, %v21411_v2  ;;  %v21437_v13 = vld [vmem:[#allocation4 + $0x8] sm:$0xff]  ;;  %91 = vst [vmem:[%s23635_s6] sm:$0xff] %v21273_v23  ;;  %vm403_vm2 = vcmask 64512   ;;  %s21276_s16 = smov 120  }
  0x5b   :  { %v117_v9 = vadd.f32 %v21421_v7, %v21419_v6  ;;  %20406 = vrot.lane.b32.xlu0 %v20405_v3, %s21272_s5  ;;  %19828 = vmatprep.subr.bf16.mxu1 %v19827_v5  ;;  %v21435_v12 = vld [vmem:[#allocation7 + $0x8] sm:$0xff]  ;;  %92 = vst [vmem:[%s23635_s6 + $0x8] sm:$0xff] %v21273_v23  ;;  %93 = vst [vmem:[%s23635_s6 + $0x10] sm:$0xff] %v21273_v23  ;;  %s21277_s17 = smov 112   ;;  %s21278_s18 = smov 32   ;;  %vm2593_vm4 = vcmask 130048  }
  0x5c   :  { %19830 = vmatpush3.bf16.msra.mxu1 %v19827_v5  ;;  %227 = vrot.lane.b32.xlu1 %v21427_v10, %s21272_s5  ;;  %v118_v14 = vadd.f32 %v21437_v13, %v21435_v12  ;;  %94 = vst [vmem:[%s23635_s6 + $0x18] sm:$0xff] %v21273_v23  ;;  %s21279_s19 = smov 104   ;;  %vm21753_vm3 = vmpackc.low %vm403_vm2, %vm403_vm2  ;;  %vm4298_vm5 = vcmask 523264   ;;  %vm4470_vm6 = vcmask 392448   ;;  %vm4481_vm7 = vcmask 458112  }
  0x5d   :  { %18499 = vmatprep.mubr.msk.f32.mxu1 %vm128_vm0, %v117_v9  ;;  %19832 = vmatprep.subr.bf16.mxu1 %v19831_v8  ;;  %vm8792_vm8 = vcmask 720320  }
  0x5f   :  { %20411 = vrot.lane.b32.xlu0 %v20410_v11, %s21272_s5 }
  0x60   :  { %19834 = vmatpush3.bf16.msra.mxu1 %v19831_v8  ;;  %20416 = vrot.lane.b32.xlu1 %v20405_v3, %s21275_s15 }
  0x63   :  { %18500 = vmatmul.mubr.msk.f32.vlgmr.msra.gmra.mrb[0].mxu1 %vm128_vm0, %v118_v14  ;;  %20421 = vrot.lane.b32.xlu0 %v20410_v11, %s21275_s15 }
  0x64   :  { %18510 = vmatprep.mubr.msk.f32.mxu1 %vm128_vm0, %v117_v9 }
  0xcd   :  { %v20407_v15 = vpop.permute.xlu0 %20406 }
  0xce   :  { %v20409_v16 = vunpack.i.h.bf16 %v20407_v15  ;;  %v20408_v17 = vunpack.i.l.bf16 %v20407_v15  ;;  %v228_v26 = vpop.permute.xlu1 %227 }
  0xd0   :  { %v19835_v18 = vpack.c.bf16 %v20409_v16, %v20408_v17 }
  0xd1   :  { %v20412_v19 = vpop.permute.xlu0 %20411 }
  0xd2   :  { %v20414_v20 = vunpack.i.h.bf16 %v20412_v19  ;;  %v20413_v21 = vunpack.i.l.bf16 %v20412_v19  ;;  %19836 = vmatprep.subr.bf16.mxu1 %v19835_v18  ;;  %v20417_v35 = vpop.permute.xlu1 %20416 }
  0xd3   :  { %19838 = vmatpush3.bf16.msra.mxu1 %v19835_v18  ;;  %v20419_v37 = vunpack.i.h.bf16 %v20417_v35  ;;  %v20418_v38 = vunpack.i.l.bf16 %v20417_v35 }
  0xd4   :  { %v19839_v22 = vpack.c.bf16 %v20414_v20, %v20413_v21 }
  0xd5   :  { %v20422_v36 = vpop.permute.xlu0 %20421  ;;  %v19843_v41 = vpack.c.bf16 %v20419_v37, %v20418_v38 }
  0xd6   :  { %19840 = vmatprep.subr.bf16.mxu1 %v19839_v22  ;;  %v20424_v39 = vunpack.i.h.bf16 %v20422_v36  ;;  %v20423_v40 = vunpack.i.l.bf16 %v20422_v36 }
  0xd7   :  { %19842 = vmatpush3.bf16.msra.mxu1 %v19839_v22  ;;  %19844 = vmatprep.subr.bf16.mxu0 %v19843_v41 }
  0xd8   :  { %18524 = vmatprep.subr.mxu1 %v21273_v23  ;;  %v19847_v42 = vpack.c.bf16 %v20424_v39, %v20423_v40  ;;  %19846 = vmatpush3.bf16.msra.mxu0 %v19843_v41 }
  0xda   :  { %18511 = vmatmul.mubr.msk.f32.vlgmr.msra.gmra.mrb[2].mxu1 %vm128_vm0, %v118_v14  ;;  %19848 = vmatprep.subr.bf16.mxu0 %v19847_v42 }
  0xdb   :  { %18526 = vmatprep.mubr.msk.f32.mxu1 %vm21274_vm1, %v21273_v23 }
  0xdc   :  { %19850 = vmatpush3.bf16.msra.mxu0 %v19847_v42 }
  0xdd   :  { %18534 = vmatprep.subr.mxu0 %v21273_v23 }
  0xdf   :  { %18522 = vmatmul.mubr.msk.f32.vlgmr.msra.gmra.mrb[0].mxu0 %vm128_vm0, %v21437_v13 }
  0xe0   :  { %18536 = vmatprep.mubr.msk.f32.mxu0 %vm21274_vm1, %v21273_v23 }
 0x136   :  { %v18501_v24 = vpop.f32.mrb[0].mxu1 }
 0x137   :  { %v201_v25 = vpop.f32.mrb[1].mxu1  ;;  %v207_v31 = vadd.f32 %v18501_v24, %v21427_v10 }
 0x138   :  { %v202_v28 = vadd.f32 %v21427_v10, %v201_v25 }
 0x139   :  { %v21485_v34 = vmul.f32 0.35355338, %v207_v31 }
 0x13a   :  { %v21474_v32 = vmul.f32 0.35355338, %v202_v28 }
 0x1ad   :  { %v18512_v27 = vpop.f32.mrb[2].mxu1 }
 0x1ae   :  { %v296_v29 = vpop.f32.mrb[3].mxu1  ;;  %v21477_v33 = vadd.f32 %v18512_v27, %v228_v26 }
 0x1af   :  { %v21469_v30 = vadd.f32 %v296_v29, %v228_v26 }
 0x1b1   :  { %18525 = vmatpush3.xpose.msk.msra.mxu1 %vm403_vm2, %v21469_v30 }
 0x1b2   :  { %18529 = vmatprep.subr.mxu1 %v21273_v23  ;;  %v18523_v53 = vpop.f32.mrb[0].mxu0 }
 0x1b3   :  { %v392_v54 = vpop.f32.mrb[1].mxu0 }
 0x1b4   :  { %18527 = vmatmul.mubr.msk.f32.vlgmr.msra.gmra.mrb[4].mxu1 %vm403_vm2, %v21474_v32 }
 0x1b5   :  { %18530 = vmatpush3.xpose.msk.msra.mxu1 %vm403_vm2, %v21477_v33  ;;  %18531 = vmatprep.mubr.msk.f32.mxu1 %vm21274_vm1, %v21273_v23 }
 0x1b6   :  { %18539 = vmatprep.subr.mxu1 %v21273_v23 }
 0x1b8   :  { %18532 = vmatmul.mubr.msk.f32.vlgmr.msra.gmra.mrb[6].mxu1 %vm403_vm2, %v21485_v34 }
 0x1b9   :  { %18541 = vmatprep.mubr.msk.f32.mxu1 %vm21274_vm1, %v21273_v23 }
 0x287   :  { %v476_v43 = vpop.f32.mrb[4].mxu1 }
 0x288   :  { %v18528_v44 = vpop.f32.mrb[5].mxu1  ;;  %v556_v55 = vsel %vm403_vm2, %v476_v43, -inf }
 0x28b   :  { %v552_v45 = vpop.f32.mrb[6].mxu1 }
 0x28c   :  { %v18533_v46 = vpop.f32.mrb[7].mxu1  ;;  %v559_v47 = vsel %vm403_vm2, %v552_v45, -inf }
 0x28d   :  { %560 = vmax.xlane.f32.xlu1 %v559_v47 }
 0x29e   :  { %804 = vrot.lane.b32.xlu1 %v21477_v33, %s21276_s16 }
 0x2a2   :  { %802 = vrot.lane.b32.xlu1 %v21485_v34, %s21276_s16 }
 0x31a   :  { %v561_v48 = vpop.xlane.xlu1 %560 }
 0x31b   :  { %v563_v49 = vsub.f32 %v552_v45, %v561_v48 }
 0x31d   :  { %v566_v50 = vmul.f32 1.442695, %v563_v49 }
 0x31e   :  { %v805_v61 = vpop.permute.xlu1 %804 }
 0x31f   :  { %20805 = vpow2.f32 %v566_v50 }
 0x322   :  { %v803_v63 = vpop.permute.xlu1 %802 }
 0x329   :  { %v20806_v51 = vpop.eup %20805 }
 0x32a   :  { %v571_v52 = vsel %vm403_vm2, %v20806_v51, 0.0 }
 0x32b   :  { %572 = vadd.xlane.f32.xlu0 %v571_v52 }
 0x341   :  { %317 = vrot.lane.b32.xlu0 %v21427_v10, %s21275_s15 }
 0x360   :  { %557 = vmax.xlane.f32.xlu0 %v556_v55 }
 0x376   :  { %726 = vrot.lane.b32.xlu0 %v21469_v30, %s21276_s16 }
 0x3b8   :  { %v573_v56 = vpop.xlane.xlu0 %572 }
 0x3b9   :  { %20807 = vrcp.f32 %v573_v56 }
 0x3bc   :  { %v318_v57 = vpop.permute.xlu0 %317 }
 0x3bd   :  { %v21508_v58 = vadd.f32 %v18523_v53, %v318_v57  ;;  %v21510_v59 = vadd.f32 %v392_v54, %v318_v57 }
 0x3bf   :  { %18540 = vmatpush3.msra.mxu1 %v21508_v58  ;;  %18535 = vmatpush3.msra.mxu0 %v21510_v59 }
 0x3c0   :  { %18549 = vmatprep.subr.mxu1 %v21273_v23  ;;  %18544 = vmatprep.subr.mxu0 %v21273_v23 }
 0x3c3   :  { %v20808_v60 = vpop.eup %20807 }
 0x3c4   :  { %v21516_v62 = vmul.f32 %v20808_v60, %v20806_v51 }
 0x3c6   :  { %18542 = vmatmul.mubr.msk.f32.vlgmr.msra.gmra.mrb[8].mxu1 %vm403_vm2, %v21516_v62 }
 0x3c7   :  { %18550 = vmatpush3.xpose.msk.msra.mxu1 %vm403_vm2, %v805_v61  ;;  %18551 = vmatprep.mubr.msk.f32.mxu1 %vm21274_vm1, %v21273_v23 }
 0x3c8   :  { %18559 = vmatprep.subr.mxu1 %v21273_v23 }
 0x3ca   :  { %18552 = vmatmul.mubr.msk.f32.vlgmr.msra.gmra.mrb[10].mxu1 %vm403_vm2, %v803_v63 }
 0x3cb   :  { %18561 = vmatprep.mubr.msk.f32.mxu1 %vm21274_vm1, %v21273_v23 }
 0x3ed   :  { %v558_v3 = vpop.xlane.xlu0 %557 }
 0x3ee   :  { %v562_v5 = vsub.f32 %v476_v43, %v558_v3 }
 0x3f0   :  { %v564_v8 = vmul.f32 1.442695, %v562_v5 }
 0x3f1   :  { %v727_v17 = vpop.permute.xlu0 %726 }
 0x3f2   :  { %20809 = vpow2.f32 %v564_v8 }
 0x3fc   :  { %v20810_v9 = vpop.eup %20809 }
 0x3fd   :  { %v568_v11 = vsel %vm403_vm2, %v20810_v9, 0.0 }
 0x3fe   :  { %569 = vadd.xlane.f32.xlu1 %v568_v11 }
 0x40f   :  { %724 = vrot.lane.b32.xlu1 %v21474_v32, %s21276_s16 }
 0x413   :  { %1228 = vrot.lane.b32.xlu1 %v21469_v30, %s21277_s17 }
 0x48b   :  { %v570_v14 = vpop.xlane.xlu1 %569 }
 0x48c   :  { %20811 = vrcp.f32 %v570_v14 }
 0x48f   :  { %v725_v20 = vpop.permute.xlu1 %724 }
 0x493   :  { %v1229_v40 = vpop.permute.xlu1 %1228 }
 0x496   :  { %v20812_v15 = vpop.eup %20811 }
 0x497   :  { %v21532_v16 = vmul.f32 %v20812_v15, %v20810_v9 }
 0x499   :  { %18537 = vmatmul.mubr.msk.f32.vlgmr.msra.gmra.mrb[2].mxu0 %vm403_vm2, %v21532_v16  ;;  %v21536_v18 = vpop.f32.mrb[8].mxu1 }
 0x49a   :  { %18545 = vmatpush3.xpose.msk.msra.mxu0 %vm403_vm2, %v727_v17  ;;  %v18543_v19 = vpop.f32.mrb[9].mxu1  ;;  %18546 = vmatprep.mubr.msk.f32.mxu0 %vm21274_vm1, %v21273_v23 }
 0x49b   :  { %18554 = vmatprep.subr.mxu0 %v21273_v23 }
 0x49d   :  { %18547 = vmatmul.mubr.msk.f32.vlgmr.msra.gmra.mrb[4].mxu0 %vm403_vm2, %v725_v20  ;;  %v876_v21 = vpop.f32.mrb[10].mxu1 }
 0x49e   :  { %v18553_v22 = vpop.f32.mrb[11].mxu1  ;;  %v883_v24 = vsel %vm403_vm2, %v876_v21, -inf  ;;  %18556 = vmatprep.mubr.msk.f32.mxu0 %vm21274_vm1, %v21273_v23 }
 0x49f   :  { %884 = vmax.xlane.f32.xlu0 %v883_v24 }
 0x4b5   :  { %980 = vrot.lane.b32.xlu0 %v21508_v58, %s21276_s16 }
 0x4b9   :  { %1226 = vrot.lane.b32.xlu0 %v21474_v32, %s21277_s17 }
 0x4bd   :  { %1304 = vrot.lane.b32.xlu0 %v21485_v34, %s21277_s17 }
 0x52c   :  { %v885_v25 = vpop.xlane.xlu0 %884 }
 0x52d   :  { %v887_v26 = vsub.f32 %v876_v21, %v885_v25 }
 0x52f   :  { %v890_v27 = vmul.f32 1.442695, %v887_v26 }
 0x530   :  { %v981_v28 = vpop.permute.xlu0 %980 }
 0x531   :  { %20813 = vpow2.f32 %v890_v27  ;;  %18560 = vmatpush3.msra.mxu1 %v981_v28 }
 0x532   :  { %18574 = vmatprep.subr.mxu1 %v21273_v23 }
 0x534   :  { %v1227_v44 = vpop.permute.xlu0 %1226 }
 0x538   :  { %v1305_v46 = vpop.permute.xlu0 %1304 }
 0x53b   :  { %v20814_v29 = vpop.eup %20813 }
 0x53c   :  { %v895_v31 = vsel %vm403_vm2, %v20814_v29, 0.0 }
 0x53d   :  { %896 = vadd.xlane.f32.xlu1 %v895_v31 }
 0x54e   :  { %1306 = vrot.lane.b32.xlu1 %v21477_v33, %s21277_s17 }
 0x56c   :  { %v21556_v35 = vpop.f32.mrb[2].mxu0 }
 0x56d   :  { %v18538_v36 = vpop.f32.mrb[3].mxu0 }
 0x570   :  { %v798_v37 = vpop.f32.mrb[4].mxu0 }
 0x571   :  { %v18548_v38 = vpop.f32.mrb[5].mxu0  ;;  %v880_v39 = vsel %vm403_vm2, %v798_v37, -inf }
 0x572   :  { %881 = vmax.xlane.f32.xlu1 %v880_v39 }
 0x5ca   :  { %v897_v41 = vpop.xlane.xlu1 %896 }
 0x5cb   :  { %20815 = vrcp.f32 %v897_v41 }
 0x5ce   :  { %v1307_v45 = vpop.permute.xlu1 %1306 }
 0x5d5   :  { %v20816_v42 = vpop.eup %20815 }
 0x5d6   :  { %v21559_v43 = vmul.f32 %v20816_v42, %v20814_v29 }
 0x5d8   :  { %18562 = vmatmul.mubr.msk.f32.vlgmr.msra.gmra.mrb[12].mxu1 %vm403_vm2, %v21559_v43  ;;  %v1225_v38 = vadd.f32 %v21559_v43, %v21516_v62 }
 0x5d9   :  { %18575 = vmatpush3.xpose.msk.msra.mxu1 %vm403_vm2, %v1229_v40  ;;  %18576 = vmatprep.mubr.msk.f32.mxu1 %vm21274_vm1, %v21273_v23 }
 0x5da   :  { %18579 = vmatprep.subr.mxu1 %v21273_v23 }
 0x5dc   :  { %18577 = vmatmul.mubr.msk.f32.vlgmr.msra.gmra.mrb[14].mxu1 %vm403_vm2, %v1227_v44 }
 0x5dd   :  { %18580 = vmatpush3.xpose.msk.msra.mxu1 %vm403_vm2, %v1307_v45  ;;  %18581 = vmatprep.mubr.msk.f32.mxu1 %vm21274_vm1, %v21273_v23 }
 0x5de   :  { %18589 = vmatprep.subr.mxu1 %v21273_v23 }
 0x5e0   :  { %18582 = vmatmul.mubr.msk.f32.vlgmr.msra.gmra.mrb[16].mxu1 %vm403_vm2, %v1305_v46 }
 0x5e1   :  { %18591 = vmatprep.mubr.msk.f32.mxu1 %vm21274_vm1, %v21273_v23 }
 0x5ff   :  { %v882_v47 = vpop.xlane.xlu1 %881 }
 0x600   :  { %v886_v48 = vsub.f32 %v798_v37, %v882_v47 }
 0x602   :  { %v888_v49 = vmul.f32 1.442695, %v886_v48 }
 0x604   :  { %20817 = vpow2.f32 %v888_v49 }
 0x60e   :  { %v20818_v50 = vpop.eup %20817 }
 0x60f   :  { %v892_v51 = vsel %vm403_vm2, %v20818_v50, 0.0 }
 0x610   :  { %893 = vadd.xlane.f32.xlu0 %v892_v51 }
 0x626   :  { %903 = vrot.lane.b32.xlu0 %v21510_v59, %s21276_s16 }
 0x62a   :  { %1140 = vrot.lane.b32.xlu0 %v21407_v0, %s21278_s18 }
 0x62e   :  { %1404 = vrot.lane.b32.xlu0 %v21510_v59, %s21277_s17 }
 0x632   :  { %1480 = vrot.lane.b32.xlu0 %v21508_v58, %s21277_s17 }
 0x636   :  { %1556 = vrot.lane.b32.xlu0 %v21411_v2, %s21278_s18 }
 0x63a   :  { %1724 = vrot.lane.b32.xlu0 %v21477_v33, %s21279_s19 }
 0x63e   :  { %1722 = vrot.lane.b32.xlu0 %v21485_v34, %s21279_s19 }
 0x69d   :  { %v894_v52 = vpop.xlane.xlu0 %893 }
 0x69e   :  { %20819 = vrcp.f32 %v894_v52 }
 0x6a1   :  { %v904_v53 = vpop.permute.xlu0 %903 }
 0x6a2   :  { %18555 = vmatpush3.msra.mxu0 %v904_v53 }
 0x6a5   :  { %v1141_v0 = vpop.permute.xlu0 %1140 }
 0x6a8   :  { %v20820_v54 = vpop.eup %20819 }
 0x6a9   :  { %v1405_v55 = vpop.permute.xlu0 %1404  ;;  %v899_v56 = vmul.f32 %v20820_v54, %v20818_v50 }
 0x6ab   :  { %18557 = vmatmul.mubr.msk.f32.vlgmr.msra.gmra.mrb[6].mxu0 %vm403_vm2, %v899_v56  ;;  %v1052_v57 = vpop.f32.mrb[12].mxu1 }
 0x6ac   :  { %v18563_v60 = vpop.f32.mrb[13].mxu1 }
 0x6ad   :  { %v1481_v2 = vpop.permute.xlu0 %1480 }
 0x6ae   :  { %18590 = vmatpush3.msra.mxu1 %v1481_v2 }
 0x6af   :  { %v1300_v61 = vpop.f32.mrb[14].mxu1  ;;  %18599 = vmatprep.subr.mxu1 %v21273_v23 }
 0x6b0   :  { %v18578_v33 = vpop.f32.mrb[15].mxu1  ;;  %v1382_v34 = vsel %vm403_vm2, %v1300_v61, -inf }
 0x6b1   :  { %1383 = vmax.xlane.f32.xlu1 %v1382_v34 }
 0x6b3   :  { %v1378_v63 = vpop.f32.mrb[16].mxu1 }
 0x6b4   :  { %v18583_v3 = vpop.f32.mrb[17].mxu1  ;;  %v1385_v5 = vsel %vm403_vm2, %v1378_v63, -inf }
 0x6b5   :  { %1386 = vmax.xlane.f32.xlu1 %v1385_v5 }
 0x73e   :  { %v1384_v8 = vpop.xlane.xlu1 %1383 }
 0x73f   :  { %v1388_v9 = vsub.f32 %v1300_v61, %v1384_v8 }
 0x741   :  { %v1390_v11 = vmul.f32 1.442695, %v1388_v9 }
 0x742   :  { %v1387_v14 = vpop.xlane.xlu1 %1386 }
 0x743   :  { %20821 = vpow2.f32 %v1390_v11  ;;  %v1389_v15 = vsub.f32 %v1378_v63, %v1387_v14 }
 0x745   :  { %v1392_v17 = vmul.f32 1.442695, %v1389_v15 }
 0x747   :  { %20823 = vpow2.f32 %v1392_v17 }
 0x74d   :  { %v20822_v19 = vpop.eup %20821 }
 0x74e   :  { %v1394_v20 = vsel %vm403_vm2, %v20822_v19, 0.0 }
 0x74f   :  { %1395 = vadd.xlane.f32.xlu1 %v1394_v20 }
 0x751   :  { %v20824_v21 = vpop.eup %20823 }
 0x752   :  { %v1397_v22 = vsel %vm403_vm2, %v20824_v21, 0.0 }
 0x753   :  { %1398 = vadd.xlane.f32.xlu1 %v1397_v22 }
 0x764   :  { %1056 = vrot.lane.b32.xlu1 %v21409_v1, %s21278_s18 }
 0x768   :  { %1646 = vrot.lane.b32.xlu1 %v21469_v30, %s21279_s19  ;;  %v1224_v30 = vadd.f32 %v899_v56, %v21532_v16  ;;  %v1557_v16 = vpop.permute.xlu0 %1556 }
 0x76c   :  { %1644 = vrot.lane.b32.xlu1 %v21474_v32, %s21279_s19  ;;  %v1725_v40 = vpop.permute.xlu0 %1724 }
 0x770   :  { %v1723_v46 = vpop.permute.xlu0 %1722 }
 0x77e   :  { %v975_v24 = vpop.f32.mrb[6].mxu0 }
 0x77f   :  { %v18558_v25 = vpop.f32.mrb[7].mxu0  ;;  %18566 = vmatprep.mubr.msk.f32.mxu0 %vm403_vm2, %v975_v24 }
 0x7dc   :  { %v1396_v26 = vpop.xlane.xlu1 %1395 }
 0x7dd   :  { %20825 = vrcp.f32 %v1396_v26 }
 0x7e0   :  { %v1399_v27 = vpop.xlane.xlu1 %1398 }
 0x7e1   :  { %20827 = vrcp.f32 %v1399_v27 }
 0x7e4   :  { %v1057_v28 = vpop.permute.xlu1 %1056 }
 0x7e5   :  { %18564 = vmatprep.subr.mxu0 %v1057_v28 }
 0x7e6   :  { %18565 = vmatpush3.msra.mxu0 %v1057_v28 }
 0x7e7   :  { %v20826_v29 = vpop.eup %20825  ;;  %18567 = vmatmul.mubr.msk.f32.vlgmr.msra.gmra.mrb[8].mxu0 %vm403_vm2, %v1052_v57  ;;  %18569 = vmatprep.subr.mxu0 %v1141_v0 }
 0x7e8   :  { %18571 = vmatprep.mubr.msk.f32.mxu0 %vm403_vm2, %v21556_v35  ;;  %18570 = vmatpush3.msra.mxu0 %v1141_v0  ;;  %v1401_v1 = vmul.f32 %v20826_v29, %v20822_v19  ;;  %v1647_v36 = vpop.permute.xlu1 %1646 }
 0x7e9   :  { %18584 = vmatprep.subr.mxu0 %v21273_v23 }
 0x7ea   :  { %v21608_v32 = vadd.f32 %v1401_v1, %v1224_v30 }
 0x7eb   :  { %v20828_v31 = vpop.eup %20827 }
 0x7ec   :  { %v1403_v37 = vmul.f32 %v20828_v31, %v20824_v21  ;;  %v1645_v35 = vpop.permute.xlu1 %1644 }
 0x7ee   :  { %18592 = vmatmul.mubr.msk.f32.vlgmr.msra.gmra.mrb[18].mxu1 %vm403_vm2, %v1403_v37  ;;  %v21613_v39 = vadd.f32 %v1403_v37, %v1225_v38  ;;  %v21673_v37 = vld [vmem:[#allocation9 + $0x208] sm:$0xff]  ;;  %v21675_v38 = vld [vmem:[#allocation9 + $0x210] sm:$0xff] }
 0x7ef   :  { %18600 = vmatpush3.xpose.msk.msra.mxu1 %vm403_vm2, %v1647_v36  ;;  %18572 = vmatmul.mubr.msk.f32.vlgmr.msra.gmra.mrb[8].mxu0 %vm403_vm2, %v21536_v18 }
 0x7f0   :  { %18585 = vmatpush3.msra.mxu0 %v1405_v55  ;;  %18601 = vmatprep.mubr.msk.f32.mxu1 %vm21274_vm1, %v21273_v23 }
 0x7f1   :  { %18586 = vmatprep.mubr.msk.f32.mxu0 %vm21274_vm1, %v21273_v23  ;;  %18594 = vmatprep.subr.mxu0 %v1557_v16 }
 0x7f2   :  { %18602 = vmatmul.mubr.msk.f32.vlgmr.msra.gmra.mrb[20].mxu1 %vm403_vm2, %v1645_v35  ;;  %18609 = vmatprep.subr.mxu1 %v21273_v23  ;;  %v21681_v35 = vld [vmem:[#allocation9 + $0x200] sm:$0xff] }
 0x7f3   :  { %18587 = vmatmul.mubr.msk.f32.vlgmr.msra.gmra.mrb[10].mxu0 %vm403_vm2, %v1401_v1  ;;  %18611 = vmatprep.mubr.msk.f32.mxu1 %vm21274_vm1, %v21273_v23 }
 0x7f4   :  { %18595 = vmatpush3.msra.mxu0 %v1557_v16  ;;  %v21679_v16 = vld [vmem:[#allocation9 + $0x1f8] sm:$0xff] }
 0x7f5   :  { %18604 = vmatprep.subr.mxu0 %v21273_v23 }
 0x8c1   :  { %v1552_v62 = vpop.f32.mrb[18].mxu1 }
 0x8c2   :  { %v18593_v18 = vpop.f32.mrb[19].mxu1 }
 0x8c3   :  { %v21690_v18 = vld [vmem:[%s23629_s0] sm:$0xff] }
 0x8c5   :  { %v1718_v41 = vpop.f32.mrb[20].mxu1 }
 0x8c6   :  { %v1476_v42 = vpop.f32.mrb[10].mxu0  ;;  %v18603_v43 = vpop.f32.mrb[21].mxu1  ;;  %v1800_v44 = vsel %vm403_vm2, %v1718_v41, -inf }
 0x8c7   :  { %v18588_v45 = vpop.f32.mrb[11].mxu0  ;;  %18596 = vmatprep.mubr.msk.f32.mxu0 %vm403_vm2, %v1476_v42  ;;  %1801 = vmax.xlane.f32.xlu1 %v1800_v44  ;;  %v19851_v42 = vpack.c.bf16 %v21681_v35, %v21679_v16  ;;  %v19855_v43 = vpack.c.bf16 %v21675_v38, %v21673_v37  ;;  %v21703_v44 = vld [vmem:[#allocation9 + $0x1f0] ss:$0 sm:$0xff] }
 0x8c8   :  { %18597 = vmatmul.mubr.msk.f32.vlgmr.msra.gmra.mrb[8].mxu0 %vm403_vm2, %v1552_v62  ;;  %v20425_v62 = vpack.i.bf16 %v21681_v35, %v21679_v16 }
 0x8c9   :  { %18605 = vmatpush3.xpose.msk.msra.mxu0 %vm403_vm2, %v1725_v40  ;;  %18606 = vmatprep.mubr.msk.f32.mxu0 %vm21274_vm1, %v21273_v23  ;;  %v99_v40 = vld [vmem:[#allocation6] sm:$0xff] }
 0x8ca   :  { %18614 = vmatprep.subr.mxu0 %v21273_v23 }
 0x8cc   :  { %18607 = vmatmul.mubr.msk.f32.vlgmr.msra.gmra.mrb[12].mxu0 %vm403_vm2, %v1723_v46 }
 0x8cd   :  { %18616 = vmatprep.mubr.msk.f32.mxu0 %vm21274_vm1, %v21273_v23 }
 0x954   :  { %v1802_v47 = vpop.xlane.xlu1 %1801 }
 0x955   :  { %v1806_v48 = vsub.f32 %v1718_v41, %v1802_v47  ;;  %v21693_v41 = vadd.f32 %v99_v40, %v21690_v18 }
 0x957   :  { %v1808_v49 = vmul.f32 1.442695, %v1806_v48 }
 0x959   :  { %20829 = vpow2.f32 %v1808_v49 }
 0x963   :  { %v20830_v53 = vpop.eup %20829 }
 0x964   :  { %v1812_v0 = vsel %vm403_vm2, %v20830_v53, 0.0 }
 0x99f   :  { %v1796_v50 = vpop.f32.mrb[12].mxu0 }
 0x9a0   :  { %v18608_v51 = vpop.f32.mrb[13].mxu0  ;;  %v1803_v52 = vsel %vm403_vm2, %v1796_v50, -inf }
 0x9a1   :  { %1804 = vmax.xlane.f32.xlu0 %v1803_v52 }
 0x9a5   :  { %1813 = vadd.xlane.f32.xlu0 %v1812_v0 }
 0x9bb   :  { %1822 = vrot.lane.b32.xlu0 %v21510_v59, %s21279_s19 }
 0x9bf   :  { %2062 = vrot.lane.b32.xlu0 %v21427_v10, %s21278_s18 }
 0xa2e   :  { %v1805_v54 = vpop.xlane.xlu0 %1804 }
 0xa2f   :  { %v1807_v55 = vsub.f32 %v1796_v50, %v1805_v54 }
 0xa31   :  { %v1810_v56 = vmul.f32 1.442695, %v1807_v55 }
 0xa32   :  { %v1814_v57 = vpop.xlane.xlu0 %1813 }
 0xa33   :  { %20831 = vpow2.f32 %v1810_v56 }
 0xa34   :  { %20833 = vrcp.f32 %v1814_v57 }
 0xa36   :  { %v1823_v60 = vpop.permute.xlu0 %1822 }
 0xa37   :  { %18610 = vmatpush3.msra.mxu1 %v1823_v60  ;;  %v96_v60 = vld [vmem:[%s23629_s0 + $0x8] sm:$0xff] }
 0xa38   :  { %19852 = vmatprep.subr.bf16.mxu1 %v19851_v42 }
 0xa3a   :  { %v2063_v15 = vpop.permute.xlu0 %2062 }
 0xa3d   :  { %v20832_v2 = vpop.eup %20831 }
 0xa3e   :  { %v20834_v61 = vpop.eup %20833  ;;  %v1815_v33 = vsel %vm403_vm2, %v20832_v2, 0.0 }
 0xa3f   :  { %1816 = vadd.xlane.f32.xlu1 %v1815_v33  ;;  %v1819_v34 = vmul.f32 %v20834_v61, %v20830_v53  ;;  %v97_v61 = vld [vmem:[%s23629_s0 + $0x10] sm:$0xff] }
 0xa40   :  { %v101_v33 = vld [vmem:[#allocation6 + $0x10] sm:$0xff] }
 0xa41   :  { %18612 = vmatmul.mubr.msk.f32.vlgmr.msra.gmra.mrb[22].mxu1 %vm403_vm2, %v1819_v34  ;;  %v21647_v59 = vadd.f32 %v1819_v34, %v21608_v32 }
 0xa42   :  { %19854 = vmatpush3.bf16.msra.mxu1 %v19851_v42 }
 0xa43   :  { %19856 = vmatprep.subr.bf16.mxu1 %v19855_v43 }
 0xa46   :  { %19858 = vmatpush3.bf16.msra.mxu1 %v19855_v43 }
 0xa50   :  { %1898 = vrot.lane.b32.xlu1 %v21508_v58, %s21279_s19 }
 0xa54   :  { %1974 = vrot.lane.b32.xlu1 %v21415_v4, %s21278_s18 }
 0xacc   :  { %v1817_v10 = vpop.xlane.xlu1 %1816 }
 0xacd   :  { %20835 = vrcp.f32 %v1817_v10 }
 0xad0   :  { %v1899_v63 = vpop.permute.xlu1 %1898 }
 0xad1   :  { %18615 = vmatpush3.msra.mxu0 %v1899_v63 }
 0xad4   :  { %v1975_v3 = vpop.permute.xlu1 %1974 }
 0xad5   :  { %18619 = vmatprep.subr.mxu0 %v1975_v3 }
 0xad7   :  { %v20836_v5 = vpop.eup %20835 }
 0xad8   :  { %v1821_v8 = vmul.f32 %v20836_v5, %v20832_v2  ;;  %v100_v2 = vld [vmem:[#allocation6 + $0x8] sm:$0xff]  ;;  %v98_v5 = vld [vmem:[%s23629_s0 + $0x18] sm:$0xff] }
 0xad9   :  { %v21713_v34 = vadd.f32 %v100_v2, %v96_v60 }
 0xada   :  { %18617 = vmatmul.mubr.msk.f32.vlgmr.msra.gmra.mrb[14].mxu0 %vm403_vm2, %v1821_v8  ;;  %v21655_v9 = vadd.f32 %v1821_v8, %v21613_v39  ;;  %v20430_v39 = vpack.i.bf16 %v21675_v38, %v21673_v37  ;;  %v102_v8 = vld [vmem:[#allocation6 + $0x18] sm:$0xff] }
 0xadb   :  { %18620 = vmatpush3.msra.mxu0 %v1975_v3  ;;  %v21715_v3 = vadd.f32 %v101_v33, %v97_v61 }
 0xb14   :  { %v1894_v11 = vpop.f32.mrb[22].mxu1 }
 0xb15   :  { %v18613_v14 = vpop.f32.mrb[23].mxu1  ;;  %18621 = vmatprep.mubr.msk.f32.mxu0 %vm403_vm2, %v1894_v11  ;;  %v17470_v11 = vld [vmem:[#allocation9 + $0x290] ss:$0 sm:$0xff] }
 0xbad   :  { %v1970_v58 = vpop.f32.mrb[14].mxu0 }
 0xbae   :  { %v18618_v4 = vpop.f32.mrb[15].mxu0  ;;  %18622 = vmatmul.mubr.msk.f32.vlgmr.msra.gmra.mrb[8].mxu0 %vm403_vm2, %v1970_v58 }
 0xbaf   :  { %18643 = vmatprep.mubr.msk.f32.mxu0 %vm128_vm0, %v21693_v41 }
 0xc81   :  { %v18623_v17 = vpop.f32.mrb[8].mxu0 }
 0xc82   :  { %v2066_v19 = vadd.f32 %v18623_v17, %v2063_v15  ;;  %v2049_v20 = vpop.f32.mrb[9].mxu0  ;;  %v17471_v17 = vld [vmem:[#allocation9 + $0x288] ss:$0 sm:$0xff] }
 0xc83   :  { %v2065_v21 = vadd.f32 %v2063_v15, %v2049_v20 }
 0xc84   :  { %v2070_v22 = vadd.f32 %v2066_v19, %v21437_v13 }
 0xc85   :  { %v2069_v24 = vadd.f32 %v2065_v21, %v21421_v7 }
 0xc86   :  { %v2076_v25 = vsel %vm128_vm0, %v2070_v22, 0.0 }
 0xc87   :  { %2077 = vadd.xlane.f32.xlu0 %v2076_v25  ;;  %v2073_v26 = vsel %vm128_vm0, %v2069_v24, 0.0 }
 0xc88   :  { %2074 = vadd.xlane.f32.xlu1 %v2073_v26 }
 0xd14   :  { %v2078_v27 = vpop.xlane.xlu0 %2077 }
 0xd15   :  { %v2081_v28 = vmul.f32 0.03125, %v2078_v27  ;;  %v2075_v29 = vpop.xlane.xlu1 %2074 }
 0xd16   :  { %v2080_v1 = vmul.f32 0.03125, %v2075_v29 }
 0xd17   :  { %v21663_v30 = vsub.f32 %v2070_v22, %v2081_v28  ;;  %v21724_v22 = vadd.f32 %v102_v8, %v98_v5 }
 0xd18   :  { %v21665_v32 = vsub.f32 %v2069_v24, %v2080_v1 }
 0xd19   :  { %v2085_v31 = vmul.f32 %v21663_v30, %v21663_v30 }
 0xd1a   :  { %v2084_v7 = vmul.f32 %v21665_v32, %v21665_v32 }
 0xd1b   :  { %v2089_v13 = vsel %vm128_vm0, %v2085_v31, 0.0 }
 0xd1c   :  { %2090 = vadd.xlane.f32.xlu1 %v2089_v13  ;;  %v2086_v36 = vsel %vm128_vm0, %v2084_v7, 0.0 }
 0xd1d   :  { %2087 = vadd.xlane.f32.xlu0 %v2086_v36 }
 0xd2d   :  { %20431 = vrot.lane.b32.xlu1 %v20430_v39, %s21272_s5 }
 0xd31   :  { %20436 = vrot.lane.b32.xlu1 %v20425_v62, %s21275_s15 }
 0xd33   :  { %20426 = vrot.lane.b32.xlu0 %v20425_v62, %s21272_s5 }
 0xd35   :  { %2221 = vrot.lane.b32.xlu1 %v21703_v44, %s21272_s5 }
 0xd37   :  { %20441 = vrot.lane.b32.xlu0 %v20430_v39, %s21275_s15 }
 0xda9   :  { %v2091_v45 = vpop.xlane.xlu1 %2090 }
 0xdaa   :  { %v2093_v46 = vmul.f32 0.03125, %v2091_v45  ;;  %v2088_v47 = vpop.xlane.xlu0 %2087 }
 0xdab   :  { %v2092_v48 = vmul.f32 0.03125, %v2088_v47 }
 0xdac   :  { %v2095_v49 = vadd.f32 1e-05, %v2093_v46 }
 0xdad   :  { %v2094_v50 = vadd.f32 1e-05, %v2092_v48  ;;  %v20432_v51 = vpop.permute.xlu1 %20431 }
 0xdae   :  { %20837 = vrsqrt.f32 %v2095_v49  ;;  %v20427_v52 = vpop.permute.xlu0 %20426  ;;  %v20434_v53 = vunpack.i.h.bf16 %v20432_v51  ;;  %v20433_v0 = vunpack.i.l.bf16 %v20432_v51 }
 0xdaf   :  { %20839 = vrsqrt.f32 %v2094_v50  ;;  %v20429_v54 = vunpack.i.h.bf16 %v20427_v52  ;;  %v20428_v55 = vunpack.i.l.bf16 %v20427_v52 }
 0xdb0   :  { %v19863_v57 = vpack.c.bf16 %v20434_v53, %v20433_v0 }
 0xdb1   :  { %v19859_v56 = vpack.c.bf16 %v20429_v54, %v20428_v55  ;;  %v20437_v10 = vpop.permute.xlu1 %20436 }
 0xdb2   :  { %v20439_v14 = vunpack.i.h.bf16 %v20437_v10  ;;  %v20438_v58 = vunpack.i.l.bf16 %v20437_v10  ;;  %v20442_v20 = vpop.permute.xlu0 %20441 }
 0xdb3   :  { %19860 = vmatprep.subr.bf16.mxu0 %v19859_v56  ;;  %v20444_v27 = vunpack.i.h.bf16 %v20442_v20  ;;  %v20443_v28 = vunpack.i.l.bf16 %v20442_v20 }
 0xdb4   :  { %19862 = vmatpush3.bf16.msra.mxu0 %v19859_v56  ;;  %v19867_v21 = vpack.c.bf16 %v20439_v14, %v20438_v58 }
 0xdb5   :  { %19864 = vmatprep.subr.bf16.mxu0 %v19863_v57 }
 0xdb6   :  { %19868 = vmatprep.subr.bf16.mxu1 %v19867_v21 }
 0xdb8   :  { %v20838_v63 = vpop.eup %20837  ;;  %19866 = vmatpush3.bf16.msra.mxu0 %v19863_v57 }
 0xdb9   :  { %v20840_v4 = vpop.eup %20839  ;;  %v2099_v15 = vmul.f32 %v20838_v63, %v21663_v30 }
 0xdba   :  { %v2098_v19 = vmul.f32 %v20840_v4, %v21665_v32  ;;  %v19871_v32 = vpack.c.bf16 %v20444_v27, %v20443_v28 }
 0xdbb   :  { %18644 = vmatmul.mubr.msk.f32.vlgmr.msra.gmra.mrb[16].mxu0 %vm128_vm0, %v21713_v34  ;;  %v2105_v24 = vmul.f32 %v17470_v11, %v2099_v15 }
 0xdbc   :  { %18646 = vmatprep.mubr.msk.f32.mxu0 %vm128_vm0, %v21715_v3  ;;  %v2104_v25 = vmul.f32 %v17470_v11, %v2098_v19 }
 0xdbd   :  { %v21728_v26 = vadd.f32 %v17471_v17, %v2105_v24 }
 0xdbe   :  { %v21730_v29 = vadd.f32 %v17471_v17, %v2104_v25 }
 0xdbf   :  { %18647 = vmatmul.mubr.msk.f32.gmra.mrb[18].mxu0 %vm128_vm0, %v21724_v22  ;;  %v2113_v30 = vadd.f32 %v21728_v26, %v21435_v12  ;;  %v2222_v12 = vpop.permute.xlu1 %2221 }
 0xdc0   :  { %v2112_v1 = vadd.f32 %v21730_v29, %v21419_v6  ;;  %18667 = vmatprep.mubr.msk.f32.mxu0 %vm21274_vm1, %v21273_v23  ;;  %v21280_v6 = vmov 0.0|0.0  }
 0xdc1   :  { %19875 = vmatprep.subr.bf16.mxu0 %v21280_v6 }
 0xdc2   :  { %18632 = vmatprep.mubr.msk.f32.mxu1 %vm128_vm0, %v2112_v1 }
 0xdc3   :  { %18633 = vmatmul.mubr.msk.f32.vlgmr.msra.gmra.mrb[24].mxu1 %vm128_vm0, %v2113_v30 }
 0xdc4   :  { %19870 = vmatpush3.bf16.msra.mxu1 %v19867_v21  ;;  %18657 = vmatprep.mubr.msk.f32.mxu1 %vm128_vm0, %v21690_v18 }
 0xdc5   :  { %19872 = vmatprep.subr.bf16.mxu1 %v19871_v32 }
 0xdc8   :  { %19874 = vmatpush3.bf16.msra.mxu1 %v19871_v32 }
 0xdc9   :  { %19879 = vmatprep.subr.bf16.mxu1 %v21280_v6 }
 0xdcb   :  { %18658 = vmatmul.mubr.msk.f32.vlgmr.msra.gmra.mrb[26].mxu1 %vm128_vm0, %v96_v60 }
 0xdcc   :  { %18660 = vmatprep.mubr.msk.f32.mxu1 %vm128_vm0, %v97_v61 }
 0xdcf   :  { %18661 = vmatmul.mubr.msk.f32.gmra.mrb[28].mxu1 %vm128_vm0, %v98_v5 }
 0xdd0   :  { %18674 = vmatprep.mubr.msk.f32.mxu1 %vm21274_vm1, %v21273_v23 }
 0xe8e   :  { %v18645_v31 = vpop.f32.mrb[16].mxu0 }
 0xe8f   :  { %v2308_v7 = vadd.f32 %v18645_v31, %v2222_v12  ;;  %v2302_v13 = vpop.f32.mrb[17].mxu0 }
 0xe90   :  { %v2303_v36 = vadd.f32 %v2302_v13, %v2222_v12 }
 0xe92   :  { %v19876_v62 = vpack.c.bf16 %v2308_v7, %v2303_v36  ;;  %v18648_v18 = vpop.f32.mrb[18].mxu0  ;;  %v21757_v40 = vpack.i.bf16 %v2308_v7, %v2303_v36 }
 0xe93   :  { %v2318_v42 = vadd.f32 %v18648_v18, %v2222_v12  ;;  %v2312_v43 = vpop.f32.mrb[19].mxu0 }
 0xe94   :  { %v2313_v45 = vadd.f32 %v2312_v43, %v2222_v12  ;;  %19878 = vmatpush3.bf16.xpose.msk.msra.mxu0 %vm21753_vm3, %v19876_v62 }
 0xe95   :  { %19883 = vmatprep.subr.bf16.mxu0 %v21280_v6 }
 0xe96   :  { %v19880_v46 = vpack.c.bf16 %v2318_v42, %v2313_v45  ;;  %v18634_v47 = vpop.f32.mrb[24].mxu1  ;;  %v21762_v48 = vpack.i.bf16 %v2318_v42, %v2313_v45 }
 0xe97   :  { %v2195_v49 = vpop.f32.mrb[25].mxu1  ;;  %v2201_v51 = vadd.f32 %v18634_v47, %v21703_v44  ;;  %v21810_v47 = vld [vmem:[%s23635_s6] sm:$0xff] }
 0xe98   :  { %v2196_v50 = vadd.f32 %v21703_v44, %v2195_v49  ;;  %19882 = vmatpush3.bf16.xpose.msk.msra.mxu1 %vm21753_vm3, %v19880_v46 }
 0xe99   :  { %19886 = vmatprep.subr.bf16.mxu1 %v21280_v6  ;;  %v21773_v53 = vmul.f32 0.35355338, %v2201_v51 }
 0xe9a   :  { %v21769_v52 = vmul.f32 0.35355338, %v2196_v50 }
 0xe9c   :  { %18668 = vmatmul.mubr.msk.f32.vlgmr.msra.gmra.mrb[20].mxu0 %vm403_vm2, %v21769_v52 }
 0xe9d   :  { %18681 = vmatprep.mubr.msk.f32.mxu0 %vm21274_vm1, %v21273_v23 }
 0xe9e   :  { %v18659_v0 = vpop.f32.mrb[26].mxu1 }
 0xe9f   :  { %18675 = vmatmul.mubr.msk.f32.vlgmr.msra.gmra.mrb[30].mxu1 %vm403_vm2, %v21773_v53  ;;  %v2414_v54 = vpop.f32.mrb[27].mxu1 }
 0xea0   :  { %18688 = vmatprep.mubr.msk.f32.mxu1 %vm21274_vm1, %v21273_v23 }
 0xea2   :  { %v18662_v55 = vpop.f32.mrb[28].mxu1 }
 0xea3   :  { %v2424_v56 = vpop.f32.mrb[29].mxu1 }
 0xf6f   :  { %v2510_v57 = vpop.f32.mrb[20].mxu0 }
 0xf70   :  { %v18669_v60 = vpop.f32.mrb[21].mxu0  ;;  %v2594_v2 = vsel %vm2593_vm4, %v2510_v57, -inf }
 0xf71   :  { %2595 = vmax.xlane.f32.xlu0 %v2594_v2 }
 0xf72   :  { %v2589_v61 = vpop.f32.mrb[30].mxu1 }
 0xf73   :  { %v18676_v33 = vpop.f32.mrb[31].mxu1  ;;  %v2597_v10 = vsel %vm2593_vm4, %v2589_v61, -inf }
 0xf74   :  { %2598 = vmax.xlane.f32.xlu1 %v2597_v10 }
 0xf85   :  { %2333 = vrot.lane.b32.xlu1 %v21703_v44, %s21275_s15 }
 0xf89   :  { %20451 = vrot.lane.b32.xlu1 %v21762_v48, %s21276_s16 }
 0xf8d   :  { %2762 = vrot.lane.b32.xlu1 %v21769_v52, %s21276_s16 }
 0xffe   :  { %v2596_v23 = vpop.xlane.xlu0 %2595 }
 0xfff   :  { %v2600_v63 = vsub.f32 %v2510_v57, %v2596_v23 }
0x1001   :  { %v2599_v5 = vpop.xlane.xlu1 %2598  ;;  %v2602_v11 = vmul.f32 1.442695, %v2600_v63 }
0x1002   :  { %v2601_v8 = vsub.f32 %v2589_v61, %v2599_v5 }
0x1004   :  { %v2604_v14 = vmul.f32 1.442695, %v2601_v8 }
0x1005   :  { %v2334_v58 = vpop.permute.xlu1 %2333 }
0x1006   :  { %20841 = vpow2.f32 %v2604_v14  ;;  %v2415_v4 = vadd.f32 %v2414_v54, %v2334_v58  ;;  %v2420_v15 = vadd.f32 %v18659_v0, %v2334_v58  ;;  %v2425_v17 = vadd.f32 %v2424_v56, %v2334_v58 }
0x1007   :  { %20843 = vpow2.f32 %v2602_v11  ;;  %v2430_v19 = vadd.f32 %v18662_v55, %v2334_v58 }
0x1008   :  { %v19884_v20 = vpack.c.bf16 %v2420_v15, %v2415_v4  ;;  %v21789_v21 = vpack.i.bf16 %v2420_v15, %v2415_v4 }
0x1009   :  { %v19887_v24 = vpack.c.bf16 %v2430_v19, %v2425_v17  ;;  %v21791_v25 = vpack.i.bf16 %v2430_v19, %v2425_v17  ;;  %v20452_v31 = vpop.permute.xlu1 %20451 }
0x100a   :  { %19885 = vmatpush3.bf16.msra.mxu0 %v19884_v20  ;;  %v20454_v7 = vunpack.i.h.bf16 %v20452_v31  ;;  %v20453_v13 = vunpack.i.l.bf16 %v20452_v31 }
0x100b   :  { %19888 = vmatpush3.bf16.msra.mxu1 %v19887_v24  ;;  %19889 = vmatprep.subr.bf16.mxu0 %v21280_v6 }
0x100c   :  { %19893 = vmatprep.subr.bf16.mxu1 %v21280_v6  ;;  %v19894_v42 = vpack.c.bf16 %v20454_v7, %v20453_v13 }
0x100d   :  { %v2763_v0 = vpop.permute.xlu1 %2762 }
0x1010   :  { %v20842_v27 = vpop.eup %20841 }
0x1011   :  { %v20844_v28 = vpop.eup %20843  ;;  %v2609_v1 = vsel %vm2593_vm4, %v20842_v27, 0.0 }
0x1012   :  { %2610 = vadd.xlane.f32.xlu0 %v2609_v1  ;;  %v2606_v30 = vsel %vm2593_vm4, %v20844_v28, 0.0 }
0x1016   :  { %2607 = vadd.xlane.f32.xlu0 %v2606_v30 }
0x102c   :  { %20446 = vrot.lane.b32.xlu0 %v21757_v40, %s21276_s16 }
0x1030   :  { %2844 = vrot.lane.b32.xlu0 %v21773_v53, %s21276_s16 }
0x109f   :  { %v2611_v32 = vpop.xlane.xlu0 %2610 }
0x10a0   :  { %20845 = vrcp.f32 %v2611_v32 }
0x10a3   :  { %v2608_v12 = vpop.xlane.xlu0 %2607 }
0x10a4   :  { %20847 = vrcp.f32 %v2608_v12 }
0x10a7   :  { %v20447_v36 = vpop.permute.xlu0 %20446 }
0x10a8   :  { %v20449_v43 = vunpack.i.h.bf16 %v20447_v36  ;;  %v20448_v45 = vunpack.i.l.bf16 %v20447_v36 }
0x10aa   :  { %v20846_v62 = vpop.eup %20845  ;;  %v19890_v50 = vpack.c.bf16 %v20449_v43, %v20448_v45 }
0x10ab   :  { %v21801_v18 = vmul.f32 %v20846_v62, %v20842_v27  ;;  %v2845_v51 = vpop.permute.xlu0 %2844 }
0x10ad   :  { %18689 = vmatmul.mubr.msk.f32.vlgmr.msra.gmra.mrb[32].mxu1 %vm2593_vm4, %v21801_v18 }
0x10ae   :  { %v20848_v46 = vpop.eup %20847  ;;  %19896 = vmatpush3.bf16.xpose.msk.msra.mxu1 %vm21753_vm3, %v19894_v42  ;;  %18702 = vmatprep.mubr.msk.f32.mxu1 %vm21274_vm1, %v21810_v47 }
0x10af   :  { %v21814_v49 = vmul.f32 %v20848_v46, %v20844_v28  ;;  %19900 = vmatprep.subr.bf16.mxu1 %v21280_v6 }
0x10b1   :  { %18682 = vmatmul.mubr.msk.f32.vlgmr.msra.gmra.mrb[22].mxu0 %vm2593_vm4, %v21814_v49 }
0x10b2   :  { %19892 = vmatpush3.bf16.xpose.msk.msra.mxu0 %vm21753_vm3, %v19890_v50  ;;  %18695 = vmatprep.mubr.msk.f32.mxu0 %vm21274_vm1, %v21810_v47 }
0x10b3   :  { %19897 = vmatprep.subr.bf16.mxu0 %v21280_v6 }
0x10b5   :  { %18703 = vmatmul.mubr.msk.f32.vlgmr.msra.gmra.mrb[34].mxu1 %vm403_vm2, %v2845_v51 }
0x10b6   :  { %18716 = vmatprep.mubr.msk.f32.mxu1 %vm21274_vm1, %v21810_v47 }
0x10b9   :  { %18696 = vmatmul.mubr.msk.f32.vlgmr.msra.gmra.mrb[24].mxu0 %vm403_vm2, %v2763_v0 }
0x10ba   :  { %18709 = vmatprep.mubr.msk.f32.mxu0 %vm21274_vm1, %v21810_v47 }
0x1180   :  { %v21830_v54 = vpop.f32.mrb[32].mxu1 }
0x1181   :  { %v18690_v55 = vpop.f32.mrb[33].mxu1 }
0x1184   :  { %v21832_v56 = vpop.f32.mrb[22].mxu0 }
0x1185   :  { %v18683_v57 = vpop.f32.mrb[23].mxu0 }
0x1188   :  { %v2922_v60 = vpop.f32.mrb[34].mxu1 }
0x1189   :  { %v18704_v2 = vpop.f32.mrb[35].mxu1  ;;  %v2929_v61 = vsel %vm2593_vm4, %v2922_v60, -inf }
0x118a   :  { %2930 = vmax.xlane.f32.xlu0 %v2929_v61 }
0x118c   :  { %v2840_v33 = vpop.f32.mrb[24].mxu0 }
0x118d   :  { %v18697_v10 = vpop.f32.mrb[25].mxu0  ;;  %v2926_v23 = vsel %vm2593_vm4, %v2840_v33, -inf }
0x118e   :  { %2927 = vmax.xlane.f32.xlu1 %v2926_v23 }
0x1217   :  { %v2931_v63 = vpop.xlane.xlu0 %2930 }
0x1218   :  { %v2933_v5 = vsub.f32 %v2922_v60, %v2931_v63 }
0x121a   :  { %v2936_v8 = vmul.f32 1.442695, %v2933_v5 }
0x121b   :  { %v2928_v11 = vpop.xlane.xlu1 %2927 }
0x121c   :  { %20849 = vpow2.f32 %v2936_v8  ;;  %v2932_v14 = vsub.f32 %v2840_v33, %v2928_v11 }
0x121e   :  { %v2934_v58 = vmul.f32 1.442695, %v2932_v14 }
0x1220   :  { %20851 = vpow2.f32 %v2934_v58 }
0x1226   :  { %v20850_v4 = vpop.eup %20849 }
0x1227   :  { %v2941_v15 = vsel %vm2593_vm4, %v20850_v4, 0.0 }
0x1228   :  { %2942 = vadd.xlane.f32.xlu1 %v2941_v15 }
0x122a   :  { %v20852_v17 = vpop.eup %20851 }
0x122b   :  { %v2938_v19 = vsel %vm2593_vm4, %v20852_v17, 0.0 }
0x122c   :  { %2939 = vadd.xlane.f32.xlu0 %v2938_v19 }
0x1239   :  { %20461 = vrot.lane.b32.xlu1 %v21791_v25, %s21276_s16 }
0x123d   :  { %3110 = vrot.lane.b32.xlu1 %v21681_v35, %s21278_s18 }
0x1241   :  { %20466 = vrot.lane.b32.xlu1 %v21757_v40, %s21277_s17 }
0x1242   :  { %20456 = vrot.lane.b32.xlu0 %v21789_v21, %s21276_s16 }
0x1245   :  { %3280 = vrot.lane.b32.xlu1 %v21769_v52, %s21277_s17 }
0x1246   :  { %3194 = vrot.lane.b32.xlu0 %v21679_v16, %s21278_s18 }
0x124a   :  { %20471 = vrot.lane.b32.xlu0 %v21762_v48, %s21277_s17 }
0x124e   :  { %3362 = vrot.lane.b32.xlu0 %v21773_v53, %s21277_s17 }
0x12b5   :  { %v2943_v20 = vpop.xlane.xlu1 %2942 }
0x12b6   :  { %20853 = vrcp.f32 %v2943_v20 }
0x12b9   :  { %v2940_v35 = vpop.xlane.xlu0 %2939  ;;  %v20462_v24 = vpop.permute.xlu1 %20461 }
0x12ba   :  { %20855 = vrcp.f32 %v2940_v35  ;;  %v20464_v27 = vunpack.i.h.bf16 %v20462_v24  ;;  %v20463_v28 = vunpack.i.l.bf16 %v20462_v24 }
0x12bc   :  { %v19901_v1 = vpack.c.bf16 %v20464_v27, %v20463_v28 }
0x12bd   :  { %v20457_v30 = vpop.permute.xlu0 %20456  ;;  %v3111_v32 = vpop.permute.xlu1 %3110 }
0x12be   :  { %v20459_v12 = vunpack.i.h.bf16 %v20457_v30  ;;  %v20458_v31 = vunpack.i.l.bf16 %v20457_v30  ;;  %19902 = vmatpush3.bf16.msra.mxu1 %v19901_v1 }
0x12bf   :  { %19903 = vmatprep.subr.bf16.mxu1 %v21280_v6 }
0x12c0   :  { %v20854_v16 = vpop.eup %20853  ;;  %v19898_v7 = vpack.c.bf16 %v20459_v12, %v20458_v31 }
0x12c1   :  { %v20467_v13 = vpop.permute.xlu1 %20466  ;;  %v21855_v36 = vmul.f32 %v20854_v16, %v20850_v4  ;;  %v3195_v50 = vpop.permute.xlu0 %3194 }
0x12c2   :  { %v20469_v62 = vunpack.i.h.bf16 %v20467_v13  ;;  %v20468_v42 = vunpack.i.l.bf16 %v20467_v13  ;;  %19899 = vmatpush3.bf16.msra.mxu0 %v19898_v7 }
0x12c3   :  { %18717 = vmatmul.mubr.msk.f32.vlgmr.msra.gmra.mrb[36].mxu1 %vm2593_vm4, %v21855_v36  ;;  %18719 = vmatprep.subr.mxu0 %v3111_v32 }
0x12c4   :  { %v20856_v43 = vpop.eup %20855  ;;  %v19904_v45 = vpack.c.bf16 %v20469_v62, %v20468_v42  ;;  %18733 = vmatprep.mubr.msk.f32.mxu1 %vm21274_vm1, %v21810_v47 }
0x12c5   :  { %v21861_v46 = vmul.f32 %v20856_v43, %v20852_v17  ;;  %v3281_v51 = vpop.permute.xlu1 %3280  ;;  %v20472_v2 = vpop.permute.xlu0 %20471 }
0x12c6   :  { %v20474_v61 = vunpack.i.h.bf16 %v20472_v2  ;;  %v20473_v33 = vunpack.i.l.bf16 %v20472_v2 }
0x12c7   :  { %18710 = vmatmul.mubr.msk.f32.vlgmr.msra.gmra.mrb[26].mxu0 %vm2593_vm4, %v21861_v46  ;;  %19906 = vmatpush3.bf16.xpose.msk.msra.mxu1 %vm21753_vm3, %v19904_v45 }
0x12c8   :  { %18720 = vmatpush3.msra.mxu0 %v3111_v32  ;;  %19911 = vmatprep.subr.bf16.mxu1 %v21280_v6  ;;  %v19908_v5 = vpack.c.bf16 %v20474_v61, %v20473_v33 }
0x12c9   :  { %18724 = vmatprep.subr.mxu0 %v3195_v50 }
0x12ce   :  { %18734 = vmatmul.mubr.msk.f32.vlgmr.msra.gmra.mrb[38].mxu1 %vm403_vm2, %v3281_v51 }
0x12cf   :  { %18747 = vmatprep.mubr.msk.f32.mxu1 %vm21274_vm1, %v21810_v47 }
0x1396   :  { %v3106_v0 = vpop.f32.mrb[36].mxu1 }
0x1397   :  { %v18718_v55 = vpop.f32.mrb[37].mxu1 }
0x139a   :  { %v3025_v57 = vpop.f32.mrb[26].mxu0 }
0x139b   :  { %v18711_v60 = vpop.f32.mrb[27].mxu0  ;;  %18721 = vmatprep.mubr.msk.f32.mxu0 %vm403_vm2, %v3025_v57 }
0x139c   :  { %18722 = vmatmul.mubr.msk.f32.vlgmr.msra.gmra.mrb[28].mxu0 %vm403_vm2, %v3106_v0 }
0x139d   :  { %18725 = vmatpush3.msra.mxu0 %v3195_v50  ;;  %18726 = vmatprep.mubr.msk.f32.mxu0 %vm403_vm2, %v21832_v56  ;;  %v3363_v56 = vpop.permute.xlu0 %3362 }
0x139e   :  { %19907 = vmatprep.subr.bf16.mxu0 %v21280_v6 }
0x13a1   :  { %v3358_v10 = vpop.f32.mrb[38].mxu1 }
0x13a2   :  { %v18735_v23 = vpop.f32.mrb[39].mxu1  ;;  %v3444_v63 = vsel %vm2593_vm4, %v3358_v10, -inf }
0x13a3   :  { %3445 = vmax.xlane.f32.xlu1 %v3444_v63 }
0x13a4   :  { %18727 = vmatmul.mubr.msk.f32.vlgmr.msra.gmra.mrb[28].mxu0 %vm403_vm2, %v21830_v54 }
0x13a5   :  { %19910 = vmatpush3.bf16.xpose.msk.msra.mxu0 %vm21753_vm3, %v19908_v5  ;;  %18740 = vmatprep.mubr.msk.f32.mxu0 %vm21274_vm1, %v21810_v47 }
0x13ac   :  { %18741 = vmatmul.mubr.msk.f32.vlgmr.msra.gmra.mrb[30].mxu0 %vm403_vm2, %v3363_v56 }
0x1430   :  { %v3446_v8 = vpop.xlane.xlu1 %3445 }
0x1431   :  { %v3450_v11 = vsub.f32 %v3358_v10, %v3446_v8 }
0x1433   :  { %v3452_v14 = vmul.f32 1.442695, %v3450_v11 }
0x1435   :  { %20857 = vpow2.f32 %v3452_v14 }
0x143f   :  { %v20858_v17 = vpop.eup %20857 }
0x1440   :  { %v3456_v54 = vsel %vm2593_vm4, %v20858_v17, 0.0 }
0x147f   :  { %v3440_v58 = vpop.f32.mrb[30].mxu0 }
0x1480   :  { %v18742_v4 = vpop.f32.mrb[31].mxu0  ;;  %v3447_v15 = vsel %vm2593_vm4, %v3440_v58, -inf }
0x1481   :  { %3448 = vmax.xlane.f32.xlu0 %v3447_v15 }
0x1485   :  { %3457 = vadd.xlane.f32.xlu0 %v3456_v54 }
0x149b   :  { %20476 = vrot.lane.b32.xlu0 %v21789_v21, %s21277_s17 }
0x149f   :  { %20486 = vrot.lane.b32.xlu0 %v21757_v40, %s21279_s19 }
0x14a3   :  { %3712 = vrot.lane.b32.xlu0 %v21769_v52, %s21279_s19  ;;  %v3278_v52 = vadd.f32 %v21861_v46, %v21814_v49 }
0x150e   :  { %v3449_v19 = vpop.xlane.xlu0 %3448 }
0x150f   :  { %v3451_v20 = vsub.f32 %v3440_v58, %v3449_v19 }
0x1511   :  { %v3454_v35 = vmul.f32 1.442695, %v3451_v20 }
0x1512   :  { %v3458_v24 = vpop.xlane.xlu0 %3457 }
0x1513   :  { %20859 = vpow2.f32 %v3454_v35 }
0x1514   :  { %20861 = vrcp.f32 %v3458_v24 }
0x1516   :  { %v20477_v27 = vpop.permute.xlu0 %20476 }
0x1517   :  { %v20479_v28 = vunpack.i.h.bf16 %v20477_v27  ;;  %v20478_v1 = vunpack.i.l.bf16 %v20477_v27 }
0x1519   :  { %v19912_v30 = vpack.c.bf16 %v20479_v28, %v20478_v1 }
0x151a   :  { %v20487_v45 = vpop.permute.xlu0 %20486 }
0x151b   :  { %19913 = vmatpush3.bf16.msra.mxu1 %v19912_v30  ;;  %v20488_v46 = vunpack.i.l.bf16 %v20487_v45 }
0x151c   :  { %19914 = vmatprep.subr.bf16.mxu1 %v21280_v6 }
0x151d   :  { %v20860_v32 = vpop.eup %20859 }
0x151e   :  { %v20862_v12 = vpop.eup %20861  ;;  %v3459_v40 = vsel %vm2593_vm4, %v20860_v32, 0.0  ;;  %v3713_v55 = vpop.permute.xlu0 %3712 }
0x151f   :  { %3460 = vadd.xlane.f32.xlu1 %v3459_v40  ;;  %v3463_v31 = vmul.f32 %v20862_v12, %v20858_v17 }
0x1521   :  { %18748 = vmatmul.mubr.msk.f32.vlgmr.msra.gmra.mrb[40].mxu1 %vm2593_vm4, %v3463_v31  ;;  %v21897_v16 = vadd.f32 %v3463_v31, %v3278_v52 }
0x1522   :  { %18754 = vmatprep.mubr.msk.f32.mxu1 %vm21274_vm1, %v21810_v47 }
0x1530   :  { %20481 = vrot.lane.b32.xlu1 %v21791_v25, %s21277_s17 }
0x1534   :  { %3624 = vrot.lane.b32.xlu1 %v21673_v37, %s21278_s18 }
0x1538   :  { %20491 = vrot.lane.b32.xlu1 %v21762_v48, %s21279_s19  ;;  %v20489_v48 = vunpack.i.h.bf16 %v20487_v45 }
0x153a   :  { %v19918_v0 = vpack.c.bf16 %v20489_v48, %v20488_v46 }
0x153c   :  { %3794 = vrot.lane.b32.xlu1 %v21773_v53, %s21279_s19  ;;  %v3279_v53 = vadd.f32 %v21855_v36, %v21801_v18 }
0x15ac   :  { %v3461_v49 = vpop.xlane.xlu1 %3460 }
0x15ad   :  { %20863 = vrcp.f32 %v3461_v49 }
0x15b0   :  { %v20482_v7 = vpop.permute.xlu1 %20481 }
0x15b1   :  { %v20484_v13 = vunpack.i.h.bf16 %v20482_v7  ;;  %v20483_v62 = vunpack.i.l.bf16 %v20482_v7 }
0x15b3   :  { %v19915_v42 = vpack.c.bf16 %v20484_v13, %v20483_v62 }
0x15b4   :  { %v3625_v43 = vpop.permute.xlu1 %3624 }
0x15b5   :  { %19916 = vmatpush3.bf16.msra.mxu1 %v19915_v42  ;;  %18757 = vmatprep.subr.mxu0 %v3625_v43 }
0x15b6   :  { %19917 = vmatprep.subr.bf16.mxu1 %v21280_v6  ;;  %18758 = vmatpush3.msra.mxu0 %v3625_v43 }
0x15b7   :  { %v20864_v37 = vpop.eup %20863  ;;  %19921 = vmatprep.subr.bf16.mxu0 %v21280_v6 }
0x15b8   :  { %v3465_v50 = vmul.f32 %v20864_v37, %v20860_v32  ;;  %v20492_v57 = vpop.permute.xlu1 %20491 }
0x15b9   :  { %v20494_v60 = vunpack.i.h.bf16 %v20492_v57  ;;  %v20493_v2 = vunpack.i.l.bf16 %v20492_v57 }
0x15ba   :  { %18755 = vmatmul.mubr.msk.f32.vlgmr.msra.gmra.mrb[42].mxu1 %vm2593_vm4, %v3465_v50  ;;  %v21914_v51 = vadd.f32 %v3465_v50, %v3279_v53 }
0x15bb   :  { %18766 = vmatprep.mubr.msk.f32.mxu1 %vm21274_vm1, %v21810_v47  ;;  %v19922_v61 = vpack.c.bf16 %v20494_v60, %v20493_v2 }
0x15bc   :  { %v3795_v23 = vpop.permute.xlu1 %3794 }
0x15be   :  { %19920 = vmatpush3.bf16.xpose.msk.msra.mxu1 %vm21753_vm3, %v19918_v0 }
0x15bf   :  { %19925 = vmatprep.subr.bf16.mxu1 %v21280_v6 }
0x15c5   :  { %18767 = vmatmul.mubr.msk.f32.vlgmr.msra.gmra.mrb[44].mxu1 %vm403_vm2, %v3713_v55 }
0x15c6   :  { %18780 = vmatprep.mubr.msk.f32.mxu1 %vm21274_vm1, %v21810_v47 }
0x15f4   :  { %v3541_v18 = vpop.f32.mrb[40].mxu1 }
0x15f5   :  { %v18749_v36 = vpop.f32.mrb[41].mxu1  ;;  %18759 = vmatprep.mubr.msk.f32.mxu0 %vm403_vm2, %v3541_v18 }
0x168d   :  { %v3620_v33 = vpop.f32.mrb[42].mxu1 }
0x168e   :  { %v18756_v10 = vpop.f32.mrb[43].mxu1  ;;  %18760 = vmatmul.mubr.msk.f32.vlgmr.msra.gmra.mrb[28].mxu0 %vm403_vm2, %v3620_v33 }
0x168f   :  { %19924 = vmatpush3.bf16.xpose.msk.msra.mxu0 %vm21753_vm3, %v19922_v61  ;;  %18773 = vmatprep.mubr.msk.f32.mxu0 %vm21274_vm1, %v21810_v47 }
0x1690   :  { %19928 = vmatprep.subr.bf16.mxu0 %v21280_v6 }
0x1696   :  { %18774 = vmatmul.mubr.msk.f32.vlgmr.msra.gmra.mrb[32].mxu0 %vm403_vm2, %v3795_v23 }
0x1697   :  { %18787 = vmatprep.mubr.msk.f32.mxu0 %vm21274_vm1, %v21810_v47 }
0x1698   :  { %v3790_v63 = vpop.f32.mrb[44].mxu1 }
0x1699   :  { %v18768_v5 = vpop.f32.mrb[45].mxu1  ;;  %v3876_v56 = vsel %vm2593_vm4, %v3790_v63, -inf }
0x169a   :  { %3877 = vmax.xlane.f32.xlu0 %v3876_v56  ;;  %v4194_v56 = vld [vmem:[#allocation9 + $0x230] sm:$0xff] }
0x1727   :  { %v3878_v8 = vpop.xlane.xlu0 %3877 }
0x1728   :  { %v3882_v11 = vsub.f32 %v3790_v63, %v3878_v8  ;;  %v4195_v8 = vld [vmem:[#allocation9 + $0x238] sm:$0xff] }
0x172a   :  { %v3884_v14 = vmul.f32 1.442695, %v3882_v11 }
0x172c   :  { %20865 = vpow2.f32 %v3884_v14  ;;  %v4196_v14 = vld [vmem:[#allocation9 + $0x240] sm:$0xff] }
0x1736   :  { %v20866_v58 = vpop.eup %20865 }
0x1737   :  { %v3888_v4 = vsel %vm2593_vm4, %v20866_v58, 0.0 }
0x1738   :  { %3889 = vadd.xlane.f32.xlu0 %v3888_v4  ;;  %v4285_v4 = vld [vmem:[#allocation9 + $0x248] sm:$0xff] }
0x1769   :  { %v3872_v15 = vpop.f32.mrb[32].mxu0 }
0x176a   :  { %v18775_v17 = vpop.f32.mrb[33].mxu0  ;;  %v3879_v54 = vsel %vm2593_vm4, %v3872_v15, -inf }
0x176b   :  { %3880 = vmax.xlane.f32.xlu1 %v3879_v54  ;;  %v4287_v17 = vld [vmem:[#allocation9 + $0x258] sm:$0xff] }
0x177c   :  { %20496 = vrot.lane.b32.xlu1 %v21789_v21, %s21279_s19 }
0x1780   :  { %4056 = vrot.lane.b32.xlu1 %v21675_v38, %s21278_s18 }
0x1784   :  { %4144 = vrot.lane.b32.xlu1 %v21703_v44, %s21278_s18 }
0x17c5   :  { %v3890_v19 = vpop.xlane.xlu0 %3889 }
0x17c6   :  { %20867 = vrcp.f32 %v3890_v19  ;;  %v4288_v19 = vld [vmem:[#allocation9 + $0x260] sm:$0xff] }
0x17d0   :  { %v20868_v20 = vpop.eup %20867 }
0x17d1   :  { %v3895_v35 = vmul.f32 %v20868_v20, %v20866_v58  ;;  %v19935_v58 = vpack.c.bf16 %v4196_v14, %v4195_v8  ;;  %v19943_v20 = vpack.c.bf16 %v4288_v19, %v4287_v17  ;;  %v21972_v17 = vld [vmem:[#allocation9 + $0xd8] sm:$0xff]  ;;  %v21976_v19 = vld [vmem:[#allocation9 + $0xe0] sm:$0xff] }
0x17d3   :  { %v21944_v24 = vadd.f32 %v3895_v35, %v21897_v16 }
0x17f8   :  { %v3881_v27 = vpop.xlane.xlu1 %3880 }
0x17f9   :  { %v3883_v28 = vsub.f32 %v3872_v15, %v3881_v27  ;;  %v4286_v15 = vld [vmem:[#allocation9 + $0x250] sm:$0xff] }
0x17fa   :  { %v19939_v54 = vpack.c.bf16 %v4286_v15, %v4285_v4  ;;  %v4290_v27 = vld [vmem:[#allocation9 + $0x270] sm:$0xff] }
0x17fb   :  { %v3886_v1 = vmul.f32 1.442695, %v3883_v28  ;;  %v21970_v15 = vld [vmem:[#allocation9 + $0xd0] sm:$0xff] }
0x17fc   :  { %v20497_v30 = vpop.permute.xlu1 %20496 }
0x17fd   :  { %20869 = vpow2.f32 %v3886_v1  ;;  %v20499_v32 = vunpack.i.h.bf16 %v20497_v30  ;;  %v20498_v21 = vunpack.i.l.bf16 %v20497_v30 }
0x17ff   :  { %v19926_v12 = vpack.c.bf16 %v20499_v32, %v20498_v21 }
0x1800   :  { %v4057_v7 = vpop.permute.xlu1 %4056 }
0x1801   :  { %19927 = vmatpush3.bf16.msra.mxu1 %v19926_v12 }
0x1804   :  { %18781 = vmatmul.mubr.msk.f32.vlgmr.msra.gmra.mrb[46].mxu1 %vm2593_vm4, %v3895_v35  ;;  %v4145_v48 = vpop.permute.xlu1 %4144  ;;  %v4289_v35 = vld [vmem:[#allocation9 + $0x268] sm:$0xff] }
0x1805   :  { %v19947_v28 = vpack.c.bf16 %v4290_v27, %v4289_v35  ;;  %v19955_v27 = vpack.c.bf16 %v21972_v17, %v21970_v15 }
0x1807   :  { %v20870_v38 = vpop.eup %20869 }
0x1808   :  { %v3891_v44 = vsel %vm2593_vm4, %v20870_v38, 0.0 }
0x1809   :  { %3892 = vadd.xlane.f32.xlu0 %v3891_v44 }
0x181f   :  { %20501 = vrot.lane.b32.xlu0 %v21791_v25, %s21279_s19 }
0x1896   :  { %v3893_v40 = vpop.xlane.xlu0 %3892 }
0x1897   :  { %20871 = vrcp.f32 %v3893_v40  ;;  %v17523_v40 = vld [vmem:[#allocation9 + $0x2a0] ss:$0 sm:$0xff] }
0x189a   :  { %v20502_v31 = vpop.permute.xlu0 %20501 }
0x189b   :  { %v20504_v52 = vunpack.i.h.bf16 %v20502_v31  ;;  %v20503_v16 = vunpack.i.l.bf16 %v20502_v31 }
0x189d   :  { %v19929_v49 = vpack.c.bf16 %v20504_v52, %v20503_v16  ;;  %v17524_v52 = vld [vmem:[#allocation9 + $0x298] ss:$0 sm:$0xff] }
0x189f   :  { %19930 = vmatpush3.bf16.msra.mxu0 %v19929_v49 }
0x18a0   :  { %18790 = vmatprep.subr.mxu0 %v4057_v7 }
0x18a1   :  { %v20872_v13 = vpop.eup %20871 }
0x18a2   :  { %v3897_v62 = vmul.f32 %v20872_v13, %v20870_v38 }
0x18a4   :  { %18788 = vmatmul.mubr.msk.f32.vlgmr.msra.gmra.mrb[34].mxu0 %vm2593_vm4, %v3897_v62  ;;  %v21952_v42 = vadd.f32 %v3897_v62, %v21914_v51 }
0x18a5   :  { %18791 = vmatpush3.msra.mxu0 %v4057_v7 }
0x18a6   :  { %19940 = vmatprep.subr.bf16.mxu0 %v19939_v54 }
0x18d7   :  { %v3973_v43 = vpop.f32.mrb[46].mxu1 }
0x18d8   :  { %v18782_v45 = vpop.f32.mrb[47].mxu1  ;;  %18792 = vmatprep.mubr.msk.f32.mxu0 %vm403_vm2, %v3973_v43 }
0x18d9   :  { %v4291_v45 = vld [vmem:[#allocation9 + $0x278] sm:$0xff] }
0x1977   :  { %v4052_v25 = vpop.f32.mrb[34].mxu0 }
0x1978   :  { %v18789_v37 = vpop.f32.mrb[35].mxu0  ;;  %18793 = vmatmul.mubr.msk.f32.vlgmr.msra.gmra.mrb[28].mxu0 %vm403_vm2, %v4052_v25  ;;  %v4292_v25 = vld [vmem:[#allocation9 + $0x280] sm:$0xff] }
0x1979   :  { %19942 = vmatpush3.bf16.msra.mxu0 %v19939_v54  ;;  %v19951_v37 = vpack.c.bf16 %v4292_v25, %v4291_v45  ;;  %v20505_v54 = vpack.i.bf16 %v21972_v17, %v21970_v15  ;;  %v17532_v45 = vld [vmem:[#allocation9 + $0x2a8] ss:$0 sm:$0xff] }
0x197a   :  { %19944 = vmatprep.subr.bf16.mxu0 %v19943_v20 }
0x197d   :  { %19946 = vmatpush3.bf16.msra.mxu0 %v19943_v20  ;;  %v21978_v20 = vld [vmem:[#allocation9 + $0xe8] sm:$0xff] }
0x197e   :  { %19948 = vmatprep.subr.bf16.mxu0 %v19947_v28  ;;  %v20510_v35 = vpack.i.bf16 %v21978_v20, %v21976_v19 }
0x1981   :  { %19950 = vmatpush3.bf16.msra.mxu0 %v19947_v28  ;;  %v19959_v28 = vpack.c.bf16 %v21978_v20, %v21976_v19 }
0x1982   :  { %19952 = vmatprep.subr.bf16.mxu0 %v19951_v37 }
0x1985   :  { %19954 = vmatpush3.bf16.msra.mxu0 %v19951_v37 }
0x1a4b   :  { %v18794_v46 = vpop.f32.mrb[28].mxu0 }
0x1a4c   :  { %v4148_v50 = vadd.f32 %v18794_v46, %v4145_v48  ;;  %v4131_v53 = vpop.f32.mrb[29].mxu0 }
0x1a4d   :  { %v4147_v0 = vadd.f32 %v4145_v48, %v4131_v53  ;;  %v17525_v48 = vld [vmem:[#allocation9 + $0x218] ss:$0 sm:$0xff] }
0x1a4e   :  { %v4152_v55 = vadd.f32 %v4148_v50, %v21728_v26 }
0x1a4f   :  { %v4151_v18 = vadd.f32 %v4147_v0, %v21730_v29  ;;  %v4193_v29 = vld [vmem:[#allocation9 + $0x228] sm:$0xff] }
0x1a50   :  { %v4158_v51 = vsel %vm128_vm0, %v4152_v55, 0.0  ;;  %v19931_v11 = vpack.c.bf16 %v4194_v56, %v4193_v29 }
0x1a51   :  { %4159 = vadd.xlane.f32.xlu1 %v4158_v51  ;;  %v4155_v36 = vsel %vm128_vm0, %v4151_v18, 0.0  ;;  %v17528_v51 = vld [vmem:[#allocation9 + $0x220] ss:$0 sm:$0xff] }
0x1a52   :  { %4156 = vadd.xlane.f32.xlu0 %v4155_v36  ;;  %19932 = vmatprep.subr.bf16.mxu1 %v19931_v11 }
0x1a53   :  { %19934 = vmatpush3.bf16.msra.mxu1 %v19931_v11 }
0x1a54   :  { %19936 = vmatprep.subr.bf16.mxu1 %v19935_v58 }
0x1a57   :  { %19938 = vmatpush3.bf16.msra.mxu1 %v19935_v58 }
0x1a58   :  { %19956 = vmatprep.subr.bf16.mxu1 %v19955_v27 }
0x1ade   :  { %v4160_v57 = vpop.xlane.xlu1 %4159 }
0x1adf   :  { %v4162_v60 = vmul.f32 0.03125, %v4160_v57  ;;  %v4157_v2 = vpop.xlane.xlu0 %4156 }
0x1ae0   :  { %v4161_v61 = vmul.f32 0.03125, %v4157_v2 }
0x1ae1   :  { %v4164_v33 = vsub.f32 %v4152_v55, %v4162_v60 }
0x1ae2   :  { %v4163_v10 = vsub.f32 %v4151_v18, %v4161_v61 }
0x1ae3   :  { %v4166_v5 = vmul.f32 %v4164_v33, %v4164_v33 }
0x1ae4   :  { %v4165_v23 = vmul.f32 %v4163_v10, %v4163_v10 }
0x1ae5   :  { %v4170_v26 = vsel %vm128_vm0, %v4166_v5, 0.0 }
0x1ae6   :  { %v4167_v63 = vsel %vm128_vm0, %v4165_v23, 0.0 }
0x1ae7   :  { %4168 = vadd.xlane.f32.xlu0 %v4167_v63 }
0x1aeb   :  { %4171 = vadd.xlane.f32.xlu0 %v4170_v26 }
0x1b74   :  { %v4169_v1 = vpop.xlane.xlu0 %4168 }
0x1b75   :  { %v4173_v30 = vmul.f32 0.03125, %v4169_v1  ;;  %v21988_v1 = vld [vmem:[#allocation2] sm:$0xff] }
0x1b77   :  { %v4175_v32 = vadd.f32 1e-05, %v4173_v30  ;;  %v21992_v30 = vld [vmem:[#allocation9 + $0xc8] ss:$0 sm:$0xff] }
0x1b78   :  { %v4172_v21 = vpop.xlane.xlu0 %4171 }
0x1b79   :  { %20873 = vrsqrt.f32 %v4175_v32  ;;  %v4174_v12 = vmul.f32 0.03125, %v4172_v21 }
0x1b7b   :  { %v4176_v38 = vadd.f32 1e-05, %v4174_v12 }
0x1b7d   :  { %20875 = vrsqrt.f32 %v4176_v38 }
0x1b83   :  { %v20874_v44 = vpop.eup %20873 }
0x1b84   :  { %v4179_v31 = vmul.f32 %v20874_v44, %v4163_v10 }
0x1b86   :  { %v4185_v16 = vmul.f32 %v17523_v40, %v4179_v31 }
0x1b87   :  { %v20876_v49 = vpop.eup %20875 }
0x1b88   :  { %v4180_v7 = vmul.f32 %v20876_v49, %v4164_v33  ;;  %v4191_v13 = vadd.f32 %v17524_v52, %v4185_v16 }
0x1b8a   :  { %v4186_v62 = vmul.f32 %v17523_v40, %v4180_v7  ;;  %18803 = vmatprep.mubr.msk.f32.mxu1 %vm128_vm0, %v4191_v13 }
0x1b8c   :  { %v4192_v43 = vadd.f32 %v17524_v52, %v4186_v62 }
0x1b8e   :  { %18804 = vmatmul.mubr.msk.f32.vlgmr.msra.gmra.mrb[48].mxu1 %vm128_vm0, %v4192_v43 }
0x1b8f   :  { %19958 = vmatpush3.bf16.msra.mxu1 %v19955_v27 }
0x1b90   :  { %19960 = vmatprep.subr.bf16.mxu1 %v19959_v28 }
0x1b93   :  { %19962 = vmatpush3.bf16.msra.mxu1 %v19959_v28 }
0x1c61   :  { %v18805_v46 = vpop.f32.mrb[48].mxu1 }
0x1c62   :  { %v4280_v50 = vadd.f32 %v18805_v46, %v17525_v48  ;;  %v4274_v53 = vpop.f32.mrb[49].mxu1 }
0x1c63   :  { %v4275_v0 = vadd.f32 %v17525_v48, %v4274_v53 }
0x1c64   :  { %v4284_v18 = vmax.f32 %v4280_v50, 0.0 }
0x1c65   :  { %v4283_v55 = vmax.f32 %v4275_v0, 0.0 }
0x1c67   :  { %18822 = vmatprep.mubr.msk.f32.mxu0 %vm4298_vm5, %v4283_v55 }
0x1c68   :  { %18823 = vmatmul.mubr.msk.f32.vlgmr.msra.gmra.mrb[36].mxu0 %vm4298_vm5, %v4284_v18  ;;  %v21126_v18 = vld [vmem:[#allocation7 + $0x8] sm:$0xff] }
0x1c69   :  { %18855 = vmatprep.mubr.msk.f32.mxu0 %vm128_vm0, %v21988_v1 }
0x1d3b   :  { %v18824_v36 = vpop.f32.mrb[36].mxu0 }
0x1d3c   :  { %v4377_v57 = vadd.f32 %v18824_v36, %v17528_v51  ;;  %v4371_v60 = vpop.f32.mrb[37].mxu0  ;;  %v21127_v36 = vld [vmem:[#allocation7] sm:$0xff] }
0x1d3d   :  { %v4372_v2 = vadd.f32 %v17528_v51, %v4371_v60  ;;  %v22006_v60 = vld [vmem:[#allocation2 + $0x8] sm:$0xff] }
0x1d3e   :  { %v4381_v61 = vadd.f32 %v4377_v57, %v4192_v43 }
0x1d3f   :  { %v4380_v33 = vadd.f32 %v4372_v2, %v4191_v13  ;;  %v17531_v13 = vld [vmem:[#allocation9 + $0x2b0] ss:$0 sm:$0xff] }
0x1d40   :  { %v4387_v10 = vsel %vm128_vm0, %v4381_v61, 0.0 }
0x1d41   :  { %4388 = vadd.xlane.f32.xlu0 %v4387_v10  ;;  %v4384_v23 = vsel %vm128_vm0, %v4380_v33, 0.0 }
0x1d42   :  { %4385 = vadd.xlane.f32.xlu1 %v4384_v23 }
0x1dce   :  { %v4389_v63 = vpop.xlane.xlu0 %4388 }
0x1dcf   :  { %v4391_v5 = vmul.f32 0.03125, %v4389_v63  ;;  %v4386_v26 = vpop.xlane.xlu1 %4385 }
0x1dd0   :  { %v4390_v29 = vmul.f32 0.03125, %v4386_v26 }
0x1dd1   :  { %v4393_v56 = vsub.f32 %v4381_v61, %v4391_v5 }
0x1dd2   :  { %v4392_v8 = vsub.f32 %v4380_v33, %v4390_v29 }
0x1dd3   :  { %v4395_v11 = vmul.f32 %v4393_v56, %v4393_v56 }
0x1dd4   :  { %v4394_v14 = vmul.f32 %v4392_v8, %v4392_v8 }
0x1dd5   :  { %v4399_v58 = vsel %vm128_vm0, %v4395_v11, 0.0 }
0x1dd6   :  { %4400 = vadd.xlane.f32.xlu0 %v4399_v58  ;;  %v4396_v4 = vsel %vm128_vm0, %v4394_v14, 0.0 }
0x1dd7   :  { %4397 = vadd.xlane.f32.xlu1 %v4396_v4 }
0x1de8   :  { %20506 = vrot.lane.b32.xlu1 %v20505_v54, %s21272_s5 }
0x1dec   :  { %20511 = vrot.lane.b32.xlu0 %v20510_v35, %s21272_s5  ;;  %4595 = vrot.lane.b32.xlu1 %v21992_v30, %s21272_s5 }
0x1df0   :  { %20516 = vrot.lane.b32.xlu1 %v20505_v54, %s21275_s15  ;;  %20521 = vrot.lane.b32.xlu0 %v20510_v35, %s21275_s15 }
0x1e63   :  { %v4401_v32 = vpop.xlane.xlu0 %4400 }
0x1e64   :  { %v4403_v21 = vmul.f32 0.03125, %v4401_v32  ;;  %v4398_v12 = vpop.xlane.xlu1 %4397 }
0x1e65   :  { %v4402_v38 = vmul.f32 0.03125, %v4398_v12 }
0x1e66   :  { %v4405_v44 = vadd.f32 1e-05, %v4403_v21 }
0x1e67   :  { %v4404_v40 = vadd.f32 1e-05, %v4402_v38  ;;  %v20512_v46 = vpop.permute.xlu0 %20511 }
0x1e68   :  { %20877 = vrsqrt.f32 %v4405_v44  ;;  %v20507_v31 = vpop.permute.xlu1 %20506  ;;  %v20514_v0 = vunpack.i.h.bf16 %v20512_v46  ;;  %v20513_v55 = vunpack.i.l.bf16 %v20512_v46 }
0x1e69   :  { %20879 = vrsqrt.f32 %v4404_v40  ;;  %v20509_v52 = vunpack.i.h.bf16 %v20507_v31  ;;  %v20508_v16 = vunpack.i.l.bf16 %v20507_v31 }
0x1e6a   :  { %v19967_v33 = vpack.c.bf16 %v20514_v0, %v20513_v55 }
0x1e6b   :  { %v19963_v49 = vpack.c.bf16 %v20509_v52, %v20508_v16  ;;  %v20522_v54 = vpop.permute.xlu0 %20521 }
0x1e6c   :  { %v4596_v63 = vpop.permute.xlu1 %4595  ;;  %v20524_v28 = vunpack.i.h.bf16 %v20522_v54  ;;  %v20523_v32 = vunpack.i.l.bf16 %v20522_v54 }
0x1e6d   :  { %19964 = vmatprep.subr.bf16.mxu1 %v19963_v49 }
0x1e6e   :  { %v19975_v12 = vpack.c.bf16 %v20524_v28, %v20523_v32 }
0x1e70   :  { %v20517_v4 = vpop.permute.xlu1 %20516 }
0x1e71   :  { %v20519_v35 = vunpack.i.h.bf16 %v20517_v4  ;;  %v20518_v27 = vunpack.i.l.bf16 %v20517_v4 }
0x1e72   :  { %v20878_v7 = vpop.eup %20877 }
0x1e73   :  { %v20880_v62 = vpop.eup %20879  ;;  %v4409_v43 = vmul.f32 %v20878_v7, %v4393_v56  ;;  %v19971_v21 = vpack.c.bf16 %v20519_v35, %v20518_v27 }
0x1e74   :  { %v4408_v25 = vmul.f32 %v20880_v62, %v4392_v8 }
0x1e75   :  { %v4415_v37 = vmul.f32 %v17531_v13, %v4409_v43  ;;  %19972 = vmatprep.subr.bf16.mxu0 %v19971_v21 }
0x1e76   :  { %v4414_v48 = vmul.f32 %v17531_v13, %v4408_v25  ;;  %19974 = vmatpush3.bf16.msra.mxu0 %v19971_v21  ;;  %v22094_v21 = vld [vmem:[%s23635_s6] sm:$0xff] }
0x1e77   :  { %v21996_v50 = vadd.f32 %v17532_v45, %v4415_v37  ;;  %19976 = vmatprep.subr.bf16.mxu0 %v19975_v12 }
0x1e78   :  { %v21998_v53 = vadd.f32 %v17532_v45, %v4414_v48 }
0x1e79   :  { %v22001_v51 = vadd.f32 %v21126_v18, %v21996_v50 }
0x1e7a   :  { %v22004_v57 = vadd.f32 %v21127_v36, %v21998_v53  ;;  %19978 = vmatpush3.bf16.msra.mxu0 %v19975_v12 }
0x1e7b   :  { %v4487_v61 = vadd.f32 %v22001_v51, %v22006_v60  ;;  %18868 = vmatprep.subr.mxu0 %v21810_v47 }
0x1e7c   :  { %v4486_v2 = vadd.f32 %v22004_v57, %v21988_v1 }
0x1e7d   :  { %18856 = vmatmul.mubr.msk.f32.vlgmr.msra.gmra.mrb[38].mxu0 %vm128_vm0, %v22006_v60 }
0x1e7e   :  { %18833 = vmatprep.mubr.msk.f32.mxu1 %vm128_vm0, %v4486_v2  ;;  %18870 = vmatprep.mubr.msk.f32.mxu0 %vm21274_vm1, %v21810_v47 }
0x1e7f   :  { %18834 = vmatmul.mubr.msk.f32.vlgmr.msra.gmra.mrb[50].mxu1 %vm128_vm0, %v4487_v61 }
0x1e80   :  { %19966 = vmatpush3.bf16.msra.mxu1 %v19963_v49  ;;  %18844 = vmatprep.mubr.msk.f32.mxu1 %vm128_vm0, %v4486_v2 }
0x1e81   :  { %19968 = vmatprep.subr.bf16.mxu1 %v19967_v33 }
0x1e84   :  { %19970 = vmatpush3.bf16.msra.mxu1 %v19967_v33 }
0x1e85   :  { %18858 = vmatprep.subr.mxu1 %v21810_v47 }
0x1e87   :  { %18845 = vmatmul.mubr.msk.f32.vlgmr.msra.gmra.mrb[52].mxu1 %vm128_vm0, %v4487_v61 }
0x1e88   :  { %18860 = vmatprep.mubr.msk.f32.mxu1 %vm21274_vm1, %v21810_v47 }
0x1f50   :  { %v18857_v43 = vpop.f32.mrb[38].mxu0 }
0x1f51   :  { %v4760_v45 = vpop.f32.mrb[39].mxu0 }
0x1f52   :  { %v18835_v10 = vpop.f32.mrb[50].mxu1 }
0x1f53   :  { %v4569_v23 = vpop.f32.mrb[51].mxu1  ;;  %v4575_v8 = vadd.f32 %v18835_v10, %v21992_v30 }
0x1f54   :  { %v4570_v26 = vadd.f32 %v21992_v30, %v4569_v23 }
0x1f55   :  { %v22038_v58 = vmul.f32 0.35355338, %v4575_v8 }
0x1f56   :  { %v22027_v11 = vmul.f32 0.35355338, %v4570_v26 }
0x1f5a   :  { %v18846_v5 = vpop.f32.mrb[52].mxu1 }
0x1f5b   :  { %v4664_v29 = vpop.f32.mrb[53].mxu1  ;;  %v22030_v14 = vadd.f32 %v18846_v5, %v4596_v63 }
0x1f5c   :  { %v22022_v56 = vadd.f32 %v4664_v29, %v4596_v63 }
0x1f5e   :  { %18859 = vmatpush3.xpose.msk.msra.mxu1 %vm403_vm2, %v22022_v56 }
0x1f5f   :  { %18863 = vmatprep.subr.mxu1 %v21810_v47 }
0x1f61   :  { %18861 = vmatmul.mubr.msk.f32.vlgmr.msra.gmra.mrb[54].mxu1 %vm403_vm2, %v22027_v11 }
0x1f62   :  { %18864 = vmatpush3.xpose.msk.msra.mxu1 %vm403_vm2, %v22030_v14  ;;  %18865 = vmatprep.mubr.msk.f32.mxu1 %vm21274_vm1, %v21810_v47 }
0x1f63   :  { %18873 = vmatprep.subr.mxu1 %v21810_v47 }
0x1f65   :  { %18866 = vmatmul.mubr.msk.f32.vlgmr.msra.gmra.mrb[56].mxu1 %vm403_vm2, %v22038_v58 }
0x1f66   :  { %18875 = vmatprep.mubr.msk.f32.mxu1 %vm21274_vm1, %v21810_v47 }
0x2034   :  { %v4843_v38 = vpop.f32.mrb[54].mxu1 }
0x2035   :  { %v18862_v44 = vpop.f32.mrb[55].mxu1  ;;  %v4923_v25 = vsel %vm403_vm2, %v4843_v38, -inf }
0x2038   :  { %v4919_v40 = vpop.f32.mrb[56].mxu1 }
0x2039   :  { %v18867_v31 = vpop.f32.mrb[57].mxu1  ;;  %v4926_v52 = vsel %vm403_vm2, %v4919_v40, -inf }
0x203a   :  { %4927 = vmax.xlane.f32.xlu1 %v4926_v52 }
0x204b   :  { %5171 = vrot.lane.b32.xlu1 %v22030_v14, %s21276_s16 }
0x204f   :  { %5169 = vrot.lane.b32.xlu1 %v22038_v58, %s21276_s16 }
0x20c7   :  { %v4928_v16 = vpop.xlane.xlu1 %4927 }
0x20c8   :  { %v4930_v49 = vsub.f32 %v4919_v40, %v4928_v16 }
0x20ca   :  { %v4933_v7 = vmul.f32 1.442695, %v4930_v49 }
0x20cb   :  { %v5172_v18 = vpop.permute.xlu1 %5171 }
0x20cc   :  { %20881 = vpow2.f32 %v4933_v7 }
0x20cf   :  { %v5170_v2 = vpop.permute.xlu1 %5169 }
0x20d6   :  { %v20882_v13 = vpop.eup %20881 }
0x20d7   :  { %v4938_v62 = vsel %vm403_vm2, %v20882_v13, 0.0 }
0x20d8   :  { %4939 = vadd.xlane.f32.xlu0 %v4938_v62 }
0x20ee   :  { %4685 = vrot.lane.b32.xlu0 %v21992_v30, %s21275_s15 }
0x210d   :  { %4924 = vmax.xlane.f32.xlu0 %v4923_v25 }
0x2123   :  { %5093 = vrot.lane.b32.xlu0 %v22022_v56, %s21276_s16 }
0x2165   :  { %v4940_v37 = vpop.xlane.xlu0 %4939 }
0x2166   :  { %20883 = vrcp.f32 %v4940_v37 }
0x2169   :  { %v4686_v48 = vpop.permute.xlu0 %4685 }
0x216a   :  { %v22061_v46 = vadd.f32 %v18857_v43, %v4686_v48  ;;  %v22063_v0 = vadd.f32 %v4760_v45, %v4686_v48 }
0x216c   :  { %18874 = vmatpush3.msra.mxu1 %v22061_v46  ;;  %18869 = vmatpush3.msra.mxu0 %v22063_v0 }
0x216d   :  { %18883 = vmatprep.subr.mxu1 %v21810_v47  ;;  %18878 = vmatprep.subr.mxu0 %v21810_v47 }
0x2170   :  { %v20884_v55 = vpop.eup %20883 }
0x2171   :  { %v4944_v36 = vmul.f32 %v20884_v55, %v20882_v13 }
0x2173   :  { %18876 = vmatmul.mubr.msk.f32.vlgmr.msra.gmra.mrb[58].mxu1 %vm403_vm2, %v4944_v36 }
0x2174   :  { %18884 = vmatpush3.xpose.msk.msra.mxu1 %vm403_vm2, %v5172_v18  ;;  %18885 = vmatprep.mubr.msk.f32.mxu1 %vm21274_vm1, %v21810_v47 }
0x2175   :  { %18893 = vmatprep.subr.mxu1 %v21810_v47 }
0x2177   :  { %18886 = vmatmul.mubr.msk.f32.vlgmr.msra.gmra.mrb[60].mxu1 %vm403_vm2, %v5170_v2 }
0x2178   :  { %18895 = vmatprep.mubr.msk.f32.mxu1 %vm21274_vm1, %v21810_v47 }
0x219a   :  { %v4925_v61 = vpop.xlane.xlu0 %4924 }
0x219b   :  { %v4929_v33 = vsub.f32 %v4843_v38, %v4925_v61 }
0x219d   :  { %v4931_v10 = vmul.f32 1.442695, %v4929_v33 }
0x219e   :  { %v5094_v8 = vpop.permute.xlu0 %5093 }
0x219f   :  { %20885 = vpow2.f32 %v4931_v10 }
0x21a9   :  { %v20886_v23 = vpop.eup %20885 }
0x21aa   :  { %v4935_v63 = vsel %vm403_vm2, %v20886_v23, 0.0 }
0x21ab   :  { %4936 = vadd.xlane.f32.xlu1 %v4935_v63 }
0x21bc   :  { %5091 = vrot.lane.b32.xlu1 %v22027_v11, %s21276_s16 }
0x21c0   :  { %5593 = vrot.lane.b32.xlu1 %v22022_v56, %s21277_s17 }
0x2238   :  { %v4937_v5 = vpop.xlane.xlu1 %4936 }
0x2239   :  { %20887 = vrcp.f32 %v4937_v5 }
0x223c   :  { %v5092_v35 = vpop.permute.xlu1 %5091 }
0x2240   :  { %v5594_v62 = vpop.permute.xlu1 %5593 }
0x2243   :  { %v20888_v26 = vpop.eup %20887 }
0x2244   :  { %v4942_v29 = vmul.f32 %v20888_v26, %v20886_v23 }
0x2246   :  { %18871 = vmatmul.mubr.msk.f32.vlgmr.msra.gmra.mrb[40].mxu0 %vm403_vm2, %v4942_v29  ;;  %v22083_v4 = vpop.f32.mrb[58].mxu1 }
0x2247   :  { %18879 = vmatpush3.xpose.msk.msra.mxu0 %vm403_vm2, %v5094_v8  ;;  %v18877_v54 = vpop.f32.mrb[59].mxu1  ;;  %18880 = vmatprep.mubr.msk.f32.mxu0 %vm21274_vm1, %v21810_v47 }
0x2248   :  { %18888 = vmatprep.subr.mxu0 %v21810_v47 }
0x224a   :  { %18881 = vmatmul.mubr.msk.f32.vlgmr.msra.gmra.mrb[42].mxu0 %vm403_vm2, %v5092_v35  ;;  %v5243_v27 = vpop.f32.mrb[60].mxu1 }
0x224b   :  { %v18887_v28 = vpop.f32.mrb[61].mxu1  ;;  %v5250_v32 = vsel %vm403_vm2, %v5243_v27, -inf  ;;  %18890 = vmatprep.mubr.msk.f32.mxu0 %vm21274_vm1, %v22094_v21 }
0x224c   :  { %5251 = vmax.xlane.f32.xlu0 %v5250_v32 }
0x2262   :  { %5347 = vrot.lane.b32.xlu0 %v22061_v46, %s21276_s16 }
0x2266   :  { %5591 = vrot.lane.b32.xlu0 %v22027_v11, %s21277_s17 }
0x226a   :  { %5669 = vrot.lane.b32.xlu0 %v22038_v58, %s21277_s17 }
0x22d9   :  { %v5252_v47 = vpop.xlane.xlu0 %5251 }
0x22da   :  { %v5254_v12 = vsub.f32 %v5243_v27, %v5252_v47 }
0x22dc   :  { %v5257_v38 = vmul.f32 1.442695, %v5254_v12 }
0x22dd   :  { %v5348_v44 = vpop.permute.xlu0 %5347 }
0x22de   :  { %20889 = vpow2.f32 %v5257_v38  ;;  %18894 = vmatpush3.msra.mxu1 %v5348_v44 }
0x22df   :  { %18908 = vmatprep.subr.mxu1 %v22094_v21 }
0x22e1   :  { %v5592_v37 = vpop.permute.xlu0 %5591 }
0x22e5   :  { %v5670_v55 = vpop.permute.xlu0 %5669 }
0x22e8   :  { %v20890_v40 = vpop.eup %20889 }
0x22e9   :  { %v5262_v31 = vsel %vm403_vm2, %v20890_v40, 0.0 }
0x22ea   :  { %5263 = vadd.xlane.f32.xlu1 %v5262_v31 }
0x22fb   :  { %5671 = vrot.lane.b32.xlu1 %v22030_v14, %s21277_s17 }
0x2319   :  { %v22108_v52 = vpop.f32.mrb[40].mxu0 }
0x231a   :  { %v18872_v16 = vpop.f32.mrb[41].mxu0 }
0x231d   :  { %v5165_v49 = vpop.f32.mrb[42].mxu0 }
0x231e   :  { %v18882_v7 = vpop.f32.mrb[43].mxu0  ;;  %v5247_v13 = vsel %vm403_vm2, %v5165_v49, -inf }
0x231f   :  { %5248 = vmax.xlane.f32.xlu1 %v5247_v13 }
0x2377   :  { %v5264_v43 = vpop.xlane.xlu1 %5263 }
0x2378   :  { %20891 = vrcp.f32 %v5264_v43 }
0x237b   :  { %v5672_v48 = vpop.permute.xlu1 %5671 }
0x2382   :  { %v20892_v45 = vpop.eup %20891 }
0x2383   :  { %v5268_v25 = vmul.f32 %v20892_v45, %v20890_v40 }
0x2385   :  { %18896 = vmatmul.mubr.msk.f32.vlgmr.msra.gmra.mrb[62].mxu1 %vm403_vm2, %v5268_v25 }
0x2386   :  { %18909 = vmatpush3.xpose.msk.msra.mxu1 %vm403_vm2, %v5594_v62  ;;  %18910 = vmatprep.mubr.msk.f32.mxu1 %vm21274_vm1, %v22094_v21 }
0x2387   :  { %18913 = vmatprep.subr.mxu1 %v22094_v21 }
0x2389   :  { %18911 = vmatmul.mubr.msk.f32.vlgmr.msra.gmra.mrb[64].mxu1 %vm403_vm2, %v5592_v37 }
0x238a   :  { %18914 = vmatpush3.xpose.msk.msra.mxu1 %vm403_vm2, %v5672_v48  ;;  %18915 = vmatprep.mubr.msk.f32.mxu1 %vm21274_vm1, %v22094_v21 }
0x238b   :  { %18923 = vmatprep.subr.mxu1 %v22094_v21 }
0x238d   :  { %18916 = vmatmul.mubr.msk.f32.vlgmr.msra.gmra.mrb[66].mxu1 %vm403_vm2, %v5670_v55 }
0x238e   :  { %18925 = vmatprep.mubr.msk.f32.mxu1 %vm21274_vm1, %v22094_v21 }
0x23ac   :  { %v5249_v18 = vpop.xlane.xlu1 %5248 }
0x23ad   :  { %v5253_v36 = vsub.f32 %v5165_v49, %v5249_v18 }
0x23af   :  { %v5255_v2 = vmul.f32 1.442695, %v5253_v36 }
0x23b1   :  { %20893 = vpow2.f32 %v5255_v2 }
0x23bb   :  { %v20894_v61 = vpop.eup %20893 }
0x23bc   :  { %v5259_v33 = vsel %vm403_vm2, %v20894_v61, 0.0 }
0x23bd   :  { %5260 = vadd.xlane.f32.xlu0 %v5259_v33 }
0x23d3   :  { %5270 = vrot.lane.b32.xlu0 %v22063_v0, %s21276_s16 }
0x23d7   :  { %5507 = vrot.lane.b32.xlu0 %v21970_v15, %s21278_s18 }
0x23db   :  { %5769 = vrot.lane.b32.xlu0 %v22063_v0, %s21277_s17 }
0x23df   :  { %5845 = vrot.lane.b32.xlu0 %v22061_v46, %s21277_s17 }
0x23e3   :  { %5921 = vrot.lane.b32.xlu0 %v21976_v19, %s21278_s18 }
0x23e7   :  { %6087 = vrot.lane.b32.xlu0 %v22030_v14, %s21279_s19 }
0x23eb   :  { %6085 = vrot.lane.b32.xlu0 %v22038_v58, %s21279_s19 }
0x244a   :  { %v5261_v10 = vpop.xlane.xlu0 %5260 }
0x244b   :  { %20895 = vrcp.f32 %v5261_v10 }
0x244e   :  { %v5271_v23 = vpop.permute.xlu0 %5270 }
0x244f   :  { %18889 = vmatpush3.msra.mxu0 %v5271_v23 }
0x2452   :  { %v5508_v15 = vpop.permute.xlu0 %5507 }
0x2455   :  { %v20896_v63 = vpop.eup %20895 }
0x2456   :  { %v5770_v5 = vpop.permute.xlu0 %5769  ;;  %v5266_v26 = vmul.f32 %v20896_v63, %v20894_v61 }
0x2458   :  { %18891 = vmatmul.mubr.msk.f32.vlgmr.msra.gmra.mrb[44].mxu0 %vm403_vm2, %v5266_v26  ;;  %v5419_v29 = vpop.f32.mrb[62].mxu1 }
0x2459   :  { %v18897_v8 = vpop.f32.mrb[63].mxu1 }
0x245a   :  { %v5846_v54 = vpop.permute.xlu0 %5845 }
0x245b   :  { %18924 = vmatpush3.msra.mxu1 %v5846_v54 }
0x245c   :  { %v5665_v19 = vpop.f32.mrb[64].mxu1  ;;  %18933 = vmatprep.subr.mxu1 %v22094_v21 }
0x245d   :  { %v18912_v14 = vpop.f32.mrb[65].mxu1  ;;  %v5747_v58 = vsel %vm403_vm2, %v5665_v19, -inf }
0x245e   :  { %5748 = vmax.xlane.f32.xlu1 %v5747_v58  ;;  %v5922_v48 = vpop.permute.xlu0 %5921 }
0x2460   :  { %v5743_v35 = vpop.f32.mrb[66].mxu1 }
0x2461   :  { %v18917_v27 = vpop.f32.mrb[67].mxu1  ;;  %v5750_v28 = vsel %vm403_vm2, %v5743_v35, -inf }
0x2462   :  { %5751 = vmax.xlane.f32.xlu1 %v5750_v28  ;;  %v6088_v36 = vpop.permute.xlu0 %6087 }
0x24eb   :  { %v5749_v32 = vpop.xlane.xlu1 %5748 }
0x24ec   :  { %v5753_v47 = vsub.f32 %v5665_v19, %v5749_v32 }
0x24ee   :  { %v5755_v12 = vmul.f32 1.442695, %v5753_v47 }
0x24ef   :  { %v5752_v38 = vpop.xlane.xlu1 %5751 }
0x24f0   :  { %20897 = vpow2.f32 %v5755_v12  ;;  %v5754_v44 = vsub.f32 %v5743_v35, %v5752_v38 }
0x24f2   :  { %v5757_v40 = vmul.f32 1.442695, %v5754_v44 }
0x24f4   :  { %20899 = vpow2.f32 %v5757_v40 }
0x24fa   :  { %v20898_v31 = vpop.eup %20897 }
0x24fb   :  { %v5759_v16 = vsel %vm403_vm2, %v20898_v31, 0.0 }
0x24fc   :  { %5760 = vadd.xlane.f32.xlu1 %v5759_v16 }
0x24fe   :  { %v20900_v49 = vpop.eup %20899 }
0x24ff   :  { %v5762_v7 = vsel %vm403_vm2, %v20900_v49, 0.0 }
0x2500   :  { %5763 = vadd.xlane.f32.xlu1 %v5762_v7 }
0x2511   :  { %5423 = vrot.lane.b32.xlu1 %v21972_v17, %s21278_s18 }
0x2515   :  { %6009 = vrot.lane.b32.xlu1 %v22022_v56, %s21279_s19 }
0x2519   :  { %6007 = vrot.lane.b32.xlu1 %v22027_v11, %s21279_s19 }
0x252b   :  { %v5342_v13 = vpop.f32.mrb[44].mxu0 }
0x252c   :  { %v18892_v62 = vpop.f32.mrb[45].mxu0  ;;  %18900 = vmatprep.mubr.msk.f32.mxu0 %vm403_vm2, %v5342_v13 }
0x2589   :  { %v5761_v43 = vpop.xlane.xlu1 %5760 }
0x258d   :  { %v5764_v45 = vpop.xlane.xlu1 %5763 }
0x258e   :  { %20901 = vrcp.f32 %v5764_v45 }
0x258f   :  { %20903 = vrcp.f32 %v5761_v43 }
0x2591   :  { %v5424_v25 = vpop.permute.xlu1 %5423 }
0x2592   :  { %18898 = vmatprep.subr.mxu0 %v5424_v25 }
0x2593   :  { %18899 = vmatpush3.msra.mxu0 %v5424_v25 }
0x2594   :  { %18901 = vmatmul.mubr.msk.f32.vlgmr.msra.gmra.mrb[46].mxu0 %vm403_vm2, %v5419_v29  ;;  %18903 = vmatprep.subr.mxu0 %v5508_v15 }
0x2595   :  { %18905 = vmatprep.mubr.msk.f32.mxu0 %vm403_vm2, %v22108_v52  ;;  %18904 = vmatpush3.msra.mxu0 %v5508_v15  ;;  %v6010_v56 = vpop.permute.xlu1 %6009  ;;  %v6086_v15 = vpop.permute.xlu0 %6085 }
0x2596   :  { %18918 = vmatprep.subr.mxu0 %v22094_v21 }
0x2598   :  { %v20902_v17 = vpop.eup %20901 }
0x2599   :  { %v5768_v11 = vmul.f32 %v20902_v17, %v20900_v49  ;;  %v20904_v37 = vpop.eup %20903  ;;  %v6008_v52 = vpop.permute.xlu1 %6007 }
0x259a   :  { %v5766_v55 = vmul.f32 %v20904_v37, %v20898_v31 }
0x259b   :  { %18926 = vmatmul.mubr.msk.f32.vlgmr.msra.gmra.mrb[68].mxu1 %vm403_vm2, %v5768_v11 }
0x259c   :  { %18934 = vmatpush3.xpose.msk.msra.mxu1 %vm403_vm2, %v6010_v56  ;;  %18906 = vmatmul.mubr.msk.f32.vlgmr.msra.gmra.mrb[46].mxu0 %vm403_vm2, %v22083_v4 }
0x259d   :  { %18919 = vmatpush3.msra.mxu0 %v5770_v5  ;;  %18935 = vmatprep.mubr.msk.f32.mxu1 %vm21274_vm1, %v22094_v21 }
0x259e   :  { %18920 = vmatprep.mubr.msk.f32.mxu0 %vm21274_vm1, %v22094_v21  ;;  %18928 = vmatprep.subr.mxu0 %v5922_v48 }
0x259f   :  { %18936 = vmatmul.mubr.msk.f32.vlgmr.msra.gmra.mrb[70].mxu1 %vm403_vm2, %v6008_v52  ;;  %18943 = vmatprep.subr.mxu1 %v22094_v21 }
0x25a0   :  { %18921 = vmatmul.mubr.msk.f32.vlgmr.msra.gmra.mrb[48].mxu0 %vm403_vm2, %v5766_v55  ;;  %18945 = vmatprep.mubr.msk.f32.mxu1 %vm21274_vm1, %v22094_v21 }
0x25a1   :  { %18929 = vmatpush3.msra.mxu0 %v5922_v48 }
0x25a2   :  { %18938 = vmatprep.subr.mxu0 %v22094_v21 }
0x266e   :  { %v5917_v4 = vpop.f32.mrb[68].mxu1 }
0x266f   :  { %v18927_v18 = vpop.f32.mrb[69].mxu1 }
0x2672   :  { %v6081_v2 = vpop.f32.mrb[70].mxu1 }
0x2673   :  { %v5841_v61 = vpop.f32.mrb[48].mxu0  ;;  %v18937_v33 = vpop.f32.mrb[71].mxu1  ;;  %v6163_v10 = vsel %vm403_vm2, %v6081_v2, -inf }
0x2674   :  { %v18922_v23 = vpop.f32.mrb[49].mxu0  ;;  %18930 = vmatprep.mubr.msk.f32.mxu0 %vm403_vm2, %v5841_v61  ;;  %6164 = vmax.xlane.f32.xlu1 %v6163_v10  ;;  %v22205_v10 = vld [vmem:[#allocation9 + $0x20] sm:$0xff] }
0x2675   :  { %18931 = vmatmul.mubr.msk.f32.vlgmr.msra.gmra.mrb[46].mxu0 %vm403_vm2, %v5917_v4 }
0x2676   :  { %18939 = vmatpush3.xpose.msk.msra.mxu0 %vm403_vm2, %v6088_v36  ;;  %18940 = vmatprep.mubr.msk.f32.mxu0 %vm21274_vm1, %v22094_v21 }
0x2677   :  { %18948 = vmatprep.subr.mxu0 %v22094_v21 }
0x2679   :  { %18941 = vmatmul.mubr.msk.f32.vlgmr.msra.gmra.mrb[50].mxu0 %vm403_vm2, %v6086_v15  ;;  %v22209_v15 = vld [vmem:[#allocation9 + $0x8] sm:$0xff] }
0x267a   :  { %18950 = vmatprep.mubr.msk.f32.mxu0 %vm21274_vm1, %v22094_v21 }
0x2701   :  { %v6165_v63 = vpop.xlane.xlu1 %6164 }
0x2702   :  { %v6169_v5 = vsub.f32 %v6081_v2, %v6165_v63  ;;  %v22211_v63 = vld [vmem:[#allocation9 + $0x10] sm:$0xff] }
0x2704   :  { %v6171_v26 = vmul.f32 1.442695, %v6169_v5  ;;  %v20525_v5 = vpack.i.bf16 %v22211_v63, %v22209_v15 }
0x2706   :  { %20905 = vpow2.f32 %v6171_v26  ;;  %v19979_v26 = vpack.c.bf16 %v22211_v63, %v22209_v15 }
0x2710   :  { %v20906_v19 = vpop.eup %20905 }
0x2711   :  { %v6175_v14 = vsel %vm403_vm2, %v20906_v19, 0.0 }
0x274c   :  { %v6159_v29 = vpop.f32.mrb[50].mxu0 }
0x274d   :  { %v18942_v8 = vpop.f32.mrb[51].mxu0  ;;  %v6166_v54 = vsel %vm403_vm2, %v6159_v29, -inf }
0x274e   :  { %6167 = vmax.xlane.f32.xlu0 %v6166_v54  ;;  %v22223_v8 = vld [vmem:[#allocation9] ss:$0 sm:$0xff] }
0x2752   :  { %6176 = vadd.xlane.f32.xlu0 %v6175_v14 }
0x2768   :  { %6185 = vrot.lane.b32.xlu0 %v22063_v0, %s21279_s19 }
0x276c   :  { %6423 = vrot.lane.b32.xlu0 %v21992_v30, %s21278_s18 }
0x27db   :  { %v6168_v58 = vpop.xlane.xlu0 %6167 }
0x27dc   :  { %v6170_v35 = vsub.f32 %v6159_v29, %v6168_v58 }
0x27de   :  { %v6173_v27 = vmul.f32 1.442695, %v6170_v35 }
0x27df   :  { %v6177_v28 = vpop.xlane.xlu0 %6176 }
0x27e0   :  { %20907 = vpow2.f32 %v6173_v27 }
0x27e1   :  { %20909 = vrcp.f32 %v6177_v28 }
0x27e3   :  { %v6186_v32 = vpop.permute.xlu0 %6185 }
0x27e4   :  { %18944 = vmatpush3.msra.mxu1 %v6186_v32 }
0x27e5   :  { %19980 = vmatprep.subr.bf16.mxu1 %v19979_v26 }
0x27ea   :  { %v20908_v47 = vpop.eup %20907 }
0x27eb   :  { %v20910_v12 = vpop.eup %20909  ;;  %v6178_v38 = vsel %vm403_vm2, %v20908_v47, 0.0 }
0x27ec   :  { %6179 = vadd.xlane.f32.xlu1 %v6178_v38  ;;  %v6182_v44 = vmul.f32 %v20910_v12, %v20906_v19 }
0x27ee   :  { %18946 = vmatmul.mubr.msk.f32.vlgmr.msra.gmra.mrb[72].mxu1 %vm403_vm2, %v6182_v44 }
0x27ef   :  { %19982 = vmatpush3.bf16.msra.mxu1 %v19979_v26 }
0x27fd   :  { %6261 = vrot.lane.b32.xlu1 %v22061_v46, %s21279_s19 }
0x2801   :  { %6337 = vrot.lane.b32.xlu1 %v21978_v20, %s21278_s18  ;;  %v6424_v20 = vpop.permute.xlu0 %6423 }
0x2879   :  { %v6180_v30 = vpop.xlane.xlu1 %6179 }
0x287a   :  { %20911 = vrcp.f32 %v6180_v30 }
0x287d   :  { %v6262_v0 = vpop.permute.xlu1 %6261 }
0x287e   :  { %18949 = vmatpush3.msra.mxu0 %v6262_v0 }
0x2881   :  { %v6338_v40 = vpop.permute.xlu1 %6337 }
0x2882   :  { %18953 = vmatprep.subr.mxu0 %v6338_v40 }
0x2884   :  { %v20912_v31 = vpop.eup %20911 }
0x2885   :  { %v6184_v16 = vmul.f32 %v20912_v31, %v20908_v47 }
0x2887   :  { %18951 = vmatmul.mubr.msk.f32.vlgmr.msra.gmra.mrb[52].mxu0 %vm403_vm2, %v6184_v16  ;;  %v17574_v16 = vld [vmem:[#allocation9 + $0xa0] ss:$0 sm:$0xff] }
0x2888   :  { %18954 = vmatpush3.msra.mxu0 %v6338_v40 }
0x28c1   :  { %v6257_v49 = vpop.f32.mrb[72].mxu1 }
0x28c2   :  { %v18947_v7 = vpop.f32.mrb[73].mxu1  ;;  %18955 = vmatprep.mubr.msk.f32.mxu0 %vm403_vm2, %v6257_v49 }
0x295a   :  { %v6333_v13 = vpop.f32.mrb[52].mxu0 }
0x295b   :  { %v18952_v46 = vpop.f32.mrb[53].mxu0  ;;  %18956 = vmatmul.mubr.msk.f32.vlgmr.msra.gmra.mrb[46].mxu0 %vm403_vm2, %v6333_v13 }
0x295c   :  { %18977 = vmatprep.mubr.msk.f32.mxu0 %vm128_vm0, %v21693_v41 }
0x2a2e   :  { %v18957_v62 = vpop.f32.mrb[46].mxu0 }
0x2a2f   :  { %v6427_v43 = vadd.f32 %v18957_v62, %v6424_v20  ;;  %v6412_v45 = vpop.f32.mrb[47].mxu0 }
0x2a30   :  { %v6426_v25 = vadd.f32 %v6424_v20, %v6412_v45  ;;  %v17575_v20 = vld [vmem:[#allocation9 + $0x98] ss:$0 sm:$0xff] }
0x2a31   :  { %v6429_v17 = vadd.f32 %v6427_v43, %v22006_v60 }
0x2a32   :  { %v6428_v56 = vadd.f32 %v6426_v25, %v21988_v1  ;;  %v22203_v1 = vld [vmem:[#allocation9 + $0x18] sm:$0xff] }
0x2a33   :  { %v6435_v11 = vsel %vm128_vm0, %v6429_v17, 0.0  ;;  %v20530_v23 = vpack.i.bf16 %v22205_v10, %v22203_v1  ;;  %v19983_v29 = vpack.c.bf16 %v22205_v10, %v22203_v1 }
0x2a34   :  { %6436 = vadd.xlane.f32.xlu0 %v6435_v11  ;;  %v6432_v37 = vsel %vm128_vm0, %v6428_v56, 0.0 }
0x2a35   :  { %6433 = vadd.xlane.f32.xlu1 %v6432_v37  ;;  %19984 = vmatprep.subr.bf16.mxu1 %v19983_v29 }
0x2a36   :  { %19986 = vmatpush3.bf16.msra.mxu1 %v19983_v29 }
0x2ac1   :  { %v6437_v48 = vpop.xlane.xlu0 %6436 }
0x2ac2   :  { %v6439_v52 = vmul.f32 0.03125, %v6437_v48  ;;  %v6434_v55 = vpop.xlane.xlu1 %6433 }
0x2ac3   :  { %v6438_v4 = vmul.f32 0.03125, %v6434_v55 }
0x2ac4   :  { %v6441_v18 = vsub.f32 %v6429_v17, %v6439_v52 }
0x2ac5   :  { %v6440_v36 = vsub.f32 %v6428_v56, %v6438_v4 }
0x2ac6   :  { %v6443_v2 = vmul.f32 %v6441_v18, %v6441_v18 }
0x2ac7   :  { %v6442_v61 = vmul.f32 %v6440_v36, %v6440_v36 }
0x2ac8   :  { %v6447_v33 = vsel %vm128_vm0, %v6443_v2, 0.0  ;;  %v21131_v2 = vld [vmem:[%s23629_s0 + $0x10] sm:$0xff] }
0x2ac9   :  { %6448 = vadd.xlane.f32.xlu1 %v6447_v33  ;;  %v6444_v60 = vsel %vm128_vm0, %v6442_v61, 0.0  ;;  %v21132_v61 = vld [vmem:[%s23629_s0 + $0x18] sm:$0xff] }
0x2aca   :  { %6445 = vadd.xlane.f32.xlu0 %v6444_v60 }
0x2ada   :  { %20531 = vrot.lane.b32.xlu1 %v20530_v23, %s21272_s5 }
0x2ade   :  { %20536 = vrot.lane.b32.xlu1 %v20525_v5, %s21275_s15 }
0x2ae0   :  { %20526 = vrot.lane.b32.xlu0 %v20525_v5, %s21272_s5 }
0x2ae2   :  { %6579 = vrot.lane.b32.xlu1 %v22223_v8, %s21272_s5 }
0x2ae4   :  { %20541 = vrot.lane.b32.xlu0 %v20530_v23, %s21275_s15 }
0x2b56   :  { %v6449_v54 = vpop.xlane.xlu1 %6448 }
0x2b57   :  { %v6451_v19 = vmul.f32 0.03125, %v6449_v54  ;;  %v6446_v14 = vpop.xlane.xlu0 %6445 }
0x2b58   :  { %v6450_v58 = vmul.f32 0.03125, %v6446_v14 }
0x2b59   :  { %v6453_v35 = vadd.f32 1e-05, %v6451_v19 }
0x2b5a   :  { %v6452_v27 = vadd.f32 1e-05, %v6450_v58  ;;  %v20532_v28 = vpop.permute.xlu1 %20531 }
0x2b5b   :  { %20913 = vrsqrt.f32 %v6453_v35  ;;  %v20527_v32 = vpop.permute.xlu0 %20526  ;;  %v20534_v47 = vunpack.i.h.bf16 %v20532_v28  ;;  %v20533_v12 = vunpack.i.l.bf16 %v20532_v28 }
0x2b5c   :  { %20915 = vrsqrt.f32 %v6452_v27  ;;  %v20529_v38 = vunpack.i.h.bf16 %v20527_v32  ;;  %v20528_v44 = vunpack.i.l.bf16 %v20527_v32 }
0x2b5d   :  { %v19991_v0 = vpack.c.bf16 %v20534_v47, %v20533_v12 }
0x2b5e   :  { %v19987_v30 = vpack.c.bf16 %v20529_v38, %v20528_v44  ;;  %v20537_v40 = vpop.permute.xlu1 %20536 }
0x2b5f   :  { %v20539_v49 = vunpack.i.h.bf16 %v20537_v40  ;;  %v20538_v7 = vunpack.i.l.bf16 %v20537_v40  ;;  %v20542_v43 = vpop.permute.xlu0 %20541 }
0x2b60   :  { %19988 = vmatprep.subr.bf16.mxu0 %v19987_v30  ;;  %v20544_v11 = vunpack.i.h.bf16 %v20542_v43  ;;  %v20543_v37 = vunpack.i.l.bf16 %v20542_v43 }
0x2b61   :  { %19990 = vmatpush3.bf16.msra.mxu0 %v19987_v30  ;;  %v19995_v45 = vpack.c.bf16 %v20539_v49, %v20538_v7 }
0x2b62   :  { %19992 = vmatprep.subr.bf16.mxu0 %v19991_v0  ;;  %v19999_v4 = vpack.c.bf16 %v20544_v11, %v20543_v37  ;;  %v6580_v33 = vpop.permute.xlu1 %6579 }
0x2b63   :  { %19996 = vmatprep.subr.bf16.mxu1 %v19995_v45 }
0x2b65   :  { %v20914_v31 = vpop.eup %20913  ;;  %19994 = vmatpush3.bf16.msra.mxu0 %v19991_v0 }
0x2b66   :  { %v20916_v13 = vpop.eup %20915  ;;  %v6457_v46 = vmul.f32 %v20914_v31, %v6441_v18  ;;  %20003 = vmatprep.subr.bf16.mxu0 %v21280_v6  ;;  %v21129_v18 = vld [vmem:[%s23629_s0] sm:$0xff] }
0x2b67   :  { %v6456_v62 = vmul.f32 %v20916_v13, %v6440_v36  ;;  %v21130_v36 = vld [vmem:[%s23629_s0 + $0x8] sm:$0xff] }
0x2b68   :  { %18978 = vmatmul.mubr.msk.f32.vlgmr.msra.gmra.mrb[54].mxu0 %vm128_vm0, %v21713_v34  ;;  %v6463_v25 = vmul.f32 %v17574_v16, %v6457_v46 }
0x2b69   :  { %18980 = vmatprep.mubr.msk.f32.mxu0 %vm128_vm0, %v21715_v3  ;;  %v6462_v17 = vmul.f32 %v17574_v16, %v6456_v62 }
0x2b6a   :  { %v22232_v56 = vadd.f32 %v17575_v20, %v6463_v25 }
0x2b6b   :  { %v22234_v48 = vadd.f32 %v17575_v20, %v6462_v17 }
0x2b6c   :  { %18981 = vmatmul.mubr.msk.f32.gmra.mrb[56].mxu0 %vm128_vm0, %v21724_v22  ;;  %v6471_v55 = vadd.f32 %v22232_v56, %v22001_v51 }
0x2b6d   :  { %v6470_v52 = vadd.f32 %v22234_v48, %v22004_v57  ;;  %19001 = vmatprep.mubr.msk.f32.mxu0 %vm21274_vm1, %v22094_v21 }
0x2b6f   :  { %18966 = vmatprep.mubr.msk.f32.mxu1 %vm128_vm0, %v6470_v52 }
0x2b70   :  { %18967 = vmatmul.mubr.msk.f32.vlgmr.msra.gmra.mrb[74].mxu1 %vm128_vm0, %v6471_v55 }
0x2b71   :  { %19998 = vmatpush3.bf16.msra.mxu1 %v19995_v45  ;;  %18991 = vmatprep.mubr.msk.f32.mxu1 %vm128_vm0, %v21129_v18 }
0x2b72   :  { %20000 = vmatprep.subr.bf16.mxu1 %v19999_v4 }
0x2b75   :  { %20002 = vmatpush3.bf16.msra.mxu1 %v19999_v4 }
0x2b76   :  { %20007 = vmatprep.subr.bf16.mxu1 %v21280_v6 }
0x2b78   :  { %18992 = vmatmul.mubr.msk.f32.vlgmr.msra.gmra.mrb[76].mxu1 %vm128_vm0, %v21130_v36 }
0x2b79   :  { %18994 = vmatprep.mubr.msk.f32.mxu1 %vm128_vm0, %v21131_v2 }
0x2b7c   :  { %18995 = vmatmul.mubr.msk.f32.gmra.mrb[78].mxu1 %vm128_vm0, %v21132_v61 }
0x2b7d   :  { %19008 = vmatprep.mubr.msk.f32.mxu1 %vm21274_vm1, %v22094_v21 }
0x2c3b   :  { %v18979_v60 = vpop.f32.mrb[54].mxu0 }
0x2c3c   :  { %v6654_v23 = vadd.f32 %v18979_v60, %v6580_v33  ;;  %v6648_v5 = vpop.f32.mrb[55].mxu0 }
0x2c3d   :  { %v6649_v26 = vadd.f32 %v6648_v5, %v6580_v33 }
0x2c3f   :  { %v20004_v29 = vpack.c.bf16 %v6654_v23, %v6649_v26  ;;  %v18982_v54 = vpop.f32.mrb[56].mxu0  ;;  %v22265_v19 = vpack.i.bf16 %v6654_v23, %v6649_v26 }
0x2c40   :  { %v6664_v14 = vadd.f32 %v18982_v54, %v6580_v33  ;;  %v6658_v58 = vpop.f32.mrb[57].mxu0 }
0x2c41   :  { %v6659_v35 = vadd.f32 %v6658_v58, %v6580_v33  ;;  %20006 = vmatpush3.bf16.xpose.msk.msra.mxu0 %vm21753_vm3, %v20004_v29 }
0x2c42   :  { %20011 = vmatprep.subr.bf16.mxu0 %v21280_v6 }
0x2c43   :  { %v20008_v27 = vpack.c.bf16 %v6664_v14, %v6659_v35  ;;  %v18968_v28 = vpop.f32.mrb[74].mxu1  ;;  %v22270_v32 = vpack.i.bf16 %v6664_v14, %v6659_v35 }
0x2c44   :  { %v6553_v47 = vpop.f32.mrb[75].mxu1  ;;  %v6559_v38 = vadd.f32 %v18968_v28, %v22223_v8 }
0x2c45   :  { %v6554_v12 = vadd.f32 %v22223_v8, %v6553_v47  ;;  %20010 = vmatpush3.bf16.xpose.msk.msra.mxu1 %vm21753_vm3, %v20008_v27 }
0x2c46   :  { %20014 = vmatprep.subr.bf16.mxu1 %v21280_v6  ;;  %v22281_v30 = vmul.f32 0.35355338, %v6559_v38 }
0x2c47   :  { %v22277_v44 = vmul.f32 0.35355338, %v6554_v12 }
0x2c49   :  { %19002 = vmatmul.mubr.msk.f32.vlgmr.msra.gmra.mrb[58].mxu0 %vm403_vm2, %v22277_v44 }
0x2c4a   :  { %19015 = vmatprep.mubr.msk.f32.mxu0 %vm21274_vm1, %v22094_v21 }
0x2c4b   :  { %v18993_v0 = vpop.f32.mrb[76].mxu1 }
0x2c4c   :  { %19009 = vmatmul.mubr.msk.f32.vlgmr.msra.gmra.mrb[80].mxu1 %vm403_vm2, %v22281_v30  ;;  %v6748_v40 = vpop.f32.mrb[77].mxu1 }
0x2c4d   :  { %19022 = vmatprep.mubr.msk.f32.mxu1 %vm21274_vm1, %v22094_v21 }
0x2c4f   :  { %v18996_v31 = vpop.f32.mrb[78].mxu1 }
0x2c50   :  { %v6758_v16 = vpop.f32.mrb[79].mxu1 }
0x2d1c   :  { %v6844_v49 = vpop.f32.mrb[58].mxu0 }
0x2d1d   :  { %v19003_v7 = vpop.f32.mrb[59].mxu0  ;;  %v6927_v13 = vsel %vm2593_vm4, %v6844_v49, -inf }
0x2d1e   :  { %6928 = vmax.xlane.f32.xlu0 %v6927_v13 }
0x2d1f   :  { %v6923_v46 = vpop.f32.mrb[80].mxu1 }
0x2d20   :  { %v19010_v20 = vpop.f32.mrb[81].mxu1  ;;  %v6930_v62 = vsel %vm2593_vm4, %v6923_v46, -inf }
0x2d21   :  { %6931 = vmax.xlane.f32.xlu1 %v6930_v62 }
0x2d32   :  { %6679 = vrot.lane.b32.xlu1 %v22223_v8, %s21275_s15 }
0x2d36   :  { %20551 = vrot.lane.b32.xlu1 %v22270_v32, %s21276_s16 }
0x2d3a   :  { %7095 = vrot.lane.b32.xlu1 %v22277_v44, %s21276_s16 }
0x2dab   :  { %v6929_v43 = vpop.xlane.xlu0 %6928 }
0x2dac   :  { %v6933_v45 = vsub.f32 %v6844_v49, %v6929_v43 }
0x2dae   :  { %v6932_v25 = vpop.xlane.xlu1 %6931  ;;  %v6935_v11 = vmul.f32 1.442695, %v6933_v45 }
0x2daf   :  { %v6934_v17 = vsub.f32 %v6923_v46, %v6932_v25 }
0x2db1   :  { %v6937_v37 = vmul.f32 1.442695, %v6934_v17 }
0x2db2   :  { %v6680_v52 = vpop.permute.xlu1 %6679 }
0x2db3   :  { %20917 = vpow2.f32 %v6937_v37  ;;  %v6749_v55 = vadd.f32 %v6748_v40, %v6680_v52  ;;  %v6754_v4 = vadd.f32 %v18993_v0, %v6680_v52  ;;  %v6759_v18 = vadd.f32 %v6758_v16, %v6680_v52 }
0x2db4   :  { %20919 = vpow2.f32 %v6935_v11  ;;  %v6764_v36 = vadd.f32 %v18996_v31, %v6680_v52 }
0x2db5   :  { %v20012_v2 = vpack.c.bf16 %v6754_v4, %v6749_v55  ;;  %v22297_v61 = vpack.i.bf16 %v6754_v4, %v6749_v55 }
0x2db6   :  { %v20015_v33 = vpack.c.bf16 %v6764_v36, %v6759_v18  ;;  %v22299_v60 = vpack.i.bf16 %v6764_v36, %v6759_v18  ;;  %v20552_v58 = vpop.permute.xlu1 %20551 }
0x2db7   :  { %20013 = vmatpush3.bf16.msra.mxu0 %v20012_v2  ;;  %v20554_v35 = vunpack.i.h.bf16 %v20552_v58  ;;  %v20553_v27 = vunpack.i.l.bf16 %v20552_v58 }
0x2db8   :  { %20016 = vmatpush3.bf16.msra.mxu1 %v20015_v33  ;;  %20017 = vmatprep.subr.bf16.mxu0 %v21280_v6 }
0x2db9   :  { %20021 = vmatprep.subr.bf16.mxu1 %v21280_v6  ;;  %v20022_v38 = vpack.c.bf16 %v20554_v35, %v20553_v27 }
0x2dba   :  { %v7096_v13 = vpop.permute.xlu1 %7095 }
0x2dbd   :  { %v20918_v23 = vpop.eup %20917 }
0x2dbe   :  { %v20920_v5 = vpop.eup %20919  ;;  %v6942_v26 = vsel %vm2593_vm4, %v20918_v23, 0.0 }
0x2dbf   :  { %6943 = vadd.xlane.f32.xlu0 %v6942_v26  ;;  %v6939_v29 = vsel %vm2593_vm4, %v20920_v5, 0.0 }
0x2dc3   :  { %6940 = vadd.xlane.f32.xlu0 %v6939_v29 }
0x2dd9   :  { %20546 = vrot.lane.b32.xlu0 %v22265_v19, %s21276_s16 }
0x2ddd   :  { %7177 = vrot.lane.b32.xlu0 %v22281_v30, %s21276_s16 }
0x2e4c   :  { %v6944_v54 = vpop.xlane.xlu0 %6943 }
0x2e4d   :  { %20921 = vrcp.f32 %v6944_v54 }
0x2e50   :  { %v6941_v14 = vpop.xlane.xlu0 %6940 }
0x2e51   :  { %20923 = vrcp.f32 %v6941_v14 }
0x2e54   :  { %v20547_v28 = vpop.permute.xlu0 %20546 }
0x2e55   :  { %v20549_v0 = vunpack.i.h.bf16 %v20547_v28  ;;  %v20548_v40 = vunpack.i.l.bf16 %v20547_v28 }
0x2e57   :  { %v20922_v47 = vpop.eup %20921  ;;  %v20018_v49 = vpack.c.bf16 %v20549_v0, %v20548_v40 }
0x2e58   :  { %v6948_v12 = vmul.f32 %v20922_v47, %v20918_v23  ;;  %v7178_v7 = vpop.permute.xlu0 %7177 }
0x2e5a   :  { %19023 = vmatmul.mubr.msk.f32.vlgmr.msra.gmra.mrb[82].mxu1 %vm2593_vm4, %v6948_v12 }
0x2e5b   :  { %v20924_v31 = vpop.eup %20923  ;;  %20024 = vmatpush3.bf16.xpose.msk.msra.mxu1 %vm21753_vm3, %v20022_v38  ;;  %19036 = vmatprep.mubr.msk.f32.mxu1 %vm21274_vm1, %v22094_v21 }
0x2e5c   :  { %v6946_v16 = vmul.f32 %v20924_v31, %v20920_v5  ;;  %20028 = vmatprep.subr.bf16.mxu1 %v21280_v6 }
0x2e5e   :  { %19016 = vmatmul.mubr.msk.f32.vlgmr.msra.gmra.mrb[60].mxu0 %vm2593_vm4, %v6946_v16 }
0x2e5f   :  { %20020 = vmatpush3.bf16.xpose.msk.msra.mxu0 %vm21753_vm3, %v20018_v49  ;;  %19029 = vmatprep.mubr.msk.f32.mxu0 %vm21274_vm1, %v22094_v21 }
0x2e60   :  { %20025 = vmatprep.subr.bf16.mxu0 %v21280_v6 }
0x2e62   :  { %19037 = vmatmul.mubr.msk.f32.vlgmr.msra.gmra.mrb[84].mxu1 %vm403_vm2, %v7178_v7 }
0x2e63   :  { %19050 = vmatprep.mubr.msk.f32.mxu1 %vm21274_vm1, %v22094_v21 }
0x2e66   :  { %19030 = vmatmul.mubr.msk.f32.vlgmr.msra.gmra.mrb[62].mxu0 %vm403_vm2, %v7096_v13 }
0x2e67   :  { %19043 = vmatprep.mubr.msk.f32.mxu0 %vm21274_vm1, %v22094_v21 }
0x2f2d   :  { %v22327_v46 = vpop.f32.mrb[82].mxu1 }
0x2f2e   :  { %v19024_v20 = vpop.f32.mrb[83].mxu1 }
0x2f31   :  { %v22329_v62 = vpop.f32.mrb[60].mxu0 }
0x2f32   :  { %v19017_v43 = vpop.f32.mrb[61].mxu0 }
0x2f35   :  { %v7255_v45 = vpop.f32.mrb[84].mxu1 }
0x2f36   :  { %v19038_v25 = vpop.f32.mrb[85].mxu1  ;;  %v7262_v17 = vsel %vm2593_vm4, %v7255_v45, -inf }
0x2f37   :  { %7263 = vmax.xlane.f32.xlu0 %v7262_v17 }
0x2f39   :  { %v7173_v11 = vpop.f32.mrb[62].mxu0 }
0x2f3a   :  { %v19031_v37 = vpop.f32.mrb[63].mxu0  ;;  %v7259_v52 = vsel %vm2593_vm4, %v7173_v11, -inf }
0x2f3b   :  { %7260 = vmax.xlane.f32.xlu1 %v7259_v52 }
0x2fc4   :  { %v7264_v55 = vpop.xlane.xlu0 %7263 }
0x2fc5   :  { %v7266_v4 = vsub.f32 %v7255_v45, %v7264_v55 }
0x2fc7   :  { %v7269_v18 = vmul.f32 1.442695, %v7266_v4 }
0x2fc8   :  { %v7261_v36 = vpop.xlane.xlu1 %7260 }
0x2fc9   :  { %20925 = vpow2.f32 %v7269_v18  ;;  %v7265_v2 = vsub.f32 %v7173_v11, %v7261_v36 }
0x2fcb   :  { %v7267_v33 = vmul.f32 1.442695, %v7265_v2 }
0x2fcd   :  { %20927 = vpow2.f32 %v7267_v33 }
0x2fd3   :  { %v20926_v23 = vpop.eup %20925 }
0x2fd4   :  { %v7274_v5 = vsel %vm2593_vm4, %v20926_v23, 0.0 }
0x2fd5   :  { %7275 = vadd.xlane.f32.xlu1 %v7274_v5 }
0x2fd7   :  { %v20928_v26 = vpop.eup %20927 }
0x2fd8   :  { %v7271_v29 = vsel %vm2593_vm4, %v20928_v26, 0.0 }
0x2fd9   :  { %7272 = vadd.xlane.f32.xlu0 %v7271_v29 }
0x2fe6   :  { %20561 = vrot.lane.b32.xlu1 %v22299_v60, %s21276_s16 }
0x2fea   :  { %7443 = vrot.lane.b32.xlu1 %v22211_v63, %s21278_s18 }
0x2fee   :  { %20566 = vrot.lane.b32.xlu1 %v22265_v19, %s21277_s17 }
0x2fef   :  { %20556 = vrot.lane.b32.xlu0 %v22297_v61, %s21276_s16 }
0x2ff2   :  { %7611 = vrot.lane.b32.xlu1 %v22277_v44, %s21277_s17 }
0x2ff3   :  { %7527 = vrot.lane.b32.xlu0 %v22209_v15, %s21278_s18 }
0x2ff7   :  { %20571 = vrot.lane.b32.xlu0 %v22270_v32, %s21277_s17 }
0x2ffb   :  { %7693 = vrot.lane.b32.xlu0 %v22281_v30, %s21277_s17 }
0x3062   :  { %v7276_v54 = vpop.xlane.xlu1 %7275 }
0x3063   :  { %20929 = vrcp.f32 %v7276_v54 }
0x3066   :  { %v7273_v63 = vpop.xlane.xlu0 %7272  ;;  %v20562_v14 = vpop.permute.xlu1 %20561 }
0x3067   :  { %20931 = vrcp.f32 %v7273_v63  ;;  %v20564_v58 = vunpack.i.h.bf16 %v20562_v14  ;;  %v20563_v35 = vunpack.i.l.bf16 %v20562_v14 }
0x3069   :  { %v20029_v27 = vpack.c.bf16 %v20564_v58, %v20563_v35 }
0x306a   :  { %v20557_v28 = vpop.permute.xlu0 %20556  ;;  %v7444_v47 = vpop.permute.xlu1 %7443 }
0x306b   :  { %v20559_v12 = vunpack.i.h.bf16 %v20557_v28  ;;  %v20558_v38 = vunpack.i.l.bf16 %v20557_v28  ;;  %20030 = vmatpush3.bf16.msra.mxu1 %v20029_v27 }
0x306c   :  { %20031 = vmatprep.subr.bf16.mxu1 %v21280_v6 }
0x306d   :  { %v20930_v15 = vpop.eup %20929  ;;  %v20026_v0 = vpack.c.bf16 %v20559_v12, %v20558_v38 }
0x306e   :  { %v20567_v40 = vpop.permute.xlu1 %20566  ;;  %v7280_v31 = vmul.f32 %v20930_v15, %v20926_v23  ;;  %v7528_v43 = vpop.permute.xlu0 %7527 }
0x306f   :  { %v20569_v16 = vunpack.i.h.bf16 %v20567_v40  ;;  %v20568_v49 = vunpack.i.l.bf16 %v20567_v40  ;;  %20027 = vmatpush3.bf16.msra.mxu0 %v20026_v0 }
0x3070   :  { %19051 = vmatmul.mubr.msk.f32.vlgmr.msra.gmra.mrb[86].mxu1 %vm2593_vm4, %v7280_v31  ;;  %19053 = vmatprep.subr.mxu0 %v7444_v47 }
0x3071   :  { %v20932_v7 = vpop.eup %20931  ;;  %v20032_v13 = vpack.c.bf16 %v20569_v16, %v20568_v49  ;;  %19067 = vmatprep.mubr.msk.f32.mxu1 %vm21274_vm1, %v22094_v21 }
0x3072   :  { %v7278_v20 = vmul.f32 %v20932_v7, %v20928_v26  ;;  %v7612_v45 = vpop.permute.xlu1 %7611  ;;  %v20572_v52 = vpop.permute.xlu0 %20571 }
0x3073   :  { %v20574_v55 = vunpack.i.h.bf16 %v20572_v52  ;;  %v20573_v4 = vunpack.i.l.bf16 %v20572_v52 }
0x3074   :  { %19044 = vmatmul.mubr.msk.f32.vlgmr.msra.gmra.mrb[64].mxu0 %vm2593_vm4, %v7278_v20  ;;  %20034 = vmatpush3.bf16.xpose.msk.msra.mxu1 %vm21753_vm3, %v20032_v13 }
0x3075   :  { %19054 = vmatpush3.msra.mxu0 %v7444_v47  ;;  %20039 = vmatprep.subr.bf16.mxu1 %v21280_v6  ;;  %v20036_v33 = vpack.c.bf16 %v20574_v55, %v20573_v4 }
0x3076   :  { %19058 = vmatprep.subr.mxu0 %v7528_v43 }
0x307b   :  { %19068 = vmatmul.mubr.msk.f32.vlgmr.msra.gmra.mrb[88].mxu1 %vm403_vm2, %v7612_v45 }
0x307c   :  { %19081 = vmatprep.mubr.msk.f32.mxu1 %vm21274_vm1, %v22094_v21 }
0x3143   :  { %v7439_v25 = vpop.f32.mrb[86].mxu1 }
0x3144   :  { %v19052_v17 = vpop.f32.mrb[87].mxu1 }
0x3147   :  { %v7358_v11 = vpop.f32.mrb[64].mxu0 }
0x3148   :  { %v19045_v37 = vpop.f32.mrb[65].mxu0  ;;  %19055 = vmatprep.mubr.msk.f32.mxu0 %vm403_vm2, %v7358_v11 }
0x3149   :  { %19056 = vmatmul.mubr.msk.f32.vlgmr.msra.gmra.mrb[66].mxu0 %vm403_vm2, %v7439_v25 }
0x314a   :  { %19059 = vmatpush3.msra.mxu0 %v7528_v43  ;;  %19060 = vmatprep.mubr.msk.f32.mxu0 %vm403_vm2, %v22329_v62  ;;  %v7694_v62 = vpop.permute.xlu0 %7693 }
0x314b   :  { %20035 = vmatprep.subr.bf16.mxu0 %v21280_v6 }
0x314e   :  { %v7689_v18 = vpop.f32.mrb[88].mxu1 }
0x314f   :  { %v19069_v36 = vpop.f32.mrb[89].mxu1  ;;  %v7775_v2 = vsel %vm2593_vm4, %v7689_v18, -inf }
0x3150   :  { %7776 = vmax.xlane.f32.xlu1 %v7775_v2 }
0x3151   :  { %19061 = vmatmul.mubr.msk.f32.vlgmr.msra.gmra.mrb[66].mxu0 %vm403_vm2, %v22327_v46 }
0x3152   :  { %20038 = vmatpush3.bf16.xpose.msk.msra.mxu0 %vm21753_vm3, %v20036_v33  ;;  %19074 = vmatprep.mubr.msk.f32.mxu0 %vm21274_vm1, %v22094_v21 }
0x3159   :  { %19075 = vmatmul.mubr.msk.f32.vlgmr.msra.gmra.mrb[68].mxu0 %vm403_vm2, %v7694_v62 }
0x31dd   :  { %v7777_v23 = vpop.xlane.xlu1 %7776 }
0x31de   :  { %v7781_v5 = vsub.f32 %v7689_v18, %v7777_v23 }
0x31e0   :  { %v7783_v26 = vmul.f32 1.442695, %v7781_v5 }
0x31e2   :  { %20933 = vpow2.f32 %v7783_v26 }
0x31ec   :  { %v20934_v14 = vpop.eup %20933 }
0x31ed   :  { %v7787_v46 = vsel %vm2593_vm4, %v20934_v14, 0.0 }
0x322c   :  { %v7771_v29 = vpop.f32.mrb[68].mxu0 }
0x322d   :  { %v19076_v54 = vpop.f32.mrb[69].mxu0  ;;  %v7778_v63 = vsel %vm2593_vm4, %v7771_v29, -inf }
0x322e   :  { %7779 = vmax.xlane.f32.xlu0 %v7778_v63 }
0x3232   :  { %7788 = vadd.xlane.f32.xlu0 %v7787_v46 }
0x3248   :  { %20576 = vrot.lane.b32.xlu0 %v22297_v61, %s21277_s17 }
0x324c   :  { %20586 = vrot.lane.b32.xlu0 %v22265_v19, %s21279_s19 }
0x3250   :  { %8041 = vrot.lane.b32.xlu0 %v22277_v44, %s21279_s19  ;;  %v22389_v44 = vld [vmem:[%s23635_s6] sm:$0xff] }
0x32bb   :  { %v7780_v21 = vpop.xlane.xlu0 %7779 }
0x32bc   :  { %v7782_v58 = vsub.f32 %v7771_v29, %v7780_v21 }
0x32be   :  { %v7785_v35 = vmul.f32 1.442695, %v7782_v58 }
0x32bf   :  { %v7789_v27 = vpop.xlane.xlu0 %7788 }
0x32c0   :  { %20935 = vpow2.f32 %v7785_v35 }
0x32c1   :  { %20937 = vrcp.f32 %v7789_v27 }
0x32c3   :  { %v20577_v28 = vpop.permute.xlu0 %20576 }
0x32c4   :  { %v20579_v47 = vunpack.i.h.bf16 %v20577_v28  ;;  %v20578_v12 = vunpack.i.l.bf16 %v20577_v28 }
0x32c6   :  { %v20040_v38 = vpack.c.bf16 %v20579_v47, %v20578_v12 }
0x32c7   :  { %v20587_v43 = vpop.permute.xlu0 %20586 }
0x32c8   :  { %20041 = vmatpush3.bf16.msra.mxu1 %v20040_v38  ;;  %v20588_v45 = vunpack.i.l.bf16 %v20587_v43 }
0x32c9   :  { %20042 = vmatprep.subr.bf16.mxu1 %v21280_v6 }
0x32ca   :  { %v20936_v15 = vpop.eup %20935 }
0x32cb   :  { %v20938_v0 = vpop.eup %20937  ;;  %v7790_v19 = vsel %vm2593_vm4, %v20936_v15, 0.0  ;;  %v8042_v17 = vpop.permute.xlu0 %8041 }
0x32cc   :  { %7791 = vadd.xlane.f32.xlu1 %v7790_v19  ;;  %v7794_v40 = vmul.f32 %v20938_v0, %v20934_v14 }
0x32ce   :  { %19082 = vmatmul.mubr.msk.f32.vlgmr.msra.gmra.mrb[90].mxu1 %vm2593_vm4, %v7794_v40 }
0x32cf   :  { %19088 = vmatprep.mubr.msk.f32.mxu1 %vm21274_vm1, %v22389_v44 }
0x32dd   :  { %20581 = vrot.lane.b32.xlu1 %v22299_v60, %s21277_s17 }
0x32e1   :  { %7955 = vrot.lane.b32.xlu1 %v22203_v1, %s21278_s18 }
0x32e5   :  { %20591 = vrot.lane.b32.xlu1 %v22270_v32, %s21279_s19  ;;  %v20589_v32 = vunpack.i.h.bf16 %v20587_v43 }
0x32e9   :  { %8123 = vrot.lane.b32.xlu1 %v22281_v30, %s21279_s19  ;;  %v20046_v30 = vpack.c.bf16 %v20589_v32, %v20588_v45 }
0x3359   :  { %v7792_v31 = vpop.xlane.xlu1 %7791 }
0x335a   :  { %20939 = vrcp.f32 %v7792_v31 }
0x335d   :  { %v20582_v16 = vpop.permute.xlu1 %20581 }
0x335e   :  { %v20584_v49 = vunpack.i.h.bf16 %v20582_v16  ;;  %v20583_v7 = vunpack.i.l.bf16 %v20582_v16 }
0x3360   :  { %v20043_v13 = vpack.c.bf16 %v20584_v49, %v20583_v7 }
0x3361   :  { %v7956_v20 = vpop.permute.xlu1 %7955 }
0x3362   :  { %20044 = vmatpush3.bf16.msra.mxu1 %v20043_v13  ;;  %19091 = vmatprep.subr.mxu0 %v7956_v20 }
0x3363   :  { %20045 = vmatprep.subr.bf16.mxu1 %v21280_v6  ;;  %19092 = vmatpush3.msra.mxu0 %v7956_v20 }
0x3364   :  { %v20940_v1 = vpop.eup %20939  ;;  %20049 = vmatprep.subr.bf16.mxu0 %v21280_v6 }
0x3365   :  { %v7796_v25 = vmul.f32 %v20940_v1, %v20936_v15  ;;  %v20592_v52 = vpop.permute.xlu1 %20591 }
0x3366   :  { %v20594_v55 = vunpack.i.h.bf16 %v20592_v52  ;;  %v20593_v4 = vunpack.i.l.bf16 %v20592_v52 }
0x3367   :  { %19089 = vmatmul.mubr.msk.f32.vlgmr.msra.gmra.mrb[92].mxu1 %vm2593_vm4, %v7796_v25 }
0x3368   :  { %19100 = vmatprep.mubr.msk.f32.mxu1 %vm21274_vm1, %v22389_v44  ;;  %v20050_v18 = vpack.c.bf16 %v20594_v55, %v20593_v4 }
0x3369   :  { %v8124_v33 = vpop.permute.xlu1 %8123 }
0x336b   :  { %20048 = vmatpush3.bf16.xpose.msk.msra.mxu1 %vm21753_vm3, %v20046_v30 }
0x336c   :  { %20053 = vmatprep.subr.bf16.mxu1 %v21280_v6 }
0x3372   :  { %19101 = vmatmul.mubr.msk.f32.vlgmr.msra.gmra.mrb[94].mxu1 %vm403_vm2, %v8042_v17 }
0x3373   :  { %19114 = vmatprep.mubr.msk.f32.mxu1 %vm21274_vm1, %v22389_v44 }
0x33a1   :  { %v7872_v11 = vpop.f32.mrb[90].mxu1 }
0x33a2   :  { %v19083_v37 = vpop.f32.mrb[91].mxu1  ;;  %19093 = vmatprep.mubr.msk.f32.mxu0 %vm403_vm2, %v7872_v11 }
0x343a   :  { %v7951_v36 = vpop.f32.mrb[92].mxu1 }
0x343b   :  { %v19090_v2 = vpop.f32.mrb[93].mxu1  ;;  %19094 = vmatmul.mubr.msk.f32.vlgmr.msra.gmra.mrb[66].mxu0 %vm403_vm2, %v7951_v36  ;;  %v22442_v36 = vld [vmem:[#allocation9 + $0x3b0] sm:$0xff] }
0x343c   :  { %20052 = vmatpush3.bf16.xpose.msk.msra.mxu0 %vm21753_vm3, %v20050_v18  ;;  %19107 = vmatprep.mubr.msk.f32.mxu0 %vm21274_vm1, %v22389_v44  ;;  %v22444_v2 = vld [vmem:[#allocation9 + $0x3b8] sm:$0xff] }
0x343d   :  { %20056 = vmatprep.subr.bf16.mxu0 %v21280_v6 }
0x3443   :  { %19108 = vmatmul.mubr.msk.f32.vlgmr.msra.gmra.mrb[70].mxu0 %vm403_vm2, %v8124_v33  ;;  %v20605_v33 = vpack.i.bf16 %v22444_v2, %v22442_v36 }
0x3444   :  { %19121 = vmatprep.mubr.msk.f32.mxu0 %vm21274_vm1, %v22389_v44 }
0x3445   :  { %v8119_v62 = vpop.f32.mrb[94].mxu1 }
0x3446   :  { %v19102_v23 = vpop.f32.mrb[95].mxu1  ;;  %v8205_v5 = vsel %vm2593_vm4, %v8119_v62, -inf }
0x3447   :  { %8206 = vmax.xlane.f32.xlu0 %v8205_v5 }
0x34d4   :  { %v8207_v26 = vpop.xlane.xlu0 %8206 }
0x34d5   :  { %v8211_v29 = vsub.f32 %v8119_v62, %v8207_v26 }
0x34d7   :  { %v8213_v54 = vmul.f32 1.442695, %v8211_v29 }
0x34d9   :  { %20941 = vpow2.f32 %v8213_v54 }
0x34e3   :  { %v20942_v63 = vpop.eup %20941 }
0x34e4   :  { %v8217_v14 = vsel %vm2593_vm4, %v20942_v63, 0.0 }
0x34e5   :  { %8218 = vadd.xlane.f32.xlu0 %v8217_v14 }
0x3516   :  { %v8201_v46 = vpop.f32.mrb[70].mxu0 }
0x3517   :  { %v19109_v21 = vpop.f32.mrb[71].mxu0  ;;  %v8208_v58 = vsel %vm2593_vm4, %v8201_v46, -inf }
0x3518   :  { %8209 = vmax.xlane.f32.xlu1 %v8208_v58  ;;  %v22453_v21 = vld [vmem:[#allocation9 + $0x3c8] sm:$0xff] }
0x3529   :  { %20596 = vrot.lane.b32.xlu1 %v22297_v61, %s21279_s19 }
0x352d   :  { %8385 = vrot.lane.b32.xlu1 %v22205_v10, %s21278_s18 }
0x3531   :  { %8471 = vrot.lane.b32.xlu1 %v22223_v8, %s21278_s18 }
0x3572   :  { %v8219_v35 = vpop.xlane.xlu0 %8218 }
0x3573   :  { %20943 = vrcp.f32 %v8219_v35  ;;  %v8518_v35 = vld [vmem:[#allocation9 + $0x38] sm:$0xff] }
0x357d   :  { %v20944_v0 = vpop.eup %20943 }
0x357e   :  { %v8224_v40 = vmul.f32 %v20944_v0, %v20942_v63  ;;  %v22460_v0 = vld [vmem:[#allocation9 + $0x3a8] ss:$0 sm:$0xff] }
0x35a5   :  { %v8210_v27 = vpop.xlane.xlu1 %8209 }
0x35a6   :  { %v8212_v28 = vsub.f32 %v8201_v46, %v8210_v27  ;;  %v22451_v46 = vld [vmem:[#allocation9 + $0x3c0] sm:$0xff] }
0x35a7   :  { %v20610_v58 = vpack.i.bf16 %v22453_v21, %v22451_v46  ;;  %v8519_v27 = vld [vmem:[#allocation9 + $0x40] sm:$0xff] }
0x35a8   :  { %v8215_v47 = vmul.f32 1.442695, %v8212_v28  ;;  %v8520_v28 = vld [vmem:[#allocation9 + $0x48] sm:$0xff] }
0x35a9   :  { %v20597_v12 = vpop.permute.xlu1 %20596 }
0x35aa   :  { %20945 = vpow2.f32 %v8215_v47  ;;  %v20599_v38 = vunpack.i.h.bf16 %v20597_v12  ;;  %v20598_v15 = vunpack.i.l.bf16 %v20597_v12  ;;  %v20059_v47 = vpack.c.bf16 %v8519_v27, %v8518_v35  ;;  %v8521_v12 = vld [vmem:[#allocation9 + $0x50] sm:$0xff] }
0x35ac   :  { %v20054_v19 = vpack.c.bf16 %v20599_v38, %v20598_v15  ;;  %v20063_v38 = vpack.c.bf16 %v8521_v12, %v8520_v28  ;;  %v20083_v15 = vpack.c.bf16 %v22444_v2, %v22442_v36  ;;  %v17629_v12 = vld [vmem:[#allocation9 + $0x28] ss:$0 sm:$0xff] }
0x35ad   :  { %v8386_v13 = vpop.permute.xlu1 %8385 }
0x35ae   :  { %20055 = vmatpush3.bf16.msra.mxu1 %v20054_v19  ;;  %v8610_v19 = vld [vmem:[#allocation9 + $0x58] sm:$0xff] }
0x35af   :  { %20060 = vmatprep.subr.bf16.mxu1 %v20059_v47 }
0x35b1   :  { %19115 = vmatmul.mubr.msk.f32.vlgmr.msra.gmra.mrb[96].mxu1 %vm2593_vm4, %v8224_v40  ;;  %v8472_v25 = vpop.permute.xlu1 %8471  ;;  %v8611_v40 = vld [vmem:[#allocation9 + $0x60] sm:$0xff] }
0x35b2   :  { %20062 = vmatpush3.bf16.msra.mxu1 %v20059_v47 }
0x35b3   :  { %20064 = vmatprep.subr.bf16.mxu1 %v20063_v38 }
0x35b4   :  { %v20946_v61 = vpop.eup %20945 }
0x35b5   :  { %v8220_v10 = vsel %vm2593_vm4, %v20946_v61, 0.0 }
0x35b6   :  { %8221 = vadd.xlane.f32.xlu0 %v8220_v10  ;;  %20066 = vmatpush3.bf16.msra.mxu1 %v20063_v38  ;;  %v8612_v10 = vld [vmem:[#allocation9 + $0x68] sm:$0xff] }
0x35b7   :  { %20084 = vmatprep.subr.bf16.mxu1 %v20083_v15 }
0x35cc   :  { %20601 = vrot.lane.b32.xlu0 %v22299_v60, %s21279_s19 }
0x3643   :  { %v8222_v8 = vpop.xlane.xlu0 %8221 }
0x3644   :  { %20947 = vrcp.f32 %v8222_v8  ;;  %v8613_v8 = vld [vmem:[#allocation9 + $0x70] sm:$0xff] }
0x3647   :  { %v20602_v31 = vpop.permute.xlu0 %20601 }
0x3648   :  { %v20604_v16 = vunpack.i.h.bf16 %v20602_v31  ;;  %v20603_v49 = vunpack.i.l.bf16 %v20602_v31  ;;  %v20071_v31 = vpack.c.bf16 %v8613_v8, %v8612_v10 }
0x364a   :  { %v20057_v7 = vpack.c.bf16 %v20604_v16, %v20603_v49  ;;  %v8614_v16 = vld [vmem:[#allocation9 + $0x78] sm:$0xff]  ;;  %v8615_v49 = vld [vmem:[#allocation9 + $0x80] sm:$0xff] }
0x364c   :  { %20058 = vmatpush3.bf16.msra.mxu0 %v20057_v7  ;;  %v20075_v7 = vpack.c.bf16 %v8615_v49, %v8614_v16 }
0x364d   :  { %19124 = vmatprep.subr.mxu0 %v8386_v13 }
0x364e   :  { %v20948_v20 = vpop.eup %20947 }
0x364f   :  { %v8226_v43 = vmul.f32 %v20948_v20, %v20946_v61  ;;  %v20067_v61 = vpack.c.bf16 %v8611_v40, %v8610_v19 }
0x3651   :  { %19122 = vmatmul.mubr.msk.f32.vlgmr.msra.gmra.mrb[72].mxu0 %vm2593_vm4, %v8226_v43 }
0x3652   :  { %19125 = vmatpush3.msra.mxu0 %v8386_v13 }
0x3653   :  { %20068 = vmatprep.subr.bf16.mxu0 %v20067_v61 }
0x3684   :  { %v8302_v1 = vpop.f32.mrb[96].mxu1 }
0x3685   :  { %v19116_v32 = vpop.f32.mrb[97].mxu1  ;;  %19126 = vmatprep.mubr.msk.f32.mxu0 %vm403_vm2, %v8302_v1 }
0x3724   :  { %v8381_v45 = vpop.f32.mrb[72].mxu0 }
0x3725   :  { %v19123_v60 = vpop.f32.mrb[73].mxu0  ;;  %19127 = vmatmul.mubr.msk.f32.vlgmr.msra.gmra.mrb[66].mxu0 %vm403_vm2, %v8381_v45 }
0x3726   :  { %20070 = vmatpush3.bf16.msra.mxu0 %v20067_v61 }
0x3727   :  { %20072 = vmatprep.subr.bf16.mxu0 %v20071_v31 }
0x372a   :  { %20074 = vmatpush3.bf16.msra.mxu0 %v20071_v31 }
0x372b   :  { %20076 = vmatprep.subr.bf16.mxu0 %v20075_v7 }
0x372e   :  { %20078 = vmatpush3.bf16.msra.mxu0 %v20075_v7 }
0x37f8   :  { %v19128_v30 = vpop.f32.mrb[66].mxu0 }
0x37f9   :  { %v8475_v17 = vadd.f32 %v19128_v30, %v8472_v25  ;;  %v8460_v11 = vpop.f32.mrb[67].mxu0 }
0x37fa   :  { %v8474_v37 = vadd.f32 %v8472_v25, %v8460_v11  ;;  %v17627_v25 = vld [vmem:[#allocation9 + $0xb0] ss:$0 sm:$0xff] }
0x37fb   :  { %v8477_v52 = vadd.f32 %v8475_v17, %v22232_v56  ;;  %v17628_v17 = vld [vmem:[#allocation9 + $0xa8] ss:$0 sm:$0xff] }
0x37fc   :  { %v8476_v55 = vadd.f32 %v8474_v37, %v22234_v48 }
0x37fd   :  { %v8483_v4 = vsel %vm128_vm0, %v8477_v52, 0.0 }
0x37fe   :  { %8484 = vadd.xlane.f32.xlu1 %v8483_v4  ;;  %v8480_v18 = vsel %vm128_vm0, %v8476_v55, 0.0 }
0x37ff   :  { %8481 = vadd.xlane.f32.xlu0 %v8480_v18 }
0x380f   :  { %20606 = vrot.lane.b32.xlu1 %v20605_v33, %s21272_s5 }
0x3813   :  { %8902 = vrot.lane.b32.xlu1 %v22460_v0, %s21272_s5 }
0x3817   :  { %20616 = vrot.lane.b32.xlu1 %v20605_v33, %s21275_s15 }
0x388b   :  { %v8485_v62 = vpop.xlane.xlu1 %8484 }
0x388c   :  { %v8487_v23 = vmul.f32 0.03125, %v8485_v62  ;;  %v8482_v56 = vpop.xlane.xlu0 %8481 }
0x388d   :  { %v8486_v5 = vmul.f32 0.03125, %v8482_v56  ;;  %v20087_v56 = vpack.c.bf16 %v22453_v21, %v22451_v46 }
0x388e   :  { %v8489_v48 = vsub.f32 %v8477_v52, %v8487_v23 }
0x388f   :  { %v8488_v26 = vsub.f32 %v8476_v55, %v8486_v5  ;;  %v20607_v4 = vpop.permute.xlu1 %20606 }
0x3890   :  { %v8491_v63 = vmul.f32 %v8489_v48, %v8489_v48  ;;  %v20609_v62 = vunpack.i.h.bf16 %v20607_v4  ;;  %v20608_v23 = vunpack.i.l.bf16 %v20607_v4 }
0x3891   :  { %v8490_v29 = vmul.f32 %v8488_v26, %v8488_v26 }
0x3892   :  { %v8495_v14 = vsel %vm128_vm0, %v8491_v63, 0.0 }
0x3893   :  { %v8492_v54 = vsel %vm128_vm0, %v8490_v29, 0.0  ;;  %v20091_v29 = vpack.c.bf16 %v20609_v62, %v20608_v23  ;;  %v8903_v63 = vpop.permute.xlu1 %8902 }
0x3894   :  { %8493 = vadd.xlane.f32.xlu0 %v8492_v54 }
0x3897   :  { %v20617_v27 = vpop.permute.xlu1 %20616 }
0x3898   :  { %8496 = vadd.xlane.f32.xlu0 %v8495_v14  ;;  %v8616_v14 = vld [vmem:[#allocation9 + $0x88] sm:$0xff]  ;;  %v20619_v28 = vunpack.i.h.bf16 %v20617_v27  ;;  %v20618_v47 = vunpack.i.l.bf16 %v20617_v27 }
0x38ae   :  { %20611 = vrot.lane.b32.xlu0 %v20610_v58, %s21272_s5 }
0x38b2   :  { %20621 = vrot.lane.b32.xlu0 %v20610_v58, %s21275_s15  ;;  %v8617_v58 = vld [vmem:[#allocation9 + $0x90] sm:$0xff] }
0x38b3   :  { %v20079_v35 = vpack.c.bf16 %v8617_v58, %v8616_v14 }
0x38b5   :  { %20080 = vmatprep.subr.bf16.mxu0 %v20079_v35 }
0x38b6   :  { %20082 = vmatpush3.bf16.msra.mxu0 %v20079_v35 }
0x3921   :  { %v8494_v13 = vpop.xlane.xlu0 %8493 }
0x3922   :  { %v8498_v20 = vmul.f32 0.03125, %v8494_v13 }
0x3924   :  { %v8500_v43 = vadd.f32 1e-05, %v8498_v20 }
0x3925   :  { %v8497_v1 = vpop.xlane.xlu0 %8496 }
0x3926   :  { %20949 = vrsqrt.f32 %v8500_v43  ;;  %v8499_v32 = vmul.f32 0.03125, %v8497_v1 }
0x3928   :  { %v8501_v45 = vadd.f32 1e-05, %v8499_v32 }
0x3929   :  { %v20612_v5 = vpop.permute.xlu0 %20611 }
0x392a   :  { %20951 = vrsqrt.f32 %v8501_v45 }
0x392d   :  { %v20622_v38 = vpop.permute.xlu0 %20621 }
0x392e   :  { %v20623_v61 = vunpack.i.l.bf16 %v20622_v38 }
0x3930   :  { %v20950_v60 = vpop.eup %20949 }
0x3931   :  { %v8504_v30 = vmul.f32 %v20950_v60, %v8488_v26  ;;  %v20613_v26 = vunpack.i.l.bf16 %v20612_v5 }
0x3933   :  { %v8510_v11 = vmul.f32 %v17627_v25, %v8504_v30 }
0x3934   :  { %v20952_v37 = vpop.eup %20951 }
0x3935   :  { %v8505_v52 = vmul.f32 %v20952_v37, %v8489_v48  ;;  %v22466_v55 = vadd.f32 %v17628_v17, %v8510_v11  ;;  %v20614_v48 = vunpack.i.h.bf16 %v20612_v5 }
0x3937   :  { %v8511_v18 = vmul.f32 %v17627_v25, %v8505_v52  ;;  %19137 = vmatprep.mubr.msk.f32.mxu1 %vm128_vm0, %v22466_v55  ;;  %v20095_v54 = vpack.c.bf16 %v20614_v48, %v20613_v26 }
0x3939   :  { %v22470_v33 = vadd.f32 %v17628_v17, %v8511_v18 }
0x393b   :  { %19138 = vmatmul.mubr.msk.f32.vlgmr.msra.gmra.mrb[98].mxu1 %vm128_vm0, %v22470_v33 }
0x393c   :  { %20086 = vmatpush3.bf16.msra.mxu1 %v20083_v15  ;;  %19167 = vmatprep.mubr.msk.f32.mxu1 %vm128_vm0, %v22004_v57 }
0x393d   :  { %20088 = vmatprep.subr.bf16.mxu1 %v20087_v56 }
0x3940   :  { %20090 = vmatpush3.bf16.msra.mxu1 %v20087_v56 }
0x3941   :  { %20092 = vmatprep.subr.bf16.mxu1 %v20091_v29 }
0x3943   :  { %19168 = vmatmul.mubr.msk.f32.vlgmr.msra.gmra.mrb[100].mxu1 %vm128_vm0, %v22001_v51 }
0x3944   :  { %20094 = vmatpush3.bf16.msra.mxu1 %v20091_v29  ;;  %19178 = vmatprep.mubr.msk.f32.mxu1 %vm128_vm0, %v22004_v57  ;;  %v20099_v57 = vpack.c.bf16 %v20619_v28, %v20618_v47 }
0x3945   :  { %20096 = vmatprep.subr.bf16.mxu1 %v20095_v54 }
0x3946   :  { %20100 = vmatprep.subr.bf16.mxu0 %v20099_v57 }
0x3948   :  { %20098 = vmatpush3.bf16.msra.mxu1 %v20095_v54 }
0x3949   :  { %19192 = vmatprep.subr.mxu1 %v22389_v44 }
0x394b   :  { %19179 = vmatmul.mubr.msk.f32.vlgmr.msra.gmra.mrb[102].mxu1 %vm128_vm0, %v22001_v51  ;;  %v20624_v51 = vunpack.i.h.bf16 %v20622_v38 }
0x394c   :  { %19194 = vmatprep.mubr.msk.f32.mxu1 %vm21274_vm1, %v22389_v44 }
0x394d   :  { %v20103_v16 = vpack.c.bf16 %v20624_v51, %v20623_v61 }
0x3a0e   :  { %v19139_v15 = vpop.f32.mrb[98].mxu1 }
0x3a0f   :  { %v8605_v19 = vadd.f32 %v19139_v15, %v17629_v12  ;;  %v8599_v40 = vpop.f32.mrb[99].mxu1 }
0x3a10   :  { %v8600_v10 = vadd.f32 %v17629_v12, %v8599_v40 }
0x3a11   :  { %v8609_v31 = vmax.f32 %v8605_v19, 0.0 }
0x3a12   :  { %v8608_v8 = vmax.f32 %v8600_v10, 0.0 }
0x3a14   :  { %19156 = vmatprep.mubr.msk.f32.mxu0 %vm4298_vm5, %v8608_v8 }
0x3a15   :  { %19157 = vmatmul.mubr.msk.f32.vlgmr.msra.gmra.mrb[74].mxu0 %vm4298_vm5, %v8609_v31 }
0x3a16   :  { %v19169_v49 = vpop.f32.mrb[100].mxu1  ;;  %20102 = vmatpush3.bf16.msra.mxu0 %v20099_v57  ;;  %19189 = vmatprep.mubr.msk.f32.mxu0 %vm128_vm0, %v21998_v53 }
0x3a17   :  { %v8876_v7 = vpop.f32.mrb[101].mxu1  ;;  %20104 = vmatprep.subr.bf16.mxu0 %v20103_v16  ;;  %v8882_v32 = vadd.f32 %v19169_v49, %v22460_v0 }
0x3a18   :  { %v8877_v20 = vadd.f32 %v22460_v0, %v8876_v7 }
0x3a19   :  { %v22513_v25 = vmul.f32 0.35355338, %v8882_v32 }
0x3a1a   :  { %20106 = vmatpush3.bf16.msra.mxu0 %v20103_v16  ;;  %v22502_v45 = vmul.f32 0.35355338, %v8877_v20 }
0x3a1b   :  { %19202 = vmatprep.subr.mxu0 %v22389_v44 }
0x3a1d   :  { %19190 = vmatmul.mubr.msk.f32.vlgmr.msra.gmra.mrb[76].mxu0 %vm128_vm0, %v21996_v50 }
0x3a1e   :  { %v19180_v13 = vpop.f32.mrb[102].mxu1  ;;  %19204 = vmatprep.mubr.msk.f32.mxu0 %vm21274_vm1, %v22389_v44 }
0x3a1f   :  { %v8971_v43 = vpop.f32.mrb[103].mxu1  ;;  %v22505_v60 = vadd.f32 %v19180_v13, %v8903_v63 }
0x3a20   :  { %v22497_v1 = vadd.f32 %v8971_v43, %v8903_v63 }
0x3a22   :  { %19193 = vmatpush3.xpose.msk.msra.mxu1 %vm403_vm2, %v22497_v1 }
0x3a23   :  { %19197 = vmatprep.subr.mxu1 %v22389_v44 }
0x3a25   :  { %19195 = vmatmul.mubr.msk.f32.vlgmr.msra.gmra.mrb[104].mxu1 %vm403_vm2, %v22502_v45 }
0x3a26   :  { %19198 = vmatpush3.xpose.msk.msra.mxu1 %vm403_vm2, %v22505_v60  ;;  %19199 = vmatprep.mubr.msk.f32.mxu1 %vm21274_vm1, %v22389_v44 }
0x3a27   :  { %19207 = vmatprep.subr.mxu1 %v22389_v44 }
0x3a29   :  { %19200 = vmatmul.mubr.msk.f32.vlgmr.msra.gmra.mrb[106].mxu1 %vm403_vm2, %v22513_v25 }
0x3a2a   :  { %19209 = vmatprep.mubr.msk.f32.mxu1 %vm21274_vm1, %v22389_v44 }
0x3ae8   :  { %v22520_v30 = vpop.f32.mrb[74].mxu0 }
0x3ae9   :  { %v22522_v17 = vpop.f32.mrb[75].mxu0 }
0x3af0   :  { %v19191_v11 = vpop.f32.mrb[76].mxu0 }
0x3af1   :  { %v9067_v37 = vpop.f32.mrb[77].mxu0 }
0x3af8   :  { %v9150_v52 = vpop.f32.mrb[104].mxu1 }
0x3af9   :  { %v19196_v4 = vpop.f32.mrb[105].mxu1  ;;  %v9230_v54 = vsel %vm403_vm2, %v9150_v52, -inf }
0x3afc   :  { %v9226_v18 = vpop.f32.mrb[106].mxu1 }
0x3afd   :  { %v19201_v62 = vpop.f32.mrb[107].mxu1  ;;  %v9233_v23 = vsel %vm403_vm2, %v9226_v18, -inf }
0x3afe   :  { %9234 = vmax.xlane.f32.xlu1 %v9233_v23 }
0x3b0f   :  { %9478 = vrot.lane.b32.xlu1 %v22505_v60, %s21276_s16 }
0x3b13   :  { %9476 = vrot.lane.b32.xlu1 %v22513_v25, %s21276_s16 }
0x3b8b   :  { %v9235_v56 = vpop.xlane.xlu1 %9234 }
0x3b8c   :  { %v9237_v5 = vsub.f32 %v9226_v18, %v9235_v56 }
0x3b8e   :  { %v9240_v48 = vmul.f32 1.442695, %v9237_v5 }
0x3b8f   :  { %v9479_v28 = vpop.permute.xlu1 %9478 }
0x3b90   :  { %20953 = vpow2.f32 %v9240_v48 }
0x3b93   :  { %v9477_v57 = vpop.permute.xlu1 %9476 }
0x3b9a   :  { %v20954_v26 = vpop.eup %20953 }
0x3b9b   :  { %v9245_v29 = vsel %vm403_vm2, %v20954_v26, 0.0 }
0x3b9c   :  { %9246 = vadd.xlane.f32.xlu0 %v9245_v29 }
0x3bb2   :  { %8992 = vrot.lane.b32.xlu0 %v22460_v0, %s21275_s15 }
0x3bd1   :  { %9231 = vmax.xlane.f32.xlu0 %v9230_v54 }
0x3be7   :  { %9400 = vrot.lane.b32.xlu0 %v22497_v1, %s21276_s16 }
0x3c29   :  { %v9247_v63 = vpop.xlane.xlu0 %9246 }
0x3c2a   :  { %20955 = vrcp.f32 %v9247_v63 }
0x3c2d   :  { %v8993_v14 = vpop.permute.xlu0 %8992 }
0x3c2e   :  { %v22535_v58 = vadd.f32 %v9067_v37, %v8993_v14  ;;  %v22537_v35 = vadd.f32 %v19191_v11, %v8993_v14 }
0x3c30   :  { %19203 = vmatpush3.msra.mxu0 %v22535_v58  ;;  %19208 = vmatpush3.msra.mxu1 %v22537_v35 }
0x3c31   :  { %19217 = vmatprep.subr.mxu1 %v22389_v44  ;;  %19212 = vmatprep.subr.mxu0 %v22389_v44 }
0x3c34   :  { %v20956_v27 = vpop.eup %20955 }
0x3c35   :  { %v22543_v47 = vmul.f32 %v20956_v27, %v20954_v26 }
0x3c37   :  { %19210 = vmatmul.mubr.msk.f32.vlgmr.msra.gmra.mrb[108].mxu1 %vm403_vm2, %v22543_v47 }
0x3c38   :  { %19218 = vmatpush3.xpose.msk.msra.mxu1 %vm403_vm2, %v9479_v28  ;;  %19219 = vmatprep.mubr.msk.f32.mxu1 %vm21274_vm1, %v22389_v44 }
0x3c39   :  { %19227 = vmatprep.subr.mxu1 %v22389_v44 }
0x3c3b   :  { %19220 = vmatmul.mubr.msk.f32.vlgmr.msra.gmra.mrb[110].mxu1 %vm403_vm2, %v9477_v57 }
0x3c3c   :  { %19229 = vmatprep.mubr.msk.f32.mxu1 %vm21274_vm1, %v22389_v44 }
0x3c5e   :  { %v9232_v12 = vpop.xlane.xlu0 %9231 }
0x3c5f   :  { %v9236_v38 = vsub.f32 %v9150_v52, %v9232_v12 }
0x3c61   :  { %v9238_v15 = vmul.f32 1.442695, %v9236_v38 }
0x3c62   :  { %v9401_v8 = vpop.permute.xlu0 %9400 }
0x3c63   :  { %20957 = vpow2.f32 %v9238_v15 }
0x3c6d   :  { %v20958_v19 = vpop.eup %20957 }
0x3c6e   :  { %v9242_v40 = vsel %vm403_vm2, %v20958_v19, 0.0 }
0x3c6f   :  { %9243 = vadd.xlane.f32.xlu1 %v9242_v40 }
0x3c80   :  { %9398 = vrot.lane.b32.xlu1 %v22502_v45, %s21276_s16 }
0x3c84   :  { %9902 = vrot.lane.b32.xlu1 %v22497_v1, %s21277_s17 }
0x3cfc   :  { %v9244_v51 = vpop.xlane.xlu1 %9243 }
0x3cfd   :  { %20959 = vrcp.f32 %v9244_v51 }
0x3d00   :  { %v9399_v49 = vpop.permute.xlu1 %9398 }
0x3d04   :  { %v9903_v48 = vpop.permute.xlu1 %9902 }
0x3d07   :  { %v20960_v61 = vpop.eup %20959 }
0x3d08   :  { %v22559_v10 = vmul.f32 %v20960_v61, %v20958_v19 }
0x3d0a   :  { %19205 = vmatmul.mubr.msk.f32.vlgmr.msra.gmra.mrb[78].mxu0 %vm403_vm2, %v22559_v10  ;;  %v22563_v31 = vpop.f32.mrb[108].mxu1 }
0x3d0b   :  { %19213 = vmatpush3.xpose.msk.msra.mxu0 %vm403_vm2, %v9401_v8  ;;  %v19211_v16 = vpop.f32.mrb[109].mxu1  ;;  %19214 = vmatprep.mubr.msk.f32.mxu0 %vm21274_vm1, %v22389_v44 }
0x3d0c   :  { %19222 = vmatprep.subr.mxu0 %v22389_v44 }
0x3d0e   :  { %19215 = vmatmul.mubr.msk.f32.vlgmr.msra.gmra.mrb[80].mxu0 %vm403_vm2, %v9399_v49  ;;  %v9550_v7 = vpop.f32.mrb[110].mxu1 }
0x3d0f   :  { %v19221_v13 = vpop.f32.mrb[111].mxu1  ;;  %v9557_v20 = vsel %vm403_vm2, %v9550_v7, -inf  ;;  %19224 = vmatprep.mubr.msk.f32.mxu0 %vm21274_vm1, %v22389_v44 }
0x3d10   :  { %9558 = vmax.xlane.f32.xlu0 %v9557_v20 }
0x3d26   :  { %9654 = vrot.lane.b32.xlu0 %v22537_v35, %s21276_s16 }
0x3d2a   :  { %9900 = vrot.lane.b32.xlu0 %v22502_v45, %s21277_s17 }
0x3d2e   :  { %9978 = vrot.lane.b32.xlu0 %v22513_v25, %s21277_s17 }
0x3d9d   :  { %v9559_v43 = vpop.xlane.xlu0 %9558 }
0x3d9e   :  { %v9561_v32 = vsub.f32 %v9550_v7, %v9559_v43 }
0x3da0   :  { %v9564_v11 = vmul.f32 1.442695, %v9561_v32 }
0x3da1   :  { %v9655_v37 = vpop.permute.xlu0 %9654 }
0x3da2   :  { %20961 = vpow2.f32 %v9564_v11  ;;  %19228 = vmatpush3.msra.mxu1 %v9655_v37 }
0x3da3   :  { %19242 = vmatprep.subr.mxu1 %v22389_v44 }
0x3da5   :  { %v9901_v63 = vpop.permute.xlu0 %9900 }
0x3da9   :  { %v9979_v27 = vpop.permute.xlu0 %9978 }
0x3dac   :  { %v20962_v52 = vpop.eup %20961 }
0x3dad   :  { %v9569_v4 = vsel %vm403_vm2, %v20962_v52, 0.0 }
0x3dae   :  { %9570 = vadd.xlane.f32.xlu1 %v9569_v4 }
0x3dbf   :  { %9980 = vrot.lane.b32.xlu1 %v22505_v60, %s21277_s17 }
0x3ddd   :  { %v22583_v18 = vpop.f32.mrb[78].mxu0 }
0x3dde   :  { %v19206_v62 = vpop.f32.mrb[79].mxu0 }
0x3de1   :  { %v9472_v23 = vpop.f32.mrb[80].mxu0 }
0x3de2   :  { %v19216_v56 = vpop.f32.mrb[81].mxu0  ;;  %v9554_v5 = vsel %vm403_vm2, %v9472_v23, -inf }
0x3de3   :  { %9555 = vmax.xlane.f32.xlu1 %v9554_v5 }
0x3e3b   :  { %v9571_v26 = vpop.xlane.xlu1 %9570 }
0x3e3c   :  { %20963 = vrcp.f32 %v9571_v26 }
0x3e3f   :  { %v9981_v14 = vpop.permute.xlu1 %9980 }
0x3e46   :  { %v20964_v29 = vpop.eup %20963 }
0x3e47   :  { %v22586_v54 = vmul.f32 %v20964_v29, %v20962_v52 }
0x3e49   :  { %19230 = vmatmul.mubr.msk.f32.vlgmr.msra.gmra.mrb[112].mxu1 %vm403_vm2, %v22586_v54 }
0x3e4a   :  { %19243 = vmatpush3.xpose.msk.msra.mxu1 %vm403_vm2, %v9903_v48  ;;  %19244 = vmatprep.mubr.msk.f32.mxu1 %vm21274_vm1, %v22389_v44 }
0x3e4b   :  { %19247 = vmatprep.subr.mxu1 %v22389_v44 }
0x3e4d   :  { %19245 = vmatmul.mubr.msk.f32.vlgmr.msra.gmra.mrb[114].mxu1 %vm403_vm2, %v9901_v63 }
0x3e4e   :  { %19248 = vmatpush3.xpose.msk.msra.mxu1 %vm403_vm2, %v9981_v14  ;;  %19249 = vmatprep.mubr.msk.f32.mxu1 %vm21274_vm1, %v22389_v44 }
0x3e4f   :  { %19257 = vmatprep.subr.mxu1 %v22389_v44 }
0x3e51   :  { %19250 = vmatmul.mubr.msk.f32.vlgmr.msra.gmra.mrb[116].mxu1 %vm403_vm2, %v9979_v27 }
0x3e52   :  { %19259 = vmatprep.mubr.msk.f32.mxu1 %vm21274_vm1, %v22389_v44 }
0x3e70   :  { %v9556_v28 = vpop.xlane.xlu1 %9555 }
0x3e71   :  { %v9560_v57 = vsub.f32 %v9472_v23, %v9556_v28 }
0x3e73   :  { %v9562_v12 = vmul.f32 1.442695, %v9560_v57 }
0x3e75   :  { %20965 = vpow2.f32 %v9562_v12 }
0x3e7f   :  { %v20966_v38 = vpop.eup %20965 }
0x3e80   :  { %v9566_v15 = vsel %vm403_vm2, %v20966_v38, 0.0 }
0x3e81   :  { %9567 = vadd.xlane.f32.xlu0 %v9566_v15  ;;  %v9899_v15 = vadd.f32 %v22586_v54, %v22543_v47 }
0x3e97   :  { %9577 = vrot.lane.b32.xlu0 %v22535_v58, %s21276_s16 }
0x3e9b   :  { %9814 = vrot.lane.b32.xlu0 %v22442_v36, %s21278_s18 }
0x3e9f   :  { %10078 = vrot.lane.b32.xlu0 %v22535_v58, %s21277_s17 }
0x3ea3   :  { %10154 = vrot.lane.b32.xlu0 %v22537_v35, %s21277_s17 }
0x3ea7   :  { %10230 = vrot.lane.b32.xlu0 %v22451_v46, %s21278_s18 }
0x3eab   :  { %10398 = vrot.lane.b32.xlu0 %v22505_v60, %s21279_s19 }
0x3eaf   :  { %10396 = vrot.lane.b32.xlu0 %v22513_v25, %s21279_s19 }
0x3f0e   :  { %v9568_v19 = vpop.xlane.xlu0 %9567 }
0x3f0f   :  { %20967 = vrcp.f32 %v9568_v19 }
0x3f12   :  { %v9578_v40 = vpop.permute.xlu0 %9577 }
0x3f13   :  { %19223 = vmatpush3.msra.mxu0 %v9578_v40 }
0x3f16   :  { %v9815_v36 = vpop.permute.xlu0 %9814 }
0x3f19   :  { %v20968_v51 = vpop.eup %20967 }
0x3f1a   :  { %v10079_v61 = vpop.permute.xlu0 %10078  ;;  %v9573_v8 = vmul.f32 %v20968_v51, %v20966_v38 }
0x3f1c   :  { %19225 = vmatmul.mubr.msk.f32.vlgmr.msra.gmra.mrb[82].mxu0 %vm403_vm2, %v9573_v8  ;;  %v9726_v16 = vpop.f32.mrb[112].mxu1 }
0x3f1d   :  { %v19231_v49 = vpop.f32.mrb[113].mxu1 }
0x3f1e   :  { %v10155_v7 = vpop.permute.xlu0 %10154 }
0x3f1f   :  { %19258 = vmatpush3.msra.mxu1 %v10155_v7 }
0x3f20   :  { %v9974_v46 = vpop.f32.mrb[114].mxu1  ;;  %19267 = vmatprep.subr.mxu1 %v22389_v44 }
0x3f21   :  { %v19246_v60 = vpop.f32.mrb[115].mxu1  ;;  %v10056_v25 = vsel %vm403_vm2, %v9974_v46, -inf }
0x3f22   :  { %10057 = vmax.xlane.f32.xlu1 %v10056_v25 }
0x3f24   :  { %v10052_v13 = vpop.f32.mrb[116].mxu1 }
0x3f25   :  { %v19251_v20 = vpop.f32.mrb[117].mxu1  ;;  %v10059_v43 = vsel %vm403_vm2, %v10052_v13, -inf }
0x3f26   :  { %10060 = vmax.xlane.f32.xlu1 %v10059_v43 }
0x3faf   :  { %v10058_v32 = vpop.xlane.xlu1 %10057 }
0x3fb0   :  { %v10062_v11 = vsub.f32 %v9974_v46, %v10058_v32 }
0x3fb2   :  { %v10064_v37 = vmul.f32 1.442695, %v10062_v11 }
0x3fb3   :  { %v10061_v52 = vpop.xlane.xlu1 %10060 }
0x3fb4   :  { %20969 = vpow2.f32 %v10064_v37  ;;  %v10063_v4 = vsub.f32 %v10052_v13, %v10061_v52 }
0x3fb6   :  { %v10066_v62 = vmul.f32 1.442695, %v10063_v4 }
0x3fb8   :  { %20971 = vpow2.f32 %v10066_v62 }
0x3fbe   :  { %v20970_v23 = vpop.eup %20969 }
0x3fbf   :  { %v10068_v56 = vsel %vm403_vm2, %v20970_v23, 0.0 }
0x3fc0   :  { %10069 = vadd.xlane.f32.xlu1 %v10068_v56 }
0x3fc2   :  { %v20972_v5 = vpop.eup %20971 }
0x3fc3   :  { %v10071_v48 = vsel %vm403_vm2, %v20972_v5, 0.0 }
0x3fc4   :  { %10072 = vadd.xlane.f32.xlu1 %v10071_v48 }
0x3fd5   :  { %9730 = vrot.lane.b32.xlu1 %v22444_v2, %s21278_s18 }
0x3fd9   :  { %10320 = vrot.lane.b32.xlu1 %v22497_v1, %s21279_s19  ;;  %v9898_v1 = vadd.f32 %v9573_v8, %v22559_v10  ;;  %v10231_v10 = vpop.permute.xlu0 %10230 }
0x3fdd   :  { %10318 = vrot.lane.b32.xlu1 %v22502_v45, %s21279_s19  ;;  %v10399_v54 = vpop.permute.xlu0 %10398 }
0x3fef   :  { %v9649_v26 = vpop.f32.mrb[82].mxu0 }
0x3ff0   :  { %v19226_v29 = vpop.f32.mrb[83].mxu0  ;;  %19234 = vmatprep.mubr.msk.f32.mxu0 %vm403_vm2, %v9649_v26 }
0x404d   :  { %v10070_v63 = vpop.xlane.xlu1 %10069 }
0x404e   :  { %20973 = vrcp.f32 %v10070_v63 }
0x4051   :  { %v10073_v14 = vpop.xlane.xlu1 %10072 }
0x4052   :  { %20975 = vrcp.f32 %v10073_v14 }
0x4055   :  { %v9731_v27 = vpop.permute.xlu1 %9730 }
0x4056   :  { %19232 = vmatprep.subr.mxu0 %v9731_v27 }
0x4057   :  { %19233 = vmatpush3.msra.mxu0 %v9731_v27 }
0x4058   :  { %v20974_v28 = vpop.eup %20973  ;;  %19235 = vmatmul.mubr.msk.f32.vlgmr.msra.gmra.mrb[84].mxu0 %vm403_vm2, %v9726_v16  ;;  %19237 = vmatprep.subr.mxu0 %v9815_v36  ;;  %v10397_v16 = vpop.permute.xlu0 %10396 }
0x4059   :  { %19239 = vmatprep.mubr.msk.f32.mxu0 %vm403_vm2, %v22583_v18  ;;  %19238 = vmatpush3.msra.mxu0 %v9815_v36  ;;  %v10075_v2 = vmul.f32 %v20974_v28, %v20970_v23  ;;  %v10321_v12 = vpop.permute.xlu1 %10320 }
0x405a   :  { %19252 = vmatprep.subr.mxu0 %v22389_v44 }
0x405b   :  { %v22635_v45 = vadd.f32 %v10075_v2, %v9898_v1 }
0x405c   :  { %v20976_v57 = vpop.eup %20975 }
0x405d   :  { %v10077_v38 = vmul.f32 %v20976_v57, %v20972_v5  ;;  %v10319_v18 = vpop.permute.xlu1 %10318 }
0x405f   :  { %19260 = vmatmul.mubr.msk.f32.vlgmr.msra.gmra.mrb[118].mxu1 %vm403_vm2, %v10077_v38  ;;  %v22640_v19 = vadd.f32 %v10077_v38, %v9899_v15 }
0x4060   :  { %19268 = vmatpush3.xpose.msk.msra.mxu1 %vm403_vm2, %v10321_v12  ;;  %19240 = vmatmul.mubr.msk.f32.vlgmr.msra.gmra.mrb[84].mxu0 %vm403_vm2, %v22563_v31 }
0x4061   :  { %19253 = vmatpush3.msra.mxu0 %v10079_v61  ;;  %19269 = vmatprep.mubr.msk.f32.mxu1 %vm21274_vm1, %v22389_v44 }
0x4062   :  { %19254 = vmatprep.mubr.msk.f32.mxu0 %vm21274_vm1, %v22389_v44  ;;  %19262 = vmatprep.subr.mxu0 %v10231_v10 }
0x4063   :  { %19270 = vmatmul.mubr.msk.f32.vlgmr.msra.gmra.mrb[120].mxu1 %vm403_vm2, %v10319_v18  ;;  %19277 = vmatprep.subr.mxu1 %v22389_v44 }
0x4064   :  { %19255 = vmatmul.mubr.msk.f32.vlgmr.msra.gmra.mrb[86].mxu0 %vm403_vm2, %v10075_v2  ;;  %19279 = vmatprep.mubr.msk.f32.mxu1 %vm21274_vm1, %v22389_v44 }
0x4065   :  { %19263 = vmatpush3.msra.mxu0 %v10231_v10 }
0x4066   :  { %19272 = vmatprep.subr.mxu0 %v22389_v44 }
0x4132   :  { %v10226_v47 = vpop.f32.mrb[118].mxu1 }
0x4133   :  { %v19261_v31 = vpop.f32.mrb[119].mxu1 }
0x4136   :  { %v10392_v40 = vpop.f32.mrb[120].mxu1 }
0x4137   :  { %v10150_v36 = vpop.f32.mrb[86].mxu0  ;;  %v19271_v51 = vpop.f32.mrb[121].mxu1  ;;  %v10474_v61 = vsel %vm403_vm2, %v10392_v40, -inf }
0x4138   :  { %v19256_v8 = vpop.f32.mrb[87].mxu0  ;;  %19264 = vmatprep.mubr.msk.f32.mxu0 %vm403_vm2, %v10150_v36  ;;  %10475 = vmax.xlane.f32.xlu1 %v10474_v61 }
0x4139   :  { %19265 = vmatmul.mubr.msk.f32.vlgmr.msra.gmra.mrb[84].mxu0 %vm403_vm2, %v10226_v47 }
0x413a   :  { %19273 = vmatpush3.xpose.msk.msra.mxu0 %vm403_vm2, %v10399_v54  ;;  %19274 = vmatprep.mubr.msk.f32.mxu0 %vm21274_vm1, %v22389_v44 }
0x413b   :  { %19282 = vmatprep.subr.mxu0 %v22389_v44 }
0x413d   :  { %19275 = vmatmul.mubr.msk.f32.vlgmr.msra.gmra.mrb[88].mxu0 %vm403_vm2, %v10397_v16  ;;  %v22694_v16 = vld [vmem:[#allocation9 + $0x2f8] sm:$0xff] }
0x413e   :  { %19284 = vmatprep.mubr.msk.f32.mxu0 %vm21274_vm1, %v22389_v44 }
0x41c5   :  { %v10476_v49 = vpop.xlane.xlu1 %10475 }
0x41c6   :  { %v10480_v7 = vsub.f32 %v10392_v40, %v10476_v49  ;;  %v22696_v49 = vld [vmem:[#allocation9 + $0x300] sm:$0xff] }
0x41c8   :  { %v10482_v46 = vmul.f32 1.442695, %v10480_v7  ;;  %v20630_v7 = vpack.i.bf16 %v22696_v49, %v22694_v16 }
0x41ca   :  { %20977 = vpow2.f32 %v10482_v46  ;;  %v22700_v46 = vld [vmem:[#allocation9 + $0x2e8] sm:$0xff] }
0x41d4   :  { %v20978_v20 = vpop.eup %20977 }
0x41d5   :  { %v10486_v43 = vsel %vm403_vm2, %v20978_v20, 0.0 }
0x4210   :  { %v10470_v60 = vpop.f32.mrb[88].mxu0 }
0x4211   :  { %v19276_v25 = vpop.f32.mrb[89].mxu0  ;;  %v10477_v13 = vsel %vm403_vm2, %v10470_v60, -inf }
0x4212   :  { %10478 = vmax.xlane.f32.xlu0 %v10477_v13 }
0x4216   :  { %10487 = vadd.xlane.f32.xlu0 %v10486_v43  ;;  %v22714_v43 = vld [vmem:[#allocation9 + $0x2e0] ss:$0 sm:$0xff] }
0x422c   :  { %10496 = vrot.lane.b32.xlu0 %v22535_v58, %s21279_s19 }
0x4230   :  { %10736 = vrot.lane.b32.xlu0 %v22460_v0, %s21278_s18 }
0x429f   :  { %v10479_v44 = vpop.xlane.xlu0 %10478 }
0x42a0   :  { %v10481_v32 = vsub.f32 %v10470_v60, %v10479_v44  ;;  %v22702_v60 = vld [vmem:[#allocation9 + $0x2f0] sm:$0xff] }
0x42a1   :  { %v20625_v25 = vpack.i.bf16 %v22702_v60, %v22700_v46  ;;  %v20107_v13 = vpack.c.bf16 %v22702_v60, %v22700_v46 }
0x42a2   :  { %v10484_v11 = vmul.f32 1.442695, %v10481_v32 }
0x42a3   :  { %v10488_v37 = vpop.xlane.xlu0 %10487 }
0x42a4   :  { %20979 = vpow2.f32 %v10484_v11 }
0x42a5   :  { %20981 = vrcp.f32 %v10488_v37 }
0x42a7   :  { %v10497_v52 = vpop.permute.xlu0 %10496 }
0x42a8   :  { %19278 = vmatpush3.msra.mxu1 %v10497_v52 }
0x42a9   :  { %20108 = vmatprep.subr.bf16.mxu1 %v20107_v13 }
0x42ab   :  { %v10737_v28 = vpop.permute.xlu0 %10736 }
0x42ae   :  { %v20980_v4 = vpop.eup %20979 }
0x42af   :  { %v20982_v62 = vpop.eup %20981  ;;  %v10489_v23 = vsel %vm403_vm2, %v20980_v4, 0.0 }
0x42b0   :  { %10490 = vadd.xlane.f32.xlu1 %v10489_v23  ;;  %v10493_v56 = vmul.f32 %v20982_v62, %v20978_v20  ;;  %v20111_v20 = vpack.c.bf16 %v22696_v49, %v22694_v16 }
0x42b2   :  { %19280 = vmatmul.mubr.msk.f32.vlgmr.msra.gmra.mrb[122].mxu1 %vm403_vm2, %v10493_v56  ;;  %v22674_v58 = vadd.f32 %v10493_v56, %v22635_v45 }
0x42b3   :  { %20110 = vmatpush3.bf16.msra.mxu1 %v20107_v13  ;;  %v21139_v13 = vld [vmem:[%s23629_s0 + $0x10] sm:$0xff] }
0x42b4   :  { %20112 = vmatprep.subr.bf16.mxu1 %v20111_v20 }
0x42b7   :  { %20114 = vmatpush3.bf16.msra.mxu1 %v20111_v20  ;;  %v21140_v20 = vld [vmem:[%s23629_s0 + $0x18] sm:$0xff] }
0x42c1   :  { %10572 = vrot.lane.b32.xlu1 %v22537_v35, %s21279_s19 }
0x42c5   :  { %10648 = vrot.lane.b32.xlu1 %v22453_v21, %s21278_s18 }
0x433d   :  { %v10491_v0 = vpop.xlane.xlu1 %10490 }
0x433e   :  { %20983 = vrcp.f32 %v10491_v0 }
0x4341   :  { %v10573_v5 = vpop.permute.xlu1 %10572 }
0x4342   :  { %19283 = vmatpush3.msra.mxu0 %v10573_v5 }
0x4345   :  { %v10649_v48 = vpop.permute.xlu1 %10648 }
0x4346   :  { %19287 = vmatprep.subr.mxu0 %v10649_v48 }
0x4348   :  { %v20984_v26 = vpop.eup %20983 }
0x4349   :  { %v10495_v29 = vmul.f32 %v20984_v26, %v20980_v4 }
0x434b   :  { %19285 = vmatmul.mubr.msk.f32.vlgmr.msra.gmra.mrb[90].mxu0 %vm403_vm2, %v10495_v29  ;;  %v22682_v63 = vadd.f32 %v10495_v29, %v22640_v19 }
0x434c   :  { %19288 = vmatpush3.msra.mxu0 %v10649_v48 }
0x4385   :  { %v10568_v14 = vpop.f32.mrb[122].mxu1 }
0x4386   :  { %v19281_v27 = vpop.f32.mrb[123].mxu1  ;;  %19289 = vmatprep.mubr.msk.f32.mxu0 %vm403_vm2, %v10568_v14 }
0x441e   :  { %v10644_v35 = vpop.f32.mrb[90].mxu0 }
0x441f   :  { %v19286_v21 = vpop.f32.mrb[91].mxu0  ;;  %19290 = vmatmul.mubr.msk.f32.vlgmr.msra.gmra.mrb[84].mxu0 %vm403_vm2, %v10644_v35  ;;  %v17678_v35 = vld [vmem:[#allocation9 + $0x380] ss:$0 sm:$0xff] }
0x4420   :  { %19311 = vmatprep.mubr.msk.f32.mxu0 %vm128_vm0, %v21693_v41 }
0x44f2   :  { %v19291_v2 = vpop.f32.mrb[84].mxu0 }
0x44f3   :  { %v10740_v1 = vadd.f32 %v19291_v2, %v10737_v28  ;;  %v10723_v45 = vpop.f32.mrb[85].mxu0 }
0x44f4   :  { %v10739_v57 = vadd.f32 %v10737_v28, %v10723_v45  ;;  %v17679_v45 = vld [vmem:[#allocation9 + $0x378] ss:$0 sm:$0xff] }
0x44f5   :  { %v10744_v12 = vadd.f32 %v10740_v1, %v21996_v50 }
0x44f6   :  { %v10743_v38 = vadd.f32 %v10739_v57, %v21998_v53 }
0x44f7   :  { %v10750_v15 = vsel %vm128_vm0, %v10744_v12, 0.0 }
0x44f8   :  { %10751 = vadd.xlane.f32.xlu0 %v10750_v15  ;;  %v10747_v19 = vsel %vm128_vm0, %v10743_v38, 0.0 }
0x44f9   :  { %10748 = vadd.xlane.f32.xlu1 %v10747_v19 }
0x4585   :  { %v10752_v10 = vpop.xlane.xlu0 %10751 }
0x4586   :  { %v10754_v18 = vmul.f32 0.03125, %v10752_v10  ;;  %v10749_v47 = vpop.xlane.xlu1 %10748 }
0x4587   :  { %v10753_v31 = vmul.f32 0.03125, %v10749_v47 }
0x4588   :  { %v10756_v54 = vsub.f32 %v10744_v12, %v10754_v18 }
0x4589   :  { %v10755_v40 = vsub.f32 %v10743_v38, %v10753_v31 }
0x458a   :  { %v10758_v36 = vmul.f32 %v10756_v54, %v10756_v54 }
0x458b   :  { %v10757_v51 = vmul.f32 %v10755_v40, %v10755_v40 }
0x458c   :  { %v10762_v61 = vsel %vm128_vm0, %v10758_v36, 0.0  ;;  %v22733_v36 = vld [vmem:[%s23635_s6] sm:$0xff] }
0x458d   :  { %10763 = vadd.xlane.f32.xlu1 %v10762_v61  ;;  %v10759_v8 = vsel %vm128_vm0, %v10757_v51, 0.0  ;;  %v21136_v51 = vld [vmem:[#allocation7 + $0x8] sm:$0xff] }
0x458e   :  { %10760 = vadd.xlane.f32.xlu0 %v10759_v8 }
0x459e   :  { %20631 = vrot.lane.b32.xlu1 %v20630_v7, %s21272_s5 }
0x45a2   :  { %20636 = vrot.lane.b32.xlu1 %v20625_v25, %s21275_s15 }
0x45a4   :  { %20626 = vrot.lane.b32.xlu0 %v20625_v25, %s21272_s5  ;;  %v21138_v25 = vld [vmem:[%s23629_s0 + $0x8] sm:$0xff] }
0x45a6   :  { %10894 = vrot.lane.b32.xlu1 %v22714_v43, %s21272_s5 }
0x45a8   :  { %20641 = vrot.lane.b32.xlu0 %v20630_v7, %s21275_s15  ;;  %v21137_v7 = vld [vmem:[%s23629_s0] sm:$0xff] }
0x461a   :  { %v10764_v44 = vpop.xlane.xlu1 %10763 }
0x461b   :  { %v10766_v32 = vmul.f32 0.03125, %v10764_v44  ;;  %v10761_v11 = vpop.xlane.xlu0 %10760 }
0x461c   :  { %v10765_v37 = vmul.f32 0.03125, %v10761_v11 }
0x461d   :  { %v10768_v52 = vadd.f32 1e-05, %v10766_v32 }
0x461e   :  { %v10767_v4 = vadd.f32 1e-05, %v10765_v37  ;;  %v20632_v62 = vpop.permute.xlu1 %20631 }
0x461f   :  { %20985 = vrsqrt.f32 %v10768_v52  ;;  %v20627_v23 = vpop.permute.xlu0 %20626  ;;  %v20634_v56 = vunpack.i.h.bf16 %v20632_v62  ;;  %v20633_v0 = vunpack.i.l.bf16 %v20632_v62 }
0x4620   :  { %20987 = vrsqrt.f32 %v10767_v4  ;;  %v20629_v5 = vunpack.i.h.bf16 %v20627_v23  ;;  %v20628_v48 = vunpack.i.l.bf16 %v20627_v23 }
0x4621   :  { %v20119_v29 = vpack.c.bf16 %v20634_v56, %v20633_v0 }
0x4622   :  { %v20115_v26 = vpack.c.bf16 %v20629_v5, %v20628_v48  ;;  %v20637_v14 = vpop.permute.xlu1 %20636 }
0x4623   :  { %v20639_v21 = vunpack.i.h.bf16 %v20637_v14  ;;  %v20638_v28 = vunpack.i.l.bf16 %v20637_v14  ;;  %v20642_v12 = vpop.permute.xlu0 %20641 }
0x4624   :  { %20116 = vmatprep.subr.bf16.mxu0 %v20115_v26  ;;  %v20644_v18 = vunpack.i.h.bf16 %v20642_v12  ;;  %v20643_v47 = vunpack.i.l.bf16 %v20642_v12 }
0x4625   :  { %20118 = vmatpush3.bf16.msra.mxu0 %v20115_v26  ;;  %v20123_v38 = vpack.c.bf16 %v20639_v21, %v20638_v28 }
0x4626   :  { %20120 = vmatprep.subr.bf16.mxu0 %v20119_v29  ;;  %v20127_v8 = vpack.c.bf16 %v20644_v18, %v20643_v47  ;;  %v10895_v44 = vpop.permute.xlu1 %10894 }
0x4627   :  { %20124 = vmatprep.subr.bf16.mxu1 %v20123_v38 }
0x4629   :  { %v20986_v27 = vpop.eup %20985  ;;  %20122 = vmatpush3.bf16.msra.mxu0 %v20119_v29 }
0x462a   :  { %v20988_v2 = vpop.eup %20987  ;;  %v10772_v1 = vmul.f32 %v20986_v27, %v10756_v54  ;;  %20131 = vmatprep.subr.bf16.mxu0 %v21280_v6  ;;  %v21134_v54 = vld [vmem:[#allocation7] sm:$0xff] }
0x462b   :  { %v10771_v57 = vmul.f32 %v20988_v2, %v10755_v40 }
0x462c   :  { %19312 = vmatmul.mubr.msk.f32.vlgmr.msra.gmra.mrb[92].mxu0 %vm128_vm0, %v21713_v34  ;;  %v10778_v15 = vmul.f32 %v17678_v35, %v10772_v1 }
0x462d   :  { %19314 = vmatprep.mubr.msk.f32.mxu0 %vm128_vm0, %v21715_v3  ;;  %v10777_v19 = vmul.f32 %v17678_v35, %v10771_v57 }
0x462e   :  { %v22723_v10 = vadd.f32 %v17679_v45, %v10778_v15 }
0x462f   :  { %v22725_v31 = vadd.f32 %v17679_v45, %v10777_v19 }
0x4630   :  { %19315 = vmatmul.mubr.msk.f32.gmra.mrb[94].mxu0 %vm128_vm0, %v21724_v22  ;;  %v10786_v61 = vadd.f32 %v21136_v51, %v22723_v10 }
0x4631   :  { %v10785_v40 = vadd.f32 %v21134_v54, %v22725_v31  ;;  %19335 = vmatprep.mubr.msk.f32.mxu0 %vm21274_vm1, %v22733_v36 }
0x4633   :  { %19300 = vmatprep.mubr.msk.f32.mxu1 %vm128_vm0, %v10785_v40 }
0x4634   :  { %19301 = vmatmul.mubr.msk.f32.vlgmr.msra.gmra.mrb[124].mxu1 %vm128_vm0, %v10786_v61 }
0x4635   :  { %20126 = vmatpush3.bf16.msra.mxu1 %v20123_v38  ;;  %19325 = vmatprep.mubr.msk.f32.mxu1 %vm128_vm0, %v21137_v7 }
0x4636   :  { %20128 = vmatprep.subr.bf16.mxu1 %v20127_v8 }
0x4639   :  { %20130 = vmatpush3.bf16.msra.mxu1 %v20127_v8 }
0x463a   :  { %20135 = vmatprep.subr.bf16.mxu1 %v21280_v6 }
0x463c   :  { %19326 = vmatmul.mubr.msk.f32.vlgmr.msra.gmra.mrb[126].mxu1 %vm128_vm0, %v21138_v25 }
0x463d   :  { %19328 = vmatprep.mubr.msk.f32.mxu1 %vm128_vm0, %v21139_v13 }
0x4640   :  { %19329 = vmatmul.mubr.msk.f32.gmra.mrb[128].mxu1 %vm128_vm0, %v21140_v20 }
0x4641   :  { %19342 = vmatprep.mubr.msk.f32.mxu1 %vm21274_vm1, %v22733_v36 }
0x46ff   :  { %v19313_v32 = vpop.f32.mrb[92].mxu0 }
0x4700   :  { %v10969_v11 = vadd.f32 %v19313_v32, %v10895_v44  ;;  %v10963_v37 = vpop.f32.mrb[93].mxu0 }
0x4701   :  { %v10964_v52 = vadd.f32 %v10963_v37, %v10895_v44 }
0x4703   :  { %v20132_v4 = vpack.c.bf16 %v10969_v11, %v10964_v52  ;;  %v19316_v62 = vpop.f32.mrb[94].mxu0  ;;  %v22759_v23 = vpack.i.bf16 %v10969_v11, %v10964_v52 }
0x4704   :  { %v10979_v56 = vadd.f32 %v19316_v62, %v10895_v44  ;;  %v10973_v0 = vpop.f32.mrb[95].mxu0 }
0x4705   :  { %v10974_v5 = vadd.f32 %v10973_v0, %v10895_v44  ;;  %20134 = vmatpush3.bf16.xpose.msk.msra.mxu0 %vm21753_vm3, %v20132_v4 }
0x4706   :  { %20139 = vmatprep.subr.bf16.mxu0 %v21280_v6 }
0x4707   :  { %v20136_v48 = vpack.c.bf16 %v10979_v56, %v10974_v5  ;;  %v19302_v26 = vpop.f32.mrb[124].mxu1  ;;  %v22764_v29 = vpack.i.bf16 %v10979_v56, %v10974_v5 }
0x4708   :  { %v10868_v14 = vpop.f32.mrb[125].mxu1  ;;  %v10874_v35 = vadd.f32 %v19302_v26, %v22714_v43 }
0x4709   :  { %v10869_v27 = vadd.f32 %v22714_v43, %v10868_v14  ;;  %20138 = vmatpush3.bf16.xpose.msk.msra.mxu1 %vm21753_vm3, %v20136_v48 }
0x470a   :  { %20142 = vmatprep.subr.bf16.mxu1 %v21280_v6  ;;  %v22775_v28 = vmul.f32 0.35355338, %v10874_v35 }
0x470b   :  { %v22771_v21 = vmul.f32 0.35355338, %v10869_v27 }
0x470d   :  { %19336 = vmatmul.mubr.msk.f32.vlgmr.msra.gmra.mrb[96].mxu0 %vm403_vm2, %v22771_v21 }
0x470e   :  { %19349 = vmatprep.mubr.msk.f32.mxu0 %vm21274_vm1, %v22733_v36 }
0x470f   :  { %v19327_v2 = vpop.f32.mrb[126].mxu1 }
0x4710   :  { %19343 = vmatmul.mubr.msk.f32.vlgmr.msra.gmra.mrb[130].mxu1 %vm403_vm2, %v22775_v28  ;;  %v11063_v1 = vpop.f32.mrb[127].mxu1 }
0x4711   :  { %19356 = vmatprep.mubr.msk.f32.mxu1 %vm21274_vm1, %v22733_v36 }
0x4713   :  { %v19330_v45 = vpop.f32.mrb[128].mxu1 }
0x4714   :  { %v11073_v57 = vpop.f32.mrb[129].mxu1 }
0x47e0   :  { %v11159_v12 = vpop.f32.mrb[96].mxu0 }
0x47e1   :  { %v19337_v38 = vpop.f32.mrb[97].mxu0  ;;  %v11242_v15 = vsel %vm2593_vm4, %v11159_v12, -inf }
0x47e2   :  { %11243 = vmax.xlane.f32.xlu0 %v11242_v15 }
0x47e3   :  { %v11238_v19 = vpop.f32.mrb[130].mxu1 }
0x47e4   :  { %v19344_v18 = vpop.f32.mrb[131].mxu1  ;;  %v11245_v47 = vsel %vm2593_vm4, %v11238_v19, -inf }
0x47e5   :  { %11246 = vmax.xlane.f32.xlu1 %v11245_v47 }
0x47f6   :  { %10994 = vrot.lane.b32.xlu1 %v22714_v43, %s21275_s15 }
0x47fa   :  { %20651 = vrot.lane.b32.xlu1 %v22764_v29, %s21276_s16 }
0x47fe   :  { %11410 = vrot.lane.b32.xlu1 %v22771_v21, %s21276_s16 }
0x486f   :  { %v11244_v54 = vpop.xlane.xlu0 %11243 }
0x4870   :  { %v11248_v40 = vsub.f32 %v11159_v12, %v11244_v54 }
0x4872   :  { %v11247_v51 = vpop.xlane.xlu1 %11246  ;;  %v11250_v8 = vmul.f32 1.442695, %v11248_v40 }
0x4873   :  { %v11249_v61 = vsub.f32 %v11238_v19, %v11247_v51 }
0x4875   :  { %v11252_v7 = vmul.f32 1.442695, %v11249_v61 }
0x4876   :  { %v10995_v25 = vpop.permute.xlu1 %10994 }
0x4877   :  { %20989 = vpow2.f32 %v11252_v7  ;;  %v11064_v13 = vadd.f32 %v11063_v1, %v10995_v25  ;;  %v11069_v20 = vadd.f32 %v19327_v2, %v10995_v25  ;;  %v11074_v44 = vadd.f32 %v11073_v57, %v10995_v25 }
0x4878   :  { %20991 = vpow2.f32 %v11250_v8  ;;  %v11079_v32 = vadd.f32 %v19330_v45, %v10995_v25 }
0x4879   :  { %v20140_v11 = vpack.c.bf16 %v11069_v20, %v11064_v13  ;;  %v22791_v37 = vpack.i.bf16 %v11069_v20, %v11064_v13 }
0x487a   :  { %v20143_v52 = vpack.c.bf16 %v11079_v32, %v11074_v44  ;;  %v22793_v4 = vpack.i.bf16 %v11079_v32, %v11074_v44  ;;  %v20652_v14 = vpop.permute.xlu1 %20651 }
0x487b   :  { %20141 = vmatpush3.bf16.msra.mxu0 %v20140_v11  ;;  %v20654_v27 = vunpack.i.h.bf16 %v20652_v14  ;;  %v20653_v35 = vunpack.i.l.bf16 %v20652_v14 }
0x487c   :  { %20144 = vmatpush3.bf16.msra.mxu1 %v20143_v52  ;;  %20145 = vmatprep.subr.bf16.mxu0 %v21280_v6 }
0x487d   :  { %20149 = vmatprep.subr.bf16.mxu1 %v21280_v6  ;;  %v20150_v57 = vpack.c.bf16 %v20654_v27, %v20653_v35 }
0x487e   :  { %v11411_v54 = vpop.permute.xlu1 %11410 }
0x4881   :  { %v20990_v62 = vpop.eup %20989 }
0x4882   :  { %v20992_v56 = vpop.eup %20991  ;;  %v11257_v0 = vsel %vm2593_vm4, %v20990_v62, 0.0 }
0x4883   :  { %11258 = vadd.xlane.f32.xlu0 %v11257_v0  ;;  %v11254_v5 = vsel %vm2593_vm4, %v20992_v56, 0.0 }
0x4887   :  { %11255 = vadd.xlane.f32.xlu0 %v11254_v5 }
0x489d   :  { %20646 = vrot.lane.b32.xlu0 %v22759_v23, %s21276_s16 }
0x48a1   :  { %11492 = vrot.lane.b32.xlu0 %v22775_v28, %s21276_s16 }
0x4910   :  { %v11259_v48 = vpop.xlane.xlu0 %11258 }
0x4911   :  { %20993 = vrcp.f32 %v11259_v48 }
0x4914   :  { %v11256_v26 = vpop.xlane.xlu0 %11255 }
0x4915   :  { %20995 = vrcp.f32 %v11256_v26 }
0x4918   :  { %v20647_v2 = vpop.permute.xlu0 %20646 }
0x4919   :  { %v20649_v12 = vunpack.i.h.bf16 %v20647_v2  ;;  %v20648_v38 = vunpack.i.l.bf16 %v20647_v2 }
0x491b   :  { %v20994_v1 = vpop.eup %20993  ;;  %v20146_v18 = vpack.c.bf16 %v20649_v12, %v20648_v38 }
0x491c   :  { %v22803_v45 = vmul.f32 %v20994_v1, %v20990_v62  ;;  %v11493_v47 = vpop.permute.xlu0 %11492 }
0x491e   :  { %19357 = vmatmul.mubr.msk.f32.vlgmr.msra.gmra.mrb[132].mxu1 %vm2593_vm4, %v22803_v45 }
0x491f   :  { %v20996_v15 = vpop.eup %20995  ;;  %20152 = vmatpush3.bf16.xpose.msk.msra.mxu1 %vm21753_vm3, %v20150_v57  ;;  %19370 = vmatprep.mubr.msk.f32.mxu1 %vm21274_vm1, %v22733_v36 }
0x4920   :  { %v22811_v19 = vmul.f32 %v20996_v15, %v20992_v56  ;;  %20156 = vmatprep.subr.bf16.mxu1 %v21280_v6 }
0x4922   :  { %19350 = vmatmul.mubr.msk.f32.vlgmr.msra.gmra.mrb[98].mxu0 %vm2593_vm4, %v22811_v19 }
0x4923   :  { %20148 = vmatpush3.bf16.xpose.msk.msra.mxu0 %vm21753_vm3, %v20146_v18  ;;  %19363 = vmatprep.mubr.msk.f32.mxu0 %vm21274_vm1, %v22733_v36 }
0x4924   :  { %20153 = vmatprep.subr.bf16.mxu0 %v21280_v6 }
0x4926   :  { %19371 = vmatmul.mubr.msk.f32.vlgmr.msra.gmra.mrb[134].mxu1 %vm403_vm2, %v11493_v47 }
0x4927   :  { %19384 = vmatprep.mubr.msk.f32.mxu1 %vm21274_vm1, %v22733_v36 }
0x492a   :  { %19364 = vmatmul.mubr.msk.f32.vlgmr.msra.gmra.mrb[100].mxu0 %vm403_vm2, %v11411_v54 }
0x492b   :  { %19377 = vmatprep.mubr.msk.f32.mxu0 %vm21274_vm1, %v22733_v36 }
0x49f1   :  { %v22827_v40 = vpop.f32.mrb[132].mxu1 }
0x49f2   :  { %v19358_v51 = vpop.f32.mrb[133].mxu1 }
0x49f5   :  { %v22829_v61 = vpop.f32.mrb[98].mxu0 }
0x49f6   :  { %v19351_v8 = vpop.f32.mrb[99].mxu0 }
0x49f9   :  { %v11570_v7 = vpop.f32.mrb[134].mxu1 }
0x49fa   :  { %v19372_v25 = vpop.f32.mrb[135].mxu1  ;;  %v11577_v13 = vsel %vm2593_vm4, %v11570_v7, -inf }
0x49fb   :  { %11578 = vmax.xlane.f32.xlu0 %v11577_v13 }
0x49fd   :  { %v11488_v20 = vpop.f32.mrb[100].mxu0 }
0x49fe   :  { %v19365_v44 = vpop.f32.mrb[101].mxu0  ;;  %v11574_v32 = vsel %vm2593_vm4, %v11488_v20, -inf }
0x49ff   :  { %11575 = vmax.xlane.f32.xlu1 %v11574_v32 }
0x4a88   :  { %v11579_v11 = vpop.xlane.xlu0 %11578 }
0x4a89   :  { %v11581_v52 = vsub.f32 %v11570_v7, %v11579_v11 }
0x4a8b   :  { %v11584_v62 = vmul.f32 1.442695, %v11581_v52 }
0x4a8c   :  { %v11576_v56 = vpop.xlane.xlu1 %11575 }
0x4a8d   :  { %20997 = vpow2.f32 %v11584_v62  ;;  %v11580_v0 = vsub.f32 %v11488_v20, %v11576_v56 }
0x4a8f   :  { %v11582_v5 = vmul.f32 1.442695, %v11580_v0 }
0x4a91   :  { %20999 = vpow2.f32 %v11582_v5 }
0x4a97   :  { %v20998_v48 = vpop.eup %20997 }
0x4a98   :  { %v11589_v26 = vsel %vm2593_vm4, %v20998_v48, 0.0 }
0x4a99   :  { %11590 = vadd.xlane.f32.xlu1 %v11589_v26 }
0x4a9b   :  { %v21000_v14 = vpop.eup %20999 }
0x4a9c   :  { %v11586_v27 = vsel %vm2593_vm4, %v21000_v14, 0.0 }
0x4a9d   :  { %11587 = vadd.xlane.f32.xlu0 %v11586_v27 }
0x4aaa   :  { %20661 = vrot.lane.b32.xlu1 %v22793_v4, %s21276_s16 }
0x4aae   :  { %11758 = vrot.lane.b32.xlu1 %v22702_v60, %s21278_s18 }
0x4ab2   :  { %20666 = vrot.lane.b32.xlu1 %v22759_v23, %s21277_s17 }
0x4ab3   :  { %20656 = vrot.lane.b32.xlu0 %v22791_v37, %s21276_s16 }
0x4ab6   :  { %11928 = vrot.lane.b32.xlu1 %v22771_v21, %s21277_s17 }
0x4ab7   :  { %11842 = vrot.lane.b32.xlu0 %v22700_v46, %s21278_s18 }
0x4abb   :  { %20671 = vrot.lane.b32.xlu0 %v22764_v29, %s21277_s17 }
0x4abf   :  { %12010 = vrot.lane.b32.xlu0 %v22775_v28, %s21277_s17 }
0x4b26   :  { %v11591_v35 = vpop.xlane.xlu1 %11590 }
0x4b27   :  { %21001 = vrcp.f32 %v11591_v35 }
0x4b2a   :  { %v11588_v60 = vpop.xlane.xlu0 %11587  ;;  %v20662_v2 = vpop.permute.xlu1 %20661 }
0x4b2b   :  { %21003 = vrcp.f32 %v11588_v60  ;;  %v20664_v1 = vunpack.i.h.bf16 %v20662_v2  ;;  %v20663_v57 = vunpack.i.l.bf16 %v20662_v2 }
0x4b2d   :  { %v20157_v12 = vpack.c.bf16 %v20664_v1, %v20663_v57 }
0x4b2e   :  { %v20657_v38 = vpop.permute.xlu0 %20656  ;;  %v11759_v15 = vpop.permute.xlu1 %11758 }
0x4b2f   :  { %v20659_v18 = vunpack.i.h.bf16 %v20657_v38  ;;  %v20658_v47 = vunpack.i.l.bf16 %v20657_v38  ;;  %20158 = vmatpush3.bf16.msra.mxu1 %v20157_v12 }
0x4b30   :  { %20159 = vmatprep.subr.bf16.mxu1 %v21280_v6 }
0x4b31   :  { %v21002_v46 = vpop.eup %21001  ;;  %v20154_v54 = vpack.c.bf16 %v20659_v18, %v20658_v47 }
0x4b32   :  { %v20667_v51 = vpop.permute.xlu1 %20666  ;;  %v22852_v8 = vmul.f32 %v21002_v46, %v20998_v48  ;;  %v11843_v32 = vpop.permute.xlu0 %11842 }
0x4b33   :  { %v20669_v7 = vunpack.i.h.bf16 %v20667_v51  ;;  %v20668_v25 = vunpack.i.l.bf16 %v20667_v51  ;;  %20155 = vmatpush3.bf16.msra.mxu0 %v20154_v54 }
0x4b34   :  { %19385 = vmatmul.mubr.msk.f32.vlgmr.msra.gmra.mrb[136].mxu1 %vm2593_vm4, %v22852_v8  ;;  %19387 = vmatprep.subr.mxu0 %v11759_v15 }
0x4b35   :  { %v21004_v13 = vpop.eup %21003  ;;  %v20160_v20 = vpack.c.bf16 %v20669_v7, %v20668_v25  ;;  %19401 = vmatprep.mubr.msk.f32.mxu1 %vm21274_vm1, %v22733_v36 }
0x4b36   :  { %v22858_v44 = vmul.f32 %v21004_v13, %v21000_v14  ;;  %v11929_v11 = vpop.permute.xlu1 %11928  ;;  %v20672_v5 = vpop.permute.xlu0 %20671 }
0x4b37   :  { %v20674_v48 = vunpack.i.h.bf16 %v20672_v5  ;;  %v20673_v26 = vunpack.i.l.bf16 %v20672_v5 }
0x4b38   :  { %19378 = vmatmul.mubr.msk.f32.vlgmr.msra.gmra.mrb[102].mxu0 %vm2593_vm4, %v22858_v44  ;;  %20162 = vmatpush3.bf16.xpose.msk.msra.mxu1 %vm21753_vm3, %v20160_v20 }
0x4b39   :  { %19388 = vmatpush3.msra.mxu0 %v11759_v15  ;;  %20167 = vmatprep.subr.bf16.mxu1 %v21280_v6  ;;  %v20164_v60 = vpack.c.bf16 %v20674_v48, %v20673_v26 }
0x4b3a   :  { %19392 = vmatprep.subr.mxu0 %v11843_v32 }
0x4b3f   :  { %19402 = vmatmul.mubr.msk.f32.vlgmr.msra.gmra.mrb[138].mxu1 %vm403_vm2, %v11929_v11 }
0x4b40   :  { %19415 = vmatprep.mubr.msk.f32.mxu1 %vm21274_vm1, %v22733_v36 }
0x4c07   :  { %v11754_v52 = vpop.f32.mrb[136].mxu1 }
0x4c08   :  { %v19386_v62 = vpop.f32.mrb[137].mxu1 }
0x4c0b   :  { %v11673_v56 = vpop.f32.mrb[102].mxu0 }
0x4c0c   :  { %v19379_v0 = vpop.f32.mrb[103].mxu0  ;;  %19389 = vmatprep.mubr.msk.f32.mxu0 %vm403_vm2, %v11673_v56 }
0x4c0d   :  { %19390 = vmatmul.mubr.msk.f32.vlgmr.msra.gmra.mrb[104].mxu0 %vm403_vm2, %v11754_v52 }
0x4c0e   :  { %19393 = vmatpush3.msra.mxu0 %v11843_v32  ;;  %19394 = vmatprep.mubr.msk.f32.mxu0 %vm403_vm2, %v22829_v61  ;;  %v12011_v61 = vpop.permute.xlu0 %12010 }
0x4c0f   :  { %20163 = vmatprep.subr.bf16.mxu0 %v21280_v6 }
0x4c12   :  { %v12006_v14 = vpop.f32.mrb[138].mxu1 }
0x4c13   :  { %v19403_v27 = vpop.f32.mrb[139].mxu1  ;;  %v12092_v35 = vsel %vm2593_vm4, %v12006_v14, -inf }
0x4c14   :  { %12093 = vmax.xlane.f32.xlu1 %v12092_v35 }
0x4c15   :  { %19395 = vmatmul.mubr.msk.f32.vlgmr.msra.gmra.mrb[104].mxu0 %vm403_vm2, %v22827_v40 }
0x4c16   :  { %20166 = vmatpush3.bf16.xpose.msk.msra.mxu0 %vm21753_vm3, %v20164_v60  ;;  %19408 = vmatprep.mubr.msk.f32.mxu0 %vm21274_vm1, %v22733_v36 }
0x4c1d   :  { %19409 = vmatmul.mubr.msk.f32.vlgmr.msra.gmra.mrb[106].mxu0 %vm403_vm2, %v12011_v61 }
0x4ca1   :  { %v12094_v2 = vpop.xlane.xlu1 %12093 }
0x4ca2   :  { %v12098_v1 = vsub.f32 %v12006_v14, %v12094_v2 }
0x4ca4   :  { %v12100_v57 = vmul.f32 1.442695, %v12098_v1 }
0x4ca6   :  { %21005 = vpow2.f32 %v12100_v57 }
0x4cb0   :  { %v21006_v18 = vpop.eup %21005 }
0x4cb1   :  { %v12104_v40 = vsel %vm2593_vm4, %v21006_v18, 0.0 }
0x4cf0   :  { %v12088_v12 = vpop.f32.mrb[106].mxu0 }
0x4cf1   :  { %v19410_v38 = vpop.f32.mrb[107].mxu0  ;;  %v12095_v15 = vsel %vm2593_vm4, %v12088_v12, -inf }
0x4cf2   :  { %12096 = vmax.xlane.f32.xlu0 %v12095_v15 }
0x4cf6   :  { %12105 = vadd.xlane.f32.xlu0 %v12104_v40 }
0x4d0c   :  { %20676 = vrot.lane.b32.xlu0 %v22791_v37, %s21277_s17 }
0x4d10   :  { %20686 = vrot.lane.b32.xlu0 %v22759_v23, %s21279_s19 }
0x4d14   :  { %12360 = vrot.lane.b32.xlu0 %v22771_v21, %s21279_s19  ;;  %v11926_v21 = vadd.f32 %v22858_v44, %v22811_v19 }
0x4d7f   :  { %v12097_v47 = vpop.xlane.xlu0 %12096 }
0x4d80   :  { %v12099_v46 = vsub.f32 %v12088_v12, %v12097_v47 }
0x4d82   :  { %v12102_v54 = vmul.f32 1.442695, %v12099_v46 }
0x4d83   :  { %v12106_v51 = vpop.xlane.xlu0 %12105 }
0x4d84   :  { %21007 = vpow2.f32 %v12102_v54 }
0x4d85   :  { %21009 = vrcp.f32 %v12106_v51 }
0x4d87   :  { %v20677_v7 = vpop.permute.xlu0 %20676 }
0x4d88   :  { %v20679_v25 = vunpack.i.h.bf16 %v20677_v7  ;;  %v20678_v13 = vunpack.i.l.bf16 %v20677_v7 }
0x4d8a   :  { %v20168_v20 = vpack.c.bf16 %v20679_v25, %v20678_v13 }
0x4d8b   :  { %v20687_v26 = vpop.permute.xlu0 %20686 }
0x4d8c   :  { %20169 = vmatpush3.bf16.msra.mxu1 %v20168_v20  ;;  %v20688_v14 = vunpack.i.l.bf16 %v20687_v26 }
0x4d8d   :  { %20170 = vmatprep.subr.bf16.mxu1 %v21280_v6 }
0x4d8e   :  { %v21008_v32 = vpop.eup %21007 }
0x4d8f   :  { %v21010_v11 = vpop.eup %21009  ;;  %v12107_v23 = vsel %vm2593_vm4, %v21008_v32, 0.0  ;;  %v12361_v61 = vpop.permute.xlu0 %12360 }
0x4d90   :  { %12108 = vadd.xlane.f32.xlu1 %v12107_v23  ;;  %v12111_v52 = vmul.f32 %v21010_v11, %v21006_v18 }
0x4d92   :  { %19416 = vmatmul.mubr.msk.f32.vlgmr.msra.gmra.mrb[140].mxu1 %vm2593_vm4, %v12111_v52  ;;  %v22894_v62 = vadd.f32 %v12111_v52, %v11926_v21 }
0x4d93   :  { %19422 = vmatprep.mubr.msk.f32.mxu1 %vm21274_vm1, %v22733_v36 }
0x4da1   :  { %20681 = vrot.lane.b32.xlu1 %v22793_v4, %s21277_s17 }
0x4da5   :  { %12272 = vrot.lane.b32.xlu1 %v22694_v16, %s21278_s18 }
0x4da9   :  { %20691 = vrot.lane.b32.xlu1 %v22764_v29, %s21279_s19  ;;  %v20689_v29 = vunpack.i.h.bf16 %v20687_v26 }
0x4dab   :  { %v20174_v60 = vpack.c.bf16 %v20689_v29, %v20688_v14 }
0x4dad   :  { %12442 = vrot.lane.b32.xlu1 %v22775_v28, %s21279_s19  ;;  %v11927_v28 = vadd.f32 %v22852_v8, %v22803_v45 }
0x4e1d   :  { %v12109_v19 = vpop.xlane.xlu1 %12108 }
0x4e1e   :  { %21011 = vrcp.f32 %v12109_v19 }
0x4e21   :  { %v20682_v44 = vpop.permute.xlu1 %20681 }
0x4e22   :  { %v20684_v56 = vunpack.i.h.bf16 %v20682_v44  ;;  %v20683_v0 = vunpack.i.l.bf16 %v20682_v44 }
0x4e24   :  { %v20171_v5 = vpack.c.bf16 %v20684_v56, %v20683_v0 }
0x4e25   :  { %v12273_v48 = vpop.permute.xlu1 %12272 }
0x4e26   :  { %20172 = vmatpush3.bf16.msra.mxu1 %v20171_v5  ;;  %19425 = vmatprep.subr.mxu0 %v12273_v48 }
0x4e27   :  { %20173 = vmatprep.subr.bf16.mxu1 %v21280_v6  ;;  %19426 = vmatpush3.msra.mxu0 %v12273_v48 }
0x4e28   :  { %v21012_v16 = vpop.eup %21011  ;;  %20177 = vmatprep.subr.bf16.mxu0 %v21280_v6 }
0x4e29   :  { %v12113_v27 = vmul.f32 %v21012_v16, %v21008_v32  ;;  %v20692_v2 = vpop.permute.xlu1 %20691 }
0x4e2a   :  { %v20694_v1 = vunpack.i.h.bf16 %v20692_v2  ;;  %v20693_v57 = vunpack.i.l.bf16 %v20692_v2 }
0x4e2b   :  { %19423 = vmatmul.mubr.msk.f32.vlgmr.msra.gmra.mrb[142].mxu1 %vm2593_vm4, %v12113_v27  ;;  %v22911_v35 = vadd.f32 %v12113_v27, %v11927_v28 }
0x4e2c   :  { %19434 = vmatprep.mubr.msk.f32.mxu1 %vm21274_vm1, %v22733_v36  ;;  %v20178_v12 = vpack.c.bf16 %v20694_v1, %v20693_v57 }
0x4e2d   :  { %v12443_v18 = vpop.permute.xlu1 %12442 }
0x4e2f   :  { %20176 = vmatpush3.bf16.xpose.msk.msra.mxu1 %vm21753_vm3, %v20174_v60 }
0x4e30   :  { %20181 = vmatprep.subr.bf16.mxu1 %v21280_v6 }
0x4e36   :  { %19435 = vmatmul.mubr.msk.f32.vlgmr.msra.gmra.mrb[144].mxu1 %vm403_vm2, %v12361_v61 }
0x4e37   :  { %19448 = vmatprep.mubr.msk.f32.mxu1 %vm21274_vm1, %v22733_v36 }
0x4e65   :  { %v12189_v45 = vpop.f32.mrb[140].mxu1 }
0x4e66   :  { %v19417_v8 = vpop.f32.mrb[141].mxu1  ;;  %19427 = vmatprep.mubr.msk.f32.mxu0 %vm403_vm2, %v12189_v45 }
0x4efe   :  { %v12268_v38 = vpop.f32.mrb[142].mxu1 }
0x4eff   :  { %v19424_v15 = vpop.f32.mrb[143].mxu1  ;;  %19428 = vmatmul.mubr.msk.f32.vlgmr.msra.gmra.mrb[104].mxu0 %vm403_vm2, %v12268_v38 }
0x4f00   :  { %20180 = vmatpush3.bf16.xpose.msk.msra.mxu0 %vm21753_vm3, %v20178_v12  ;;  %19441 = vmatprep.mubr.msk.f32.mxu0 %vm21274_vm1, %v22733_v36 }
0x4f01   :  { %20184 = vmatprep.subr.bf16.mxu0 %v21280_v6 }
0x4f07   :  { %19442 = vmatmul.mubr.msk.f32.vlgmr.msra.gmra.mrb[108].mxu0 %vm403_vm2, %v12443_v18 }
0x4f08   :  { %19455 = vmatprep.mubr.msk.f32.mxu0 %vm21274_vm1, %v22733_v36 }
0x4f09   :  { %v12438_v40 = vpop.f32.mrb[144].mxu1 }
0x4f0a   :  { %v19436_v47 = vpop.f32.mrb[145].mxu1  ;;  %v12524_v46 = vsel %vm2593_vm4, %v12438_v40, -inf }
0x4f0b   :  { %12525 = vmax.xlane.f32.xlu0 %v12524_v46 }
0x4f98   :  { %v12526_v54 = vpop.xlane.xlu0 %12525 }
0x4f99   :  { %v12530_v51 = vsub.f32 %v12438_v40, %v12526_v54 }
0x4f9b   :  { %v12532_v7 = vmul.f32 1.442695, %v12530_v51 }
0x4f9d   :  { %21013 = vpow2.f32 %v12532_v7 }
0x4fa7   :  { %v21014_v25 = vpop.eup %21013 }
0x4fa8   :  { %v12536_v13 = vsel %vm2593_vm4, %v21014_v25, 0.0 }
0x4fa9   :  { %12537 = vadd.xlane.f32.xlu0 %v12536_v13 }
0x4fda   :  { %v12520_v20 = vpop.f32.mrb[108].mxu0 }
0x4fdb   :  { %v19443_v32 = vpop.f32.mrb[109].mxu0  ;;  %v12527_v11 = vsel %vm2593_vm4, %v12520_v20, -inf }
0x4fdc   :  { %12528 = vmax.xlane.f32.xlu1 %v12527_v11 }
0x4fed   :  { %20696 = vrot.lane.b32.xlu1 %v22791_v37, %s21279_s19 }
0x4ff1   :  { %12704 = vrot.lane.b32.xlu1 %v22696_v49, %s21278_s18 }
0x4ff5   :  { %12792 = vrot.lane.b32.xlu1 %v22714_v43, %s21278_s18 }
0x5036   :  { %v12538_v36 = vpop.xlane.xlu0 %12537 }
0x5037   :  { %21015 = vrcp.f32 %v12538_v36  ;;  %v12842_v36 = vld [vmem:[#allocation9 + $0x320] sm:$0xff] }
0x5041   :  { %v21016_v23 = vpop.eup %21015 }
0x5042   :  { %v12543_v52 = vmul.f32 %v21016_v23, %v21014_v25  ;;  %v12843_v23 = vld [vmem:[#allocation9 + $0x328] sm:$0xff] }
0x5044   :  { %v22941_v21 = vadd.f32 %v12543_v52, %v22894_v62 }
0x5069   :  { %v12529_v19 = vpop.xlane.xlu1 %12528 }
0x506a   :  { %v12531_v44 = vsub.f32 %v12520_v20, %v12529_v19  ;;  %v12844_v19 = vld [vmem:[#allocation9 + $0x330] sm:$0xff] }
0x506c   :  { %v12534_v56 = vmul.f32 1.442695, %v12531_v44  ;;  %v20191_v44 = vpack.c.bf16 %v12844_v19, %v12843_v23 }
0x506d   :  { %v20697_v0 = vpop.permute.xlu1 %20696 }
0x506e   :  { %21017 = vpow2.f32 %v12534_v56  ;;  %v20699_v5 = vunpack.i.h.bf16 %v20697_v0  ;;  %v20698_v37 = vunpack.i.l.bf16 %v20697_v0  ;;  %v12933_v56 = vld [vmem:[#allocation9 + $0x338] sm:$0xff]  ;;  %v12934_v0 = vld [vmem:[#allocation9 + $0x340] sm:$0xff] }
0x5070   :  { %v20182_v48 = vpack.c.bf16 %v20699_v5, %v20698_v37  ;;  %v12935_v5 = vld [vmem:[#allocation9 + $0x348] sm:$0xff]  ;;  %v20195_v37 = vpack.c.bf16 %v12934_v0, %v12933_v56 }
0x5071   :  { %v12705_v27 = vpop.permute.xlu1 %12704 }
0x5072   :  { %20183 = vmatpush3.bf16.msra.mxu1 %v20182_v48  ;;  %v12936_v48 = vld [vmem:[#allocation9 + $0x350] sm:$0xff] }
0x5075   :  { %19449 = vmatmul.mubr.msk.f32.vlgmr.msra.gmra.mrb[146].mxu1 %vm2593_vm4, %v12543_v52  ;;  %v12793_v1 = vpop.permute.xlu1 %12792 }
0x5078   :  { %v21018_v49 = vpop.eup %21017 }
0x5079   :  { %v12539_v43 = vsel %vm2593_vm4, %v21018_v49, 0.0 }
0x507a   :  { %12540 = vadd.xlane.f32.xlu0 %v12539_v43  ;;  %v12937_v43 = vld [vmem:[#allocation9 + $0x358] sm:$0xff] }
0x5090   :  { %20701 = vrot.lane.b32.xlu0 %v22793_v4, %s21279_s19 }
0x5107   :  { %v12541_v62 = vpop.xlane.xlu0 %12540 }
0x5108   :  { %21019 = vrcp.f32 %v12541_v62  ;;  %v12938_v62 = vld [vmem:[#allocation9 + $0x360] sm:$0xff] }
0x510b   :  { %v20702_v26 = vpop.permute.xlu0 %20701 }
0x510c   :  { %v20704_v16 = vunpack.i.h.bf16 %v20702_v26  ;;  %v20703_v29 = vunpack.i.l.bf16 %v20702_v26  ;;  %v20203_v26 = vpack.c.bf16 %v12938_v62, %v12937_v43 }
0x510e   :  { %v20185_v14 = vpack.c.bf16 %v20704_v16, %v20703_v29 }
0x5110   :  { %20186 = vmatpush3.bf16.msra.mxu0 %v20185_v14 }
0x5111   :  { %19458 = vmatprep.subr.mxu0 %v12705_v27 }
0x5112   :  { %v21020_v28 = vpop.eup %21019 }
0x5113   :  { %v12545_v60 = vmul.f32 %v21020_v28, %v21018_v49  ;;  %v20199_v49 = vpack.c.bf16 %v12936_v48, %v12935_v5 }
0x5115   :  { %19456 = vmatmul.mubr.msk.f32.vlgmr.msra.gmra.mrb[110].mxu0 %vm2593_vm4, %v12545_v60  ;;  %v22949_v61 = vadd.f32 %v12545_v60, %v22911_v35 }
0x5116   :  { %19459 = vmatpush3.msra.mxu0 %v12705_v27 }
0x5117   :  { %20196 = vmatprep.subr.bf16.mxu0 %v20195_v37 }
0x5148   :  { %v12621_v45 = vpop.f32.mrb[146].mxu1 }
0x5149   :  { %v19450_v8 = vpop.f32.mrb[147].mxu1  ;;  %19460 = vmatprep.mubr.msk.f32.mxu0 %vm403_vm2, %v12621_v45 }
0x514a   :  { %v17731_v8 = vld [vmem:[#allocation9 + $0x390] ss:$0 sm:$0xff] }
0x51e8   :  { %v12700_v4 = vpop.f32.mrb[110].mxu0 }
0x51e9   :  { %v19457_v2 = vpop.f32.mrb[111].mxu0  ;;  %19461 = vmatmul.mubr.msk.f32.vlgmr.msra.gmra.mrb[104].mxu0 %vm403_vm2, %v12700_v4 }
0x51ea   :  { %20198 = vmatpush3.bf16.msra.mxu0 %v20195_v37  ;;  %v17732_v2 = vld [vmem:[#allocation9 + $0x388] ss:$0 sm:$0xff] }
0x51eb   :  { %20200 = vmatprep.subr.bf16.mxu0 %v20199_v49 }
0x51ee   :  { %20202 = vmatpush3.bf16.msra.mxu0 %v20199_v49 }
0x51ef   :  { %20204 = vmatprep.subr.bf16.mxu0 %v20203_v26 }
0x51f2   :  { %20206 = vmatpush3.bf16.msra.mxu0 %v20203_v26 }
0x52bc   :  { %v19462_v57 = vpop.f32.mrb[104].mxu0 }
0x52bd   :  { %v12796_v12 = vadd.f32 %v19462_v57, %v12793_v1  ;;  %v12779_v38 = vpop.f32.mrb[105].mxu0 }
0x52be   :  { %v12795_v15 = vadd.f32 %v12793_v1, %v12779_v38 }
0x52bf   :  { %v12800_v18 = vadd.f32 %v12796_v12, %v22723_v10 }
0x52c0   :  { %v12799_v40 = vadd.f32 %v12795_v15, %v22725_v31  ;;  %v12841_v31 = vld [vmem:[#allocation9 + $0x318] sm:$0xff] }
0x52c1   :  { %v12806_v35 = vsel %vm128_vm0, %v12800_v18, 0.0  ;;  %v20187_v52 = vpack.c.bf16 %v12842_v36, %v12841_v31 }
0x52c2   :  { %12807 = vadd.xlane.f32.xlu1 %v12806_v35  ;;  %v12803_v47 = vsel %vm128_vm0, %v12799_v40, 0.0  ;;  %v12940_v35 = vld [vmem:[#allocation9 + $0x370] sm:$0xff] }
0x52c3   :  { %12804 = vadd.xlane.f32.xlu0 %v12803_v47  ;;  %20188 = vmatprep.subr.bf16.mxu1 %v20187_v52 }
0x52c4   :  { %20190 = vmatpush3.bf16.msra.mxu1 %v20187_v52 }
0x52c5   :  { %20192 = vmatprep.subr.bf16.mxu1 %v20191_v44 }
0x52c8   :  { %20194 = vmatpush3.bf16.msra.mxu1 %v20191_v44 }
0x534f   :  { %v12808_v46 = vpop.xlane.xlu1 %12807 }
0x5350   :  { %v12810_v54 = vmul.f32 0.03125, %v12808_v46  ;;  %v12805_v51 = vpop.xlane.xlu0 %12804  ;;  %v17733_v46 = vld [vmem:[#allocation9 + $0x308] ss:$0 sm:$0xff] }
0x5351   :  { %v12809_v7 = vmul.f32 0.03125, %v12805_v51 }
0x5352   :  { %v12812_v25 = vsub.f32 %v12800_v18, %v12810_v54 }
0x5353   :  { %v12811_v13 = vsub.f32 %v12799_v40, %v12809_v7  ;;  %v12939_v40 = vld [vmem:[#allocation9 + $0x368] sm:$0xff] }
0x5354   :  { %v12814_v11 = vmul.f32 %v12812_v25, %v12812_v25  ;;  %v20207_v47 = vpack.c.bf16 %v12940_v35, %v12939_v40  ;;  %v22997_v35 = vld [vmem:[#allocation9 + $0x1d0] sm:$0xff] }
0x5355   :  { %v12813_v20 = vmul.f32 %v12811_v13, %v12811_v13 }
0x5356   :  { %v12818_v10 = vsel %vm128_vm0, %v12814_v11, 0.0  ;;  %20208 = vmatprep.subr.bf16.mxu0 %v20207_v47  ;;  %v17736_v11 = vld [vmem:[#allocation9 + $0x310] ss:$0 sm:$0xff] }
0x5357   :  { %v12815_v32 = vsel %vm128_vm0, %v12813_v20, 0.0  ;;  %20210 = vmatpush3.bf16.msra.mxu0 %v20207_v47  ;;  %v22999_v47 = vld [vmem:[#allocation9 + $0x1d8] sm:$0xff] }
0x5358   :  { %12816 = vadd.xlane.f32.xlu0 %v12815_v32 }
0x535c   :  { %12819 = vadd.xlane.f32.xlu0 %v12818_v10 }
0x53e5   :  { %v12817_v16 = vpop.xlane.xlu0 %12816 }
0x53e6   :  { %v12821_v29 = vmul.f32 0.03125, %v12817_v16 }
0x53e8   :  { %v12823_v14 = vadd.f32 1e-05, %v12821_v29 }
0x53e9   :  { %v12820_v27 = vpop.xlane.xlu0 %12819 }
0x53ea   :  { %21021 = vrsqrt.f32 %v12823_v14  ;;  %v12822_v28 = vmul.f32 0.03125, %v12820_v27 }
0x53ec   :  { %v12824_v60 = vadd.f32 1e-05, %v12822_v28 }
0x53ee   :  { %21023 = vrsqrt.f32 %v12824_v60 }
0x53f4   :  { %v21022_v45 = vpop.eup %21021 }
0x53f5   :  { %v12827_v4 = vmul.f32 %v21022_v45, %v12811_v13 }
0x53f7   :  { %v12833_v1 = vmul.f32 %v17731_v8, %v12827_v4 }
0x53f8   :  { %v21024_v57 = vpop.eup %21023 }
0x53f9   :  { %v12828_v12 = vmul.f32 %v21024_v57, %v12812_v25  ;;  %v12839_v38 = vadd.f32 %v17732_v2, %v12833_v1  ;;  %v17632_v25 = vld [vmem:[#allocation9 + $0x30] ss:$0 sm:$0xff] }
0x53fa   :  { %v8701_v31 = vadd.f32 %v22520_v30, %v17632_v25  ;;  %v8696_v52 = vadd.f32 %v17632_v25, %v22522_v17 }
0x53fb   :  { %v12834_v15 = vmul.f32 %v17731_v8, %v12828_v12  ;;  %19471 = vmatprep.mubr.msk.f32.mxu1 %vm128_vm0, %v12839_v38 }
0x53fc   :  { %v8705_v0 = vadd.f32 %v8701_v31, %v22470_v33  ;;  %v8704_v37 = vadd.f32 %v8696_v52, %v22466_v55 }
0x53fd   :  { %v12840_v18 = vadd.f32 %v17732_v2, %v12834_v15  ;;  %v22991_v15 = vld [vmem:[#allocation9 + $0x1c0] sm:$0xff] }
0x53fe   :  { %v8711_v49 = vsel %vm128_vm0, %v8705_v0, 0.0  ;;  %v8708_v30 = vsel %vm128_vm0, %v8704_v37, 0.0 }
0x53ff   :  { %19472 = vmatmul.mubr.msk.f32.vlgmr.msra.gmra.mrb[148].mxu1 %vm128_vm0, %v12840_v18 }
0x54d2   :  { %v19473_v54 = vpop.f32.mrb[148].mxu1 }
0x54d3   :  { %v12928_v51 = vadd.f32 %v19473_v54, %v17733_v46  ;;  %v12922_v7 = vpop.f32.mrb[149].mxu1  ;;  %v23004_v54 = vld [vmem:[#allocation9 + $0x1b8] ss:$0 sm:$0xff] }
0x54d4   :  { %v12923_v13 = vadd.f32 %v17733_v46, %v12922_v7  ;;  %v20710_v46 = vpack.i.bf16 %v22999_v47, %v22997_v35  ;;  %v20215_v7 = vpack.c.bf16 %v22999_v47, %v22997_v35 }
0x54d5   :  { %v12932_v32 = vmax.f32 %v12928_v51, 0.0 }
0x54d6   :  { %v12931_v20 = vmax.f32 %v12923_v13, 0.0 }
0x54d8   :  { %19490 = vmatprep.mubr.msk.f32.mxu0 %vm4298_vm5, %v12931_v20 }
0x54d9   :  { %19491 = vmatmul.mubr.msk.f32.vlgmr.msra.gmra.mrb[112].mxu0 %vm4298_vm5, %v12932_v32 }
0x55ac   :  { %v19492_v10 = vpop.f32.mrb[112].mxu0 }
0x55ad   :  { %v13024_v36 = vadd.f32 %v19492_v10, %v17736_v11  ;;  %v13018_v23 = vpop.f32.mrb[113].mxu0 }
0x55ae   :  { %v13019_v19 = vadd.f32 %v17736_v11, %v13018_v23 }
0x55af   :  { %v13028_v44 = vadd.f32 %v13024_v36, %v12840_v18  ;;  %v22993_v18 = vld [vmem:[#allocation9 + $0x1c8] sm:$0xff] }
0x55b0   :  { %v13027_v56 = vadd.f32 %v13019_v19, %v12839_v38  ;;  %v20705_v40 = vpack.i.bf16 %v22993_v18, %v22991_v15  ;;  %v20211_v51 = vpack.c.bf16 %v22993_v18, %v22991_v15 }
0x55b1   :  { %v13034_v5 = vsel %vm128_vm0, %v13028_v44, 0.0 }
0x55b2   :  { %13035 = vadd.xlane.f32.xlu0 %v13034_v5  ;;  %v13031_v48 = vsel %vm128_vm0, %v13027_v56, 0.0  ;;  %20212 = vmatprep.subr.bf16.mxu1 %v20211_v51 }
0x55b3   :  { %13032 = vadd.xlane.f32.xlu1 %v13031_v48  ;;  %20214 = vmatpush3.bf16.msra.mxu1 %v20211_v51 }
0x55b4   :  { %20216 = vmatprep.subr.bf16.mxu1 %v20215_v7 }
0x55b6   :  { %8712 = vadd.xlane.f32.xlu0 %v8711_v49 }
0x55b7   :  { %8709 = vadd.xlane.f32.xlu1 %v8708_v30  ;;  %20218 = vmatpush3.bf16.msra.mxu1 %v20215_v7 }
0x563f   :  { %v13036_v17 = vpop.xlane.xlu0 %13035 }
0x5640   :  { %v13038_v43 = vmul.f32 0.03125, %v13036_v17  ;;  %v13033_v62 = vpop.xlane.xlu1 %13032 }
0x5641   :  { %v13037_v26 = vmul.f32 0.03125, %v13033_v62 }
0x5642   :  { %v22971_v16 = vsub.f32 %v13028_v44, %v13038_v43  ;;  %v17739_v43 = vld [vmem:[#allocation9 + $0x3a0] ss:$0 sm:$0xff] }
0x5643   :  { %v22973_v33 = vsub.f32 %v13027_v56, %v13037_v26  ;;  %v8713_v29 = vpop.xlane.xlu0 %8712 }
0x5644   :  { %v8715_v55 = vmul.f32 0.03125, %v8713_v29  ;;  %v8710_v14 = vpop.xlane.xlu1 %8709  ;;  %v13042_v27 = vmul.f32 %v22971_v16, %v22971_v16 }
0x5645   :  { %v8714_v28 = vmul.f32 0.03125, %v8710_v14  ;;  %v13041_v60 = vmul.f32 %v22973_v33, %v22973_v33 }
0x5646   :  { %v22979_v45 = vsub.f32 %v8705_v0, %v8715_v55  ;;  %v13046_v8 = vsel %vm128_vm0, %v13042_v27, 0.0 }
0x5647   :  { %v22982_v4 = vsub.f32 %v8704_v37, %v8714_v28  ;;  %13047 = vadd.xlane.f32.xlu0 %v13046_v8  ;;  %v13043_v2 = vsel %vm128_vm0, %v13041_v60, 0.0 }
0x5648   :  { %13044 = vadd.xlane.f32.xlu1 %v13043_v2  ;;  %v8719_v1 = vmul.f32 %v22979_v45, %v22979_v45  ;;  %v17740_v2 = vld [vmem:[#allocation9 + $0x398] ss:$0 sm:$0xff] }
0x5649   :  { %v8718_v57 = vmul.f32 %v22982_v4, %v22982_v4 }
0x564a   :  { %v8723_v12 = vsel %vm128_vm0, %v8719_v1, 0.0 }
0x564b   :  { %8724 = vadd.xlane.f32.xlu0 %v8723_v12  ;;  %v8720_v38 = vsel %vm128_vm0, %v8718_v57, 0.0  ;;  %v17635_v12 = vld [vmem:[#allocation9 + $0xc0] ss:$0 sm:$0xff] }
0x564c   :  { %8721 = vadd.xlane.f32.xlu1 %v8720_v38 }
0x565d   :  { %20706 = vrot.lane.b32.xlu1 %v20705_v40, %s21272_s5 }
0x5661   :  { %13233 = vrot.lane.b32.xlu1 %v23004_v54, %s21272_s5  ;;  %20711 = vrot.lane.b32.xlu0 %v20710_v46, %s21272_s5 }
0x5665   :  { %20716 = vrot.lane.b32.xlu1 %v20705_v40, %s21275_s15  ;;  %20721 = vrot.lane.b32.xlu0 %v20710_v46, %s21275_s15 }
0x56d4   :  { %v13048_v13 = vpop.xlane.xlu0 %13047 }
0x56d5   :  { %v13050_v20 = vmul.f32 0.03125, %v13048_v13  ;;  %v13045_v32 = vpop.xlane.xlu1 %13044 }
0x56d6   :  { %v13049_v25 = vmul.f32 0.03125, %v13045_v32 }
0x56d7   :  { %v13052_v11 = vadd.f32 1e-05, %v13050_v20 }
0x56d8   :  { %v13051_v10 = vadd.f32 1e-05, %v13049_v25  ;;  %v8725_v31 = vpop.xlane.xlu0 %8724 }
0x56d9   :  { %21025 = vrsqrt.f32 %v13052_v11  ;;  %v8727_v36 = vmul.f32 0.03125, %v8725_v31  ;;  %v8722_v23 = vpop.xlane.xlu1 %8721 }
0x56da   :  { %21027 = vrsqrt.f32 %v13051_v10  ;;  %v8726_v52 = vmul.f32 0.03125, %v8722_v23 }
0x56db   :  { %v8729_v19 = vadd.f32 1e-05, %v8727_v36 }
0x56dc   :  { %v8728_v44 = vadd.f32 1e-05, %v8726_v52  ;;  %v20712_v56 = vpop.permute.xlu0 %20711 }
0x56dd   :  { %21029 = vrsqrt.f32 %v8729_v19  ;;  %v20707_v0 = vpop.permute.xlu1 %20706  ;;  %v20714_v25 = vunpack.i.h.bf16 %v20712_v56  ;;  %v20713_v11 = vunpack.i.l.bf16 %v20712_v56  ;;  %v23044_v56 = vld [vmem:[%s23635_s6] sm:$0xff] }
0x56de   :  { %21031 = vrsqrt.f32 %v8728_v44  ;;  %v20709_v5 = vunpack.i.h.bf16 %v20707_v0  ;;  %v20708_v37 = vunpack.i.l.bf16 %v20707_v0 }
0x56df   :  { %v20223_v44 = vpack.c.bf16 %v20714_v25, %v20713_v11 }
0x56e0   :  { %v20219_v48 = vpack.c.bf16 %v20709_v5, %v20708_v37  ;;  %v20722_v30 = vpop.permute.xlu0 %20721 }
0x56e1   :  { %v23015_v49 = vpop.permute.xlu1 %13233  ;;  %v20724_v29 = vunpack.i.h.bf16 %v20722_v30  ;;  %v20723_v55 = vunpack.i.l.bf16 %v20722_v30 }
0x56e2   :  { %20220 = vmatprep.subr.bf16.mxu1 %v20219_v48 }
0x56e3   :  { %v21026_v17 = vpop.eup %21025  ;;  %v20231_v51 = vpack.c.bf16 %v20724_v29, %v20723_v55 }
0x56e4   :  { %v21028_v62 = vpop.eup %21027  ;;  %v13056_v26 = vmul.f32 %v21026_v17, %v22971_v16  ;;  %v17636_v16 = vld [vmem:[#allocation9 + $0xb8] ss:$0 sm:$0xff] }
0x56e5   :  { %v13055_v14 = vmul.f32 %v21028_v62, %v22973_v33  ;;  %v20717_v27 = vpop.permute.xlu1 %20716 }
0x56e6   :  { %v13062_v28 = vmul.f32 %v17739_v43, %v13056_v26  ;;  %v20719_v60 = vunpack.i.h.bf16 %v20717_v27  ;;  %v20718_v8 = vunpack.i.l.bf16 %v20717_v27 }
0x56e7   :  { %v21030_v1 = vpop.eup %21029  ;;  %v13061_v57 = vmul.f32 %v17739_v43, %v13055_v14 }
0x56e8   :  { %v21032_v38 = vpop.eup %21031  ;;  %v8733_v40 = vmul.f32 %v21030_v1, %v22979_v45  ;;  %v20227_v46 = vpack.c.bf16 %v20719_v60, %v20718_v8  ;;  %v23023_v20 = vadd.f32 %v17740_v2, %v13062_v28  ;;  %v21141_v45 = vld [vmem:[#allocation7] sm:$0xff] }
0x56e9   :  { %v8732_v7 = vmul.f32 %v21032_v38, %v22982_v4  ;;  %v23021_v13 = vadd.f32 %v17740_v2, %v13061_v57  ;;  %v21142_v4 = vld [vmem:[#allocation7 + $0x8] sm:$0xff] }
0x56ea   :  { %20228 = vmatprep.subr.bf16.mxu0 %v20227_v46  ;;  %v8739_v33 = vmul.f32 %v17635_v12, %v8733_v40  ;;  %v23033_v23 = vadd.f32 %v21142_v4, %v23023_v20 }
0x56eb   :  { %20230 = vmatpush3.bf16.msra.mxu0 %v20227_v46  ;;  %v8738_v32 = vmul.f32 %v17635_v12, %v8732_v7  ;;  %v23030_v36 = vadd.f32 %v21141_v45, %v23021_v13 }
0x56ec   :  { %20232 = vmatprep.subr.bf16.mxu0 %v20231_v51  ;;  %v23025_v10 = vadd.f32 %v17636_v16, %v8739_v33 }
0x56ed   :  { %v23027_v31 = vadd.f32 %v17636_v16, %v8738_v32 }
0x56ee   :  { %v13125_v19 = vadd.f32 %v23033_v23, %v23025_v10 }
0x56ef   :  { %20234 = vmatpush3.bf16.msra.mxu0 %v20231_v51  ;;  %19523 = vmatprep.mubr.msk.f32.mxu0 %vm128_vm0, %v23027_v31  ;;  %v13124_v52 = vadd.f32 %v23030_v36, %v23027_v31 }
0x56f0   :  { %19536 = vmatprep.subr.mxu0 %v23044_v56 }
0x56f1   :  { %19501 = vmatprep.mubr.msk.f32.mxu1 %vm128_vm0, %v13124_v52 }
0x56f2   :  { %19502 = vmatmul.mubr.msk.f32.vlgmr.msra.gmra.mrb[150].mxu1 %vm128_vm0, %v13125_v19  ;;  %19524 = vmatmul.mubr.msk.f32.vlgmr.msra.gmra.mrb[114].mxu0 %vm128_vm0, %v23025_v10 }
0x56f3   :  { %20222 = vmatpush3.bf16.msra.mxu1 %v20219_v48  ;;  %19512 = vmatprep.mubr.msk.f32.mxu1 %vm128_vm0, %v13124_v52 }
0x56f4   :  { %20224 = vmatprep.subr.bf16.mxu1 %v20223_v44  ;;  %19538 = vmatprep.mubr.msk.f32.mxu0 %vm21274_vm1, %v23044_v56 }
0x56f7   :  { %20226 = vmatpush3.bf16.msra.mxu1 %v20223_v44 }
0x56f8   :  { %19526 = vmatprep.subr.mxu1 %v23044_v56 }
0x56fa   :  { %19513 = vmatmul.mubr.msk.f32.vlgmr.msra.gmra.mrb[152].mxu1 %vm128_vm0, %v13125_v19 }
0x56fb   :  { %19528 = vmatprep.mubr.msk.f32.mxu1 %vm21274_vm1, %v23044_v56 }
0x57c5   :  { %v19503_v0 = vpop.f32.mrb[150].mxu1  ;;  %v19525_v5 = vpop.f32.mrb[114].mxu0 }
0x57c6   :  { %v13207_v37 = vpop.f32.mrb[151].mxu1  ;;  %v13398_v30 = vpop.f32.mrb[115].mxu0  ;;  %v13213_v26 = vadd.f32 %v19503_v0, %v23004_v54 }
0x57c7   :  { %v13208_v48 = vadd.f32 %v23004_v54, %v13207_v37 }
0x57c8   :  { %v23077_v14 = vmul.f32 0.35355338, %v13213_v26 }
0x57c9   :  { %v23065_v29 = vmul.f32 0.35355338, %v13208_v48 }
0x57cd   :  { %v19514_v17 = vpop.f32.mrb[152].mxu1 }
0x57ce   :  { %v13302_v43 = vpop.f32.mrb[153].mxu1  ;;  %v23069_v55 = vadd.f32 %v19514_v17, %v23015_v49 }
0x57cf   :  { %v23060_v62 = vadd.f32 %v13302_v43, %v23015_v49 }
0x57d1   :  { %19527 = vmatpush3.xpose.msk.msra.mxu1 %vm403_vm2, %v23060_v62 }
0x57d2   :  { %19531 = vmatprep.subr.mxu1 %v23044_v56 }
0x57d4   :  { %19529 = vmatmul.mubr.msk.f32.vlgmr.msra.gmra.mrb[154].mxu1 %vm403_vm2, %v23065_v29 }
0x57d5   :  { %19532 = vmatpush3.xpose.msk.msra.mxu1 %vm403_vm2, %v23069_v55  ;;  %19533 = vmatprep.mubr.msk.f32.mxu1 %vm21274_vm1, %v23044_v56 }
0x57d6   :  { %19541 = vmatprep.subr.mxu1 %v23044_v56 }
0x57d8   :  { %19534 = vmatmul.mubr.msk.f32.vlgmr.msra.gmra.mrb[156].mxu1 %vm403_vm2, %v23077_v14 }
0x57d9   :  { %19543 = vmatprep.mubr.msk.f32.mxu1 %vm21274_vm1, %v23044_v56 }
0x58a7   :  { %v13481_v49 = vpop.f32.mrb[154].mxu1 }
0x58a8   :  { %v19530_v27 = vpop.f32.mrb[155].mxu1  ;;  %v13561_v40 = vsel %vm403_vm2, %v13481_v49, -inf }
0x58ab   :  { %v13557_v28 = vpop.f32.mrb[156].mxu1 }
0x58ac   :  { %v19535_v60 = vpop.f32.mrb[157].mxu1  ;;  %v13564_v8 = vsel %vm403_vm2, %v13557_v28, -inf }
0x58ad   :  { %13565 = vmax.xlane.f32.xlu1 %v13564_v8 }
0x58be   :  { %13809 = vrot.lane.b32.xlu1 %v23069_v55, %s21276_s16 }
0x58c2   :  { %13807 = vrot.lane.b32.xlu1 %v23077_v14, %s21276_s16 }
0x593a   :  { %v13566_v2 = vpop.xlane.xlu1 %13565 }
0x593b   :  { %v13568_v1 = vsub.f32 %v13557_v28, %v13566_v2 }
0x593d   :  { %v13571_v57 = vmul.f32 1.442695, %v13568_v1 }
0x593e   :  { %v13810_v32 = vpop.permute.xlu1 %13809 }
0x593f   :  { %21033 = vpow2.f32 %v13571_v57 }
0x5942   :  { %v13808_v11 = vpop.permute.xlu1 %13807 }
0x5949   :  { %v21034_v12 = vpop.eup %21033 }
0x594a   :  { %v13576_v38 = vsel %vm403_vm2, %v21034_v12, 0.0 }
0x594b   :  { %13577 = vadd.xlane.f32.xlu0 %v13576_v38 }
0x5961   :  { %13323 = vrot.lane.b32.xlu0 %v23004_v54, %s21275_s15 }
0x5980   :  { %13562 = vmax.xlane.f32.xlu0 %v13561_v40 }
0x5996   :  { %13731 = vrot.lane.b32.xlu0 %v23060_v62, %s21276_s16 }
0x59d8   :  { %v13578_v46 = vpop.xlane.xlu0 %13577 }
0x59d9   :  { %21035 = vrcp.f32 %v13578_v46 }
0x59dc   :  { %v13324_v51 = vpop.permute.xlu0 %13323 }
0x59dd   :  { %v23095_v7 = vadd.f32 %v13398_v30, %v13324_v51  ;;  %v23097_v16 = vadd.f32 %v19525_v5, %v13324_v51 }
0x59df   :  { %19537 = vmatpush3.msra.mxu0 %v23095_v7  ;;  %19542 = vmatpush3.msra.mxu1 %v23097_v16 }
0x59e0   :  { %19551 = vmatprep.subr.mxu1 %v23044_v56  ;;  %19546 = vmatprep.subr.mxu0 %v23044_v56 }
0x59e3   :  { %v21036_v33 = vpop.eup %21035 }
0x59e4   :  { %v13582_v25 = vmul.f32 %v21036_v33, %v21034_v12 }
0x59e6   :  { %19544 = vmatmul.mubr.msk.f32.vlgmr.msra.gmra.mrb[158].mxu1 %vm403_vm2, %v13582_v25 }
0x59e7   :  { %19552 = vmatpush3.xpose.msk.msra.mxu1 %vm403_vm2, %v13810_v32  ;;  %19553 = vmatprep.mubr.msk.f32.mxu1 %vm21274_vm1, %v23044_v56 }
0x59e8   :  { %19561 = vmatprep.subr.mxu1 %v23044_v56 }
0x59ea   :  { %19554 = vmatmul.mubr.msk.f32.vlgmr.msra.gmra.mrb[160].mxu1 %vm403_vm2, %v13808_v11 }
0x59eb   :  { %19563 = vmatprep.mubr.msk.f32.mxu1 %vm21274_vm1, %v23044_v56 }
0x5a0d   :  { %v13563_v45 = vpop.xlane.xlu0 %13562 }
0x5a0e   :  { %v13567_v4 = vsub.f32 %v13481_v49, %v13563_v45 }
0x5a10   :  { %v13569_v52 = vmul.f32 1.442695, %v13567_v4 }
0x5a11   :  { %v13732_v30 = vpop.permute.xlu0 %13731 }
0x5a12   :  { %21037 = vpow2.f32 %v13569_v52 }
0x5a1c   :  { %v21038_v19 = vpop.eup %21037 }
0x5a1d   :  { %v13573_v44 = vsel %vm403_vm2, %v21038_v19, 0.0 }
0x5a1e   :  { %13574 = vadd.xlane.f32.xlu1 %v13573_v44 }
0x5a2f   :  { %13729 = vrot.lane.b32.xlu1 %v23065_v29, %s21276_s16 }
0x5a33   :  { %14231 = vrot.lane.b32.xlu1 %v23060_v62, %s21277_s17 }
0x5aab   :  { %v13575_v0 = vpop.xlane.xlu1 %13574 }
0x5aac   :  { %21039 = vrcp.f32 %v13575_v0 }
0x5aaf   :  { %v13730_v43 = vpop.permute.xlu1 %13729 }
0x5ab3   :  { %v14232_v33 = vpop.permute.xlu1 %14231 }
0x5ab6   :  { %v21040_v5 = vpop.eup %21039 }
0x5ab7   :  { %v13580_v37 = vmul.f32 %v21040_v5, %v21038_v19 }
0x5ab9   :  { %19539 = vmatmul.mubr.msk.f32.vlgmr.msra.gmra.mrb[116].mxu0 %vm403_vm2, %v13580_v37  ;;  %v23117_v17 = vpop.f32.mrb[158].mxu1 }
0x5aba   :  { %19547 = vmatpush3.xpose.msk.msra.mxu0 %vm403_vm2, %v13732_v30  ;;  %v19545_v48 = vpop.f32.mrb[159].mxu1  ;;  %19548 = vmatprep.mubr.msk.f32.mxu0 %vm21274_vm1, %v23044_v56 }
0x5abb   :  { %19556 = vmatprep.subr.mxu0 %v23044_v56 }
0x5abd   :  { %19549 = vmatmul.mubr.msk.f32.vlgmr.msra.gmra.mrb[118].mxu0 %vm403_vm2, %v13730_v43  ;;  %v13881_v26 = vpop.f32.mrb[160].mxu1 }
0x5abe   :  { %v19555_v49 = vpop.f32.mrb[161].mxu1  ;;  %v13888_v27 = vsel %vm403_vm2, %v13881_v26, -inf  ;;  %19558 = vmatprep.mubr.msk.f32.mxu0 %vm21274_vm1, %v23044_v56 }
0x5abf   :  { %13889 = vmax.xlane.f32.xlu0 %v13888_v27 }
0x5ad5   :  { %13985 = vrot.lane.b32.xlu0 %v23097_v16, %s21276_s16 }
0x5ad9   :  { %14229 = vrot.lane.b32.xlu0 %v23065_v29, %s21277_s17 }
0x5add   :  { %14307 = vrot.lane.b32.xlu0 %v23077_v14, %s21277_s17 }
0x5b4c   :  { %v13890_v28 = vpop.xlane.xlu0 %13889 }
0x5b4d   :  { %v13892_v60 = vsub.f32 %v13881_v26, %v13890_v28 }
0x5b4f   :  { %v13895_v8 = vmul.f32 1.442695, %v13892_v60 }
0x5b50   :  { %v13986_v2 = vpop.permute.xlu0 %13985 }
0x5b51   :  { %21041 = vpow2.f32 %v13895_v8  ;;  %19562 = vmatpush3.msra.mxu1 %v13986_v2 }
0x5b52   :  { %19576 = vmatprep.subr.mxu1 %v23044_v56 }
0x5b54   :  { %v14230_v45 = vpop.permute.xlu0 %14229 }
0x5b58   :  { %v14308_v52 = vpop.permute.xlu0 %14307 }
0x5b5b   :  { %v21042_v1 = vpop.eup %21041 }
0x5b5c   :  { %v13900_v57 = vsel %vm403_vm2, %v21042_v1, 0.0 }
0x5b5d   :  { %13901 = vadd.xlane.f32.xlu1 %v13900_v57 }
0x5b6e   :  { %14309 = vrot.lane.b32.xlu1 %v23069_v55, %s21277_s17 }
0x5b8c   :  { %v23137_v12 = vpop.f32.mrb[116].mxu0 }
0x5b8d   :  { %v19540_v38 = vpop.f32.mrb[117].mxu0 }
0x5b90   :  { %v13803_v40 = vpop.f32.mrb[118].mxu0 }
0x5b91   :  { %v19550_v46 = vpop.f32.mrb[119].mxu0  ;;  %v13885_v51 = vsel %vm403_vm2, %v13803_v40, -inf }
0x5b92   :  { %13886 = vmax.xlane.f32.xlu1 %v13885_v51 }
0x5bea   :  { %v13902_v32 = vpop.xlane.xlu1 %13901 }
0x5beb   :  { %21043 = vrcp.f32 %v13902_v32 }
0x5bee   :  { %v14310_v4 = vpop.permute.xlu1 %14309 }
0x5bf5   :  { %v21044_v25 = vpop.eup %21043 }
0x5bf6   :  { %v13906_v11 = vmul.f32 %v21044_v25, %v21042_v1 }
0x5bf8   :  { %19564 = vmatmul.mubr.msk.f32.vlgmr.msra.gmra.mrb[162].mxu1 %vm403_vm2, %v13906_v11 }
0x5bf9   :  { %19577 = vmatpush3.xpose.msk.msra.mxu1 %vm403_vm2, %v14232_v33  ;;  %19578 = vmatprep.mubr.msk.f32.mxu1 %vm21274_vm1, %v23044_v56 }
0x5bfa   :  { %19581 = vmatprep.subr.mxu1 %v23044_v56 }
0x5bfc   :  { %19579 = vmatmul.mubr.msk.f32.vlgmr.msra.gmra.mrb[164].mxu1 %vm403_vm2, %v14230_v45 }
0x5bfd   :  { %19582 = vmatpush3.xpose.msk.msra.mxu1 %vm403_vm2, %v14310_v4  ;;  %19583 = vmatprep.mubr.msk.f32.mxu1 %vm21274_vm1, %v23044_v56 }
0x5bfe   :  { %19591 = vmatprep.subr.mxu1 %v23044_v56 }
0x5c00   :  { %19584 = vmatmul.mubr.msk.f32.vlgmr.msra.gmra.mrb[166].mxu1 %vm403_vm2, %v14308_v52 }
0x5c01   :  { %19593 = vmatprep.mubr.msk.f32.mxu1 %vm21274_vm1, %v23044_v56 }
0x5c1f   :  { %v13887_v19 = vpop.xlane.xlu1 %13886 }
0x5c20   :  { %v13891_v44 = vsub.f32 %v13803_v40, %v13887_v19 }
0x5c22   :  { %v13893_v0 = vmul.f32 1.442695, %v13891_v44 }
0x5c24   :  { %21045 = vpow2.f32 %v13893_v0 }
0x5c2e   :  { %v21046_v5 = vpop.eup %21045 }
0x5c2f   :  { %v13897_v37 = vsel %vm403_vm2, %v21046_v5, 0.0 }
0x5c30   :  { %13898 = vadd.xlane.f32.xlu0 %v13897_v37 }
0x5c46   :  { %13908 = vrot.lane.b32.xlu0 %v23095_v7, %s21276_s16 }
0x5c4a   :  { %14145 = vrot.lane.b32.xlu0 %v22991_v15, %s21278_s18 }
0x5c4e   :  { %14407 = vrot.lane.b32.xlu0 %v23095_v7, %s21277_s17 }
0x5c52   :  { %14483 = vrot.lane.b32.xlu0 %v23097_v16, %s21277_s17 }
0x5c56   :  { %14559 = vrot.lane.b32.xlu0 %v22997_v35, %s21278_s18 }
0x5c5a   :  { %14725 = vrot.lane.b32.xlu0 %v23069_v55, %s21279_s19 }
0x5c5e   :  { %14723 = vrot.lane.b32.xlu0 %v23077_v14, %s21279_s19 }
0x5cbd   :  { %v13899_v30 = vpop.xlane.xlu0 %13898 }
0x5cbe   :  { %21047 = vrcp.f32 %v13899_v30 }
0x5cc1   :  { %v13909_v48 = vpop.permute.xlu0 %13908 }
0x5cc2   :  { %19557 = vmatpush3.msra.mxu0 %v13909_v48 }
0x5cc5   :  { %v14146_v15 = vpop.permute.xlu0 %14145 }
0x5cc8   :  { %v21048_v43 = vpop.eup %21047 }
0x5cc9   :  { %v14408_v26 = vpop.permute.xlu0 %14407  ;;  %v13904_v49 = vmul.f32 %v21048_v43, %v21046_v5 }
0x5ccb   :  { %19559 = vmatmul.mubr.msk.f32.vlgmr.msra.gmra.mrb[120].mxu0 %vm403_vm2, %v13904_v49  ;;  %v14057_v27 = vpop.f32.mrb[162].mxu1 }
0x5ccc   :  { %v19565_v28 = vpop.f32.mrb[163].mxu1 }
0x5ccd   :  { %v14484_v60 = vpop.permute.xlu0 %14483 }
0x5cce   :  { %19592 = vmatpush3.msra.mxu1 %v14484_v60 }
0x5ccf   :  { %v14303_v35 = vpop.f32.mrb[164].mxu1  ;;  %19601 = vmatprep.subr.mxu1 %v23044_v56 }
0x5cd0   :  { %v19580_v55 = vpop.f32.mrb[165].mxu1  ;;  %v14385_v14 = vsel %vm403_vm2, %v14303_v35, -inf }
0x5cd1   :  { %14386 = vmax.xlane.f32.xlu1 %v14385_v14  ;;  %v14560_v37 = vpop.permute.xlu0 %14559 }
0x5cd3   :  { %v14381_v8 = vpop.f32.mrb[166].mxu1 }
0x5cd4   :  { %v19585_v2 = vpop.f32.mrb[167].mxu1  ;;  %v14388_v1 = vsel %vm403_vm2, %v14381_v8, -inf }
0x5cd5   :  { %14389 = vmax.xlane.f32.xlu1 %v14388_v1 }
0x5d5e   :  { %v14387_v57 = vpop.xlane.xlu1 %14386 }
0x5d5f   :  { %v14391_v38 = vsub.f32 %v14303_v35, %v14387_v57 }
0x5d61   :  { %v14393_v40 = vmul.f32 1.442695, %v14391_v38 }
0x5d62   :  { %v14390_v46 = vpop.xlane.xlu1 %14389 }
0x5d63   :  { %21049 = vpow2.f32 %v14393_v40  ;;  %v14392_v51 = vsub.f32 %v14381_v8, %v14390_v46 }
0x5d65   :  { %v14395_v33 = vmul.f32 1.442695, %v14392_v51 }
0x5d67   :  { %21051 = vpow2.f32 %v14395_v33 }
0x5d6d   :  { %v21050_v32 = vpop.eup %21049 }
0x5d6e   :  { %v14397_v25 = vsel %vm403_vm2, %v21050_v32, 0.0 }
0x5d6f   :  { %14398 = vadd.xlane.f32.xlu1 %v14397_v25 }
0x5d71   :  { %v21052_v11 = vpop.eup %21051 }
0x5d72   :  { %v14400_v45 = vsel %vm403_vm2, %v21052_v11, 0.0 }
0x5d73   :  { %14401 = vadd.xlane.f32.xlu1 %v14400_v45 }
0x5d84   :  { %14061 = vrot.lane.b32.xlu1 %v22993_v18, %s21278_s18 }
0x5d88   :  { %14647 = vrot.lane.b32.xlu1 %v23060_v62, %s21279_s19 }
0x5d8c   :  { %14645 = vrot.lane.b32.xlu1 %v23065_v29, %s21279_s19 }
0x5d9e   :  { %v13980_v4 = vpop.f32.mrb[120].mxu0 }
0x5d9f   :  { %v19560_v52 = vpop.f32.mrb[121].mxu0  ;;  %19568 = vmatprep.mubr.msk.f32.mxu0 %vm403_vm2, %v13980_v4 }
0x5dfc   :  { %v14399_v19 = vpop.xlane.xlu1 %14398 }
0x5e00   :  { %v14402_v44 = vpop.xlane.xlu1 %14401 }
0x5e01   :  { %21053 = vrcp.f32 %v14402_v44 }
0x5e02   :  { %21055 = vrcp.f32 %v14399_v19 }
0x5e04   :  { %v14062_v0 = vpop.permute.xlu1 %14061 }
0x5e05   :  { %19566 = vmatprep.subr.mxu0 %v14062_v0 }
0x5e06   :  { %19567 = vmatpush3.msra.mxu0 %v14062_v0 }
0x5e07   :  { %19569 = vmatmul.mubr.msk.f32.vlgmr.msra.gmra.mrb[122].mxu0 %vm403_vm2, %v14057_v27  ;;  %19571 = vmatprep.subr.mxu0 %v14146_v15 }
0x5e08   :  { %19573 = vmatprep.mubr.msk.f32.mxu0 %vm403_vm2, %v23137_v12  ;;  %19572 = vmatpush3.msra.mxu0 %v14146_v15  ;;  %v14648_v62 = vpop.permute.xlu1 %14647  ;;  %v14726_v15 = vpop.permute.xlu0 %14725 }
0x5e09   :  { %19586 = vmatprep.subr.mxu0 %v23044_v56 }
0x5e0b   :  { %v21054_v18 = vpop.eup %21053 }
0x5e0c   :  { %v14406_v29 = vmul.f32 %v21054_v18, %v21052_v11  ;;  %v21056_v5 = vpop.eup %21055  ;;  %v14646_v12 = vpop.permute.xlu1 %14645 }
0x5e0d   :  { %v14404_v30 = vmul.f32 %v21056_v5, %v21050_v32  ;;  %v14724_v60 = vpop.permute.xlu0 %14723 }
0x5e0e   :  { %19594 = vmatmul.mubr.msk.f32.vlgmr.msra.gmra.mrb[168].mxu1 %vm403_vm2, %v14406_v29 }
0x5e0f   :  { %19602 = vmatpush3.xpose.msk.msra.mxu1 %vm403_vm2, %v14648_v62  ;;  %19574 = vmatmul.mubr.msk.f32.vlgmr.msra.gmra.mrb[122].mxu0 %vm403_vm2, %v23117_v17 }
0x5e10   :  { %19587 = vmatpush3.msra.mxu0 %v14408_v26  ;;  %19603 = vmatprep.mubr.msk.f32.mxu1 %vm21274_vm1, %v23044_v56 }
0x5e11   :  { %19588 = vmatprep.mubr.msk.f32.mxu0 %vm21274_vm1, %v23044_v56  ;;  %19596 = vmatprep.subr.mxu0 %v14560_v37 }
0x5e12   :  { %19604 = vmatmul.mubr.msk.f32.vlgmr.msra.gmra.mrb[170].mxu1 %vm403_vm2, %v14646_v12  ;;  %19611 = vmatprep.subr.mxu1 %v23044_v56 }
0x5e13   :  { %19589 = vmatmul.mubr.msk.f32.vlgmr.msra.gmra.mrb[124].mxu0 %vm403_vm2, %v14404_v30  ;;  %19613 = vmatprep.mubr.msk.f32.mxu1 %vm21274_vm1, %v23044_v56 }
0x5e14   :  { %19597 = vmatpush3.msra.mxu0 %v14560_v37 }
0x5e15   :  { %19606 = vmatprep.subr.mxu0 %v23044_v56 }
0x5ee1   :  { %v14555_v17 = vpop.f32.mrb[168].mxu1 }
0x5ee2   :  { %v19595_v48 = vpop.f32.mrb[169].mxu1 }
0x5ee5   :  { %v14719_v43 = vpop.f32.mrb[170].mxu1 }
0x5ee6   :  { %v14479_v26 = vpop.f32.mrb[124].mxu0  ;;  %v19605_v49 = vpop.f32.mrb[171].mxu1  ;;  %v14801_v27 = vsel %vm403_vm2, %v14719_v43, -inf }
0x5ee7   :  { %v19590_v28 = vpop.f32.mrb[125].mxu0  ;;  %19598 = vmatprep.mubr.msk.f32.mxu0 %vm403_vm2, %v14479_v26  ;;  %14802 = vmax.xlane.f32.xlu1 %v14801_v27 }
0x5ee8   :  { %19599 = vmatmul.mubr.msk.f32.vlgmr.msra.gmra.mrb[122].mxu0 %vm403_vm2, %v14555_v17 }
0x5ee9   :  { %19607 = vmatpush3.xpose.msk.msra.mxu0 %vm403_vm2, %v14726_v15  ;;  %19608 = vmatprep.mubr.msk.f32.mxu0 %vm21274_vm1, %v23044_v56 }
0x5eea   :  { %19616 = vmatprep.subr.mxu0 %v23044_v56 }
0x5eec   :  { %19609 = vmatmul.mubr.msk.f32.vlgmr.msra.gmra.mrb[126].mxu0 %vm403_vm2, %v14724_v60 }
0x5eed   :  { %19618 = vmatprep.mubr.msk.f32.mxu0 %vm21274_vm1, %v23044_v56 }
0x5f74   :  { %v14803_v35 = vpop.xlane.xlu1 %14802 }
0x5f75   :  { %v14807_v55 = vsub.f32 %v14719_v43, %v14803_v35 }
0x5f77   :  { %v14809_v14 = vmul.f32 1.442695, %v14807_v55 }
0x5f79   :  { %21057 = vpow2.f32 %v14809_v14 }
0x5f83   :  { %v21058_v57 = vpop.eup %21057 }
0x5f84   :  { %v14813_v38 = vsel %vm403_vm2, %v21058_v57, 0.0 }
0x5fbf   :  { %v14797_v8 = vpop.f32.mrb[126].mxu0 }
0x5fc0   :  { %v19610_v2 = vpop.f32.mrb[127].mxu0  ;;  %v14804_v1 = vsel %vm403_vm2, %v14797_v8, -inf }
0x5fc1   :  { %14805 = vmax.xlane.f32.xlu0 %v14804_v1  ;;  %v23234_v2 = vld [vmem:[#allocation9 + $0x110] sm:$0xff] }
0x5fc5   :  { %14814 = vadd.xlane.f32.xlu0 %v14813_v38  ;;  %v23240_v38 = vld [vmem:[#allocation9 + $0x100] sm:$0xff] }
0x5fdb   :  { %14823 = vrot.lane.b32.xlu0 %v23095_v7, %s21279_s19 }
0x5fdf   :  { %15061 = vrot.lane.b32.xlu0 %v23004_v54, %s21278_s18 }
0x604e   :  { %v14806_v40 = vpop.xlane.xlu0 %14805 }
0x604f   :  { %v14808_v46 = vsub.f32 %v14797_v8, %v14806_v40  ;;  %v23232_v8 = vld [vmem:[#allocation9 + $0x108] sm:$0xff] }
0x6050   :  { %v20730_v1 = vpack.i.bf16 %v23234_v2, %v23232_v8 }
0x6051   :  { %v14811_v51 = vmul.f32 1.442695, %v14808_v46 }
0x6052   :  { %v14815_v33 = vpop.xlane.xlu0 %14814 }
0x6053   :  { %21059 = vpow2.f32 %v14811_v51  ;;  %v20239_v51 = vpack.c.bf16 %v23234_v2, %v23232_v8 }
0x6054   :  { %21061 = vrcp.f32 %v14815_v33  ;;  %v23252_v33 = vld [vmem:[#allocation9 + $0xf0] ss:$0 sm:$0xff] }
0x6056   :  { %v14824_v32 = vpop.permute.xlu0 %14823 }
0x6057   :  { %19612 = vmatpush3.msra.mxu1 %v14824_v32 }
0x605d   :  { %v21060_v25 = vpop.eup %21059 }
0x605e   :  { %v21062_v11 = vpop.eup %21061  ;;  %v14816_v45 = vsel %vm403_vm2, %v21060_v25, 0.0 }
0x605f   :  { %v14820_v4 = vmul.f32 %v21062_v11, %v21058_v57  ;;  %14817 = vadd.xlane.f32.xlu1 %v14816_v45  ;;  %v23238_v57 = vld [vmem:[#allocation9 + $0xf8] sm:$0xff] }
0x6060   :  { %v20725_v40 = vpack.i.bf16 %v23240_v38, %v23238_v57  ;;  %v20235_v46 = vpack.c.bf16 %v23240_v38, %v23238_v57 }
0x6061   :  { %19614 = vmatmul.mubr.msk.f32.vlgmr.msra.gmra.mrb[172].mxu1 %vm403_vm2, %v14820_v4 }
0x6062   :  { %20236 = vmatprep.subr.bf16.mxu1 %v20235_v46 }
0x6063   :  { %20238 = vmatpush3.bf16.msra.mxu1 %v20235_v46 }
0x6064   :  { %20240 = vmatprep.subr.bf16.mxu1 %v20239_v51 }
0x6067   :  { %20242 = vmatpush3.bf16.msra.mxu1 %v20239_v51 }
0x6070   :  { %14899 = vrot.lane.b32.xlu1 %v23097_v16, %s21279_s19 }
0x6074   :  { %14975 = vrot.lane.b32.xlu1 %v22999_v47, %s21278_s18  ;;  %v15062_v47 = vpop.permute.xlu0 %15061 }
0x60ec   :  { %v14818_v54 = vpop.xlane.xlu1 %14817 }
0x60ed   :  { %21063 = vrcp.f32 %v14818_v54 }
0x60f0   :  { %v14900_v7 = vpop.permute.xlu1 %14899 }
0x60f1   :  { %19617 = vmatpush3.msra.mxu0 %v14900_v7 }
0x60f4   :  { %v14976_v52 = vpop.permute.xlu1 %14975 }
0x60f5   :  { %19621 = vmatprep.subr.mxu0 %v14976_v52 }
0x60f7   :  { %v21064_v19 = vpop.eup %21063 }
0x60f8   :  { %v14822_v44 = vmul.f32 %v21064_v19, %v21060_v25 }
0x60fa   :  { %19619 = vmatmul.mubr.msk.f32.vlgmr.msra.gmra.mrb[128].mxu0 %vm403_vm2, %v14822_v44 }
0x60fb   :  { %19622 = vmatpush3.msra.mxu0 %v14976_v52 }
0x6134   :  { %v14895_v0 = vpop.f32.mrb[172].mxu1 }
0x6135   :  { %v19615_v18 = vpop.f32.mrb[173].mxu1  ;;  %19623 = vmatprep.mubr.msk.f32.mxu0 %vm403_vm2, %v14895_v0 }
0x61cd   :  { %v14971_v62 = vpop.f32.mrb[128].mxu0 }
0x61ce   :  { %v19620_v16 = vpop.f32.mrb[129].mxu0  ;;  %19624 = vmatmul.mubr.msk.f32.vlgmr.msra.gmra.mrb[122].mxu0 %vm403_vm2, %v14971_v62 }
0x61cf   :  { %19645 = vmatprep.mubr.msk.f32.mxu0 %vm128_vm0, %v21693_v41 }
0x62a1   :  { %v19625_v29 = vpop.f32.mrb[122].mxu0 }
0x62a2   :  { %v15065_v5 = vadd.f32 %v19625_v29, %v15062_v47  ;;  %v15050_v37 = vpop.f32.mrb[123].mxu0 }
0x62a3   :  { %v15064_v12 = vadd.f32 %v15062_v47, %v15050_v37 }
0x62a4   :  { %v15067_v30 = vadd.f32 %v15065_v5, %v23025_v10  ;;  %v17786_v5 = vld [vmem:[#allocation9 + $0x190] ss:$0 sm:$0xff] }
0x62a5   :  { %v15066_v17 = vadd.f32 %v15064_v12, %v23027_v31 }
0x62a6   :  { %v15073_v48 = vsel %vm128_vm0, %v15067_v30, 0.0 }
0x62a7   :  { %15074 = vadd.xlane.f32.xlu0 %v15073_v48  ;;  %v15070_v15 = vsel %vm128_vm0, %v15066_v17, 0.0 }
0x62a8   :  { %15071 = vadd.xlane.f32.xlu1 %v15070_v15  ;;  %v17787_v15 = vld [vmem:[#allocation9 + $0x188] ss:$0 sm:$0xff] }
0x6334   :  { %v15075_v43 = vpop.xlane.xlu0 %15074 }
0x6335   :  { %v15077_v26 = vmul.f32 0.03125, %v15075_v43  ;;  %v15072_v49 = vpop.xlane.xlu1 %15071 }
0x6336   :  { %v15076_v27 = vmul.f32 0.03125, %v15072_v49 }
0x6337   :  { %v15079_v41 = vsub.f32 %v15067_v30, %v15077_v26 }
0x6338   :  { %v15078_v28 = vsub.f32 %v15066_v17, %v15076_v27 }
0x6339   :  { %v15081_v60 = vmul.f32 %v15079_v41, %v15079_v41 }
0x633a   :  { %v15080_v35 = vmul.f32 %v15078_v28, %v15078_v28 }
0x633b   :  { %v15085_v55 = vsel %vm128_vm0, %v15081_v60, 0.0 }
0x633c   :  { %15086 = vadd.xlane.f32.xlu1 %v15085_v55  ;;  %v15082_v14 = vsel %vm128_vm0, %v15080_v35, 0.0 }
0x633d   :  { %15083 = vadd.xlane.f32.xlu0 %v15082_v14  ;;  %v21144_v14 = vld [vmem:[%s23629_s0] sm:$0xff] }
0x634d   :  { %20731 = vrot.lane.b32.xlu1 %v20730_v1, %s21272_s5 }
0x6351   :  { %20736 = vrot.lane.b32.xlu1 %v20725_v40, %s21275_s15 }
0x6353   :  { %20726 = vrot.lane.b32.xlu0 %v20725_v40, %s21272_s5 }
0x6355   :  { %15217 = vrot.lane.b32.xlu1 %v23252_v33, %s21272_s5 }
0x6357   :  { %20741 = vrot.lane.b32.xlu0 %v20730_v1, %s21275_s15 }
0x63c9   :  { %v15087_v32 = vpop.xlane.xlu1 %15086 }
0x63ca   :  { %v15089_v25 = vmul.f32 0.03125, %v15087_v32  ;;  %v15084_v11 = vpop.xlane.xlu0 %15083 }
0x63cb   :  { %v15088_v45 = vmul.f32 0.03125, %v15084_v11 }
0x63cc   :  { %v15091_v4 = vadd.f32 1e-05, %v15089_v25 }
0x63cd   :  { %v15090_v54 = vadd.f32 1e-05, %v15088_v45  ;;  %v20732_v7 = vpop.permute.xlu1 %20731 }
0x63ce   :  { %21065 = vrsqrt.f32 %v15091_v4  ;;  %v20727_v52 = vpop.permute.xlu0 %20726  ;;  %v20734_v19 = vunpack.i.h.bf16 %v20732_v7  ;;  %v20733_v44 = vunpack.i.l.bf16 %v20732_v7 }
0x63cf   :  { %21067 = vrsqrt.f32 %v15090_v54  ;;  %v20729_v0 = vunpack.i.h.bf16 %v20727_v52  ;;  %v20728_v18 = vunpack.i.l.bf16 %v20727_v52 }
0x63d0   :  { %v20247_v16 = vpack.c.bf16 %v20734_v19, %v20733_v44 }
0x63d1   :  { %v20243_v62 = vpack.c.bf16 %v20729_v0, %v20728_v18  ;;  %v20737_v47 = vpop.permute.xlu1 %20736 }
0x63d2   :  { %v20739_v37 = vunpack.i.h.bf16 %v20737_v47  ;;  %v20738_v12 = vunpack.i.l.bf16 %v20737_v47  ;;  %v20742_v26 = vpop.permute.xlu0 %20741 }
0x63d3   :  { %20244 = vmatprep.subr.bf16.mxu0 %v20243_v62  ;;  %v20744_v35 = vunpack.i.h.bf16 %v20742_v26  ;;  %v20743_v55 = vunpack.i.l.bf16 %v20742_v26 }
0x63d4   :  { %20246 = vmatpush3.bf16.msra.mxu0 %v20243_v62  ;;  %v20251_v43 = vpack.c.bf16 %v20739_v37, %v20738_v12 }
0x63d5   :  { %20248 = vmatprep.subr.bf16.mxu0 %v20247_v16  ;;  %v15218_v1 = vpop.permute.xlu1 %15217 }
0x63d6   :  { %20252 = vmatprep.subr.bf16.mxu1 %v20251_v43 }
0x63d8   :  { %v21066_v29 = vpop.eup %21065  ;;  %20250 = vmatpush3.bf16.msra.mxu0 %v20247_v16 }
0x63d9   :  { %v21068_v30 = vpop.eup %21067  ;;  %v15095_v17 = vmul.f32 %v21066_v29, %v15079_v41  ;;  %20259 = vmatprep.subr.bf16.mxu0 %v21280_v6 }
0x63da   :  { %v15094_v48 = vmul.f32 %v21068_v30, %v15078_v28 }
0x63db   :  { %19646 = vmatmul.mubr.msk.f32.vlgmr.msra.gmra.mrb[130].mxu0 %vm128_vm0, %v21713_v34  ;;  %v15101_v49 = vmul.f32 %v17786_v5, %v15095_v17 }
0x63dc   :  { %19648 = vmatprep.mubr.msk.f32.mxu0 %vm128_vm0, %v21715_v3  ;;  %v15100_v27 = vmul.f32 %v17786_v5, %v15094_v48  ;;  %v20255_v3 = vpack.c.bf16 %v20744_v35, %v20743_v55 }
0x63dd   :  { %v23261_v60 = vadd.f32 %v17787_v15, %v15101_v49 }
0x63de   :  { %v23263_v41 = vadd.f32 %v17787_v15, %v15100_v27 }
0x63df   :  { %19649 = vmatmul.mubr.msk.f32.gmra.mrb[132].mxu0 %vm128_vm0, %v21724_v22  ;;  %v15109_v34 = vadd.f32 %v23261_v60, %v23033_v23  ;;  %v21145_v22 = vld [vmem:[%s23629_s0 + $0x8] sm:$0xff]  ;;  %v21147_v23 = vld [vmem:[%s23629_s0 + $0x18] sm:$0xff] }
0x63e0   :  { %v15108_v28 = vadd.f32 %v23263_v41, %v23030_v36  ;;  %19669 = vmatprep.mubr.msk.f32.mxu0 %vm21274_vm1, %v23044_v56  ;;  %v21146_v36 = vld [vmem:[%s23629_s0 + $0x10] sm:$0xff] }
0x63e2   :  { %19634 = vmatprep.mubr.msk.f32.mxu1 %vm128_vm0, %v15108_v28 }
0x63e3   :  { %19635 = vmatmul.mubr.msk.f32.vlgmr.msra.gmra.mrb[174].mxu1 %vm128_vm0, %v15109_v34 }
0x63e4   :  { %20254 = vmatpush3.bf16.msra.mxu1 %v20251_v43  ;;  %19659 = vmatprep.mubr.msk.f32.mxu1 %vm128_vm0, %v21144_v14 }
0x63e5   :  { %20256 = vmatprep.subr.bf16.mxu1 %v20255_v3 }
0x63e8   :  { %20258 = vmatpush3.bf16.msra.mxu1 %v20255_v3 }
0x63e9   :  { %20263 = vmatprep.subr.bf16.mxu1 %v21280_v6 }
0x63eb   :  { %19660 = vmatmul.mubr.msk.f32.vlgmr.msra.gmra.mrb[176].mxu1 %vm128_vm0, %v21145_v22 }
0x63ec   :  { %19662 = vmatprep.mubr.msk.f32.mxu1 %vm128_vm0, %v21146_v36 }
0x63ef   :  { %19663 = vmatmul.mubr.msk.f32.gmra.mrb[178].mxu1 %vm128_vm0, %v21147_v23 }
0x63f0   :  { %19676 = vmatprep.mubr.msk.f32.mxu1 %vm21274_vm1, %v23044_v56 }
0x64ae   :  { %v19647_v40 = vpop.f32.mrb[130].mxu0 }
0x64af   :  { %v15292_v46 = vadd.f32 %v19647_v40, %v15218_v1  ;;  %v15286_v51 = vpop.f32.mrb[131].mxu0 }
0x64b0   :  { %v15287_v32 = vadd.f32 %v15286_v51, %v15218_v1 }
0x64b2   :  { %v20260_v25 = vpack.c.bf16 %v15292_v46, %v15287_v32  ;;  %v19650_v11 = vpop.f32.mrb[132].mxu0  ;;  %v23294_v45 = vpack.i.bf16 %v15292_v46, %v15287_v32 }
0x64b3   :  { %v15302_v4 = vadd.f32 %v19650_v11, %v15218_v1  ;;  %v15296_v54 = vpop.f32.mrb[133].mxu0 }
0x64b4   :  { %v15297_v7 = vadd.f32 %v15296_v54, %v15218_v1  ;;  %20262 = vmatpush3.bf16.xpose.msk.msra.mxu0 %vm21753_vm3, %v20260_v25 }
0x64b5   :  { %20267 = vmatprep.subr.bf16.mxu0 %v21280_v6 }
0x64b6   :  { %v20264_v52 = vpack.c.bf16 %v15302_v4, %v15297_v7  ;;  %v19636_v19 = vpop.f32.mrb[174].mxu1  ;;  %v23299_v44 = vpack.i.bf16 %v15302_v4, %v15297_v7 }
0x64b7   :  { %v15191_v0 = vpop.f32.mrb[175].mxu1  ;;  %v15197_v62 = vadd.f32 %v19636_v19, %v23252_v33 }
0x64b8   :  { %v15192_v18 = vadd.f32 %v23252_v33, %v15191_v0  ;;  %20266 = vmatpush3.bf16.xpose.msk.msra.mxu1 %vm21753_vm3, %v20264_v52 }
0x64b9   :  { %20270 = vmatprep.subr.bf16.mxu1 %v21280_v6  ;;  %v23310_v47 = vmul.f32 0.35355338, %v15197_v62 }
0x64ba   :  { %v23306_v16 = vmul.f32 0.35355338, %v15192_v18 }
0x64bc   :  { %19670 = vmatmul.mubr.msk.f32.vlgmr.msra.gmra.mrb[134].mxu0 %vm403_vm2, %v23306_v16 }
0x64bd   :  { %19683 = vmatprep.mubr.msk.f32.mxu0 %vm21274_vm1, %v23044_v56 }
0x64be   :  { %v19661_v29 = vpop.f32.mrb[176].mxu1 }
0x64bf   :  { %19677 = vmatmul.mubr.msk.f32.vlgmr.msra.gmra.mrb[180].mxu1 %vm403_vm2, %v23310_v47  ;;  %v15386_v5 = vpop.f32.mrb[177].mxu1 }
0x64c0   :  { %19690 = vmatprep.mubr.msk.f32.mxu1 %vm21274_vm1, %v23044_v56 }
0x64c2   :  { %v19664_v37 = vpop.f32.mrb[178].mxu1 }
0x64c3   :  { %v15396_v12 = vpop.f32.mrb[179].mxu1 }
0x658f   :  { %v15482_v30 = vpop.f32.mrb[134].mxu0 }
0x6590   :  { %v19671_v17 = vpop.f32.mrb[135].mxu0  ;;  %v15565_v48 = vsel %vm2593_vm4, %v15482_v30, -inf }
0x6591   :  { %15566 = vmax.xlane.f32.xlu0 %v15565_v48 }
0x6592   :  { %v15561_v15 = vpop.f32.mrb[180].mxu1 }
0x6593   :  { %v19678_v43 = vpop.f32.mrb[181].mxu1  ;;  %v15568_v26 = vsel %vm2593_vm4, %v15561_v15, -inf }
0x6594   :  { %15569 = vmax.xlane.f32.xlu1 %v15568_v26 }
0x65a5   :  { %15317 = vrot.lane.b32.xlu1 %v23252_v33, %s21275_s15 }
0x65a9   :  { %20751 = vrot.lane.b32.xlu1 %v23299_v44, %s21276_s16 }
0x65ad   :  { %15733 = vrot.lane.b32.xlu1 %v23306_v16, %s21276_s16 }
0x661e   :  { %v15567_v49 = vpop.xlane.xlu0 %15566 }
0x661f   :  { %v15571_v27 = vsub.f32 %v15482_v30, %v15567_v49 }
0x6621   :  { %v15570_v35 = vpop.xlane.xlu1 %15569  ;;  %v15573_v28 = vmul.f32 1.442695, %v15571_v27 }
0x6622   :  { %v15572_v55 = vsub.f32 %v15561_v15, %v15570_v35 }
0x6624   :  { %v15575_v34 = vmul.f32 1.442695, %v15572_v55 }
0x6625   :  { %v15318_v3 = vpop.permute.xlu1 %15317 }
0x6626   :  { %21069 = vpow2.f32 %v15575_v34  ;;  %v15387_v14 = vadd.f32 %v15386_v5, %v15318_v3  ;;  %v15392_v22 = vadd.f32 %v19661_v29, %v15318_v3  ;;  %v15397_v36 = vadd.f32 %v15396_v12, %v15318_v3 }
0x6627   :  { %21071 = vpow2.f32 %v15573_v28  ;;  %v15402_v23 = vadd.f32 %v19664_v37, %v15318_v3 }
0x6628   :  { %v20268_v1 = vpack.c.bf16 %v15392_v22, %v15387_v14  ;;  %v23326_v40 = vpack.i.bf16 %v15392_v22, %v15387_v14 }
0x6629   :  { %v20271_v46 = vpack.c.bf16 %v15402_v23, %v15397_v36  ;;  %v23328_v51 = vpack.i.bf16 %v15402_v23, %v15397_v36  ;;  %v20752_v52 = vpop.permute.xlu1 %20751 }
0x662a   :  { %20269 = vmatpush3.bf16.msra.mxu0 %v20268_v1  ;;  %v20754_v19 = vunpack.i.h.bf16 %v20752_v52  ;;  %v20753_v0 = vunpack.i.l.bf16 %v20752_v52 }
0x662b   :  { %20272 = vmatpush3.bf16.msra.mxu1 %v20271_v46  ;;  %20273 = vmatprep.subr.bf16.mxu0 %v21280_v6 }
0x662c   :  { %20277 = vmatprep.subr.bf16.mxu1 %v21280_v6  ;;  %v20278_v5 = vpack.c.bf16 %v20754_v19, %v20753_v0 }
0x662d   :  { %v15734_v43 = vpop.permute.xlu1 %15733 }
0x6630   :  { %v21070_v32 = vpop.eup %21069 }
0x6631   :  { %v21072_v25 = vpop.eup %21071  ;;  %v15580_v11 = vsel %vm2593_vm4, %v21070_v32, 0.0 }
0x6632   :  { %15581 = vadd.xlane.f32.xlu0 %v15580_v11  ;;  %v15577_v4 = vsel %vm2593_vm4, %v21072_v25, 0.0 }
0x6636   :  { %15578 = vadd.xlane.f32.xlu0 %v15577_v4 }
0x664c   :  { %20746 = vrot.lane.b32.xlu0 %v23294_v45, %s21276_s16 }
0x6650   :  { %15815 = vrot.lane.b32.xlu0 %v23310_v47, %s21276_s16 }
0x66bf   :  { %v15582_v54 = vpop.xlane.xlu0 %15581 }
0x66c0   :  { %21073 = vrcp.f32 %v15582_v54 }
0x66c3   :  { %v15579_v7 = vpop.xlane.xlu0 %15578 }
0x66c4   :  { %21075 = vrcp.f32 %v15579_v7 }
0x66c7   :  { %v20747_v18 = vpop.permute.xlu0 %20746 }
0x66c8   :  { %v20749_v37 = vunpack.i.h.bf16 %v20747_v18  ;;  %v20748_v12 = vunpack.i.l.bf16 %v20747_v18 }
0x66ca   :  { %v21074_v62 = vpop.eup %21073  ;;  %v20274_v48 = vpack.c.bf16 %v20749_v37, %v20748_v12 }
0x66cb   :  { %v15586_v29 = vmul.f32 %v21074_v62, %v21070_v32  ;;  %v15816_v15 = vpop.permute.xlu0 %15815 }
0x66cd   :  { %19691 = vmatmul.mubr.msk.f32.vlgmr.msra.gmra.mrb[182].mxu1 %vm2593_vm4, %v15586_v29 }
0x66ce   :  { %v21076_v30 = vpop.eup %21075  ;;  %20280 = vmatpush3.bf16.xpose.msk.msra.mxu1 %vm21753_vm3, %v20278_v5  ;;  %19704 = vmatprep.mubr.msk.f32.mxu1 %vm21274_vm1, %v23044_v56 }
0x66cf   :  { %v15584_v17 = vmul.f32 %v21076_v30, %v21072_v25  ;;  %20284 = vmatprep.subr.bf16.mxu1 %v21280_v6 }
0x66d1   :  { %19684 = vmatmul.mubr.msk.f32.vlgmr.msra.gmra.mrb[136].mxu0 %vm2593_vm4, %v15584_v17 }
0x66d2   :  { %20276 = vmatpush3.bf16.xpose.msk.msra.mxu0 %vm21753_vm3, %v20274_v48  ;;  %19697 = vmatprep.mubr.msk.f32.mxu0 %vm21274_vm1, %v23044_v56 }
0x66d3   :  { %20281 = vmatprep.subr.bf16.mxu0 %v21280_v6 }
0x66d5   :  { %19705 = vmatmul.mubr.msk.f32.vlgmr.msra.gmra.mrb[184].mxu1 %vm403_vm2, %v15816_v15 }
0x66d6   :  { %19718 = vmatprep.mubr.msk.f32.mxu1 %vm21274_vm1, %v23044_v56 }
0x66d9   :  { %19698 = vmatmul.mubr.msk.f32.vlgmr.msra.gmra.mrb[138].mxu0 %vm403_vm2, %v15734_v43 }
0x66da   :  { %19711 = vmatprep.mubr.msk.f32.mxu0 %vm21274_vm1, %v23044_v56 }
0x67a0   :  { %v23356_v26 = vpop.f32.mrb[182].mxu1 }
0x67a1   :  { %v19692_v49 = vpop.f32.mrb[183].mxu1 }
0x67a4   :  { %v23358_v27 = vpop.f32.mrb[136].mxu0 }
0x67a5   :  { %v19685_v35 = vpop.f32.mrb[137].mxu0 }
0x67a6   :  { %v23385_v35 = vld [vmem:[%s23635_s6] sm:$0xff] }
0x67a8   :  { %v15893_v55 = vpop.f32.mrb[184].mxu1 }
0x67a9   :  { %v19706_v28 = vpop.f32.mrb[185].mxu1  ;;  %v15900_v34 = vsel %vm2593_vm4, %v15893_v55, -inf }
0x67aa   :  { %15901 = vmax.xlane.f32.xlu0 %v15900_v34 }
0x67ac   :  { %v15811_v3 = vpop.f32.mrb[138].mxu0 }
0x67ad   :  { %v19699_v14 = vpop.f32.mrb[139].mxu0  ;;  %v15897_v22 = vsel %vm2593_vm4, %v15811_v3, -inf }
0x67ae   :  { %15898 = vmax.xlane.f32.xlu1 %v15897_v22 }
0x6837   :  { %v15902_v36 = vpop.xlane.xlu0 %15901 }
0x6838   :  { %v15904_v23 = vsub.f32 %v15893_v55, %v15902_v36 }
0x683a   :  { %v15907_v1 = vmul.f32 1.442695, %v15904_v23 }
0x683b   :  { %v15899_v56 = vpop.xlane.xlu1 %15898 }
0x683c   :  { %21077 = vpow2.f32 %v15907_v1  ;;  %v15903_v46 = vsub.f32 %v15811_v3, %v15899_v56 }
0x683e   :  { %v15905_v32 = vmul.f32 1.442695, %v15903_v46 }
0x6840   :  { %21079 = vpow2.f32 %v15905_v32 }
0x6846   :  { %v21078_v25 = vpop.eup %21077 }
0x6847   :  { %v15912_v11 = vsel %vm2593_vm4, %v21078_v25, 0.0 }
0x6848   :  { %15913 = vadd.xlane.f32.xlu1 %v15912_v11 }
0x684a   :  { %v21080_v4 = vpop.eup %21079 }
0x684b   :  { %v15909_v54 = vsel %vm2593_vm4, %v21080_v4, 0.0 }
0x684c   :  { %15910 = vadd.xlane.f32.xlu0 %v15909_v54 }
0x6859   :  { %20761 = vrot.lane.b32.xlu1 %v23328_v51, %s21276_s16 }
0x685d   :  { %16081 = vrot.lane.b32.xlu1 %v23240_v38, %s21278_s18 }
0x6861   :  { %20766 = vrot.lane.b32.xlu1 %v23294_v45, %s21277_s17 }
0x6862   :  { %20756 = vrot.lane.b32.xlu0 %v23326_v40, %s21276_s16  ;;  %s21281_s16 = smov 48  }
0x6865   :  { %16249 = vrot.lane.b32.xlu1 %v23306_v16, %s21277_s17 }
0x6866   :  { %16165 = vrot.lane.b32.xlu0 %v23238_v57, %s21278_s18 }
0x686a   :  { %20771 = vrot.lane.b32.xlu0 %v23299_v44, %s21277_s17 }
0x686e   :  { %16331 = vrot.lane.b32.xlu0 %v23310_v47, %s21277_s17 }
0x68d5   :  { %v15914_v7 = vpop.xlane.xlu1 %15913 }
0x68d6   :  { %21081 = vrcp.f32 %v15914_v7 }
0x68d9   :  { %v15911_v38 = vpop.xlane.xlu0 %15910  ;;  %v20762_v52 = vpop.permute.xlu1 %20761 }
0x68da   :  { %21083 = vrcp.f32 %v15911_v38  ;;  %v20764_v19 = vunpack.i.h.bf16 %v20762_v52  ;;  %v20763_v0 = vunpack.i.l.bf16 %v20762_v52 }
0x68dc   :  { %v20285_v18 = vpack.c.bf16 %v20764_v19, %v20763_v0 }
0x68dd   :  { %v20757_v62 = vpop.permute.xlu0 %20756  ;;  %v16082_v29 = vpop.permute.xlu1 %16081 }
0x68de   :  { %v20759_v5 = vunpack.i.h.bf16 %v20757_v62  ;;  %v20758_v37 = vunpack.i.l.bf16 %v20757_v62  ;;  %20286 = vmatpush3.bf16.msra.mxu1 %v20285_v18 }
0x68df   :  { %20287 = vmatprep.subr.bf16.mxu1 %v21280_v6 }
0x68e0   :  { %v21082_v57 = vpop.eup %21081  ;;  %v20282_v12 = vpack.c.bf16 %v20759_v5, %v20758_v37 }
0x68e1   :  { %v15918_v30 = vmul.f32 %v21082_v57, %v21078_v25  ;;  %v20767_v17 = vpop.permute.xlu1 %20766  ;;  %v16166_v28 = vpop.permute.xlu0 %16165 }
0x68e2   :  { %v20769_v48 = vunpack.i.h.bf16 %v20767_v17  ;;  %v20768_v15 = vunpack.i.l.bf16 %v20767_v17  ;;  %20283 = vmatpush3.bf16.msra.mxu0 %v20282_v12 }
0x68e3   :  { %19719 = vmatmul.mubr.msk.f32.vlgmr.msra.gmra.mrb[186].mxu1 %vm2593_vm4, %v15918_v30  ;;  %19721 = vmatprep.subr.mxu0 %v16082_v29 }
0x68e4   :  { %v21084_v43 = vpop.eup %21083  ;;  %v20288_v49 = vpack.c.bf16 %v20769_v48, %v20768_v15  ;;  %19735 = vmatprep.mubr.msk.f32.mxu1 %vm21274_vm1, %v23385_v35 }
0x68e5   :  { %v15916_v55 = vmul.f32 %v21084_v43, %v21080_v4  ;;  %v16250_v34 = vpop.permute.xlu1 %16249  ;;  %v20772_v23 = vpop.permute.xlu0 %20771 }
0x68e6   :  { %v20774_v1 = vunpack.i.h.bf16 %v20772_v23  ;;  %v20773_v56 = vunpack.i.l.bf16 %v20772_v23 }
0x68e7   :  { %19712 = vmatmul.mubr.msk.f32.vlgmr.msra.gmra.mrb[140].mxu0 %vm2593_vm4, %v15916_v55  ;;  %20290 = vmatpush3.bf16.xpose.msk.msra.mxu1 %vm21753_vm3, %v20288_v49 }
0x68e8   :  { %19722 = vmatpush3.msra.mxu0 %v16082_v29  ;;  %20295 = vmatprep.subr.bf16.mxu1 %v21280_v6  ;;  %v20292_v11 = vpack.c.bf16 %v20774_v1, %v20773_v56 }
0x68e9   :  { %19726 = vmatprep.subr.mxu0 %v16166_v28 }
0x68ee   :  { %19736 = vmatmul.mubr.msk.f32.vlgmr.msra.gmra.mrb[188].mxu1 %vm403_vm2, %v16250_v34 }
0x68ef   :  { %19749 = vmatprep.mubr.msk.f32.mxu1 %vm21274_vm1, %v23385_v35 }
0x69b6   :  { %v16077_v3 = vpop.f32.mrb[186].mxu1 }
0x69b7   :  { %v19720_v14 = vpop.f32.mrb[187].mxu1 }
0x69ba   :  { %v15996_v22 = vpop.f32.mrb[140].mxu0 }
0x69bb   :  { %v19713_v36 = vpop.f32.mrb[141].mxu0  ;;  %19723 = vmatprep.mubr.msk.f32.mxu0 %vm403_vm2, %v15996_v22 }
0x69bc   :  { %19724 = vmatmul.mubr.msk.f32.vlgmr.msra.gmra.mrb[142].mxu0 %vm403_vm2, %v16077_v3 }
0x69bd   :  { %19727 = vmatpush3.msra.mxu0 %v16166_v28  ;;  %19728 = vmatprep.mubr.msk.f32.mxu0 %vm403_vm2, %v23358_v27  ;;  %v16332_v27 = vpop.permute.xlu0 %16331 }
0x69be   :  { %20291 = vmatprep.subr.bf16.mxu0 %v21280_v6 }
0x69c1   :  { %v16327_v46 = vpop.f32.mrb[188].mxu1 }
0x69c2   :  { %v19737_v32 = vpop.f32.mrb[189].mxu1  ;;  %v16413_v25 = vsel %vm2593_vm4, %v16327_v46, -inf }
0x69c3   :  { %16414 = vmax.xlane.f32.xlu1 %v16413_v25 }
0x69c4   :  { %19729 = vmatmul.mubr.msk.f32.vlgmr.msra.gmra.mrb[142].mxu0 %vm403_vm2, %v23356_v26 }
0x69c5   :  { %20294 = vmatpush3.bf16.xpose.msk.msra.mxu0 %vm21753_vm3, %v20292_v11  ;;  %19742 = vmatprep.mubr.msk.f32.mxu0 %vm21274_vm1, %v23385_v35 }
0x69cc   :  { %19743 = vmatmul.mubr.msk.f32.vlgmr.msra.gmra.mrb[144].mxu0 %vm403_vm2, %v16332_v27 }
0x6a50   :  { %v16415_v4 = vpop.xlane.xlu1 %16414 }
0x6a51   :  { %v16419_v54 = vsub.f32 %v16327_v46, %v16415_v4 }
0x6a53   :  { %v16421_v7 = vmul.f32 1.442695, %v16419_v54 }
0x6a55   :  { %21085 = vpow2.f32 %v16421_v7 }
0x6a5f   :  { %v21086_v0 = vpop.eup %21085 }
0x6a60   :  { %v16425_v26 = vsel %vm2593_vm4, %v21086_v0, 0.0 }
0x6a9f   :  { %v16409_v38 = vpop.f32.mrb[144].mxu0 }
0x6aa0   :  { %v19744_v52 = vpop.f32.mrb[145].mxu0  ;;  %v16416_v19 = vsel %vm2593_vm4, %v16409_v38, -inf }
0x6aa1   :  { %16417 = vmax.xlane.f32.xlu0 %v16416_v19 }
0x6aa5   :  { %16426 = vadd.xlane.f32.xlu0 %v16425_v26 }
0x6abb   :  { %20776 = vrot.lane.b32.xlu0 %v23326_v40, %s21277_s17 }
0x6abf   :  { %20786 = vrot.lane.b32.xlu0 %v23294_v45, %s21279_s19 }
0x6ac3   :  { %16679 = vrot.lane.b32.xlu0 %v23306_v16, %s21279_s19 }
0x6b2e   :  { %v16418_v18 = vpop.xlane.xlu0 %16417 }
0x6b2f   :  { %v16420_v62 = vsub.f32 %v16409_v38, %v16418_v18 }
0x6b31   :  { %v16423_v29 = vmul.f32 1.442695, %v16420_v62 }
0x6b32   :  { %v16427_v5 = vpop.xlane.xlu0 %16426 }
0x6b33   :  { %21087 = vpow2.f32 %v16423_v29 }
0x6b34   :  { %21089 = vrcp.f32 %v16427_v5 }
0x6b36   :  { %v20777_v37 = vpop.permute.xlu0 %20776 }
0x6b37   :  { %v20779_v57 = vunpack.i.h.bf16 %v20777_v37  ;;  %v20778_v12 = vunpack.i.l.bf16 %v20777_v37 }
0x6b39   :  { %v20296_v30 = vpack.c.bf16 %v20779_v57, %v20778_v12 }
0x6b3a   :  { %v20787_v3 = vpop.permute.xlu0 %20786 }
0x6b3b   :  { %20297 = vmatpush3.bf16.msra.mxu1 %v20296_v30  ;;  %v20788_v14 = vunpack.i.l.bf16 %v20787_v3 }
0x6b3c   :  { %20298 = vmatprep.subr.bf16.mxu1 %v21280_v6 }
0x6b3d   :  { %v21088_v17 = vpop.eup %21087 }
0x6b3e   :  { %v21090_v48 = vpop.eup %21089  ;;  %v16428_v45 = vsel %vm2593_vm4, %v21088_v17, 0.0  ;;  %v16680_v36 = vpop.permute.xlu0 %16679 }
0x6b3f   :  { %v16432_v15 = vmul.f32 %v21090_v48, %v21086_v0  ;;  %16429 = vadd.xlane.f32.xlu1 %v16428_v45 }
0x6b41   :  { %19750 = vmatmul.mubr.msk.f32.vlgmr.msra.gmra.mrb[190].mxu1 %vm2593_vm4, %v16432_v15 }
0x6b42   :  { %19756 = vmatprep.mubr.msk.f32.mxu1 %vm21274_vm1, %v23385_v35 }
0x6b50   :  { %20781 = vrot.lane.b32.xlu1 %v23328_v51, %s21277_s17  ;;  %s21282_s17 = smov 56  }
0x6b54   :  { %16593 = vrot.lane.b32.xlu1 %v23232_v8, %s21278_s18 }
0x6b58   :  { %20791 = vrot.lane.b32.xlu1 %v23299_v44, %s21279_s19  ;;  %v20789_v44 = vunpack.i.h.bf16 %v20787_v3 }
0x6b5c   :  { %16761 = vrot.lane.b32.xlu1 %v23310_v47, %s21279_s19  ;;  %v20302_v47 = vpack.c.bf16 %v20789_v44, %v20788_v14 }
0x6bcc   :  { %v16430_v16 = vpop.xlane.xlu1 %16429 }
0x6bcd   :  { %21091 = vrcp.f32 %v16430_v16 }
0x6bd0   :  { %v20782_v43 = vpop.permute.xlu1 %20781 }
0x6bd1   :  { %v20784_v49 = vunpack.i.h.bf16 %v20782_v43  ;;  %v20783_v55 = vunpack.i.l.bf16 %v20782_v43 }
0x6bd3   :  { %v20299_v28 = vpack.c.bf16 %v20784_v49, %v20783_v55 }
0x6bd4   :  { %v16594_v34 = vpop.permute.xlu1 %16593 }
0x6bd5   :  { %20300 = vmatpush3.bf16.msra.mxu1 %v20299_v28  ;;  %19759 = vmatprep.subr.mxu0 %v16594_v34 }
0x6bd6   :  { %20301 = vmatprep.subr.bf16.mxu1 %v21280_v6  ;;  %19760 = vmatpush3.msra.mxu0 %v16594_v34 }
0x6bd7   :  { %v21092_v8 = vpop.eup %21091  ;;  %20305 = vmatprep.subr.bf16.mxu0 %v21280_v6 }
0x6bd8   :  { %v16434_v22 = vmul.f32 %v21092_v8, %v21088_v17  ;;  %v20792_v56 = vpop.permute.xlu1 %20791 }
0x6bd9   :  { %v20794_v46 = vunpack.i.h.bf16 %v20792_v56  ;;  %v20793_v32 = vunpack.i.l.bf16 %v20792_v56 }
0x6bda   :  { %19757 = vmatmul.mubr.msk.f32.vlgmr.msra.gmra.mrb[192].mxu1 %vm2593_vm4, %v16434_v22 }
0x6bdb   :  { %19768 = vmatprep.mubr.msk.f32.mxu1 %vm21274_vm1, %v23385_v35  ;;  %v20306_v25 = vpack.c.bf16 %v20794_v46, %v20793_v32 }
0x6bdc   :  { %v16762_v4 = vpop.permute.xlu1 %16761 }
0x6bde   :  { %20304 = vmatpush3.bf16.xpose.msk.msra.mxu1 %vm21753_vm3, %v20302_v47 }
0x6bdf   :  { %20309 = vmatprep.subr.bf16.mxu1 %v21280_v6 }
0x6be5   :  { %19769 = vmatmul.mubr.msk.f32.vlgmr.msra.gmra.mrb[194].mxu1 %vm403_vm2, %v16680_v36 }
0x6be6   :  { %19782 = vmatprep.mubr.msk.f32.mxu1 %vm21274_vm1, %v23385_v35 }
0x6c14   :  { %v16510_v23 = vpop.f32.mrb[190].mxu1 }
0x6c15   :  { %v19751_v1 = vpop.f32.mrb[191].mxu1  ;;  %19761 = vmatprep.mubr.msk.f32.mxu0 %vm403_vm2, %v16510_v23 }
0x6cad   :  { %v16589_v11 = vpop.f32.mrb[192].mxu1 }
0x6cae   :  { %v19758_v27 = vpop.f32.mrb[193].mxu1  ;;  %19762 = vmatmul.mubr.msk.f32.vlgmr.msra.gmra.mrb[142].mxu0 %vm403_vm2, %v16589_v11 }
0x6caf   :  { %20308 = vmatpush3.bf16.xpose.msk.msra.mxu0 %vm21753_vm3, %v20306_v25  ;;  %19775 = vmatprep.mubr.msk.f32.mxu0 %vm21274_vm1, %v23385_v35 }
0x6cb0   :  { %20312 = vmatprep.subr.bf16.mxu0 %v21280_v6 }
0x6cb6   :  { %19776 = vmatmul.mubr.msk.f32.vlgmr.msra.gmra.mrb[146].mxu0 %vm403_vm2, %v16762_v4 }
0x6cb7   :  { %19789 = vmatprep.mubr.msk.f32.mxu0 %vm21274_vm1, %v23385_v35 }
0x6cb8   :  { %v16757_v54 = vpop.f32.mrb[194].mxu1 }
0x6cb9   :  { %v19770_v7 = vpop.f32.mrb[195].mxu1  ;;  %v16843_v38 = vsel %vm2593_vm4, %v16757_v54, -inf }
0x6cba   :  { %16844 = vmax.xlane.f32.xlu0 %v16843_v38 }
0x6d47   :  { %v16845_v52 = vpop.xlane.xlu0 %16844 }
0x6d48   :  { %v16849_v19 = vsub.f32 %v16757_v54, %v16845_v52 }
0x6d4a   :  { %v16851_v39 = vmul.f32 1.442695, %v16849_v19 }
0x6d4c   :  { %21093 = vpow2.f32 %v16851_v39  ;;  %v17157_v39 = vld [vmem:[#allocation9 + $0x130] sm:$0xff] }
0x6d56   :  { %v21094_v0 = vpop.eup %21093 }
0x6d57   :  { %v16855_v26 = vsel %vm2593_vm4, %v21094_v0, 0.0 }
0x6d58   :  { %16856 = vadd.xlane.f32.xlu0 %v16855_v26  ;;  %v17158_v26 = vld [vmem:[#allocation9 + $0x138] sm:$0xff] }
0x6d89   :  { %v16839_v6 = vpop.f32.mrb[146].mxu0 }
0x6d8a   :  { %v19777_v18 = vpop.f32.mrb[147].mxu0  ;;  %v16846_v62 = vsel %vm2593_vm4, %v16839_v6, -inf }
0x6d8b   :  { %16847 = vmax.xlane.f32.xlu1 %v16846_v62  ;;  %v17248_v62 = vld [vmem:[#allocation9 + $0x148] sm:$0xff] }
0x6d9c   :  { %20796 = vrot.lane.b32.xlu1 %v23326_v40, %s21279_s19 }
0x6da0   :  { %17023 = vrot.lane.b32.xlu1 %v23234_v2, %s21278_s18 }
0x6da4   :  { %17109 = vrot.lane.b32.xlu1 %v23252_v33, %s21278_s18 }
0x6de5   :  { %v16857_v35 = vpop.xlane.xlu0 %16856 }
0x6de6   :  { %21095 = vrcp.f32 %v16857_v35  ;;  %v17249_v35 = vld [vmem:[#allocation9 + $0x150] sm:$0xff] }
0x6df0   :  { %v21096_v17 = vpop.eup %21095 }
0x6df1   :  { %v16862_v45 = vmul.f32 %v21096_v17, %v21094_v0 }
0x6e18   :  { %v16848_v29 = vpop.xlane.xlu1 %16847 }
0x6e19   :  { %v16850_v5 = vsub.f32 %v16839_v6, %v16848_v29  ;;  %v17159_v6 = vld [vmem:[#allocation9 + $0x140] sm:$0xff]  ;;  %v17250_v29 = vld [vmem:[#allocation9 + $0x158] sm:$0xff] }
0x6e1a   :  { %v20319_v18 = vpack.c.bf16 %v17159_v6, %v17158_v26 }
0x6e1b   :  { %v16853_v37 = vmul.f32 1.442695, %v16850_v5  ;;  %v20323_v5 = vpack.c.bf16 %v17249_v35, %v17248_v62 }
0x6e1c   :  { %v20797_v57 = vpop.permute.xlu1 %20796 }
0x6e1d   :  { %21097 = vpow2.f32 %v16853_v37  ;;  %v20799_v12 = vunpack.i.h.bf16 %v20797_v57  ;;  %v20798_v30 = vunpack.i.l.bf16 %v20797_v57  ;;  %v17251_v37 = vld [vmem:[#allocation9 + $0x160] sm:$0xff] }
0x6e1e   :  { %v20327_v57 = vpack.c.bf16 %v17251_v37, %v17250_v29  ;;  %v8749_v37 = vsel %vm128_vm0, %v23025_v10, 0.0 }
0x6e1f   :  { %v20310_v48 = vpack.c.bf16 %v20799_v12, %v20798_v30  ;;  %v17252_v12 = vld [vmem:[#allocation9 + $0x168] sm:$0xff]  ;;  %v17253_v30 = vld [vmem:[#allocation9 + $0x170] sm:$0xff] }
0x6e20   :  { %v17024_v55 = vpop.permute.xlu1 %17023  ;;  %v20331_v17 = vpack.c.bf16 %v17253_v30, %v17252_v12 }
0x6e21   :  { %20311 = vmatpush3.bf16.msra.mxu1 %v20310_v48 }
0x6e24   :  { %19783 = vmatmul.mubr.msk.f32.vlgmr.msra.gmra.mrb[196].mxu1 %vm2593_vm4, %v16862_v45  ;;  %v17110_v14 = vpop.permute.xlu1 %17109 }
0x6e27   :  { %v21098_v40 = vpop.eup %21097 }
0x6e28   :  { %v16858_v2 = vsel %vm2593_vm4, %v21098_v40, 0.0 }
0x6e29   :  { %16859 = vadd.xlane.f32.xlu0 %v16858_v2 }
0x6e3f   :  { %20801 = vrot.lane.b32.xlu0 %v23328_v51, %s21279_s19 }
0x6eb6   :  { %v16860_v33 = vpop.xlane.xlu0 %16859 }
0x6eb7   :  { %21099 = vrcp.f32 %v16860_v33 }
0x6eba   :  { %v20802_v15 = vpop.permute.xlu0 %20801 }
0x6ebb   :  { %v20804_v16 = vunpack.i.h.bf16 %v20802_v15  ;;  %v20803_v43 = vunpack.i.l.bf16 %v20802_v15 }
0x6ebd   :  { %v20313_v49 = vpack.c.bf16 %v20804_v16, %v20803_v43  ;;  %v17839_v43 = vld [vmem:[#allocation9 + $0x1a0] ss:$0 sm:$0xff] }
0x6ebf   :  { %20314 = vmatpush3.bf16.msra.mxu0 %v20313_v49 }
0x6ec0   :  { %19792 = vmatprep.subr.mxu0 %v17024_v55 }
0x6ec1   :  { %v21100_v28 = vpop.eup %21099 }
0x6ec2   :  { %v16864_v34 = vmul.f32 %v21100_v28, %v21098_v40 }
0x6ec4   :  { %19790 = vmatmul.mubr.msk.f32.vlgmr.msra.gmra.mrb[148].mxu0 %vm2593_vm4, %v16864_v34 }
0x6ec5   :  { %19793 = vmatpush3.msra.mxu0 %v17024_v55  ;;  %v17840_v55 = vld [vmem:[#allocation9 + $0x198] ss:$0 sm:$0xff] }
0x6ec6   :  { %20324 = vmatprep.subr.bf16.mxu0 %v20323_v5 }
0x6ef7   :  { %v16940_v3 = vpop.f32.mrb[196].mxu1 }
0x6ef8   :  { %v19784_v8 = vpop.f32.mrb[197].mxu1  ;;  %19794 = vmatprep.mubr.msk.f32.mxu0 %vm403_vm2, %v16940_v3 }
0x6f97   :  { %v17019_v44 = vpop.f32.mrb[148].mxu0 }
0x6f98   :  { %v19791_v51 = vpop.f32.mrb[149].mxu0  ;;  %19795 = vmatmul.mubr.msk.f32.vlgmr.msra.gmra.mrb[142].mxu0 %vm403_vm2, %v17019_v44 }
0x6f99   :  { %20326 = vmatpush3.bf16.msra.mxu0 %v20323_v5 }
0x6f9a   :  { %20328 = vmatprep.subr.bf16.mxu0 %v20327_v57 }
0x6f9d   :  { %20330 = vmatpush3.bf16.msra.mxu0 %v20327_v57  ;;  %v8746_v57 = vsel %vm128_vm0, %v23027_v31, 0.0 }
0x6f9e   :  { %20332 = vmatprep.subr.bf16.mxu0 %v20331_v17 }
0x6fa1   :  { %20334 = vmatpush3.bf16.msra.mxu0 %v20331_v17 }
0x706b   :  { %v19796_v22 = vpop.f32.mrb[142].mxu0 }
0x706c   :  { %v17113_v47 = vadd.f32 %v19796_v22, %v17110_v14  ;;  %v17098_v36 = vpop.f32.mrb[143].mxu0  ;;  %v17255_v22 = vld [vmem:[#allocation9 + $0x180] sm:$0xff] }
0x706d   :  { %v17112_v23 = vadd.f32 %v17110_v14, %v17098_v36  ;;  %v17254_v14 = vld [vmem:[#allocation9 + $0x178] sm:$0xff] }
0x706e   :  { %v17115_v1 = vadd.f32 %v17113_v47, %v23261_v60  ;;  %v20335_v47 = vpack.c.bf16 %v17255_v22, %v17254_v14  ;;  %v17841_v36 = vld [vmem:[#allocation9 + $0x118] ss:$0 sm:$0xff] }
0x706f   :  { %v17114_v56 = vadd.f32 %v17112_v23, %v23263_v41  ;;  %v17156_v41 = vld [vmem:[#allocation9 + $0x128] sm:$0xff] }
0x7070   :  { %v17121_v46 = vsel %vm128_vm0, %v17115_v1, 0.0  ;;  %v20315_v0 = vpack.c.bf16 %v17157_v39, %v17156_v41  ;;  %20336 = vmatprep.subr.bf16.mxu0 %v20335_v47 }
0x7071   :  { %17122 = vadd.xlane.f32.xlu1 %v17121_v46  ;;  %v17118_v32 = vsel %vm128_vm0, %v17114_v56, 0.0  ;;  %20338 = vmatpush3.bf16.msra.mxu0 %v20335_v47 }
0x7072   :  { %17119 = vadd.xlane.f32.xlu0 %v17118_v32  ;;  %20316 = vmatprep.subr.bf16.mxu1 %v20315_v0 }
0x7073   :  { %20318 = vmatpush3.bf16.msra.mxu1 %v20315_v0 }
0x7074   :  { %20320 = vmatprep.subr.bf16.mxu1 %v20319_v18 }
0x7077   :  { %20322 = vmatpush3.bf16.msra.mxu1 %v20319_v18 }
0x70fe   :  { %v17123_v25 = vpop.xlane.xlu1 %17122 }
0x70ff   :  { %v17125_v11 = vmul.f32 0.03125, %v17123_v25  ;;  %v17120_v27 = vpop.xlane.xlu0 %17119 }
0x7100   :  { %v17124_v4 = vmul.f32 0.03125, %v17120_v27 }
0x7101   :  { %v17127_v54 = vsub.f32 %v17115_v1, %v17125_v11  ;;  %v17844_v11 = vld [vmem:[#allocation9 + $0x120] ss:$0 sm:$0xff] }
0x7102   :  { %v17126_v7 = vsub.f32 %v17114_v56, %v17124_v4 }
0x7103   :  { %v17129_v19 = vmul.f32 %v17127_v54, %v17127_v54 }
0x7104   :  { %v17128_v38 = vmul.f32 %v17126_v7, %v17126_v7 }
0x7105   :  { %v17133_v60 = vsel %vm128_vm0, %v17129_v19, 0.0 }
0x7106   :  { %v17130_v52 = vsel %vm128_vm0, %v17128_v38, 0.0 }
0x7107   :  { %17131 = vadd.xlane.f32.xlu0 %v17130_v52 }
0x710b   :  { %17134 = vadd.xlane.f32.xlu0 %v17133_v60 }
0x7194   :  { %v17132_v48 = vpop.xlane.xlu0 %17131 }
0x7195   :  { %v17136_v45 = vmul.f32 0.03125, %v17132_v48 }
0x7197   :  { %v17138_v40 = vadd.f32 1e-05, %v17136_v45 }
0x7198   :  { %v17135_v2 = vpop.xlane.xlu0 %17134 }
0x7199   :  { %21101 = vrsqrt.f32 %v17138_v40  ;;  %v17137_v33 = vmul.f32 0.03125, %v17135_v2 }
0x719b   :  { %v17139_v15 = vadd.f32 1e-05, %v17137_v33  ;;  %v17847_v33 = vld [vmem:[#allocation9 + $0x1b0] ss:$0 sm:$0xff] }
0x719d   :  { %21103 = vrsqrt.f32 %v17139_v15 }
0x71a3   :  { %v21102_v16 = vpop.eup %21101 }
0x71a4   :  { %v17142_v49 = vmul.f32 %v21102_v16, %v17126_v7 }
0x71a6   :  { %v17148_v28 = vmul.f32 %v17839_v43, %v17142_v49 }
0x71a7   :  { %v21104_v34 = vpop.eup %21103 }
0x71a8   :  { %v17143_v3 = vmul.f32 %v21104_v34, %v17127_v54  ;;  %v17154_v8 = vadd.f32 %v17840_v55, %v17148_v28 }
0x71aa   :  { %v17149_v44 = vmul.f32 %v17839_v43, %v17143_v3  ;;  %19805 = vmatprep.mubr.msk.f32.mxu1 %vm128_vm0, %v17154_v8  ;;  %v17848_v43 = vld [vmem:[#allocation9 + $0x1a8] ss:$0 sm:$0xff] }
0x71ac   :  { %v17155_v51 = vadd.f32 %v17840_v55, %v17149_v44 }
0x71ae   :  { %19806 = vmatmul.mubr.msk.f32.vlgmr.msra.gmra.mrb[198].mxu1 %vm128_vm0, %v17155_v51 }
0x7281   :  { %v19807_v23 = vpop.f32.mrb[198].mxu1 }
0x7282   :  { %v17243_v1 = vadd.f32 %v19807_v23, %v17841_v36  ;;  %v17237_v56 = vpop.f32.mrb[199].mxu1  ;;  %v4425_v23 = vsel %vm128_vm0, %v21996_v50, 0.0 }
0x7283   :  { %v17238_v46 = vadd.f32 %v17841_v36, %v17237_v56  ;;  %v4422_v56 = vsel %vm128_vm0, %v21998_v53, 0.0 }
0x7284   :  { %v17247_v25 = vmax.f32 %v17243_v1, 0.0 }
0x7285   :  { %v17246_v32 = vmax.f32 %v17238_v46, 0.0  ;;  %v13072_v46 = vsel %vm128_vm0, %v23023_v20, 0.0 }
0x7287   :  { %19824 = vmatprep.mubr.msk.f32.mxu0 %vm4298_vm5, %v17246_v32 }
0x7288   :  { %19825 = vmatmul.mubr.msk.f32.vlgmr.msra.gmra.mrb[150].mxu0 %vm4298_vm5, %v17247_v25 }
0x735b   :  { %v19826_v27 = vpop.f32.mrb[150].mxu0 }
0x735c   :  { %v17339_v4 = vadd.f32 %v19826_v27, %v17844_v11  ;;  %v17333_v54 = vpop.f32.mrb[151].mxu0 }
0x735d   :  { %v17334_v7 = vadd.f32 %v17844_v11, %v17333_v54 }
0x735e   :  { %v17343_v38 = vadd.f32 %v17339_v4, %v17155_v51 }
0x735f   :  { %v17342_v52 = vadd.f32 %v17334_v7, %v17154_v8 }
0x7360   :  { %v17349_v19 = vsel %vm128_vm0, %v17343_v38, 0.0 }
0x7361   :  { %17350 = vadd.xlane.f32.xlu0 %v17349_v19  ;;  %v17346_v60 = vsel %vm128_vm0, %v17342_v52, 0.0 }
0x7362   :  { %17347 = vadd.xlane.f32.xlu1 %v17346_v60 }
0x73ee   :  { %v17351_v41 = vpop.xlane.xlu0 %17350 }
0x73ef   :  { %v17353_v39 = vmul.f32 0.03125, %v17351_v41  ;;  %v17348_v0 = vpop.xlane.xlu1 %17347 }
0x73f0   :  { %v17352_v26 = vmul.f32 0.03125, %v17348_v0 }
0x73f1   :  { %v17355_v6 = vsub.f32 %v17343_v38, %v17353_v39 }
0x73f2   :  { %v17354_v18 = vsub.f32 %v17342_v52, %v17352_v26 }
0x73f3   :  { %v17357_v62 = vmul.f32 %v17355_v6, %v17355_v6 }
0x73f4   :  { %v17356_v35 = vmul.f32 %v17354_v18, %v17354_v18 }
0x73f5   :  { %v17361_v29 = vsel %vm128_vm0, %v17357_v62, 0.0 }
0x73f6   :  { %17362 = vadd.xlane.f32.xlu0 %v17361_v29  ;;  %v17358_v5 = vsel %vm128_vm0, %v17356_v35, 0.0 }
0x73f7   :  { %17359 = vadd.xlane.f32.xlu1 %v17358_v5 }
0x73fa   :  { %8750 = vadd.xlane.f32.xlu0 %v8749_v37 }
0x73fb   :  { %8747 = vadd.xlane.f32.xlu1 %v8746_v57 }
0x7483   :  { %v17363_v12 = vpop.xlane.xlu0 %17362 }
0x7484   :  { %v17365_v30 = vmul.f32 0.03125, %v17363_v12  ;;  %v17360_v17 = vpop.xlane.xlu1 %17359 }
0x7485   :  { %v17364_v48 = vmul.f32 0.03125, %v17360_v17 }
0x7486   :  { %v17367_v45 = vadd.f32 1e-05, %v17365_v30 }
0x7487   :  { %v17366_v40 = vadd.f32 1e-05, %v17364_v48  ;;  %v8751_v28 = vpop.xlane.xlu0 %8750 }
0x7488   :  { %21105 = vrsqrt.f32 %v17367_v45  ;;  %v8748_v3 = vpop.xlane.xlu1 %8747  ;;  %v8753_v51 = vmul.f32 0.03125, %v8751_v28  ;;  %v4150_v28 = vmul.f32 0.25, %v21952_v42  ;;  %v2068_v42 = vmul.f32 0.25, %v21655_v9 }
0x7489   :  { %21107 = vrsqrt.f32 %v17366_v40  ;;  %v8752_v22 = vmul.f32 0.03125, %v8748_v3 }
0x748a   :  { %v23488_v36 = vsub.f32 %v23025_v10, %v8753_v51  ;;  %v13069_v10 = vsel %vm128_vm0, %v23021_v13, 0.0 }
0x748b   :  { %v23493_v1 = vsub.f32 %v23027_v31, %v8752_v22  ;;  %v17637_v22 = vld [vmem:[#allocation9 + $0x1e8] ss:$0 sm:$0xff] }
0x748c   :  { %v8757_v32 = vmul.f32 %v23488_v36, %v23488_v36 }
0x748d   :  { %v8756_v25 = vmul.f32 %v23493_v1, %v23493_v1 }
0x748e   :  { %v8761_v31 = vsel %vm128_vm0, %v8757_v32, 0.0 }
0x748f   :  { %v8758_v11 = vsel %vm128_vm0, %v8756_v25, 0.0 }
0x7492   :  { %v21106_v2 = vpop.eup %21105 }
0x7493   :  { %v21108_v15 = vpop.eup %21107  ;;  %v17371_v16 = vmul.f32 %v21106_v2, %v17355_v6 }
0x7494   :  { %v17370_v49 = vmul.f32 %v21108_v15, %v17354_v18 }
0x7495   :  { %v17377_v55 = vmul.f32 %v17847_v33, %v17371_v16 }
0x7496   :  { %v17376_v34 = vmul.f32 %v17847_v33, %v17370_v49 }
0x7497   :  { %v17383_v8 = vadd.f32 %v17848_v43, %v17377_v55  ;;  %v4149_v55 = vmul.f32 0.25, %v21944_v24  ;;  %v10741_v24 = vmul.f32 0.25, %v22674_v58 }
0x7498   :  { %v17382_v44 = vadd.f32 %v17848_v43, %v17376_v34  ;;  %v12797_v34 = vmul.f32 0.25, %v22941_v21 }
0x7499   :  { %v17387_v14 = vsel %vm128_vm0, %v17383_v8, 0.0 }
0x749a   :  { %17388 = vadd.xlane.f32.xlu0 %v17387_v14  ;;  %v17384_v47 = vsel %vm128_vm0, %v17382_v44, 0.0 }
0x749b   :  { %17385 = vadd.xlane.f32.xlu1 %v17384_v47 }
0x749e   :  { %4426 = vadd.xlane.f32.xlu0 %v4425_v23  ;;  %v17638_v23 = vld [vmem:[#allocation9 + $0x1e0] ss:$0 sm:$0xff] }
0x749f   :  { %4423 = vadd.xlane.f32.xlu1 %v4422_v56 }
0x74a2   :  { %13073 = vadd.xlane.f32.xlu0 %v13072_v46 }
0x74a3   :  { %13070 = vadd.xlane.f32.xlu1 %v13069_v10 }
0x74a6   :  { %8762 = vadd.xlane.f32.xlu0 %v8761_v31 }
0x74a7   :  { %8759 = vadd.xlane.f32.xlu1 %v8758_v11 }
0x7527   :  { %v17389_v27 = vpop.xlane.xlu0 %17388 }
0x7528   :  { %v17391_v4 = vmul.f32 0.03125, %v17389_v27  ;;  %v17386_v54 = vpop.xlane.xlu1 %17385 }
0x7529   :  { %v17390_v7 = vmul.f32 0.03125, %v17386_v54 }
0x752a   :  { %v23507_v38 = vsub.f32 %v17383_v8, %v17391_v4  ;;  %v2067_v8 = vmul.f32 0.25, %v21647_v59  ;;  %v10742_v59 = vmul.f32 0.25, %v22682_v63 }
0x752b   :  { %v23509_v52 = vsub.f32 %v17382_v44, %v17390_v7  ;;  %v4427_v19 = vpop.xlane.xlu0 %4426  ;;  %v12798_v44 = vmul.f32 0.25, %v22949_v61 }
0x752c   :  { %v4429_v60 = vmul.f32 0.03125, %v4427_v19  ;;  %v4424_v41 = vpop.xlane.xlu1 %4423  ;;  %v17395_v39 = vmul.f32 %v23507_v38, %v23507_v38 }
0x752d   :  { %v4428_v0 = vmul.f32 0.03125, %v4424_v41  ;;  %v17394_v26 = vmul.f32 %v23509_v52, %v23509_v52 }
0x752e   :  { %v23516_v6 = vsub.f32 %v21996_v50, %v4429_v60  ;;  %v17399_v18 = vsel %vm128_vm0, %v17395_v39, 0.0 }
0x752f   :  { %v23520_v62 = vsub.f32 %v21998_v53, %v4428_v0  ;;  %17400 = vadd.xlane.f32.xlu0 %v17399_v18  ;;  %v13074_v35 = vpop.xlane.xlu0 %13073  ;;  %v17396_v29 = vsel %vm128_vm0, %v17394_v26, 0.0 }
0x7530   :  { %v13076_v5 = vmul.f32 0.03125, %v13074_v35  ;;  %17397 = vadd.xlane.f32.xlu1 %v17396_v29  ;;  %v13071_v37 = vpop.xlane.xlu1 %13070  ;;  %v4433_v57 = vmul.f32 %v23516_v6, %v23516_v6 }
0x7531   :  { %v13075_v12 = vmul.f32 0.03125, %v13071_v37  ;;  %v4432_v50 = vmul.f32 %v23520_v62, %v23520_v62 }
0x7532   :  { %v23528_v30 = vsub.f32 %v23023_v20, %v13076_v5  ;;  %v4437_v53 = vsel %vm128_vm0, %v4433_v57, 0.0 }
0x7533   :  { %v23532_v17 = vsub.f32 %v23021_v13, %v13075_v12  ;;  %4438 = vadd.xlane.f32.xlu0 %v4437_v53  ;;  %v4434_v48 = vsel %vm128_vm0, %v4432_v50, 0.0  ;;  %v8763_v13 = vpop.xlane.xlu0 %8762  ;;  %v17533_v53 = vld [vmem:[#allocation9 + $0x3d8] ss:$0 sm:$0xff] }
0x7534   :  { %4435 = vadd.xlane.f32.xlu1 %v4434_v48  ;;  %v13080_v45 = vmul.f32 %v23528_v30, %v23528_v30  ;;  %v8760_v33 = vpop.xlane.xlu1 %8759  ;;  %v8765_v16 = vmul.f32 0.03125, %v8763_v13 }
0x7535   :  { %v13079_v40 = vmul.f32 %v23532_v17, %v23532_v17  ;;  %v8764_v15 = vmul.f32 0.03125, %v8760_v33 }
0x7536   :  { %v13084_v2 = vsel %vm128_vm0, %v13080_v45, 0.0  ;;  %v8767_v49 = vadd.f32 1e-05, %v8765_v16 }
0x7537   :  { %13085 = vadd.xlane.f32.xlu0 %v13084_v2  ;;  %v13081_v20 = vsel %vm128_vm0, %v13079_v40, 0.0  ;;  %v8766_v43 = vadd.f32 1e-05, %v8764_v15 }
0x7538   :  { %13082 = vadd.xlane.f32.xlu1 %v13081_v20  ;;  %v17534_v20 = vld [vmem:[#allocation9 + $0x3d0] ss:$0 sm:$0xff] }
0x7539   :  { %21109 = vrsqrt.f32 %v8766_v43 }
0x753a   :  { %21111 = vrsqrt.f32 %v8767_v49 }
0x7543   :  { %v21110_v3 = vpop.eup %21109 }
0x7544   :  { %v8770_v51 = vmul.f32 %v21110_v3, %v23493_v1  ;;  %v21112_v14 = vpop.eup %21111 }
0x7545   :  { %v8771_v47 = vmul.f32 %v21112_v14, %v23488_v36 }
0x7546   :  { %v8776_v21 = vmul.f32 %v17637_v22, %v8770_v51 }
0x7547   :  { %v8777_v1 = vmul.f32 %v17637_v22, %v8771_v47 }
0x7548   :  { %v8782_v61 = vadd.f32 %v17638_v23, %v8776_v21 }
0x7549   :  { %4464 = vrot.lane.b32.xlu1 %v4149_v55, %s21278_s18  ;;  %v8783_v56 = vadd.f32 %v17638_v23, %v8777_v1 }
0x754d   :  { %4466 = vrot.lane.b32.xlu0 %v4150_v28, %s21278_s18  ;;  %13104 = vrot.lane.b32.xlu1 %v12797_v34, %s21278_s18 }
0x7551   :  { %4475 = vrot.lane.b32.xlu0 %v2067_v8, %s21281_s16  ;;  %13106 = vrot.lane.b32.xlu1 %v12798_v44, %s21278_s18 }
0x7555   :  { %13114 = vrot.lane.b32.xlu0 %v10741_v24, %s21281_s16  ;;  %4477 = vrot.lane.b32.xlu1 %v2068_v42, %s21281_s16 }
0x7559   :  { %13116 = vrot.lane.b32.xlu1 %v10742_v59, %s21281_s16  ;;  %8786 = vrot.lane.b32.xlu0 %v8782_v61, %s21282_s17 }
0x755d   :  { %8788 = vrot.lane.b32.xlu1 %v8783_v56, %s21282_s17 }
0x75bc   :  { %v17401_v58 = vpop.xlane.xlu0 %17400 }
0x75bd   :  { %v17403_v46 = vmul.f32 0.03125, %v17401_v58  ;;  %v17398_v9 = vpop.xlane.xlu1 %17397 }
0x75be   :  { %v17402_v32 = vmul.f32 0.03125, %v17398_v9 }
0x75bf   :  { %v17405_v10 = vadd.f32 1e-05, %v17403_v46 }
0x75c0   :  { %v17404_v36 = vadd.f32 1e-05, %v17402_v32  ;;  %v4439_v25 = vpop.xlane.xlu0 %4438 }
0x75c1   :  { %21113 = vrsqrt.f32 %v17405_v10  ;;  %v4441_v31 = vmul.f32 0.03125, %v4439_v25  ;;  %v4436_v11 = vpop.xlane.xlu1 %4435 }
0x75c2   :  { %21115 = vrsqrt.f32 %v17404_v36  ;;  %v4440_v63 = vmul.f32 0.03125, %v4436_v11 }
0x75c3   :  { %v4443_v27 = vadd.f32 1e-05, %v4441_v31 }
0x75c4   :  { %v4442_v4 = vadd.f32 1e-05, %v4440_v63  ;;  %v13086_v54 = vpop.xlane.xlu0 %13085 }
0x75c5   :  { %21117 = vrsqrt.f32 %v4443_v27  ;;  %v13088_v7 = vmul.f32 0.03125, %v13086_v54  ;;  %v13083_v19 = vpop.xlane.xlu1 %13082 }
0x75c6   :  { %21119 = vrsqrt.f32 %v4442_v4  ;;  %v13087_v60 = vmul.f32 0.03125, %v13083_v19 }
0x75c7   :  { %v13090_v41 = vadd.f32 1e-05, %v13088_v7 }
0x75c8   :  { %v13089_v39 = vadd.f32 1e-05, %v13087_v60  ;;  %v4467_v0 = vpop.permute.xlu0 %4466 }
0x75c9   :  { %21121 = vrsqrt.f32 %v13090_v41  ;;  %v4465_v26 = vpop.permute.xlu1 %4464 }
0x75ca   :  { %21123 = vrsqrt.f32 %v13089_v39 }
0x75cb   :  { %v21114_v18 = vpop.eup %21113 }
0x75cc   :  { %v21116_v35 = vpop.eup %21115  ;;  %v17409_v29 = vmul.f32 %v21114_v18, %v23507_v38  ;;  %v4476_v5 = vpop.permute.xlu0 %4475 }
0x75cd   :  { %v13105_v37 = vpop.permute.xlu1 %13104  ;;  %v17408_v57 = vmul.f32 %v21116_v35, %v23509_v52 }
0x75ce   :  { %v17411_v12 = vmul.f32 %v17637_v22, %v17409_v29 }
0x75cf   :  { %v21118_v50 = vpop.eup %21117  ;;  %v17410_v48 = vmul.f32 %v17637_v22, %v17408_v57 }
0x75d0   :  { %v21120_v45 = vpop.eup %21119  ;;  %v4447_v40 = vmul.f32 %v21118_v50, %v23516_v6  ;;  %v17413_v2 = vadd.f32 %v17638_v23, %v17411_v12  ;;  %v13115_v49 = vpop.permute.xlu0 %13114 }
0x75d1   :  { %v4446_v33 = vmul.f32 %v21120_v45, %v23520_v62  ;;  %v13107_v15 = vpop.permute.xlu1 %13106  ;;  %v17412_v13 = vadd.f32 %v17638_v23, %v17410_v48 }
0x75d2   :  { %v4453_v16 = vmul.f32 %v17533_v53, %v4447_v40  ;;  %17418 = vrot.lane.b32.xlu1 %v17413_v2, %s21282_s17 }
0x75d3   :  { %v21122_v38 = vpop.eup %21121  ;;  %v4452_v43 = vmul.f32 %v17533_v53, %v4446_v33  ;;  %17416 = vrot.lane.b32.xlu0 %v17412_v13, %s21282_s17 }
0x75d4   :  { %v21124_v52 = vpop.eup %21123  ;;  %v13094_v55 = vmul.f32 %v21122_v38, %v23528_v30  ;;  %v4459_v28 = vadd.f32 %v17534_v20, %v4453_v16  ;;  %v8787_v44 = vpop.permute.xlu0 %8786 }
0x75d5   :  { %v13093_v6 = vmul.f32 %v21124_v52, %v23532_v17  ;;  %v4458_v34 = vadd.f32 %v17534_v20, %v4452_v43  ;;  %v4478_v62 = vpop.permute.xlu1 %4477 }
0x75d6   :  { %v13096_v3 = vmul.f32 %v17533_v53, %v13094_v55  ;;  %4461 = vst.msk [vmem:[%s23635_s6 + $0x8] sm:$0xff] %vm128_vm0, %v4459_v28 }
0x75d7   :  { %v13095_v8 = vmul.f32 %v17533_v53, %v13093_v6  ;;  %4472 = vst.msk [vmem:[%s23635_s6 + $0x8] sm:$0xff] %vm4470_vm6, %v4467_v0 }
0x75d8   :  { %4460 = vst.msk [vmem:[%s23635_s6] sm:$0xff] %vm128_vm0, %v4458_v34  ;;  %v13098_v30 = vadd.f32 %v17534_v20, %v13096_v3 }
0x75d9   :  { %4471 = vst.msk [vmem:[%s23635_s6] sm:$0xff] %vm4470_vm6, %v4465_v26  ;;  %v13097_v17 = vadd.f32 %v17534_v20, %v13095_v8  ;;  %v13117_v51 = vpop.permute.xlu1 %13116 }
0x75da   :  { %4483 = vst.msk [vmem:[%s23635_s6 + $0x8] sm:$0xff] %vm4481_vm7, %v4478_v62  ;;  %4482 = vst.msk [vmem:[%s23635_s6] sm:$0xff] %vm4481_vm7, %v4476_v5 }
0x75db   :  { %17742 = vst.msk [vmem:[%s23635_s6 + $0x18] sm:$0xff] %vm128_vm0, %v13098_v30  ;;  %17741 = vst.msk [vmem:[%s23635_s6 + $0x10] sm:$0xff] %vm128_vm0, %v13097_v17 }
0x75dc   :  { %8793 = vst.msk [vmem:[%s23635_s6] sm:$0xff] %vm8792_vm8, %v8787_v44 }
0x75dd   :  { %17744 = vst.msk [vmem:[%s23635_s6 + $0x18] sm:$0xff] %vm4470_vm6, %v13107_v15  ;;  %17743 = vst.msk [vmem:[%s23635_s6 + $0x10] sm:$0xff] %vm4470_vm6, %v13105_v37  ;;  %v8789_v14 = vpop.permute.xlu1 %8788 }
0x75de   :  { %17746 = vst.msk [vmem:[%s23635_s6 + $0x18] sm:$0xff] %vm4481_vm7, %v13117_v51  ;;  %17745 = vst.msk [vmem:[%s23635_s6 + $0x10] sm:$0xff] %vm4481_vm7, %v13115_v49 }
0x75df   :  { %8794 = vst.msk [vmem:[%s23635_s6 + $0x8] sm:$0xff] %vm8792_vm8, %v8789_v14 }
0x7644   :  { %v17419_v22 = vpop.permute.xlu1 %17418 }
0x7645   :  { %17850 = vst.msk [vmem:[%s23635_s6 + $0x18] sm:$0xff] %vm8792_vm8, %v17419_v22  ;;  %v17417_v24 = vpop.permute.xlu0 %17416 }
0x7646   :  { %17849 = vst.msk [vmem:[%s23635_s6 + $0x10] sm:$0xff] %vm8792_vm8, %v17417_v24 }
0x7647   :  { %17428 = vsyncpa [#allocation3], 1 }
0x7648   :  { %17429 = vsyncpa [#allocation5], 1 }
0x7649   :  { %17430 = vsyncpa [#allocation8], 1 }

</bundles_post_ra>
